<compile_context>
chip_gen: v7x
topology: tpu7x:2x2x1
jax: 0.10.0
libtpu: 0.0.40
codegen_flags: <defaults>
</compile_context>

<pallas_src>
import jax
import jax.numpy as jnp
from jax.experimental import pallas as pl
from jax.experimental.pallas import tpu as pltpu

# -----------------------------------------------------------------------------
# Static network geometry (fixed by Linear(17024, 128)).
# -----------------------------------------------------------------------------
FLAT_K = 17024                    # 64 * 14 * 19 (conv3 output, flattened)
FC_HIDDEN = 128
FC_OUT = 4
NUM_H_SPLITS = 2                  # shard FC1 columns across 2 TCs (v7x megacore)
H_HALF = FC_HIDDEN // NUM_H_SPLITS
FC_K_STEPS = 2                    # K-grid steps for the FC1 contraction
# tk must be a multiple of 128 (lane constraint); pad K so it divides evenly.
FC_TK = pl.cdiv(pl.cdiv(FLAT_K, FC_K_STEPS), 128) * 128      # 8576
FC_K_PAD = FC_TK * FC_K_STEPS                                 # 17152


# -----------------------------------------------------------------------------
# Kernel 1: out = relu(x @ w + b), tiled over M (the three convs after im2col).
# x/w bf16, accumulate f32, output bf16.
# -----------------------------------------------------------------------------
def _matmul_bias_relu_kernel(x_ref, w_ref, b_ref, o_ref):
    acc = jnp.dot(x_ref[...], w_ref[...], preferred_element_type=jnp.float32)
    acc = jnp.maximum(acc + b_ref[...], 0.0)          # bias + ReLU in f32
    o_ref[...] = acc.astype(o_ref.dtype)


def _pick_m_tiling(m, *, max_tm=8192, min_blocks=2):
    """Pick an M tile so every grid step is full-width (no ragged tail) and
    there are >= min_blocks blocks (lets 'parallel' shard over v7x's 2 TCs)."""
    nblk = max(min_blocks, pl.cdiv(m, max_tm))
    tm = pl.cdiv(pl.cdiv(m, nblk), 8) * 8             # sublane-aligned
    return tm, nblk, tm * nblk


def matmul_bias_relu(x, w, b, *, max_tm=8192):
    """x: (M, K) bf16, w: (K, N) bf16, b: (1, N) f32 -> (M, N) bf16."""
    m, k = x.shape
    kw, n = w.shape
    assert k == kw, (k, kw)
    tm, nblk, m_pad = _pick_m_tiling(m, max_tm=max_tm)
    if m_pad != m:                                     # pad: every block full-width
        x = jnp.pad(x, ((0, m_pad - m), (0, 0)))
    out = pl.pallas_call(
        _matmul_bias_relu_kernel,
        out_shape=jax.ShapeDtypeStruct((m_pad, n), jnp.bfloat16),
        grid=(nblk,),
        in_specs=[
            pl.BlockSpec((tm, k), lambda i: (i, 0)),   # patches: tiled over M
            pl.BlockSpec((k, n), lambda i: (0, 0)),    # weight: resident
            pl.BlockSpec((1, n), lambda i: (0, 0)),    # bias: resident
        ],
        out_specs=pl.BlockSpec((tm, n), lambda i: (i, 0)),
        compiler_params=pltpu.CompilerParams(
            dimension_semantics=("parallel",)),
    )(x, w, b)
    return out[:m] if m_pad != m else out


# -----------------------------------------------------------------------------
# Kernel 2: fused FC head, split over FC1 column halves (grid axis 0, parallel)
# and the K=17152 (padded) contraction (grid axis 1, arbitrary).
#   acc_h  = sum_k x[:, k-tile] @ W1_h[k-tile, :]          (f32 VMEM scratch)
#   out[h] = relu(acc_h + b1_h) @ W2_h                     (partial logits, f32)
# The (2, B, 4) partials are summed + b2 + sigmoid outside (tiny XLA epilogue).
# -----------------------------------------------------------------------------
def _fc_head_kernel(x_ref, w1_ref, b1_ref, w2_ref, o_ref, acc_ref):
    k = pl.program_id(1)

    @pl.when(k == 0)
    def _():
        acc_ref[...] = jnp.zeros_like(acc_ref)

    acc_ref[...] += jnp.dot(x_ref[...], w1_ref[0],
                            preferred_element_type=jnp.float32)

    @pl.when(k == pl.num_programs(1) - 1)
    def _():
        h = jnp.maximum(acc_ref[...] + b1_ref[0], 0.0)       # (B, 64) f32
        h = h.astype(jnp.bfloat16)
        o_ref[0] = jnp.dot(h, w2_ref[0], preferred_element_type=jnp.float32)


def fc_head_partials(x, w1, b1, w2):
    """x:(B,K_PAD) bf16, w1:(2,K_PAD,64) bf16, b1:(2,1,64) f32, w2:(2,64,4) bf16
    -> (2, B, 4) f32 partial logits (one slab per FC1 column half)."""
    bsz, k = x.shape
    nh, kw, hh = w1.shape
    assert k == FC_K_PAD and kw == FC_K_PAD, (k, kw)
    assert nh == NUM_H_SPLITS and hh == H_HALF, (nh, hh)
    return pl.pallas_call(
        _fc_head_kernel,
        out_shape=jax.ShapeDtypeStruct((NUM_H_SPLITS, bsz, FC_OUT), jnp.float32),
        grid=(NUM_H_SPLITS, FC_K_STEPS),
        in_specs=[
            pl.BlockSpec((bsz, FC_TK), lambda h, k: (0, k)),        # act K-slice
            pl.BlockSpec((1, FC_TK, H_HALF), lambda h, k: (h, k, 0)),  # big weight
            pl.BlockSpec((1, 1, H_HALF), lambda h, k: (h, 0, 0)),   # b1 half
            pl.BlockSpec((1, H_HALF, FC_OUT), lambda h, k: (h, 0, 0)),  # w2 half
        ],
        out_specs=pl.BlockSpec((1, bsz, FC_OUT), lambda h, k: (h, 0, 0)),
        scratch_shapes=[pltpu.VMEM((bsz, H_HALF), jnp.float32)],
        compiler_params=pltpu.CompilerParams(
            dimension_semantics=("parallel", "arbitrary")),
    )(x, w1, b1, w2)


# -----------------------------------------------------------------------------
# im2col (XLA glue, static strided slices): (B,H,W,C) -> (B*OH*OW, KH*KW*C)
# patch ordering (ki, kj, c) — matches the conv weight reshape below.
# -----------------------------------------------------------------------------
def _im2col(x_nhwc, kh, kw, stride):
    b, h, w, c = x_nhwc.shape
    oh = (h - kh) // stride + 1
    ow = (w - kw) // stride + 1
    cols = []
    for i in range(kh):
        for j in range(kw):
            cols.append(
                x_nhwc[:, i: i + stride * oh: stride, j: j + stride * ow: stride, :])
    patches = jnp.concatenate(cols, axis=-1)            # (B, oh, ow, kh*kw*C)
    return patches.reshape(b * oh * ow, kh * kw * c), oh, ow


# -----------------------------------------------------------------------------
# Parameters: PyTorch-shaped init + ONE-TIME prepare (outside jit).
# -----------------------------------------------------------------------------
def init_params(key):
    ks = jax.random.split(key, 10)
    p = {}
    p["w1"] = jax.random.normal(ks[0], (16, 3, 3, 3), jnp.float32) * 0.1
    p["b1"] = jax.random.normal(ks[1], (16,), jnp.float32) * 0.01
    p["w2"] = jax.random.normal(ks[2], (32, 16, 3, 3), jnp.float32) * 0.05
    p["b2"] = jax.random.normal(ks[3], (32,), jnp.float32) * 0.01
    p["w3"] = jax.random.normal(ks[4], (64, 32, 3, 3), jnp.float32) * 0.05
    p["b3"] = jax.random.normal(ks[5], (64,), jnp.float32) * 0.01
    p["wfc1"] = jax.random.normal(ks[6], (128, 17024), jnp.float32) * 0.01
    p["bfc1"] = jax.random.normal(ks[7], (128,), jnp.float32) * 0.01
    p["wfc2"] = jax.random.normal(ks[8], (4, 128), jnp.float32) * 0.05
    p["bfc2"] = jax.random.normal(ks[9], (4,), jnp.float32) * 0.01
    return p


def prepare_params(p):
    """One-time weight prep: matmul layouts, bf16, folded permutes, K pad, H split."""
    def conv_w(w_oihw):
        o, cin, kh, kw = w_oihw.shape
        # (O,Cin,KH,KW) -> (KH,KW,Cin,O) -> (KH*KW*Cin, O): matches im2col order.
        return jnp.transpose(w_oihw, (2, 3, 1, 0)).reshape(kh * kw * cin, o) \
                  .astype(jnp.bfloat16)

    q = {}
    q["w1"] = conv_w(p["w1"]); q["b1"] = p["b1"].reshape(1, -1).astype(jnp.float32)
    q["w2"] = conv_w(p["w2"]); q["b2"] = p["b2"].reshape(1, -1).astype(jnp.float32)
    q["w3"] = conv_w(p["w3"]); q["b3"] = p["b3"].reshape(1, -1).astype(jnp.float32)

    # wfc1: (128, 17024) with columns in NCHW-flatten order (C=64,H=14,W=19).
    # Re-index once so FC1 consumes the conv3 output flattened in NHWC order,
    # transpose to (K,128), zero-pad K to FC_K_PAD, split H=128 into two 64s.
    w = p["wfc1"].reshape(FC_HIDDEN, 64, 14, 19)        # (N, C, H, W)
    w = jnp.transpose(w, (2, 3, 1, 0)).reshape(FLAT_K, FC_HIDDEN)   # (K, N), NHWC rows
    w = jnp.pad(w, ((0, FC_K_PAD - FLAT_K), (0, 0)))    # zero rows -> no-op in dot
    w = w.reshape(FC_K_PAD, NUM_H_SPLITS, H_HALF)
    q["wfc1"] = jnp.transpose(w, (1, 0, 2)).astype(jnp.bfloat16)    # (2, K_PAD, 64)
    q["bfc1"] = p["bfc1"].reshape(NUM_H_SPLITS, 1, H_HALF).astype(jnp.float32)

    w2 = jnp.transpose(p["wfc2"])                       # (128, 4)
    q["wfc2"] = w2.reshape(NUM_H_SPLITS, H_HALF, FC_OUT).astype(jnp.bfloat16)
    q["bfc2"] = p["bfc2"].reshape(1, FC_OUT).astype(jnp.float32)
    return jax.tree_util.tree_map(jnp.asarray, q)


# -----------------------------------------------------------------------------
# Full forward pass (input in PyTorch NCHW layout, prepared params).
# -----------------------------------------------------------------------------
@jax.jit
def simple_cnn_forward(x_nchw, params):
    bsz = x_nchw.shape[0]
    x = jnp.transpose(x_nchw, (0, 2, 3, 1)).astype(jnp.bfloat16)   # NHWC bf16

    p, oh, ow = _im2col(x, 3, 3, 2)
    x = matmul_bias_relu(p, params["w1"], params["b1"]).reshape(bsz, oh, ow, 16)

    p, oh, ow = _im2col(x, 3, 3, 2)
    x = matmul_bias_relu(p, params["w2"], params["b2"]).reshape(bsz, oh, ow, 32)

    p, oh, ow = _im2col(x, 3, 3, 2)
    x = matmul_bias_relu(p, params["w3"], params["b3"]).reshape(bsz, oh, ow, 64)

    # Flatten directly in NHWC order — the NCHW permutation is baked into wfc1.
    flat = x.reshape(bsz, oh * ow * 64)                             # (B, 17024) bf16
    flat = jnp.pad(flat, ((0, 0), (0, FC_K_PAD - FLAT_K)))          # (B, 17152)

    partials = fc_head_partials(flat, params["wfc1"], params["bfc1"],
                                params["wfc2"])                     # (2, B, 4) f32
    # Tiny XLA epilogue: combine the two TC halves, add bias, sigmoid.
    return jax.nn.sigmoid(jnp.sum(partials, axis=0) + params["bfc2"])   # (B, 4) f32


# -----------------------------------------------------------------------------
# Pure-JAX f32 reference (PyTorch semantics) for a correctness check.
# -----------------------------------------------------------------------------
@jax.jit
def reference_forward(x_nchw, p):
    hp = jax.lax.Precision.HIGHEST

    def conv(x, w, b):
        y = jax.lax.conv_general_dilated(
            x, w, window_strides=(2, 2), padding="VALID",
            dimension_numbers=("NCHW", "OIHW", "NCHW"), precision=hp)
        return jnp.maximum(y + b[None, :, None, None], 0.0)

    x = conv(x_nchw, p["w1"], p["b1"])
    x = conv(x, p["w2"], p["b2"])
    x = conv(x, p["w3"], p["b3"])
    x = x.reshape(x.shape[0], -1)                                   # NCHW flatten
    h = jnp.maximum(jnp.dot(x, p["wfc1"].T, precision=hp) + p["bfc1"], 0.0)
    logits = jnp.dot(h, p["wfc2"].T, precision=hp) + p["bfc2"]
    return jax.nn.sigmoid(logits)


if __name__ == "__main__":
    key = jax.random.PRNGKey(0)
    # Input shape is pinned by Linear(17024, 128): (B, 3, 120, 160); batch = 2.
    x = jax.random.normal(key, (2, 3, 120, 160), jnp.float32)

    raw_params = init_params(jax.random.PRNGKey(42))
    params = prepare_params(raw_params)        # one-time, outside the jitted path

    out = simple_cnn_forward(x, params)
    out = jax.block_until_ready(out)

    assert out.shape == (2, 4), out.shape
    assert out.dtype == jnp.float32
    assert bool(jnp.all(jnp.isfinite(out)))
    assert bool(jnp.all((out >= 0.0) & (out <= 1.0)))   # sigmoid output range

    ref = jax.block_until_ready(reference_forward(x, raw_params))
    max_err = float(jnp.max(jnp.abs(out - ref)))
    assert max_err < 0.02, f"max abs err vs f32 reference: {max_err}"

    print("KERNEL_OK")
</pallas_src>

<mosaic_0001>
module attributes {stable_mosaic.version = 11 : i64} {
  func.func @_matmul_bias_relu_kernel(%arg0: i32, %arg1: memref<4664x27xbf16, #tpu.memory_space<vmem>>, %arg2: memref<27x16xbf16, #tpu.memory_space<vmem>>, %arg3: memref<1x16xf32, #tpu.memory_space<vmem>>, %arg4: memref<4664x16xbf16, #tpu.memory_space<vmem>>) attributes {dimension_semantics = [#tpu.dimension_semantics<parallel>], iteration_bounds = array<i64: 2>, scalar_prefetch = 0 : i64, scratch_operands = 0 : i64, tpu.core_type = #tpu.core_type<tc>, window_params = [{transform_indices = @transform_0, window_bounds = array<i64: 4664, 27>}, {pipeline_mode = #tpu.pipeline_mode<synchronous>, transform_indices = @transform_1, window_bounds = array<i64: 27, 16>}, {pipeline_mode = #tpu.pipeline_mode<synchronous>, transform_indices = @transform_2, window_bounds = array<i64: 1, 16>}, {transform_indices = @transform_3, window_bounds = array<i64: 4664, 16>}]} {
    %c0 = arith.constant 0 : index
    %c0_0 = arith.constant 0 : index
    %0 = vector.load %arg1[%c0, %c0_0] : memref<4664x27xbf16, #tpu.memory_space<vmem>>, vector<4664x27xbf16>
    %c0_1 = arith.constant 0 : index
    %c0_2 = arith.constant 0 : index
    %1 = vector.load %arg2[%c0_1, %c0_2] : memref<27x16xbf16, #tpu.memory_space<vmem>>, vector<27x16xbf16>
    %cst = arith.constant dense<0.000000e+00> : vector<4664x16xf32>
    %2 = tpu.matmul %0, %1, %cst {dimension_numbers = #tpu.dot_dimension_numbers<[1], [0], [0], [1], [0, 0, 1, 1], [], []>} : vector<4664x27xbf16>, vector<27x16xbf16>, vector<4664x16xf32> -> vector<4664x16xf32>
    %c0_3 = arith.constant 0 : index
    %c0_4 = arith.constant 0 : index
    %3 = vector.load %arg3[%c0_3, %c0_4] : memref<1x16xf32, #tpu.memory_space<vmem>>, vector<1x16xf32>
    %4 = vector.broadcast %3 : vector<1x16xf32> to vector<4664x16xf32>
    %5 = arith.addf %2, %4 : vector<4664x16xf32>
    %cst_5 = arith.constant 0.000000e+00 : f32
    %6 = vector.broadcast %cst_5 : f32 to vector<4664x16xf32>
    %7 = arith.maximumf %5, %6 : vector<4664x16xf32>
    %8 = arith.truncf %7 : vector<4664x16xf32> to vector<4664x16xbf16>
    %c0_6 = arith.constant 0 : index
    %c0_7 = arith.constant 0 : index
    %9 = vector.load %arg4[%c0_6, %c0_7] : memref<4664x16xbf16, #tpu.memory_space<vmem>>, vector<4664x16xbf16>
    tpu.vector_store %arg4[%c0_6, %c0_7], %8 {strides = array<i32>} : memref<4664x16xbf16, #tpu.memory_space<vmem>>, vector<4664x16xbf16>,
    return
  }
  func.func @transform_0(%arg0: i32) -> (i32, i32) {
    %c0_i32 = arith.constant 0 : i32
    %c0_i32_0 = arith.constant 0 : i32
    return %arg0, %c0_i32 : i32, i32
  }
  func.func @transform_1(%arg0: i32) -> (i32, i32) {
    %c0_i32 = arith.constant 0 : i32
    %c0_i32_0 = arith.constant 0 : i32
    %c0_i32_1 = arith.constant 0 : i32
    return %c0_i32, %c0_i32_0 : i32, i32
  }
  func.func @transform_2(%arg0: i32) -> (i32, i32) {
    %c0_i32 = arith.constant 0 : i32
    %c0_i32_0 = arith.constant 0 : i32
    %c0_i32_1 = arith.constant 0 : i32
    return %c0_i32, %c0_i32_0 : i32, i32
  }
  func.func @transform_3(%arg0: i32) -> (i32, i32) {
    %c0_i32 = arith.constant 0 : i32
    %c0_i32_0 = arith.constant 0 : i32
    return %arg0, %c0_i32 : i32, i32
  }
}

module attributes {stable_mosaic.version = 11 : i64} {
  func.func @_matmul_bias_relu_kernel(%arg0: i32, %arg1: memref<1136x144xbf16, #tpu.memory_space<vmem>>, %arg2: memref<144x32xbf16, #tpu.memory_space<vmem>>, %arg3: memref<1x32xf32, #tpu.memory_space<vmem>>, %arg4: memref<1136x32xbf16, #tpu.memory_space<vmem>>) attributes {dimension_semantics = [#tpu.dimension_semantics<parallel>], iteration_bounds = array<i64: 2>, scalar_prefetch = 0 : i64, scratch_operands = 0 : i64, tpu.core_type = #tpu.core_type<tc>, window_params = [{transform_indices = @transform_0, window_bounds = array<i64: 1136, 144>}, {pipeline_mode = #tpu.pipeline_mode<synchronous>, transform_indices = @transform_1, window_bounds = array<i64: 144, 32>}, {pipeline_mode = #tpu.pipeline_mode<synchronous>, transform_indices = @transform_2, window_bounds = array<i64: 1, 32>}, {transform_indices = @transform_3, window_bounds = array<i64: 1136, 32>}]} {
    %c0 = arith.constant 0 : index
    %c0_0 = arith.constant 0 : index
    %0 = vector.load %arg1[%c0, %c0_0] : memref<1136x144xbf16, #tpu.memory_space<vmem>>, vector<1136x144xbf16>
    %c0_1 = arith.constant 0 : index
    %c0_2 = arith.constant 0 : index
    %1 = vector.load %arg2[%c0_1, %c0_2] : memref<144x32xbf16, #tpu.memory_space<vmem>>, vector<144x32xbf16>
    %cst = arith.constant dense<0.000000e+00> : vector<1136x32xf32>
    %2 = tpu.matmul %0, %1, %cst {dimension_numbers = #tpu.dot_dimension_numbers<[1], [0], [0], [1], [0, 0, 1, 1], [], []>} : vector<1136x144xbf16>, vector<144x32xbf16>, vector<1136x32xf32> -> vector<1136x32xf32>
    %c0_3 = arith.constant 0 : index
    %c0_4 = arith.constant 0 : index
    %3 = vector.load %arg3[%c0_3, %c0_4] : memref<1x32xf32, #tpu.memory_space<vmem>>, vector<1x32xf32>
    %4 = vector.broadcast %3 : vector<1x32xf32> to vector<1136x32xf32>
    %5 = arith.addf %2, %4 : vector<1136x32xf32>
    %cst_5 = arith.constant 0.000000e+00 : f32
    %6 = vector.broadcast %cst_5 : f32 to vector<1136x32xf32>
    %7 = arith.maximumf %5, %6 : vector<1136x32xf32>
    %8 = arith.truncf %7 : vector<1136x32xf32> to vector<1136x32xbf16>
    %c0_6 = arith.constant 0 : index
    %c0_7 = arith.constant 0 : index
    %9 = vector.load %arg4[%c0_6, %c0_7] : memref<1136x32xbf16, #tpu.memory_space<vmem>>, vector<1136x32xbf16>
    tpu.vector_store %arg4[%c0_6, %c0_7], %8 {strides = array<i32>} : memref<1136x32xbf16, #tpu.memory_space<vmem>>, vector<1136x32xbf16>,
    return
  }
  func.func @transform_0(%arg0: i32) -> (i32, i32) {
    %c0_i32 = arith.constant 0 : i32
    %c0_i32_0 = arith.constant 0 : i32
    return %arg0, %c0_i32 : i32, i32
  }
  func.func @transform_1(%arg0: i32) -> (i32, i32) {
    %c0_i32 = arith.constant 0 : i32
    %c0_i32_0 = arith.constant 0 : i32
    %c0_i32_1 = arith.constant 0 : i32
    return %c0_i32, %c0_i32_0 : i32, i32
  }
  func.func @transform_2(%arg0: i32) -> (i32, i32) {
    %c0_i32 = arith.constant 0 : i32
    %c0_i32_0 = arith.constant 0 : i32
    %c0_i32_1 = arith.constant 0 : i32
    return %c0_i32, %c0_i32_0 : i32, i32
  }
  func.func @transform_3(%arg0: i32) -> (i32, i32) {
    %c0_i32 = arith.constant 0 : i32
    %c0_i32_0 = arith.constant 0 : i32
    return %arg0, %c0_i32 : i32, i32
  }
}

module attributes {stable_mosaic.version = 11 : i64} {
  func.func @_matmul_bias_relu_kernel(%arg0: i32, %arg1: memref<272x288xbf16, #tpu.memory_space<vmem>>, %arg2: memref<288x64xbf16, #tpu.memory_space<vmem>>, %arg3: memref<1x64xf32, #tpu.memory_space<vmem>>, %arg4: memref<272x64xbf16, #tpu.memory_space<vmem>>) attributes {dimension_semantics = [#tpu.dimension_semantics<parallel>], iteration_bounds = array<i64: 2>, scalar_prefetch = 0 : i64, scratch_operands = 0 : i64, tpu.core_type = #tpu.core_type<tc>, window_params = [{transform_indices = @transform_0, window_bounds = array<i64: 272, 288>}, {pipeline_mode = #tpu.pipeline_mode<synchronous>, transform_indices = @transform_1, window_bounds = array<i64: 288, 64>}, {pipeline_mode = #tpu.pipeline_mode<synchronous>, transform_indices = @transform_2, window_bounds = array<i64: 1, 64>}, {transform_indices = @transform_3, window_bounds = array<i64: 272, 64>}]} {
    %c0 = arith.constant 0 : index
    %c0_0 = arith.constant 0 : index
    %0 = vector.load %arg1[%c0, %c0_0] : memref<272x288xbf16, #tpu.memory_space<vmem>>, vector<272x288xbf16>
    %c0_1 = arith.constant 0 : index
    %c0_2 = arith.constant 0 : index
    %1 = vector.load %arg2[%c0_1, %c0_2] : memref<288x64xbf16, #tpu.memory_space<vmem>>, vector<288x64xbf16>
    %cst = arith.constant dense<0.000000e+00> : vector<272x64xf32>
    %2 = tpu.matmul %0, %1, %cst {dimension_numbers = #tpu.dot_dimension_numbers<[1], [0], [0], [1], [0, 0, 1, 1], [], []>} : vector<272x288xbf16>, vector<288x64xbf16>, vector<272x64xf32> -> vector<272x64xf32>
    %c0_3 = arith.constant 0 : index
    %c0_4 = arith.constant 0 : index
    %3 = vector.load %arg3[%c0_3, %c0_4] : memref<1x64xf32, #tpu.memory_space<vmem>>, vector<1x64xf32>
    %4 = vector.broadcast %3 : vector<1x64xf32> to vector<272x64xf32>
    %5 = arith.addf %2, %4 : vector<272x64xf32>
    %cst_5 = arith.constant 0.000000e+00 : f32
    %6 = vector.broadcast %cst_5 : f32 to vector<272x64xf32>
    %7 = arith.maximumf %5, %6 : vector<272x64xf32>
    %8 = arith.truncf %7 : vector<272x64xf32> to vector<272x64xbf16>
    %c0_6 = arith.constant 0 : index
    %c0_7 = arith.constant 0 : index
    %9 = vector.load %arg4[%c0_6, %c0_7] : memref<272x64xbf16, #tpu.memory_space<vmem>>, vector<272x64xbf16>
    tpu.vector_store %arg4[%c0_6, %c0_7], %8 {strides = array<i32>} : memref<272x64xbf16, #tpu.memory_space<vmem>>, vector<272x64xbf16>,
    return
  }
  func.func @transform_0(%arg0: i32) -> (i32, i32) {
    %c0_i32 = arith.constant 0 : i32
    %c0_i32_0 = arith.constant 0 : i32
    return %arg0, %c0_i32 : i32, i32
  }
  func.func @transform_1(%arg0: i32) -> (i32, i32) {
    %c0_i32 = arith.constant 0 : i32
    %c0_i32_0 = arith.constant 0 : i32
    %c0_i32_1 = arith.constant 0 : i32
    return %c0_i32, %c0_i32_0 : i32, i32
  }
  func.func @transform_2(%arg0: i32) -> (i32, i32) {
    %c0_i32 = arith.constant 0 : i32
    %c0_i32_0 = arith.constant 0 : i32
    %c0_i32_1 = arith.constant 0 : i32
    return %c0_i32, %c0_i32_0 : i32, i32
  }
  func.func @transform_3(%arg0: i32) -> (i32, i32) {
    %c0_i32 = arith.constant 0 : i32
    %c0_i32_0 = arith.constant 0 : i32
    return %arg0, %c0_i32 : i32, i32
  }
}

module attributes {stable_mosaic.version = 11 : i64} {
  func.func @_fc_head_kernel(%arg0: i32, %arg1: i32, %arg2: memref<2x8576xbf16, #tpu.memory_space<vmem>>, %arg3: memref<1x8576x64xbf16, #tpu.memory_space<vmem>>, %arg4: memref<1x1x64xf32, #tpu.memory_space<vmem>>, %arg5: memref<1x64x4xbf16, #tpu.memory_space<vmem>>, %arg6: memref<1x2x4xf32, #tpu.memory_space<vmem>>, %arg7: memref<2x64xf32, #tpu.memory_space<vmem>>) attributes {dimension_semantics = [#tpu.dimension_semantics<parallel>, #tpu.dimension_semantics<arbitrary>], iteration_bounds = array<i64: 2, 2>, scalar_prefetch = 0 : i64, scratch_operands = 1 : i64, tpu.core_type = #tpu.core_type<tc>, window_params = [{transform_indices = @transform_0, window_bounds = array<i64: 2, 8576>}, {transform_indices = @transform_1, window_bounds = array<i64: 1, 8576, 64>}, {transform_indices = @transform_2, window_bounds = array<i64: 1, 1, 64>}, {transform_indices = @transform_3, window_bounds = array<i64: 1, 64, 4>}, {transform_indices = @transform_4, window_bounds = array<i64: 1, 2, 4>}]} {
    %c0_i32 = arith.constant 0 : i32
    %0 = arith.cmpi eq, %arg1, %c0_i32 : i32
    %1 = arith.extui %0 : i1 to i32
    %c0_i32_0 = arith.constant 0 : i32
    %2 = arith.cmpi ne, %1, %c0_i32_0 : i32
    scf.if %2 {
      %cst_10 = arith.constant 0.000000e+00 : f32
      %13 = vector.broadcast %cst_10 : f32 to vector<2x64xf32>
      %c0_11 = arith.constant 0 : index
      %c0_12 = arith.constant 0 : index
      %14 = vector.load %arg7[%c0_11, %c0_12] : memref<2x64xf32, #tpu.memory_space<vmem>>, vector<2x64xf32>
      tpu.vector_store %arg7[%c0_11, %c0_12], %13 {strides = array<i32>} : memref<2x64xf32, #tpu.memory_space<vmem>>, vector<2x64xf32>,
    } else {
    }
    %c0 = arith.constant 0 : index
    %c0_1 = arith.constant 0 : index
    %3 = vector.load %arg7[%c0, %c0_1] : memref<2x64xf32, #tpu.memory_space<vmem>>, vector<2x64xf32>
    %c0_2 = arith.constant 0 : index
    %c0_3 = arith.constant 0 : index
    %4 = vector.load %arg2[%c0_2, %c0_3] : memref<2x8576xbf16, #tpu.memory_space<vmem>>, vector<2x8576xbf16>
    %c0_4 = arith.constant 0 : index
    %c0_5 = arith.constant 0 : index
    %c0_6 = arith.constant 0 : index
    %5 = vector.load %arg3[%c0_4, %c0_5, %c0_6] : memref<1x8576x64xbf16, #tpu.memory_space<vmem>>, vector<1x8576x64xbf16>
    %6 = vector.shape_cast %5 : vector<1x8576x64xbf16> to vector<8576x64xbf16>
    %cst = arith.constant dense<0.000000e+00> : vector<2x64xf32>
    %7 = tpu.matmul %4, %6, %cst {dimension_numbers = #tpu.dot_dimension_numbers<[1], [0], [0], [1], [0, 0, 1, 1], [], []>} : vector<2x8576xbf16>, vector<8576x64xbf16>, vector<2x64xf32> -> vector<2x64xf32>
    %8 = arith.addf %3, %7 : vector<2x64xf32>
    %c0_7 = arith.constant 0 : index
    %c0_8 = arith.constant 0 : index
    %9 = vector.load %arg7[%c0_7, %c0_8] : memref<2x64xf32, #tpu.memory_space<vmem>>, vector<2x64xf32>
    tpu.vector_store %arg7[%c0_7, %c0_8], %8 {strides = array<i32>} : memref<2x64xf32, #tpu.memory_space<vmem>>, vector<2x64xf32>,
    %c1_i32 = arith.constant 1 : i32
    %10 = arith.cmpi eq, %arg1, %c1_i32 : i32
    %11 = arith.extui %10 : i1 to i32
    %c0_i32_9 = arith.constant 0 : i32
    %12 = arith.cmpi ne, %11, %c0_i32_9 : i32
    scf.if %12 {
      %c0_10 = arith.constant 0 : index
      %c0_11 = arith.constant 0 : index
      %13 = vector.load %arg7[%c0_10, %c0_11] : memref<2x64xf32, #tpu.memory_space<vmem>>, vector<2x64xf32>
      %c0_12 = arith.constant 0 : index
      %c0_13 = arith.constant 0 : index
      %c0_14 = arith.constant 0 : index
      %14 = vector.load %arg4[%c0_12, %c0_13, %c0_14] : memref<1x1x64xf32, #tpu.memory_space<vmem>>, vector<1x1x64xf32>
      %15 = vector.shape_cast %14 : vector<1x1x64xf32> to vector<1x64xf32>
      %16 = vector.broadcast %15 : vector<1x64xf32> to vector<2x64xf32>
      %17 = arith.addf %13, %16 : vector<2x64xf32>
      %cst_15 = arith.constant 0.000000e+00 : f32
      %18 = vector.broadcast %cst_15 : f32 to vector<2x64xf32>
      %19 = arith.maximumf %17, %18 : vector<2x64xf32>
      %20 = arith.truncf %19 : vector<2x64xf32> to vector<2x64xbf16>
      %c0_16 = arith.constant 0 : index
      %c0_17 = arith.constant 0 : index
      %c0_18 = arith.constant 0 : index
      %21 = vector.load %arg5[%c0_16, %c0_17, %c0_18] : memref<1x64x4xbf16, #tpu.memory_space<vmem>>, vector<1x64x4xbf16>
      %22 = vector.shape_cast %21 : vector<1x64x4xbf16> to vector<64x4xbf16>
      %cst_19 = arith.constant dense<0.000000e+00> : vector<2x4xf32>
      %23 = tpu.matmul %20, %22, %cst_19 {dimension_numbers = #tpu.dot_dimension_numbers<[1], [0], [0], [1], [0, 0, 1, 1], [], []>} : vector<2x64xbf16>, vector<64x4xbf16>, vector<2x4xf32> -> vector<2x4xf32>
      %c0_20 = arith.constant 0 : index
      %c0_21 = arith.constant 0 : index
      %c0_22 = arith.constant 0 : index
      %24 = vector.load %arg6[%c0_20, %c0_21, %c0_22] : memref<1x2x4xf32, #tpu.memory_space<vmem>>, vector<1x2x4xf32>
      %25 = vector.shape_cast %24 : vector<1x2x4xf32> to vector<2x4xf32>
      %26 = vector.shape_cast %23 : vector<2x4xf32> to vector<1x2x4xf32>
      tpu.vector_store %arg6[%c0_20, %c0_21, %c0_22], %26 {strides = array<i32>} : memref<1x2x4xf32, #tpu.memory_space<vmem>>, vector<1x2x4xf32>,
    } else {
    }
    return
  }
  func.func @transform_0(%arg0: i32, %arg1: i32) -> (i32, i32) {
    %c0_i32 = arith.constant 0 : i32
    %c0_i32_0 = arith.constant 0 : i32
    return %c0_i32, %arg1 : i32, i32
  }
  func.func @transform_1(%arg0: i32, %arg1: i32) -> (i32, i32, i32) {
    %c0_i32 = arith.constant 0 : i32
    %c0_i32_0 = arith.constant 0 : i32
    return %arg0, %arg1, %c0_i32 : i32, i32, i32
  }
  func.func @transform_2(%arg0: i32, %arg1: i32) -> (i32, i32, i32) {
    %c0_i32 = arith.constant 0 : i32
    %c0_i32_0 = arith.constant 0 : i32
    %c0_i32_1 = arith.constant 0 : i32
    return %arg0, %c0_i32, %c0_i32_0 : i32, i32, i32
  }
  func.func @transform_3(%arg0: i32, %arg1: i32) -> (i32, i32, i32) {
    %c0_i32 = arith.constant 0 : i32
    %c0_i32_0 = arith.constant 0 : i32
    %c0_i32_1 = arith.constant 0 : i32
    return %arg0, %c0_i32, %c0_i32_0 : i32, i32, i32
  }
  func.func @transform_4(%arg0: i32, %arg1: i32) -> (i32, i32, i32) {
    %c0_i32 = arith.constant 0 : i32
    %c0_i32_0 = arith.constant 0 : i32
    %c0_i32_1 = arith.constant 0 : i32
    return %arg0, %c0_i32, %c0_i32_0 : i32, i32, i32
  }
}

</mosaic_0001>

<bundles_post_ra>
// kernel: simple_cnn_forward.4
= control target key start
LH: loop header
LB: loop body
LE: loop exit
PB: predicated region body
PF: predicated region fallthrough
CT: control target
= control target key end

     0   :  { %s12032_s12 = smov 0   ;;  %s14434_s0 = inlined_call_operand.vmem [shape: bf16[9328,27], index: 0, kind: input, shape index: {}]   ;;  %s14435_s1 = inlined_call_operand.vmem [shape: bf16[27,16], index: 1, kind: input, shape index: {}]   ;;  %s14436_s2 = inlined_call_operand.vmem [shape: f32[1,16], index: 2, kind: input, shape index: {}]   ;;  %s14437_s3 = inlined_call_operand.vmem [shape: bf16[9328,16], index: 3, kind: output, shape index: {}]  }
   0x1 LB: > { %s9046_s13 = sadd.s32 4294967295, %s12009_s12   ;;  %p9050_p0 = scmp.ge.s32.totalorder %s12009_s12, 1  ;;  %s12009_s12 = sphi %s12032_s12, %s13_s12  }
   0x2   : > { %p138_p1 = scmp.lt.s32.totalorder %s12009_s12, 3 }
   0x4   : > { %p139_p2 = pnand %p9050_p0, %p138_p1 }
   0x5   : > { %v11703_v0 = vld [vmem:[%s14435_s1] sm:$0xff] (!%p139_p2)   ;;  %vm3115_vm0 = vcmask (!%p139_p2), 1044480   ;;  %v11704_v1 = vld [vmem:[%s14435_s1 + $0x8] sm:$0x3f] (!%p139_p2)   ;;  %vm3116_vm1 = vcmask (!%p139_p2), 1045504   ;;  %s162_s18 = smul.u32 (!%p139_p2), 583, %s9046_s13 }
   0x6   : > { %142 = sbr.rel (%p139_p2) target bundleno = 816 (0x330), region = 32  ;;  %11102 = vmatprep.subr.bf16.mxu0 (!%p139_p2), %v11703_v0  ;;  %11690 = vmatprep.subr.bf16.mxu1 (!%p139_p2), %v11703_v0  ;;  %v12011_v2 = vmov (!%p139_p2), 65535   ;;  %vm2238_vm2 = vcmask (!%p139_p2), 220160   ;;  %vm8406_vm3 = vcmask (!%p139_p2), 125952  }
   0x7   : > { %11103 = vmatpush3.bf16.msra.mxu0 (!%p139_p2), %v11703_v0  ;;  %11692 = vmatpush3.bf16.msra.mxu1 (!%p139_p2), %v11703_v0  ;;  %v3117_v3 = vsel (!%p139_p2), %vm3115_vm0, 4294967295, %v12011_v2  ;;  %p163_p3 = scmp.lt.s32.totalorder (!%p139_p2), %s162_s18, 1165 }
   0x8   : > { %v3118_v4 = vsel (!%p139_p2), %vm3116_vm1, %v3117_v3, 0 }
   0x9   : > { %v3120_v5 = vand.u32 (!%p139_p2), %v11704_v1, %v3118_v4 }
   0xb   : > { %11104 = vmatprep.subr.bf16.mxu0 (!%p139_p2), %v3120_v5  ;;  %11691 = vmatprep.subr.bf16.mxu1 (!%p139_p2), %v3120_v5 }
   0xc   : > { %11105 = vmatpush3.bf16.msra.mxu0 (!%p139_p2), %v3120_v5  ;;  %11693 = vmatpush3.bf16.msra.mxu1 (!%p139_p2), %v3120_v5 }
   0xd   : > { %s14439_s18 = smov (!%p163_p3, %s162_s18), 1165 }
   0xe   : > { %s9051_s19 = sshll.u32 %s14439_s18, 2 }
   0xf   : > { %s12054_s22 = scalar_lea.vmem %s14434_s0, %s9051_s19  ;;  %s12295_s27 = scalar_lea.vmem %s14437_s3, %s9051_s19 }
  0x10   : > { %v11705_v6 = vld [vmem:[%s12054_s22] sm:$0xff]   ;;  %v11706_v7 = vld [vmem:[%s12054_s22 + $0x490] sm:$0xff]   ;;  %v11707_v8 = vld [vmem:[%s12054_s22 + $0x8] sm:$0xff]  }
  0x11   : > { %11106 = vmatprep.mubr.msk.bf16.mxu0 %vm2238_vm2, %v11705_v6  ;;  %11398 = vmatprep.mubr.msk.bf16.mxu1 %vm2238_vm2, %v11706_v7  ;;  %v11708_v9 = vld [vmem:[%s12054_s22 + $0x498] sm:$0xff]   ;;  %v11709_v10 = vld [vmem:[%s12054_s22 + $0x10] sm:$0xff]   ;;  %v11710_v11 = vld [vmem:[%s12054_s22 + $0x4a0] sm:$0xff]  }
  0x12   : > { %11107 = vmatmul.mubr.msk.bf16.vlgmr.msra.gmra.mrb[0].mxu0 %vm2238_vm2, %v11707_v8  ;;  %11399 = vmatmul.mubr.msk.bf16.vlgmr.msra.gmra.mrb[0].mxu1 %vm2238_vm2, %v11708_v9  ;;  %v11711_v12 = vld [vmem:[%s12054_s22 + $0x18] sm:$0xff]   ;;  %v11712_v13 = vld [vmem:[%s12054_s22 + $0x4a8] sm:$0xff]   ;;  %v11713_v14 = vld [vmem:[%s12054_s22 + $0x20] sm:$0xff]  }
  0x13   : > { %11110 = vmatprep.mubr.msk.bf16.mxu0 %vm2238_vm2, %v11709_v10  ;;  %11402 = vmatprep.mubr.msk.bf16.mxu1 %vm2238_vm2, %v11710_v11  ;;  %v11714_v15 = vld [vmem:[%s12054_s22 + $0x4b0] sm:$0xff]   ;;  %v11715_v16 = vld [vmem:[%s12054_s22 + $0x28] sm:$0xff]   ;;  %v11716_v17 = vld [vmem:[%s12054_s22 + $0x4b8] sm:$0xff]  }
  0x14   : > { %v11717_v18 = vld [vmem:[%s12054_s22 + $0x30] sm:$0xff]   ;;  %v11718_v19 = vld [vmem:[%s12054_s22 + $0x4c0] sm:$0xff]   ;;  %v11719_v20 = vld [vmem:[%s12054_s22 + $0x38] sm:$0xff]  }
  0x15   : > { %v11720_v21 = vld [vmem:[%s12054_s22 + $0x4c8] sm:$0xff]   ;;  %v11721_v22 = vld [vmem:[%s12054_s22 + $0x40] sm:$0xff]   ;;  %v11722_v23 = vld [vmem:[%s12054_s22 + $0x4d0] sm:$0xff]  }
  0x16   : > { %v11723_v24 = vld [vmem:[%s12054_s22 + $0x48] sm:$0xff]   ;;  %v11724_v25 = vld [vmem:[%s12054_s22 + $0x4d8] sm:$0xff]   ;;  %v11725_v26 = vld [vmem:[%s12054_s22 + $0x50] sm:$0xff]  }
  0x17   : > { %v11726_v27 = vld [vmem:[%s12054_s22 + $0x4e0] sm:$0xff]   ;;  %v11727_v28 = vld [vmem:[%s12054_s22 + $0x58] sm:$0xff]   ;;  %v11728_v29 = vld [vmem:[%s12054_s22 + $0x4e8] sm:$0xff]  }
  0x18   : > { %v11729_v30 = vld [vmem:[%s12054_s22 + $0x60] sm:$0xff]   ;;  %v11730_v31 = vld [vmem:[%s12054_s22 + $0x4f0] sm:$0xff]   ;;  %v11731_v32 = vld [vmem:[%s12054_s22 + $0x68] sm:$0xff]  }
  0x19   : > { %v11732_v33 = vld [vmem:[%s12054_s22 + $0x4f8] sm:$0xff]   ;;  %v11733_v34 = vld [vmem:[%s12054_s22 + $0x70] sm:$0xff]   ;;  %v11734_v35 = vld [vmem:[%s12054_s22 + $0x500] sm:$0xff]  }
  0x1a   : > { %11111 = vmatmul.mubr.msk.bf16.gmra.mrb[4].mxu0 %vm2238_vm2, %v11711_v12  ;;  %11403 = vmatmul.mubr.msk.bf16.gmra.mrb[4].mxu1 %vm2238_vm2, %v11712_v13  ;;  %v11735_v36 = vld [vmem:[%s12054_s22 + $0x78] sm:$0xff]   ;;  %v11736_v37 = vld [vmem:[%s12054_s22 + $0x508] sm:$0xff]   ;;  %v11737_v38 = vld [vmem:[%s12054_s22 + $0x80] sm:$0xff]  }
  0x1b   : > { %11114 = vmatprep.mubr.msk.bf16.mxu0 %vm2238_vm2, %v11713_v14  ;;  %11406 = vmatprep.mubr.msk.bf16.mxu1 %vm2238_vm2, %v11714_v15  ;;  %v11738_v39 = vld [vmem:[%s12054_s22 + $0x510] sm:$0xff]   ;;  %v11739_v40 = vld [vmem:[%s12054_s22 + $0x88] sm:$0xff]   ;;  %v11740_v41 = vld [vmem:[%s12054_s22 + $0x518] sm:$0xff]  }
  0x1c   : > { %v11741_v42 = vld [vmem:[%s12054_s22 + $0x90] sm:$0xff]   ;;  %v11742_v43 = vld [vmem:[%s12054_s22 + $0x520] sm:$0xff]   ;;  %v11743_v44 = vld [vmem:[%s12054_s22 + $0x98] sm:$0xff]  }
  0x1d   : > { %v11744_v45 = vld [vmem:[%s12054_s22 + $0x528] sm:$0xff]   ;;  %v11745_v46 = vld [vmem:[%s12054_s22 + $0xa0] sm:$0xff]   ;;  %v11746_v47 = vld [vmem:[%s12054_s22 + $0x530] sm:$0xff]  }
  0x1e   : > { %v11747_v48 = vld [vmem:[%s12054_s22 + $0xa8] sm:$0xff]   ;;  %v11748_v49 = vld [vmem:[%s12054_s22 + $0x538] sm:$0xff]   ;;  %v11749_v50 = vld [vmem:[%s12054_s22 + $0xb0] sm:$0xff]  }
  0x1f   : > { %v11750_v51 = vld [vmem:[%s12054_s22 + $0x540] sm:$0xff]   ;;  %v11751_v52 = vld [vmem:[%s12054_s22 + $0xb8] sm:$0xff]   ;;  %v11752_v53 = vld [vmem:[%s12054_s22 + $0x548] sm:$0xff]  }
  0x20   : > { %v11753_v54 = vld [vmem:[%s12054_s22 + $0xc0] sm:$0xff]   ;;  %v11754_v55 = vld [vmem:[%s12054_s22 + $0x550] sm:$0xff]   ;;  %v11755_v56 = vld [vmem:[%s12054_s22 + $0xc8] sm:$0xff]  }
  0x21   : > { %v11756_v57 = vld [vmem:[%s12054_s22 + $0x558] sm:$0xff]   ;;  %v11757_v58 = vld [vmem:[%s12054_s22 + $0xd0] sm:$0xff]   ;;  %v11758_v59 = vld [vmem:[%s12054_s22 + $0x560] sm:$0xff]  }
  0x22   : > { %11115 = vmatmul.mubr.msk.bf16.gmra.mrb[8].mxu0 %vm2238_vm2, %v11715_v16  ;;  %11407 = vmatmul.mubr.msk.bf16.gmra.mrb[8].mxu1 %vm2238_vm2, %v11716_v17  ;;  %v11759_v60 = vld [vmem:[%s12054_s22 + $0xd8] sm:$0xff]   ;;  %v11760_v61 = vld [vmem:[%s12054_s22 + $0x568] sm:$0xff]   ;;  %v11761_v62 = vld [vmem:[%s12054_s22 + $0xe0] sm:$0xff]  }
  0x23   : > { %11118 = vmatprep.mubr.msk.bf16.mxu0 %vm2238_vm2, %v11717_v18  ;;  %11410 = vmatprep.mubr.msk.bf16.mxu1 %vm2238_vm2, %v11718_v19  ;;  %v11762_v63 = vld [vmem:[%s12054_s22 + $0x570] sm:$0xff]   ;;  %v11763_v0 = vld [vmem:[%s12054_s22 + $0xe8] sm:$0xff]   ;;  %v11764_v1 = vld [vmem:[%s12054_s22 + $0x578] sm:$0xff]  }
  0x24   : > { %v11765_v2 = vld [vmem:[%s12054_s22 + $0xf0] sm:$0xff]   ;;  %v11766_v3 = vld [vmem:[%s12054_s22 + $0x580] sm:$0xff]   ;;  %v11767_v4 = vld [vmem:[%s12054_s22 + $0xf8] sm:$0xff]  }
  0x25   : > { %v11768_v5 = vld [vmem:[%s12054_s22 + $0x588] sm:$0xff]   ;;  %v11769_v6 = vld [vmem:[%s12054_s22 + $0x100] sm:$0xff]   ;;  %v11770_v7 = vld [vmem:[%s12054_s22 + $0x590] sm:$0xff]  }
  0x26   : > { %v11771_v8 = vld [vmem:[%s12054_s22 + $0x108] sm:$0xff]   ;;  %v11772_v9 = vld [vmem:[%s12054_s22 + $0x598] sm:$0xff]   ;;  %v11773_v10 = vld [vmem:[%s12054_s22 + $0x110] sm:$0xff]  }
  0x27   : > { %v11774_v11 = vld [vmem:[%s12054_s22 + $0x5a0] sm:$0xff]   ;;  %v11775_v12 = vld [vmem:[%s12054_s22 + $0x118] sm:$0xff]   ;;  %v11776_v13 = vld [vmem:[%s12054_s22 + $0x5a8] sm:$0xff]  }
  0x28   : > { %v11777_v14 = vld [vmem:[%s12054_s22 + $0x120] sm:$0xff]   ;;  %v11778_v15 = vld [vmem:[%s12054_s22 + $0x5b0] sm:$0xff]   ;;  %v11779_v16 = vld [vmem:[%s12054_s22 + $0x128] sm:$0xff]  }
  0x29   : > { %v11780_v17 = vld [vmem:[%s12054_s22 + $0x5b8] sm:$0xff]   ;;  %v11781_v18 = vld [vmem:[%s12054_s22 + $0x130] sm:$0xff]   ;;  %v11782_v19 = vld [vmem:[%s12054_s22 + $0x5c0] sm:$0xff]  }
  0x2a   : > { %11119 = vmatmul.mubr.msk.bf16.gmra.mrb[12].mxu0 %vm2238_vm2, %v11719_v20  ;;  %11411 = vmatmul.mubr.msk.bf16.gmra.mrb[12].mxu1 %vm2238_vm2, %v11720_v21  ;;  %v11783_v20 = vld [vmem:[%s12054_s22 + $0x138] sm:$0xff]   ;;  %v11784_v21 = vld [vmem:[%s12054_s22 + $0x5c8] sm:$0xff]  }
  0x2b   : > { %11122 = vmatprep.mubr.msk.bf16.mxu0 %vm2238_vm2, %v11721_v22  ;;  %11414 = vmatprep.mubr.msk.bf16.mxu1 %vm2238_vm2, %v11722_v23  ;;  %v11785_v22 = vld [vmem:[%s12054_s22 + $0x140] sm:$0xff]   ;;  %v11786_v23 = vld [vmem:[%s12054_s22 + $0x5d0] sm:$0xff]  }
  0x32   : > { %11123 = vmatmul.mubr.msk.bf16.gmra.mrb[16].mxu0 %vm2238_vm2, %v11723_v24  ;;  %11415 = vmatmul.mubr.msk.bf16.gmra.mrb[16].mxu1 %vm2238_vm2, %v11724_v25  ;;  %v11787_v24 = vld [vmem:[%s12054_s22 + $0x148] sm:$0xff]   ;;  %v11788_v25 = vld [vmem:[%s12054_s22 + $0x5d8] sm:$0xff]  }
  0x33   : > { %11126 = vmatprep.mubr.msk.bf16.mxu0 %vm2238_vm2, %v11725_v26  ;;  %11418 = vmatprep.mubr.msk.bf16.mxu1 %vm2238_vm2, %v11726_v27  ;;  %v11789_v26 = vld [vmem:[%s12054_s22 + $0x150] sm:$0xff]   ;;  %v11790_v27 = vld [vmem:[%s12054_s22 + $0x5e0] sm:$0xff]  }
  0x3a   : > { %11127 = vmatmul.mubr.msk.bf16.gmra.mrb[20].mxu0 %vm2238_vm2, %v11727_v28  ;;  %11419 = vmatmul.mubr.msk.bf16.gmra.mrb[20].mxu1 %vm2238_vm2, %v11728_v29  ;;  %v11791_v28 = vld [vmem:[%s12054_s22 + $0x158] sm:$0xff]   ;;  %v11792_v29 = vld [vmem:[%s12054_s22 + $0x5e8] sm:$0xff]  }
  0x3b   : > { %11130 = vmatprep.mubr.msk.bf16.mxu0 %vm2238_vm2, %v11729_v30  ;;  %11422 = vmatprep.mubr.msk.bf16.mxu1 %vm2238_vm2, %v11730_v31  ;;  %v11793_v30 = vld [vmem:[%s12054_s22 + $0x160] sm:$0xff]   ;;  %v11794_v31 = vld [vmem:[%s12054_s22 + $0x5f0] sm:$0xff]  }
  0x42   : > { %11131 = vmatmul.mubr.msk.bf16.gmra.mrb[24].mxu0 %vm2238_vm2, %v11731_v32  ;;  %11423 = vmatmul.mubr.msk.bf16.gmra.mrb[24].mxu1 %vm2238_vm2, %v11732_v33  ;;  %v11795_v32 = vld [vmem:[%s12054_s22 + $0x168] sm:$0xff]   ;;  %v11796_v33 = vld [vmem:[%s12054_s22 + $0x5f8] sm:$0xff]  }
  0x43   : > { %11134 = vmatprep.mubr.msk.bf16.mxu0 %vm2238_vm2, %v11733_v34  ;;  %11426 = vmatprep.mubr.msk.bf16.mxu1 %vm2238_vm2, %v11734_v35  ;;  %v11797_v34 = vld [vmem:[%s12054_s22 + $0x170] sm:$0xff]   ;;  %v11798_v35 = vld [vmem:[%s12054_s22 + $0x600] sm:$0xff]  }
  0x4a   : > { %11135 = vmatmul.mubr.msk.bf16.gmra.mrb[28].mxu0 %vm2238_vm2, %v11735_v36  ;;  %11427 = vmatmul.mubr.msk.bf16.gmra.mrb[28].mxu1 %vm2238_vm2, %v11736_v37  ;;  %v11799_v36 = vld [vmem:[%s12054_s22 + $0x178] sm:$0xff]   ;;  %v11800_v37 = vld [vmem:[%s12054_s22 + $0x608] sm:$0xff]  }
  0x4b   : > { %11138 = vmatprep.mubr.msk.bf16.mxu0 %vm2238_vm2, %v11737_v38  ;;  %11430 = vmatprep.mubr.msk.bf16.mxu1 %vm2238_vm2, %v11738_v39  ;;  %v11801_v38 = vld [vmem:[%s12054_s22 + $0x180] sm:$0xff]   ;;  %v11802_v39 = vld [vmem:[%s12054_s22 + $0x610] sm:$0xff]  }
  0x52   : > { %11139 = vmatmul.mubr.msk.bf16.gmra.mrb[32].mxu0 %vm2238_vm2, %v11739_v40  ;;  %11431 = vmatmul.mubr.msk.bf16.gmra.mrb[32].mxu1 %vm2238_vm2, %v11740_v41  ;;  %v11803_v40 = vld [vmem:[%s12054_s22 + $0x188] sm:$0xff]   ;;  %v11804_v41 = vld [vmem:[%s12054_s22 + $0x618] sm:$0xff]  }
  0x53   : > { %11142 = vmatprep.mubr.msk.bf16.mxu0 %vm2238_vm2, %v11741_v42  ;;  %11434 = vmatprep.mubr.msk.bf16.mxu1 %vm2238_vm2, %v11742_v43  ;;  %v11805_v42 = vld [vmem:[%s12054_s22 + $0x190] sm:$0xff]   ;;  %v11806_v43 = vld [vmem:[%s12054_s22 + $0x620] sm:$0xff]  }
  0x5a   : > { %11143 = vmatmul.mubr.msk.bf16.gmra.mrb[36].mxu0 %vm2238_vm2, %v11743_v44  ;;  %11435 = vmatmul.mubr.msk.bf16.gmra.mrb[36].mxu1 %vm2238_vm2, %v11744_v45  ;;  %v11807_v44 = vld [vmem:[%s12054_s22 + $0x198] sm:$0xff]   ;;  %v11808_v45 = vld [vmem:[%s12054_s22 + $0x628] sm:$0xff]  }
  0x5b   : > { %11146 = vmatprep.mubr.msk.bf16.mxu0 %vm2238_vm2, %v11745_v46  ;;  %11438 = vmatprep.mubr.msk.bf16.mxu1 %vm2238_vm2, %v11746_v47  ;;  %v11809_v46 = vld [vmem:[%s12054_s22 + $0x1a0] sm:$0xff]   ;;  %v11810_v47 = vld [vmem:[%s12054_s22 + $0x630] sm:$0xff]  }
  0x62   : > { %11147 = vmatmul.mubr.msk.bf16.gmra.mrb[40].mxu0 %vm2238_vm2, %v11747_v48  ;;  %11439 = vmatmul.mubr.msk.bf16.gmra.mrb[40].mxu1 %vm2238_vm2, %v11748_v49  ;;  %v11811_v48 = vld [vmem:[%s12054_s22 + $0x1a8] sm:$0xff]   ;;  %v11812_v49 = vld [vmem:[%s12054_s22 + $0x638] sm:$0xff]  }
  0x63   : > { %11150 = vmatprep.mubr.msk.bf16.mxu0 %vm2238_vm2, %v11749_v50  ;;  %11442 = vmatprep.mubr.msk.bf16.mxu1 %vm2238_vm2, %v11750_v51  ;;  %v11813_v50 = vld [vmem:[%s12054_s22 + $0x1b0] sm:$0xff]   ;;  %v11814_v51 = vld [vmem:[%s12054_s22 + $0x640] sm:$0xff]  }
  0x6a   : > { %11151 = vmatmul.mubr.msk.bf16.gmra.mrb[44].mxu0 %vm2238_vm2, %v11751_v52  ;;  %11443 = vmatmul.mubr.msk.bf16.gmra.mrb[44].mxu1 %vm2238_vm2, %v11752_v53  ;;  %v12275_v52 = vld [vmem:[%s14436_s2] ss:$0 sm:$0xff]  ;;  %v11815_v53 = vld [vmem:[%s12054_s22 + $0x1b8] sm:$0xff]  }
  0x6b   : > { %11154 = vmatprep.mubr.msk.bf16.mxu0 %vm2238_vm2, %v11753_v54  ;;  %11446 = vmatprep.mubr.msk.bf16.mxu1 %vm2238_vm2, %v11754_v55  ;;  %v11816_v55 = vld [vmem:[%s12054_s22 + $0x648] sm:$0xff]  }
  0x72   : > { %11155 = vmatmul.mubr.msk.bf16.gmra.mrb[48].mxu0 %vm2238_vm2, %v11755_v56  ;;  %11447 = vmatmul.mubr.msk.bf16.gmra.mrb[48].mxu1 %vm2238_vm2, %v11756_v57  ;;  %v11817_v56 = vld [vmem:[%s12054_s22 + $0x1c0] sm:$0xff]  }
  0x73   : > { %11158 = vmatprep.mubr.msk.bf16.mxu0 %vm2238_vm2, %v11757_v58  ;;  %11450 = vmatprep.mubr.msk.bf16.mxu1 %vm2238_vm2, %v11758_v59 }
  0x7a   : > { %11159 = vmatmul.mubr.msk.bf16.gmra.mrb[52].mxu0 %vm2238_vm2, %v11759_v60  ;;  %11451 = vmatmul.mubr.msk.bf16.gmra.mrb[52].mxu1 %vm2238_vm2, %v11760_v61 }
  0x7b   : > { %11162 = vmatprep.mubr.msk.bf16.mxu0 %vm2238_vm2, %v11761_v62  ;;  %11454 = vmatprep.mubr.msk.bf16.mxu1 %vm2238_vm2, %v11762_v63 }
  0x82   : > { %11163 = vmatmul.mubr.msk.bf16.gmra.mrb[56].mxu0 %vm2238_vm2, %v11763_v0  ;;  %11455 = vmatmul.mubr.msk.bf16.gmra.mrb[56].mxu1 %vm2238_vm2, %v11764_v1 }
  0x83   : > { %11166 = vmatprep.mubr.msk.bf16.mxu0 %vm2238_vm2, %v11765_v2  ;;  %11458 = vmatprep.mubr.msk.bf16.mxu1 %vm2238_vm2, %v11766_v3 }
  0x8a   : > { %11167 = vmatmul.mubr.msk.bf16.gmra.mrb[60].mxu0 %vm2238_vm2, %v11767_v4  ;;  %11459 = vmatmul.mubr.msk.bf16.gmra.mrb[60].mxu1 %vm2238_vm2, %v11768_v5  ;;  %v11818_v5 = vld [vmem:[%s12054_s22 + $0x650] sm:$0xff]  }
  0x8b   : > { %11170 = vmatprep.mubr.msk.bf16.mxu0 %vm2238_vm2, %v11769_v6  ;;  %11462 = vmatprep.mubr.msk.bf16.mxu1 %vm2238_vm2, %v11770_v7 }
  0x92   : > { %11171 = vmatmul.mubr.msk.bf16.gmra.mrb[64].mxu0 %vm2238_vm2, %v11771_v8  ;;  %11463 = vmatmul.mubr.msk.bf16.gmra.mrb[64].mxu1 %vm2238_vm2, %v11772_v9 }
  0x93   : > { %11174 = vmatprep.mubr.msk.bf16.mxu0 %vm2238_vm2, %v11773_v10  ;;  %11466 = vmatprep.mubr.msk.bf16.mxu1 %vm2238_vm2, %v11774_v11 }
  0x9a   : > { %11175 = vmatmul.mubr.msk.bf16.gmra.mrb[68].mxu0 %vm2238_vm2, %v11775_v12  ;;  %11467 = vmatmul.mubr.msk.bf16.gmra.mrb[68].mxu1 %vm2238_vm2, %v11776_v13 }
  0x9b   : > { %11178 = vmatprep.mubr.msk.bf16.mxu0 %vm2238_vm2, %v11777_v14  ;;  %11470 = vmatprep.mubr.msk.bf16.mxu1 %vm2238_vm2, %v11778_v15 }
  0xa2   : > { %11179 = vmatmul.mubr.msk.bf16.gmra.mrb[72].mxu0 %vm2238_vm2, %v11779_v16  ;;  %11471 = vmatmul.mubr.msk.bf16.gmra.mrb[72].mxu1 %vm2238_vm2, %v11780_v17 }
  0xa3   : > { %11182 = vmatprep.mubr.msk.bf16.mxu0 %vm2238_vm2, %v11781_v18  ;;  %11474 = vmatprep.mubr.msk.bf16.mxu1 %vm2238_vm2, %v11782_v19 }
  0xaa   : > { %11183 = vmatmul.mubr.msk.bf16.gmra.mrb[76].mxu0 %vm2238_vm2, %v11783_v20  ;;  %11475 = vmatmul.mubr.msk.bf16.gmra.mrb[76].mxu1 %vm2238_vm2, %v11784_v21 }
  0xab   : > { %11186 = vmatprep.mubr.msk.bf16.mxu0 %vm2238_vm2, %v11785_v22  ;;  %11478 = vmatprep.mubr.msk.bf16.mxu1 %vm2238_vm2, %v11786_v23  ;;  %v11819_v22 = vld [vmem:[%s12054_s22 + $0x1c8] sm:$0xff]  }
  0xb2   : > { %11187 = vmatmul.mubr.msk.bf16.gmra.mrb[80].mxu0 %vm2238_vm2, %v11787_v24  ;;  %11479 = vmatmul.mubr.msk.bf16.gmra.mrb[80].mxu1 %vm2238_vm2, %v11788_v25 }
  0xb3   : > { %11190 = vmatprep.mubr.msk.bf16.mxu0 %vm2238_vm2, %v11789_v26  ;;  %11482 = vmatprep.mubr.msk.bf16.mxu1 %vm2238_vm2, %v11790_v27  ;;  %v11820_v26 = vld [vmem:[%s12054_s22 + $0x658] sm:$0xff]   ;;  %v11821_v27 = vld [vmem:[%s12054_s22 + $0x1d0] sm:$0xff]  }
  0xba   : > { %11191 = vmatmul.mubr.msk.bf16.gmra.mrb[84].mxu0 %vm2238_vm2, %v11791_v28  ;;  %11483 = vmatmul.mubr.msk.bf16.gmra.mrb[84].mxu1 %vm2238_vm2, %v11792_v29 }
  0xbb   : > { %11194 = vmatprep.mubr.msk.bf16.mxu0 %vm2238_vm2, %v11793_v30  ;;  %11486 = vmatprep.mubr.msk.bf16.mxu1 %vm2238_vm2, %v11794_v31 }
  0xc2   : > { %11195 = vmatmul.mubr.msk.bf16.gmra.mrb[88].mxu0 %vm2238_vm2, %v11795_v32  ;;  %11487 = vmatmul.mubr.msk.bf16.gmra.mrb[88].mxu1 %vm2238_vm2, %v11796_v33 }
  0xc3   : > { %11198 = vmatprep.mubr.msk.bf16.mxu0 %vm2238_vm2, %v11797_v34  ;;  %11490 = vmatprep.mubr.msk.bf16.mxu1 %vm2238_vm2, %v11798_v35 }
  0xca   : > { %11199 = vmatmul.mubr.msk.bf16.gmra.mrb[92].mxu0 %vm2238_vm2, %v11799_v36  ;;  %11491 = vmatmul.mubr.msk.bf16.gmra.mrb[92].mxu1 %vm2238_vm2, %v11800_v37 }
  0xcb   : > { %11202 = vmatprep.mubr.msk.bf16.mxu0 %vm2238_vm2, %v11801_v38  ;;  %11494 = vmatprep.mubr.msk.bf16.mxu1 %vm2238_vm2, %v11802_v39 }
  0xd2   : > { %11203 = vmatmul.mubr.msk.bf16.gmra.mrb[96].mxu0 %vm2238_vm2, %v11803_v40  ;;  %11495 = vmatmul.mubr.msk.bf16.gmra.mrb[96].mxu1 %vm2238_vm2, %v11804_v41  ;;  %v11822_v41 = vld [vmem:[%s12054_s22 + $0x660] sm:$0xff]  }
  0xd3   : > { %11206 = vmatprep.mubr.msk.bf16.mxu0 %vm2238_vm2, %v11805_v42  ;;  %11498 = vmatprep.mubr.msk.bf16.mxu1 %vm2238_vm2, %v11806_v43 }
  0xda   : > { %11207 = vmatmul.mubr.msk.bf16.gmra.mrb[100].mxu0 %vm2238_vm2, %v11807_v44  ;;  %11499 = vmatmul.mubr.msk.bf16.gmra.mrb[100].mxu1 %vm2238_vm2, %v11808_v45 }
  0xdb   : > { %11210 = vmatprep.mubr.msk.bf16.mxu0 %vm2238_vm2, %v11809_v46  ;;  %11502 = vmatprep.mubr.msk.bf16.mxu1 %vm2238_vm2, %v11810_v47 }
  0xe2   : > { %11211 = vmatmul.mubr.msk.bf16.gmra.mrb[104].mxu0 %vm2238_vm2, %v11811_v48  ;;  %11503 = vmatmul.mubr.msk.bf16.gmra.mrb[104].mxu1 %vm2238_vm2, %v11812_v49 }
  0xe3   : > { %11214 = vmatprep.mubr.msk.bf16.mxu0 %vm2238_vm2, %v11813_v50  ;;  %11506 = vmatprep.mubr.msk.bf16.mxu1 %vm2238_vm2, %v11814_v51 }
  0xe5   : > { %v11108_v54 = vpop.f32.mrb[0].mxu0  ;;  %v11400_v58 = vpop.f32.mrb[0].mxu1 }
  0xe6   : > { %v3165_v57 = vadd.f32 %v11108_v54, %v12275_v52  ;;  %v3156_v59 = vpop.f32.mrb[1].mxu0  ;;  %v4333_v60 = vadd.f32 %v11400_v58, %v12275_v52  ;;  %v4324_v62 = vpop.f32.mrb[1].mxu1 }
  0xe7   : > { %v3157_v61 = vadd.f32 %v12275_v52, %v3156_v59  ;;  %v11109_v63 = vpop.f32.mrb[2].mxu0  ;;  %v4325_v1 = vadd.f32 %v12275_v52, %v4324_v62  ;;  %v11401_v3 = vpop.f32.mrb[2].mxu1  ;;  %v11823_v59 = vld [vmem:[%s12054_s22 + $0x1d8] sm:$0xff]  }
  0xe8   : > { %v5492_v0 = vmax.f32 %v3165_v57, 0.0  ;;  %v3168_v2 = vadd.f32 %v11109_v63, %v12275_v52  ;;  %v3159_v4 = vpop.f32.mrb[3].mxu0  ;;  %v5784_v6 = vmax.f32 %v4333_v60, 0.0  ;;  %v4336_v8 = vadd.f32 %v11401_v3, %v12275_v52  ;;  %v4327_v10 = vpop.f32.mrb[3].mxu1  ;;  %v11824_v63 = vld [vmem:[%s12054_s22 + $0x668] sm:$0xff]  }
  0xe9   : > { %v5490_v7 = vmax.f32 %v3157_v61, 0.0  ;;  %v3160_v9 = vadd.f32 %v12275_v52, %v3159_v4  ;;  %v5782_v12 = vmax.f32 %v4325_v1, 0.0  ;;  %v4328_v14 = vadd.f32 %v12275_v52, %v4327_v10 }
  0xea   : > { %v10227_v11 = vpack.c.bf16 %v5492_v0, %v5492_v0  ;;  %v5493_v13 = vmax.f32 %v3168_v2, 0.0  ;;  %11215 = vmatmul.mubr.msk.bf16.gmra.mrb[108].mxu0 %vm2238_vm2, %v11815_v53  ;;  %v10519_v15 = vpack.c.bf16 %v5784_v6, %v5784_v6  ;;  %v5785_v17 = vmax.f32 %v4336_v8, 0.0  ;;  %11507 = vmatmul.mubr.msk.bf16.gmra.mrb[108].mxu1 %vm2238_vm2, %v11816_v55  ;;  %v11825_v0 = vld [vmem:[%s12054_s22 + $0x1e0] sm:$0xff]  }
  0xeb   : > { %v10225_v16 = vpack.c.bf16 %v5490_v7, %v5490_v7  ;;  %v5491_v18 = vmax.f32 %v3160_v9, 0.0  ;;  %11218 = vmatprep.mubr.msk.bf16.mxu0 %vm2238_vm2, %v11817_v56  ;;  %v10517_v19 = vpack.c.bf16 %v5782_v12, %v5782_v12  ;;  %v5783_v21 = vmax.f32 %v4328_v14, 0.0  ;;  %11510 = vmatprep.mubr.msk.bf16.mxu1 %vm2238_vm2, %v11818_v5  ;;  %v11826_v14 = vld [vmem:[%s12054_s22 + $0x670] sm:$0xff]  }
  0xec   : > { %8409 = vst.msk [vmem:[%s12295_s27 + $0x8] sm:$0xf] %vm8406_vm3, %v10227_v11  ;;  %v10228_v20 = vpack.c.bf16 %v5493_v13, %v5493_v13  ;;  %8701 = vst.msk [vmem:[%s12295_s27 + $0x498] sm:$0xf] %vm8406_vm3, %v10519_v15  ;;  %v10520_v23 = vpack.c.bf16 %v5785_v17, %v5785_v17 }
  0xed   : > { %8407 = vst.msk [vmem:[%s12295_s27] sm:$0xf] %vm8406_vm3, %v10225_v16  ;;  %v10226_v24 = vpack.c.bf16 %v5491_v18, %v5491_v18  ;;  %v11112_v25 = vpop.f32.mrb[4].mxu0  ;;  %8699 = vst.msk [vmem:[%s12295_s27 + $0x490] sm:$0xf] %vm8406_vm3, %v10517_v19  ;;  %v10518_v28 = vpack.c.bf16 %v5783_v21, %v5783_v21  ;;  %v11404_v30 = vpop.f32.mrb[4].mxu1 }
  0xee   : > { %8410 = vst.msk [vmem:[%s12295_s27 + $0xc] sm:$0xf] %vm8406_vm3, %v10228_v20  ;;  %v3181_v29 = vadd.f32 %v11112_v25, %v12275_v52  ;;  %v3172_v31 = vpop.f32.mrb[5].mxu0  ;;  %8702 = vst.msk [vmem:[%s12295_s27 + $0x49c] sm:$0xf] %vm8406_vm3, %v10520_v23  ;;  %v4349_v32 = vadd.f32 %v11404_v30, %v12275_v52  ;;  %v4340_v34 = vpop.f32.mrb[5].mxu1 }
  0xef   : > { %8408 = vst.msk [vmem:[%s12295_s27 + $0x4] sm:$0xf] %vm8406_vm3, %v10226_v24  ;;  %v3173_v33 = vadd.f32 %v12275_v52, %v3172_v31  ;;  %v11113_v35 = vpop.f32.mrb[6].mxu0  ;;  %8700 = vst.msk [vmem:[%s12295_s27 + $0x494] sm:$0xf] %vm8406_vm3, %v10518_v28  ;;  %v4341_v37 = vadd.f32 %v12275_v52, %v4340_v34  ;;  %v11405_v39 = vpop.f32.mrb[6].mxu1 }
  0xf0   : > { %v5496_v36 = vmax.f32 %v3181_v29, 0.0  ;;  %v3184_v38 = vadd.f32 %v11113_v35, %v12275_v52  ;;  %v3175_v40 = vpop.f32.mrb[7].mxu0  ;;  %v5788_v42 = vmax.f32 %v4349_v32, 0.0  ;;  %v4352_v44 = vadd.f32 %v11405_v39, %v12275_v52  ;;  %v4343_v46 = vpop.f32.mrb[7].mxu1  ;;  %v11827_v31 = vld [vmem:[%s12054_s22 + $0x1e8] sm:$0xff]   ;;  %v11828_v35 = vld [vmem:[%s12054_s22 + $0x678] sm:$0xff]  }
  0xf1   : > { %v5494_v43 = vmax.f32 %v3173_v33, 0.0  ;;  %v3176_v45 = vadd.f32 %v12275_v52, %v3175_v40  ;;  %v5786_v48 = vmax.f32 %v4341_v37, 0.0  ;;  %v4344_v50 = vadd.f32 %v12275_v52, %v4343_v46 }
  0xf2   : > { %v10231_v47 = vpack.c.bf16 %v5496_v36, %v5496_v36  ;;  %v5497_v49 = vmax.f32 %v3184_v38, 0.0  ;;  %11219 = vmatmul.mubr.msk.bf16.gmra.mrb[112].mxu0 %vm2238_vm2, %v11819_v22  ;;  %v10523_v51 = vpack.c.bf16 %v5788_v42, %v5788_v42  ;;  %v5789_v54 = vmax.f32 %v4352_v44, 0.0  ;;  %11511 = vmatmul.mubr.msk.bf16.gmra.mrb[112].mxu1 %vm2238_vm2, %v11820_v26  ;;  %v11829_v36 = vld [vmem:[%s12054_s22 + $0x1f0] sm:$0xff]  }
  0xf3   : > { %v10229_v53 = vpack.c.bf16 %v5494_v43, %v5494_v43  ;;  %v5495_v55 = vmax.f32 %v3176_v45, 0.0  ;;  %11222 = vmatprep.mubr.msk.bf16.mxu0 %vm2238_vm2, %v11821_v27  ;;  %v10521_v56 = vpack.c.bf16 %v5786_v48, %v5786_v48  ;;  %v5787_v58 = vmax.f32 %v4344_v50, 0.0  ;;  %11514 = vmatprep.mubr.msk.bf16.mxu1 %vm2238_vm2, %v11822_v41  ;;  %v11830_v50 = vld [vmem:[%s12054_s22 + $0x680] sm:$0xff]  }
  0xf4   : > { %8413 = vst.msk [vmem:[%s12295_s27 + $0x18] sm:$0xf] %vm8406_vm3, %v10231_v47  ;;  %v10232_v57 = vpack.c.bf16 %v5497_v49, %v5497_v49  ;;  %8705 = vst.msk [vmem:[%s12295_s27 + $0x4a8] sm:$0xf] %vm8406_vm3, %v10523_v51  ;;  %v10524_v60 = vpack.c.bf16 %v5789_v54, %v5789_v54 }
  0xf5   : > { %8411 = vst.msk [vmem:[%s12295_s27 + $0x10] sm:$0xf] %vm8406_vm3, %v10229_v53  ;;  %v10230_v61 = vpack.c.bf16 %v5495_v55, %v5495_v55  ;;  %v11116_v62 = vpop.f32.mrb[8].mxu0  ;;  %8703 = vst.msk [vmem:[%s12295_s27 + $0x4a0] sm:$0xf] %vm8406_vm3, %v10521_v56  ;;  %v10522_v1 = vpack.c.bf16 %v5787_v58, %v5787_v58  ;;  %v11408_v3 = vpop.f32.mrb[8].mxu1 }
  0xf6   : > { %8414 = vst.msk [vmem:[%s12295_s27 + $0x1c] sm:$0xf] %vm8406_vm3, %v10232_v57  ;;  %v3197_v2 = vadd.f32 %v11116_v62, %v12275_v52  ;;  %v3188_v4 = vpop.f32.mrb[9].mxu0  ;;  %8706 = vst.msk [vmem:[%s12295_s27 + $0x4ac] sm:$0xf] %vm8406_vm3, %v10524_v60  ;;  %v4365_v5 = vadd.f32 %v11408_v3, %v12275_v52  ;;  %v4356_v7 = vpop.f32.mrb[9].mxu1 }
  0xf7   : > { %8412 = vst.msk [vmem:[%s12295_s27 + $0x14] sm:$0xf] %vm8406_vm3, %v10230_v61  ;;  %v3189_v6 = vadd.f32 %v12275_v52, %v3188_v4  ;;  %v11117_v8 = vpop.f32.mrb[10].mxu0  ;;  %8704 = vst.msk [vmem:[%s12295_s27 + $0x4a4] sm:$0xf] %vm8406_vm3, %v10522_v1  ;;  %v4357_v10 = vadd.f32 %v12275_v52, %v4356_v7  ;;  %v11409_v12 = vpop.f32.mrb[10].mxu1 }
  0xf8   : > { %v5500_v9 = vmax.f32 %v3197_v2, 0.0  ;;  %v3200_v11 = vadd.f32 %v11117_v8, %v12275_v52  ;;  %v3191_v13 = vpop.f32.mrb[11].mxu0  ;;  %v5792_v15 = vmax.f32 %v4365_v5, 0.0  ;;  %v4368_v17 = vadd.f32 %v11409_v12, %v12275_v52  ;;  %v4359_v19 = vpop.f32.mrb[11].mxu1  ;;  %v11831_v4 = vld [vmem:[%s12054_s22 + $0x1f8] sm:$0xff]   ;;  %v11832_v8 = vld [vmem:[%s12054_s22 + $0x688] sm:$0xff]  }
  0xf9   : > { %v5498_v16 = vmax.f32 %v3189_v6, 0.0  ;;  %v3192_v18 = vadd.f32 %v12275_v52, %v3191_v13  ;;  %v5790_v21 = vmax.f32 %v4357_v10, 0.0  ;;  %v4360_v23 = vadd.f32 %v12275_v52, %v4359_v19 }
  0xfa   : > { %v10235_v20 = vpack.c.bf16 %v5500_v9, %v5500_v9  ;;  %v5501_v22 = vmax.f32 %v3200_v11, 0.0  ;;  %11223 = vmatmul.mubr.msk.bf16.gmra.mrb[116].mxu0 %vm2238_vm2, %v11823_v59  ;;  %v10527_v24 = vpack.c.bf16 %v5792_v15, %v5792_v15  ;;  %v5793_v26 = vmax.f32 %v4368_v17, 0.0  ;;  %11515 = vmatmul.mubr.msk.bf16.gmra.mrb[116].mxu1 %vm2238_vm2, %v11824_v63  ;;  %v11833_v9 = vld [vmem:[%s12054_s22 + $0x200] sm:$0xff]  }
  0xfb   : > { %v10233_v25 = vpack.c.bf16 %v5498_v16, %v5498_v16  ;;  %v5499_v27 = vmax.f32 %v3192_v18, 0.0  ;;  %11226 = vmatprep.mubr.msk.bf16.mxu0 %vm2238_vm2, %v11825_v0  ;;  %v10525_v28 = vpack.c.bf16 %v5790_v21, %v5790_v21  ;;  %v5791_v30 = vmax.f32 %v4360_v23, 0.0  ;;  %11518 = vmatprep.mubr.msk.bf16.mxu1 %vm2238_vm2, %v11826_v14  ;;  %v11834_v23 = vld [vmem:[%s12054_s22 + $0x690] sm:$0xff]  }
  0xfc   : > { %8417 = vst.msk [vmem:[%s12295_s27 + $0x28] sm:$0xf] %vm8406_vm3, %v10235_v20  ;;  %v10236_v29 = vpack.c.bf16 %v5501_v22, %v5501_v22  ;;  %8709 = vst.msk [vmem:[%s12295_s27 + $0x4b8] sm:$0xf] %vm8406_vm3, %v10527_v24  ;;  %v10528_v32 = vpack.c.bf16 %v5793_v26, %v5793_v26 }
  0xfd   : > { %8415 = vst.msk [vmem:[%s12295_s27 + $0x20] sm:$0xf] %vm8406_vm3, %v10233_v25  ;;  %v10234_v33 = vpack.c.bf16 %v5499_v27, %v5499_v27  ;;  %v11120_v34 = vpop.f32.mrb[12].mxu0  ;;  %8707 = vst.msk [vmem:[%s12295_s27 + $0x4b0] sm:$0xf] %vm8406_vm3, %v10525_v28  ;;  %v10526_v37 = vpack.c.bf16 %v5791_v30, %v5791_v30  ;;  %v11412_v39 = vpop.f32.mrb[12].mxu1 }
  0xfe   : > { %8418 = vst.msk [vmem:[%s12295_s27 + $0x2c] sm:$0xf] %vm8406_vm3, %v10236_v29  ;;  %v3213_v38 = vadd.f32 %v11120_v34, %v12275_v52  ;;  %v3204_v40 = vpop.f32.mrb[13].mxu0  ;;  %8710 = vst.msk [vmem:[%s12295_s27 + $0x4bc] sm:$0xf] %vm8406_vm3, %v10528_v32  ;;  %v4381_v41 = vadd.f32 %v11412_v39, %v12275_v52  ;;  %v4372_v43 = vpop.f32.mrb[13].mxu1 }
  0xff   : > { %8416 = vst.msk [vmem:[%s12295_s27 + $0x24] sm:$0xf] %vm8406_vm3, %v10234_v33  ;;  %v3205_v42 = vadd.f32 %v12275_v52, %v3204_v40  ;;  %v11121_v44 = vpop.f32.mrb[14].mxu0  ;;  %8708 = vst.msk [vmem:[%s12295_s27 + $0x4b4] sm:$0xf] %vm8406_vm3, %v10526_v37  ;;  %v4373_v46 = vadd.f32 %v12275_v52, %v4372_v43  ;;  %v11413_v48 = vpop.f32.mrb[14].mxu1 }
 0x100   : > { %v5504_v45 = vmax.f32 %v3213_v38, 0.0  ;;  %v3216_v47 = vadd.f32 %v11121_v44, %v12275_v52  ;;  %v3207_v49 = vpop.f32.mrb[15].mxu0  ;;  %v5796_v51 = vmax.f32 %v4381_v41, 0.0  ;;  %v4384_v54 = vadd.f32 %v11413_v48, %v12275_v52  ;;  %v4375_v56 = vpop.f32.mrb[15].mxu1  ;;  %v11835_v40 = vld [vmem:[%s12054_s22 + $0x208] sm:$0xff]   ;;  %v11836_v44 = vld [vmem:[%s12054_s22 + $0x698] sm:$0xff]  }
 0x101   : > { %v5502_v53 = vmax.f32 %v3205_v42, 0.0  ;;  %v3208_v55 = vadd.f32 %v12275_v52, %v3207_v49  ;;  %v5794_v58 = vmax.f32 %v4373_v46, 0.0  ;;  %v4376_v60 = vadd.f32 %v12275_v52, %v4375_v56 }
 0x102   : > { %v10239_v57 = vpack.c.bf16 %v5504_v45, %v5504_v45  ;;  %v5505_v59 = vmax.f32 %v3216_v47, 0.0  ;;  %11227 = vmatmul.mubr.msk.bf16.gmra.mrb[120].mxu0 %vm2238_vm2, %v11827_v31  ;;  %v10531_v61 = vpack.c.bf16 %v5796_v51, %v5796_v51  ;;  %v5797_v63 = vmax.f32 %v4384_v54, 0.0  ;;  %11519 = vmatmul.mubr.msk.bf16.gmra.mrb[120].mxu1 %vm2238_vm2, %v11828_v35  ;;  %v11837_v45 = vld [vmem:[%s12054_s22 + $0x210] sm:$0xff]  }
 0x103   : > { %v10237_v62 = vpack.c.bf16 %v5502_v53, %v5502_v53  ;;  %v5503_v0 = vmax.f32 %v3208_v55, 0.0  ;;  %11230 = vmatprep.mubr.msk.bf16.mxu0 %vm2238_vm2, %v11829_v36  ;;  %v10529_v1 = vpack.c.bf16 %v5794_v58, %v5794_v58  ;;  %v5795_v3 = vmax.f32 %v4376_v60, 0.0  ;;  %11522 = vmatprep.mubr.msk.bf16.mxu1 %vm2238_vm2, %v11830_v50  ;;  %v11838_v60 = vld [vmem:[%s12054_s22 + $0x6a0] sm:$0xff]  }
 0x104   : > { %8421 = vst.msk [vmem:[%s12295_s27 + $0x38] sm:$0xf] %vm8406_vm3, %v10239_v57  ;;  %v10240_v2 = vpack.c.bf16 %v5505_v59, %v5505_v59  ;;  %8713 = vst.msk [vmem:[%s12295_s27 + $0x4c8] sm:$0xf] %vm8406_vm3, %v10531_v61  ;;  %v10532_v5 = vpack.c.bf16 %v5797_v63, %v5797_v63 }
 0x105   : > { %8419 = vst.msk [vmem:[%s12295_s27 + $0x30] sm:$0xf] %vm8406_vm3, %v10237_v62  ;;  %v10238_v6 = vpack.c.bf16 %v5503_v0, %v5503_v0  ;;  %v11124_v7 = vpop.f32.mrb[16].mxu0  ;;  %8711 = vst.msk [vmem:[%s12295_s27 + $0x4c0] sm:$0xf] %vm8406_vm3, %v10529_v1  ;;  %v10530_v10 = vpack.c.bf16 %v5795_v3, %v5795_v3  ;;  %v11416_v12 = vpop.f32.mrb[16].mxu1 }
 0x106   : > { %8422 = vst.msk [vmem:[%s12295_s27 + $0x3c] sm:$0xf] %vm8406_vm3, %v10240_v2  ;;  %v3229_v11 = vadd.f32 %v11124_v7, %v12275_v52  ;;  %v3220_v13 = vpop.f32.mrb[17].mxu0  ;;  %8714 = vst.msk [vmem:[%s12295_s27 + $0x4cc] sm:$0xf] %vm8406_vm3, %v10532_v5  ;;  %v4397_v14 = vadd.f32 %v11416_v12, %v12275_v52  ;;  %v4388_v16 = vpop.f32.mrb[17].mxu1 }
 0x107   : > { %8420 = vst.msk [vmem:[%s12295_s27 + $0x34] sm:$0xf] %vm8406_vm3, %v10238_v6  ;;  %v3221_v15 = vadd.f32 %v12275_v52, %v3220_v13  ;;  %v11125_v17 = vpop.f32.mrb[18].mxu0  ;;  %8712 = vst.msk [vmem:[%s12295_s27 + $0x4c4] sm:$0xf] %vm8406_vm3, %v10530_v10  ;;  %v4389_v19 = vadd.f32 %v12275_v52, %v4388_v16  ;;  %v11417_v21 = vpop.f32.mrb[18].mxu1 }
 0x108   : > { %v5508_v18 = vmax.f32 %v3229_v11, 0.0  ;;  %v3232_v20 = vadd.f32 %v11125_v17, %v12275_v52  ;;  %v3223_v22 = vpop.f32.mrb[19].mxu0  ;;  %v5800_v24 = vmax.f32 %v4397_v14, 0.0  ;;  %v4400_v26 = vadd.f32 %v11417_v21, %v12275_v52  ;;  %v4391_v28 = vpop.f32.mrb[19].mxu1  ;;  %v11839_v13 = vld [vmem:[%s12054_s22 + $0x218] sm:$0xff]   ;;  %v11840_v17 = vld [vmem:[%s12054_s22 + $0x6a8] sm:$0xff]  }
 0x109   : > { %v5506_v25 = vmax.f32 %v3221_v15, 0.0  ;;  %v3224_v27 = vadd.f32 %v12275_v52, %v3223_v22  ;;  %v5798_v30 = vmax.f32 %v4389_v19, 0.0  ;;  %v4392_v32 = vadd.f32 %v12275_v52, %v4391_v28 }
 0x10a   : > { %v10243_v29 = vpack.c.bf16 %v5508_v18, %v5508_v18  ;;  %v5509_v31 = vmax.f32 %v3232_v20, 0.0  ;;  %11231 = vmatmul.mubr.msk.bf16.gmra.mrb[124].mxu0 %vm2238_vm2, %v11831_v4  ;;  %v10535_v33 = vpack.c.bf16 %v5800_v24, %v5800_v24  ;;  %v5801_v35 = vmax.f32 %v4400_v26, 0.0  ;;  %11523 = vmatmul.mubr.msk.bf16.gmra.mrb[124].mxu1 %vm2238_vm2, %v11832_v8  ;;  %v11841_v18 = vld [vmem:[%s12054_s22 + $0x220] sm:$0xff]  }
 0x10b   : > { %v10241_v34 = vpack.c.bf16 %v5506_v25, %v5506_v25  ;;  %v5507_v36 = vmax.f32 %v3224_v27, 0.0  ;;  %11234 = vmatprep.mubr.msk.bf16.mxu0 %vm2238_vm2, %v11833_v9  ;;  %v10533_v37 = vpack.c.bf16 %v5798_v30, %v5798_v30  ;;  %v5799_v39 = vmax.f32 %v4392_v32, 0.0  ;;  %11526 = vmatprep.mubr.msk.bf16.mxu1 %vm2238_vm2, %v11834_v23  ;;  %v11842_v32 = vld [vmem:[%s12054_s22 + $0x6b0] sm:$0xff]  }
 0x10c   : > { %8425 = vst.msk [vmem:[%s12295_s27 + $0x48] sm:$0xf] %vm8406_vm3, %v10243_v29  ;;  %v10244_v38 = vpack.c.bf16 %v5509_v31, %v5509_v31  ;;  %8717 = vst.msk [vmem:[%s12295_s27 + $0x4d8] sm:$0xf] %vm8406_vm3, %v10535_v33  ;;  %v10536_v41 = vpack.c.bf16 %v5801_v35, %v5801_v35 }
 0x10d   : > { %8423 = vst.msk [vmem:[%s12295_s27 + $0x40] sm:$0xf] %vm8406_vm3, %v10241_v34  ;;  %v10242_v42 = vpack.c.bf16 %v5507_v36, %v5507_v36  ;;  %v11128_v43 = vpop.f32.mrb[20].mxu0  ;;  %8715 = vst.msk [vmem:[%s12295_s27 + $0x4d0] sm:$0xf] %vm8406_vm3, %v10533_v37  ;;  %v10534_v46 = vpack.c.bf16 %v5799_v39, %v5799_v39  ;;  %v11420_v48 = vpop.f32.mrb[20].mxu1 }
 0x10e   : > { %8426 = vst.msk [vmem:[%s12295_s27 + $0x4c] sm:$0xf] %vm8406_vm3, %v10244_v38  ;;  %v3245_v47 = vadd.f32 %v11128_v43, %v12275_v52  ;;  %v3236_v49 = vpop.f32.mrb[21].mxu0  ;;  %8718 = vst.msk [vmem:[%s12295_s27 + $0x4dc] sm:$0xf] %vm8406_vm3, %v10536_v41  ;;  %v4413_v50 = vadd.f32 %v11420_v48, %v12275_v52  ;;  %v4404_v53 = vpop.f32.mrb[21].mxu1 }
 0x10f   : > { %8424 = vst.msk [vmem:[%s12295_s27 + $0x44] sm:$0xf] %vm8406_vm3, %v10242_v42  ;;  %v3237_v51 = vadd.f32 %v12275_v52, %v3236_v49  ;;  %v11129_v54 = vpop.f32.mrb[22].mxu0  ;;  %8716 = vst.msk [vmem:[%s12295_s27 + $0x4d4] sm:$0xf] %vm8406_vm3, %v10534_v46  ;;  %v4405_v56 = vadd.f32 %v12275_v52, %v4404_v53  ;;  %v11421_v58 = vpop.f32.mrb[22].mxu1 }
 0x110   : > { %v5512_v55 = vmax.f32 %v3245_v47, 0.0  ;;  %v3248_v57 = vadd.f32 %v11129_v54, %v12275_v52  ;;  %v3239_v59 = vpop.f32.mrb[23].mxu0  ;;  %v5804_v61 = vmax.f32 %v4413_v50, 0.0  ;;  %v4416_v63 = vadd.f32 %v11421_v58, %v12275_v52  ;;  %v4407_v1 = vpop.f32.mrb[23].mxu1  ;;  %v11843_v49 = vld [vmem:[%s12054_s22 + $0x228] sm:$0xff]   ;;  %v11844_v54 = vld [vmem:[%s12054_s22 + $0x6b8] sm:$0xff]  }
 0x111   : > { %v5510_v62 = vmax.f32 %v3237_v51, 0.0  ;;  %v3240_v0 = vadd.f32 %v12275_v52, %v3239_v59  ;;  %v5802_v3 = vmax.f32 %v4405_v56, 0.0  ;;  %v4408_v5 = vadd.f32 %v12275_v52, %v4407_v1 }
 0x112   : > { %v10247_v2 = vpack.c.bf16 %v5512_v55, %v5512_v55  ;;  %v5513_v4 = vmax.f32 %v3248_v57, 0.0  ;;  %11235 = vmatmul.mubr.msk.bf16.gmra.mrb[128].mxu0 %vm2238_vm2, %v11835_v40  ;;  %v10539_v6 = vpack.c.bf16 %v5804_v61, %v5804_v61  ;;  %v5805_v8 = vmax.f32 %v4416_v63, 0.0  ;;  %11527 = vmatmul.mubr.msk.bf16.gmra.mrb[128].mxu1 %vm2238_vm2, %v11836_v44  ;;  %v11845_v55 = vld [vmem:[%s12054_s22 + $0x230] sm:$0xff]  }
 0x113   : > { %v10245_v7 = vpack.c.bf16 %v5510_v62, %v5510_v62  ;;  %v5511_v9 = vmax.f32 %v3240_v0, 0.0  ;;  %11238 = vmatprep.mubr.msk.bf16.mxu0 %vm2238_vm2, %v11837_v45  ;;  %v10537_v10 = vpack.c.bf16 %v5802_v3, %v5802_v3  ;;  %v5803_v12 = vmax.f32 %v4408_v5, 0.0  ;;  %11530 = vmatprep.mubr.msk.bf16.mxu1 %vm2238_vm2, %v11838_v60  ;;  %v11846_v5 = vld [vmem:[%s12054_s22 + $0x6c0] sm:$0xff]  }
 0x114   : > { %8429 = vst.msk [vmem:[%s12295_s27 + $0x58] sm:$0xf] %vm8406_vm3, %v10247_v2  ;;  %v10248_v11 = vpack.c.bf16 %v5513_v4, %v5513_v4  ;;  %8721 = vst.msk [vmem:[%s12295_s27 + $0x4e8] sm:$0xf] %vm8406_vm3, %v10539_v6  ;;  %v10540_v14 = vpack.c.bf16 %v5805_v8, %v5805_v8 }
 0x115   : > { %8427 = vst.msk [vmem:[%s12295_s27 + $0x50] sm:$0xf] %vm8406_vm3, %v10245_v7  ;;  %v10246_v15 = vpack.c.bf16 %v5511_v9, %v5511_v9  ;;  %v11132_v16 = vpop.f32.mrb[24].mxu0  ;;  %8719 = vst.msk [vmem:[%s12295_s27 + $0x4e0] sm:$0xf] %vm8406_vm3, %v10537_v10  ;;  %v10538_v19 = vpack.c.bf16 %v5803_v12, %v5803_v12  ;;  %v11424_v21 = vpop.f32.mrb[24].mxu1 }
 0x116   : > { %8430 = vst.msk [vmem:[%s12295_s27 + $0x5c] sm:$0xf] %vm8406_vm3, %v10248_v11  ;;  %v3261_v20 = vadd.f32 %v11132_v16, %v12275_v52  ;;  %v3252_v22 = vpop.f32.mrb[25].mxu0  ;;  %8722 = vst.msk [vmem:[%s12295_s27 + $0x4ec] sm:$0xf] %vm8406_vm3, %v10540_v14  ;;  %v4429_v23 = vadd.f32 %v11424_v21, %v12275_v52  ;;  %v4420_v25 = vpop.f32.mrb[25].mxu1 }
 0x117   : > { %8428 = vst.msk [vmem:[%s12295_s27 + $0x54] sm:$0xf] %vm8406_vm3, %v10246_v15  ;;  %v3253_v24 = vadd.f32 %v12275_v52, %v3252_v22  ;;  %v11133_v26 = vpop.f32.mrb[26].mxu0  ;;  %8720 = vst.msk [vmem:[%s12295_s27 + $0x4e4] sm:$0xf] %vm8406_vm3, %v10538_v19  ;;  %v4421_v28 = vadd.f32 %v12275_v52, %v4420_v25  ;;  %v11425_v30 = vpop.f32.mrb[26].mxu1 }
 0x118   : > { %v5516_v27 = vmax.f32 %v3261_v20, 0.0  ;;  %v3264_v29 = vadd.f32 %v11133_v26, %v12275_v52  ;;  %v3255_v31 = vpop.f32.mrb[27].mxu0  ;;  %v5808_v33 = vmax.f32 %v4429_v23, 0.0  ;;  %v4432_v35 = vadd.f32 %v11425_v30, %v12275_v52  ;;  %v4423_v37 = vpop.f32.mrb[27].mxu1  ;;  %v11847_v22 = vld [vmem:[%s12054_s22 + $0x238] sm:$0xff]   ;;  %v11848_v26 = vld [vmem:[%s12054_s22 + $0x6c8] sm:$0xff]  }
 0x119   : > { %v5514_v34 = vmax.f32 %v3253_v24, 0.0  ;;  %v3256_v36 = vadd.f32 %v12275_v52, %v3255_v31  ;;  %v5806_v39 = vmax.f32 %v4421_v28, 0.0  ;;  %v4424_v41 = vadd.f32 %v12275_v52, %v4423_v37  ;;  %v12553_v37 = vld [vmem:[%s14436_s2] ss:$0 sm:$0xff] }
 0x11a   : > { %v10251_v38 = vpack.c.bf16 %v5516_v27, %v5516_v27  ;;  %v5517_v40 = vmax.f32 %v3264_v29, 0.0  ;;  %11239 = vmatmul.mubr.msk.bf16.gmra.mrb[132].mxu0 %vm2238_vm2, %v11839_v13  ;;  %v10543_v42 = vpack.c.bf16 %v5808_v33, %v5808_v33  ;;  %v5809_v44 = vmax.f32 %v4432_v35, 0.0  ;;  %11531 = vmatmul.mubr.msk.bf16.gmra.mrb[132].mxu1 %vm2238_vm2, %v11840_v17  ;;  %v11849_v27 = vld [vmem:[%s12054_s22 + $0x240] sm:$0xff]  }
 0x11b   : > { %v10249_v43 = vpack.c.bf16 %v5514_v34, %v5514_v34  ;;  %v5515_v45 = vmax.f32 %v3256_v36, 0.0  ;;  %11242 = vmatprep.mubr.msk.bf16.mxu0 %vm2238_vm2, %v11841_v18  ;;  %v10541_v46 = vpack.c.bf16 %v5806_v39, %v5806_v39  ;;  %v5807_v48 = vmax.f32 %v4424_v41, 0.0  ;;  %11534 = vmatprep.mubr.msk.bf16.mxu1 %vm2238_vm2, %v11842_v32 }
 0x11c   : > { %8433 = vst.msk [vmem:[%s12295_s27 + $0x68] sm:$0xf] %vm8406_vm3, %v10251_v38  ;;  %v10252_v47 = vpack.c.bf16 %v5517_v40, %v5517_v40  ;;  %8725 = vst.msk [vmem:[%s12295_s27 + $0x4f8] sm:$0xf] %vm8406_vm3, %v10543_v42  ;;  %v10544_v50 = vpack.c.bf16 %v5809_v44, %v5809_v44  ;;  %v11850_v42 = vld [vmem:[%s12054_s22 + $0x6d0] sm:$0xff]  }
 0x11d   : > { %8431 = vst.msk [vmem:[%s12295_s27 + $0x60] sm:$0xf] %vm8406_vm3, %v10249_v43  ;;  %v10250_v51 = vpack.c.bf16 %v5515_v45, %v5515_v45  ;;  %v11136_v53 = vpop.f32.mrb[28].mxu0  ;;  %8723 = vst.msk [vmem:[%s12295_s27 + $0x4f0] sm:$0xf] %vm8406_vm3, %v10541_v46  ;;  %v10542_v56 = vpack.c.bf16 %v5807_v48, %v5807_v48  ;;  %v11428_v58 = vpop.f32.mrb[28].mxu1 }
 0x11e   : > { %8434 = vst.msk [vmem:[%s12295_s27 + $0x6c] sm:$0xf] %vm8406_vm3, %v10252_v47  ;;  %v3277_v57 = vadd.f32 %v11136_v53, %v12275_v52  ;;  %v3268_v59 = vpop.f32.mrb[29].mxu0  ;;  %8726 = vst.msk [vmem:[%s12295_s27 + $0x4fc] sm:$0xf] %vm8406_vm3, %v10544_v50  ;;  %v4445_v60 = vadd.f32 %v11428_v58, %v12275_v52  ;;  %v4436_v62 = vpop.f32.mrb[29].mxu1 }
 0x11f   : > { %8432 = vst.msk [vmem:[%s12295_s27 + $0x64] sm:$0xf] %vm8406_vm3, %v10250_v51  ;;  %v3269_v61 = vadd.f32 %v12275_v52, %v3268_v59  ;;  %v11137_v63 = vpop.f32.mrb[30].mxu0  ;;  %8724 = vst.msk [vmem:[%s12295_s27 + $0x4f4] sm:$0xf] %vm8406_vm3, %v10542_v56  ;;  %v4437_v1 = vadd.f32 %v12275_v52, %v4436_v62  ;;  %v11429_v3 = vpop.f32.mrb[30].mxu1 }
 0x120   : > { %v5520_v0 = vmax.f32 %v3277_v57, 0.0  ;;  %v3280_v2 = vadd.f32 %v11137_v63, %v12275_v52  ;;  %v3271_v4 = vpop.f32.mrb[31].mxu0  ;;  %v5812_v6 = vmax.f32 %v4445_v60, 0.0  ;;  %v4448_v8 = vadd.f32 %v11429_v3, %v12275_v52  ;;  %v4439_v10 = vpop.f32.mrb[31].mxu1 }
 0x121   : > { %v5518_v7 = vmax.f32 %v3269_v61, 0.0  ;;  %v3272_v9 = vadd.f32 %v12275_v52, %v3271_v4  ;;  %v5810_v12 = vmax.f32 %v4437_v1, 0.0  ;;  %v4440_v14 = vadd.f32 %v12275_v52, %v4439_v10 }
 0x122   : > { %v10255_v11 = vpack.c.bf16 %v5520_v0, %v5520_v0  ;;  %v5521_v13 = vmax.f32 %v3280_v2, 0.0  ;;  %11243 = vmatmul.mubr.msk.bf16.gmra.mrb[136].mxu0 %vm2238_vm2, %v11843_v49  ;;  %v10547_v15 = vpack.c.bf16 %v5812_v6, %v5812_v6  ;;  %v5813_v17 = vmax.f32 %v4448_v8, 0.0  ;;  %11535 = vmatmul.mubr.msk.bf16.gmra.mrb[136].mxu1 %vm2238_vm2, %v11844_v54  ;;  %v11851_v2 = vld [vmem:[%s12054_s22 + $0x248] sm:$0xff]   ;;  %v11853_v8 = vld [vmem:[%s12054_s22 + $0x250] sm:$0xff]  }
 0x123   : > { %v10253_v16 = vpack.c.bf16 %v5518_v7, %v5518_v7  ;;  %v5519_v18 = vmax.f32 %v3272_v9, 0.0  ;;  %11246 = vmatprep.mubr.msk.bf16.mxu0 %vm2238_vm2, %v11845_v55  ;;  %v10545_v19 = vpack.c.bf16 %v5810_v12, %v5810_v12  ;;  %v5811_v21 = vmax.f32 %v4440_v14, 0.0  ;;  %11538 = vmatprep.mubr.msk.bf16.mxu1 %vm2238_vm2, %v11846_v5  ;;  %v11852_v7 = vld [vmem:[%s12054_s22 + $0x6d8] sm:$0xff]   ;;  %v11854_v14 = vld [vmem:[%s12054_s22 + $0x6e0] sm:$0xff]  }
 0x124   : > { %8437 = vst.msk [vmem:[%s12295_s27 + $0x78] sm:$0xf] %vm8406_vm3, %v10255_v11  ;;  %v10256_v20 = vpack.c.bf16 %v5521_v13, %v5521_v13  ;;  %8729 = vst.msk [vmem:[%s12295_s27 + $0x508] sm:$0xf] %vm8406_vm3, %v10547_v15  ;;  %v10548_v23 = vpack.c.bf16 %v5813_v17, %v5813_v17 }
 0x125   : > { %8435 = vst.msk [vmem:[%s12295_s27 + $0x70] sm:$0xf] %vm8406_vm3, %v10253_v16  ;;  %v10254_v24 = vpack.c.bf16 %v5519_v18, %v5519_v18  ;;  %v11140_v25 = vpop.f32.mrb[32].mxu0  ;;  %8727 = vst.msk [vmem:[%s12295_s27 + $0x500] sm:$0xf] %vm8406_vm3, %v10545_v19  ;;  %v10546_v28 = vpack.c.bf16 %v5811_v21, %v5811_v21  ;;  %v11432_v30 = vpop.f32.mrb[32].mxu1 }
 0x126   : > { %8438 = vst.msk [vmem:[%s12295_s27 + $0x7c] sm:$0xf] %vm8406_vm3, %v10256_v20  ;;  %v3293_v29 = vadd.f32 %v11140_v25, %v12275_v52  ;;  %v3284_v31 = vpop.f32.mrb[33].mxu0  ;;  %8730 = vst.msk [vmem:[%s12295_s27 + $0x50c] sm:$0xf] %vm8406_vm3, %v10548_v23  ;;  %v4461_v32 = vadd.f32 %v11432_v30, %v12275_v52  ;;  %v4452_v34 = vpop.f32.mrb[33].mxu1 }
 0x127   : > { %8436 = vst.msk [vmem:[%s12295_s27 + $0x74] sm:$0xf] %vm8406_vm3, %v10254_v24  ;;  %v3285_v33 = vadd.f32 %v12275_v52, %v3284_v31  ;;  %v11141_v35 = vpop.f32.mrb[34].mxu0  ;;  %8728 = vst.msk [vmem:[%s12295_s27 + $0x504] sm:$0xf] %vm8406_vm3, %v10546_v28  ;;  %v4453_v38 = vadd.f32 %v12553_v37, %v4452_v34  ;;  %v11433_v40 = vpop.f32.mrb[34].mxu1 }
 0x128   : > { %v5524_v36 = vmax.f32 %v3293_v29, 0.0  ;;  %v3296_v39 = vadd.f32 %v12553_v37, %v11141_v35  ;;  %v3287_v41 = vpop.f32.mrb[35].mxu0  ;;  %v5816_v43 = vmax.f32 %v4461_v32, 0.0  ;;  %v4464_v44 = vadd.f32 %v12553_v37, %v11433_v40  ;;  %v4455_v46 = vpop.f32.mrb[35].mxu1 }
 0x129   : > { %v5522_v52 = vmax.f32 %v3285_v33, 0.0  ;;  %v3288_v45 = vadd.f32 %v12553_v37, %v3287_v41  ;;  %v5814_v48 = vmax.f32 %v4453_v38, 0.0  ;;  %v4456_v50 = vadd.f32 %v12553_v37, %v4455_v46 }
 0x12a   : > { %v10259_v47 = vpack.c.bf16 %v5524_v36, %v5524_v36  ;;  %v5525_v49 = vmax.f32 %v3296_v39, 0.0  ;;  %11247 = vmatmul.mubr.msk.bf16.gmra.mrb[140].mxu0 %vm2238_vm2, %v11847_v22  ;;  %v10551_v51 = vpack.c.bf16 %v5816_v43, %v5816_v43  ;;  %v5817_v54 = vmax.f32 %v4464_v44, 0.0  ;;  %11539 = vmatmul.mubr.msk.bf16.gmra.mrb[140].mxu1 %vm2238_vm2, %v11848_v26  ;;  %v11855_v39 = vld [vmem:[%s12054_s22 + $0x258] sm:$0xff]   ;;  %v11857_v44 = vld [vmem:[%s12054_s22 + $0x260] sm:$0xff]  }
 0x12b   : > { %v10257_v53 = vpack.c.bf16 %v5522_v52, %v5522_v52  ;;  %v5523_v55 = vmax.f32 %v3288_v45, 0.0  ;;  %11250 = vmatprep.mubr.msk.bf16.mxu0 %vm2238_vm2, %v11849_v27  ;;  %v10549_v56 = vpack.c.bf16 %v5814_v48, %v5814_v48  ;;  %v5815_v58 = vmax.f32 %v4456_v50, 0.0  ;;  %11542 = vmatprep.mubr.msk.bf16.mxu1 %vm2238_vm2, %v11850_v42  ;;  %v11856_v52 = vld [vmem:[%s12054_s22 + $0x6e8] sm:$0xff]   ;;  %v11858_v50 = vld [vmem:[%s12054_s22 + $0x6f0] sm:$0xff]  }
 0x12c   : > { %8441 = vst.msk [vmem:[%s12295_s27 + $0x88] sm:$0xf] %vm8406_vm3, %v10259_v47  ;;  %v10260_v57 = vpack.c.bf16 %v5525_v49, %v5525_v49  ;;  %8733 = vst.msk [vmem:[%s12295_s27 + $0x518] sm:$0xf] %vm8406_vm3, %v10551_v51  ;;  %v10552_v59 = vpack.c.bf16 %v5817_v54, %v5817_v54 }
 0x12d   : > { %8439 = vst.msk [vmem:[%s12295_s27 + $0x80] sm:$0xf] %vm8406_vm3, %v10257_v53  ;;  %v10258_v60 = vpack.c.bf16 %v5523_v55, %v5523_v55  ;;  %v11144_v61 = vpop.f32.mrb[36].mxu0  ;;  %8731 = vst.msk [vmem:[%s12295_s27 + $0x510] sm:$0xf] %vm8406_vm3, %v10549_v56  ;;  %v10550_v62 = vpack.c.bf16 %v5815_v58, %v5815_v58  ;;  %v11436_v0 = vpop.f32.mrb[36].mxu1 }
 0x12e   : > { %8442 = vst.msk [vmem:[%s12295_s27 + $0x8c] sm:$0xf] %vm8406_vm3, %v10260_v57  ;;  %v3309_v63 = vadd.f32 %v12553_v37, %v11144_v61  ;;  %v3300_v1 = vpop.f32.mrb[37].mxu0  ;;  %8734 = vst.msk [vmem:[%s12295_s27 + $0x51c] sm:$0xf] %vm8406_vm3, %v10552_v59  ;;  %v4477_v3 = vadd.f32 %v12553_v37, %v11436_v0  ;;  %v4468_v5 = vpop.f32.mrb[37].mxu1 }
 0x12f   : > { %8440 = vst.msk [vmem:[%s12295_s27 + $0x84] sm:$0xf] %vm8406_vm3, %v10258_v60  ;;  %v3301_v4 = vadd.f32 %v12553_v37, %v3300_v1  ;;  %v11145_v6 = vpop.f32.mrb[38].mxu0  ;;  %8732 = vst.msk [vmem:[%s12295_s27 + $0x514] sm:$0xf] %vm8406_vm3, %v10550_v62  ;;  %v4469_v10 = vadd.f32 %v12553_v37, %v4468_v5  ;;  %v11437_v12 = vpop.f32.mrb[38].mxu1 }
 0x130   : > { %v5528_v9 = vmax.f32 %v3309_v63, 0.0  ;;  %v3312_v11 = vadd.f32 %v12553_v37, %v11145_v6  ;;  %v3303_v13 = vpop.f32.mrb[39].mxu0  ;;  %v5820_v15 = vmax.f32 %v4477_v3, 0.0  ;;  %v4480_v17 = vadd.f32 %v12553_v37, %v11437_v12  ;;  %v4471_v19 = vpop.f32.mrb[39].mxu1 }
 0x131   : > { %v5526_v16 = vmax.f32 %v3301_v4, 0.0  ;;  %v3304_v18 = vadd.f32 %v12553_v37, %v3303_v13  ;;  %v5818_v21 = vmax.f32 %v4469_v10, 0.0  ;;  %v4472_v23 = vadd.f32 %v12553_v37, %v4471_v19 }
 0x132   : > { %v10263_v20 = vpack.c.bf16 %v5528_v9, %v5528_v9  ;;  %v5529_v22 = vmax.f32 %v3312_v11, 0.0  ;;  %11251 = vmatmul.mubr.msk.bf16.gmra.mrb[144].mxu0 %vm2238_vm2, %v11851_v2  ;;  %v10555_v24 = vpack.c.bf16 %v5820_v15, %v5820_v15  ;;  %v5821_v26 = vmax.f32 %v4480_v17, 0.0  ;;  %11543 = vmatmul.mubr.msk.bf16.gmra.mrb[144].mxu1 %vm2238_vm2, %v11852_v7  ;;  %v11859_v11 = vld [vmem:[%s12054_s22 + $0x268] sm:$0xff]   ;;  %v11861_v17 = vld [vmem:[%s12054_s22 + $0x270] sm:$0xff]  }
 0x133   : > { %v10261_v25 = vpack.c.bf16 %v5526_v16, %v5526_v16  ;;  %v5527_v27 = vmax.f32 %v3304_v18, 0.0  ;;  %11254 = vmatprep.mubr.msk.bf16.mxu0 %vm2238_vm2, %v11853_v8  ;;  %v10553_v28 = vpack.c.bf16 %v5818_v21, %v5818_v21  ;;  %v5819_v30 = vmax.f32 %v4472_v23, 0.0  ;;  %11546 = vmatprep.mubr.msk.bf16.mxu1 %vm2238_vm2, %v11854_v14  ;;  %v11860_v16 = vld [vmem:[%s12054_s22 + $0x6f8] sm:$0xff]   ;;  %v11862_v23 = vld [vmem:[%s12054_s22 + $0x700] sm:$0xff]  }
 0x134   : > { %8445 = vst.msk [vmem:[%s12295_s27 + $0x98] sm:$0xf] %vm8406_vm3, %v10263_v20  ;;  %v10264_v29 = vpack.c.bf16 %v5529_v22, %v5529_v22  ;;  %8737 = vst.msk [vmem:[%s12295_s27 + $0x528] sm:$0xf] %vm8406_vm3, %v10555_v24  ;;  %v10556_v31 = vpack.c.bf16 %v5821_v26, %v5821_v26 }
 0x135   : > { %8443 = vst.msk [vmem:[%s12295_s27 + $0x90] sm:$0xf] %vm8406_vm3, %v10261_v25  ;;  %v10262_v32 = vpack.c.bf16 %v5527_v27, %v5527_v27  ;;  %v11148_v33 = vpop.f32.mrb[40].mxu0  ;;  %8735 = vst.msk [vmem:[%s12295_s27 + $0x520] sm:$0xf] %vm8406_vm3, %v10553_v28  ;;  %v10554_v34 = vpack.c.bf16 %v5819_v30, %v5819_v30  ;;  %v11440_v36 = vpop.f32.mrb[40].mxu1 }
 0x136   : > { %8446 = vst.msk [vmem:[%s12295_s27 + $0x9c] sm:$0xf] %vm8406_vm3, %v10264_v29  ;;  %v3325_v35 = vadd.f32 %v12553_v37, %v11148_v33  ;;  %v3316_v38 = vpop.f32.mrb[41].mxu0  ;;  %8738 = vst.msk [vmem:[%s12295_s27 + $0x52c] sm:$0xf] %vm8406_vm3, %v10556_v31  ;;  %v4493_v40 = vadd.f32 %v12553_v37, %v11440_v36  ;;  %v4484_v42 = vpop.f32.mrb[41].mxu1 }
 0x137   : > { %8444 = vst.msk [vmem:[%s12295_s27 + $0x94] sm:$0xf] %vm8406_vm3, %v10262_v32  ;;  %v3317_v41 = vadd.f32 %v12553_v37, %v3316_v38  ;;  %v11149_v43 = vpop.f32.mrb[42].mxu0  ;;  %8736 = vst.msk [vmem:[%s12295_s27 + $0x524] sm:$0xf] %vm8406_vm3, %v10554_v34  ;;  %v4485_v46 = vadd.f32 %v12553_v37, %v4484_v42  ;;  %v11441_v48 = vpop.f32.mrb[42].mxu1 }
 0x138   : > { %v5532_v45 = vmax.f32 %v3325_v35, 0.0  ;;  %v3328_v47 = vadd.f32 %v12553_v37, %v11149_v43  ;;  %v3319_v49 = vpop.f32.mrb[43].mxu0  ;;  %v5824_v51 = vmax.f32 %v4493_v40, 0.0  ;;  %v4496_v54 = vadd.f32 %v12553_v37, %v11441_v48  ;;  %v4487_v56 = vpop.f32.mrb[43].mxu1 }
 0x139   : > { %v5530_v53 = vmax.f32 %v3317_v41, 0.0  ;;  %v3320_v55 = vadd.f32 %v12553_v37, %v3319_v49  ;;  %v5822_v58 = vmax.f32 %v4485_v46, 0.0  ;;  %v4488_v60 = vadd.f32 %v12553_v37, %v4487_v56 }
 0x13a   : > { %v10267_v57 = vpack.c.bf16 %v5532_v45, %v5532_v45  ;;  %v5533_v59 = vmax.f32 %v3328_v47, 0.0  ;;  %11255 = vmatmul.mubr.msk.bf16.gmra.mrb[148].mxu0 %vm2238_vm2, %v11855_v39  ;;  %v10559_v61 = vpack.c.bf16 %v5824_v51, %v5824_v51  ;;  %v5825_v63 = vmax.f32 %v4496_v54, 0.0  ;;  %11547 = vmatmul.mubr.msk.bf16.gmra.mrb[148].mxu1 %vm2238_vm2, %v11856_v52  ;;  %v11863_v47 = vld [vmem:[%s12054_s22 + $0x278] sm:$0xff]   ;;  %v11865_v54 = vld [vmem:[%s12054_s22 + $0x280] sm:$0xff]  }
 0x13b   : > { %v10265_v62 = vpack.c.bf16 %v5530_v53, %v5530_v53  ;;  %v5531_v0 = vmax.f32 %v3320_v55, 0.0  ;;  %11258 = vmatprep.mubr.msk.bf16.mxu0 %vm2238_vm2, %v11857_v44  ;;  %v10557_v1 = vpack.c.bf16 %v5822_v58, %v5822_v58  ;;  %v5823_v3 = vmax.f32 %v4488_v60, 0.0  ;;  %11550 = vmatprep.mubr.msk.bf16.mxu1 %vm2238_vm2, %v11858_v50  ;;  %v11864_v53 = vld [vmem:[%s12054_s22 + $0x708] sm:$0xff]   ;;  %v11866_v60 = vld [vmem:[%s12054_s22 + $0x710] sm:$0xff]  }
 0x13c   : > { %8449 = vst.msk [vmem:[%s12295_s27 + $0xa8] sm:$0xf] %vm8406_vm3, %v10267_v57  ;;  %v10268_v2 = vpack.c.bf16 %v5533_v59, %v5533_v59  ;;  %8741 = vst.msk [vmem:[%s12295_s27 + $0x538] sm:$0xf] %vm8406_vm3, %v10559_v61  ;;  %v10560_v4 = vpack.c.bf16 %v5825_v63, %v5825_v63 }
 0x13d   : > { %8447 = vst.msk [vmem:[%s12295_s27 + $0xa0] sm:$0xf] %vm8406_vm3, %v10265_v62  ;;  %v10266_v5 = vpack.c.bf16 %v5531_v0, %v5531_v0  ;;  %v11152_v6 = vpop.f32.mrb[44].mxu0  ;;  %8739 = vst.msk [vmem:[%s12295_s27 + $0x530] sm:$0xf] %vm8406_vm3, %v10557_v1  ;;  %v10558_v7 = vpack.c.bf16 %v5823_v3, %v5823_v3  ;;  %v11444_v9 = vpop.f32.mrb[44].mxu1 }
 0x13e   : > { %8450 = vst.msk [vmem:[%s12295_s27 + $0xac] sm:$0xf] %vm8406_vm3, %v10268_v2  ;;  %v3341_v8 = vadd.f32 %v12553_v37, %v11152_v6  ;;  %v3332_v10 = vpop.f32.mrb[45].mxu0  ;;  %8742 = vst.msk [vmem:[%s12295_s27 + $0x53c] sm:$0xf] %vm8406_vm3, %v10560_v4  ;;  %v4509_v12 = vadd.f32 %v12553_v37, %v11444_v9  ;;  %v4500_v14 = vpop.f32.mrb[45].mxu1 }
 0x13f   : > { %8448 = vst.msk [vmem:[%s12295_s27 + $0xa4] sm:$0xf] %vm8406_vm3, %v10266_v5  ;;  %v3333_v13 = vadd.f32 %v12553_v37, %v3332_v10  ;;  %v11153_v15 = vpop.f32.mrb[46].mxu0  ;;  %8740 = vst.msk [vmem:[%s12295_s27 + $0x534] sm:$0xf] %vm8406_vm3, %v10558_v7  ;;  %v4501_v19 = vadd.f32 %v12553_v37, %v4500_v14  ;;  %v11445_v21 = vpop.f32.mrb[46].mxu1 }
 0x140   : > { %v5536_v18 = vmax.f32 %v3341_v8, 0.0  ;;  %v3344_v20 = vadd.f32 %v12553_v37, %v11153_v15  ;;  %v3335_v22 = vpop.f32.mrb[47].mxu0  ;;  %v5828_v24 = vmax.f32 %v4509_v12, 0.0  ;;  %v4512_v26 = vadd.f32 %v12553_v37, %v11445_v21  ;;  %v4503_v28 = vpop.f32.mrb[47].mxu1 }
 0x141   : > { %v5534_v25 = vmax.f32 %v3333_v13, 0.0  ;;  %v3336_v27 = vadd.f32 %v12553_v37, %v3335_v22  ;;  %v5826_v30 = vmax.f32 %v4501_v19, 0.0  ;;  %v4504_v32 = vadd.f32 %v12553_v37, %v4503_v28 }
 0x142   : > { %v10271_v29 = vpack.c.bf16 %v5536_v18, %v5536_v18  ;;  %v5537_v31 = vmax.f32 %v3344_v20, 0.0  ;;  %11259 = vmatmul.mubr.msk.bf16.gmra.mrb[152].mxu0 %vm2238_vm2, %v11859_v11  ;;  %v10563_v33 = vpack.c.bf16 %v5828_v24, %v5828_v24  ;;  %v5829_v35 = vmax.f32 %v4512_v26, 0.0  ;;  %11551 = vmatmul.mubr.msk.bf16.gmra.mrb[152].mxu1 %vm2238_vm2, %v11860_v16  ;;  %v11867_v20 = vld [vmem:[%s12054_s22 + $0x288] sm:$0xff]   ;;  %v11869_v26 = vld [vmem:[%s12054_s22 + $0x290] sm:$0xff]  }
 0x143   : > { %v10269_v34 = vpack.c.bf16 %v5534_v25, %v5534_v25  ;;  %v5535_v36 = vmax.f32 %v3336_v27, 0.0  ;;  %11262 = vmatprep.mubr.msk.bf16.mxu0 %vm2238_vm2, %v11861_v17  ;;  %v10561_v38 = vpack.c.bf16 %v5826_v30, %v5826_v30  ;;  %v5827_v40 = vmax.f32 %v4504_v32, 0.0  ;;  %11554 = vmatprep.mubr.msk.bf16.mxu1 %vm2238_vm2, %v11862_v23  ;;  %v11868_v25 = vld [vmem:[%s12054_s22 + $0x718] sm:$0xff]   ;;  %v11870_v32 = vld [vmem:[%s12054_s22 + $0x720] sm:$0xff]  }
 0x144   : > { %8453 = vst.msk [vmem:[%s12295_s27 + $0xb8] sm:$0xf] %vm8406_vm3, %v10271_v29  ;;  %v10272_v39 = vpack.c.bf16 %v5537_v31, %v5537_v31  ;;  %8745 = vst.msk [vmem:[%s12295_s27 + $0x548] sm:$0xf] %vm8406_vm3, %v10563_v33  ;;  %v10564_v41 = vpack.c.bf16 %v5829_v35, %v5829_v35 }
 0x145   : > { %8451 = vst.msk [vmem:[%s12295_s27 + $0xb0] sm:$0xf] %vm8406_vm3, %v10269_v34  ;;  %v10270_v42 = vpack.c.bf16 %v5535_v36, %v5535_v36  ;;  %v11156_v43 = vpop.f32.mrb[48].mxu0  ;;  %8743 = vst.msk [vmem:[%s12295_s27 + $0x540] sm:$0xf] %vm8406_vm3, %v10561_v38  ;;  %v10562_v52 = vpack.c.bf16 %v5827_v40, %v5827_v40  ;;  %v11448_v45 = vpop.f32.mrb[48].mxu1 }
 0x146   : > { %8454 = vst.msk [vmem:[%s12295_s27 + $0xbc] sm:$0xf] %vm8406_vm3, %v10272_v39  ;;  %v3357_v44 = vadd.f32 %v12553_v37, %v11156_v43  ;;  %v3348_v46 = vpop.f32.mrb[49].mxu0  ;;  %8746 = vst.msk [vmem:[%s12295_s27 + $0x54c] sm:$0xf] %vm8406_vm3, %v10564_v41  ;;  %v4525_v48 = vadd.f32 %v12553_v37, %v11448_v45  ;;  %v4516_v50 = vpop.f32.mrb[49].mxu1 }
 0x147   : > { %8452 = vst.msk [vmem:[%s12295_s27 + $0xb4] sm:$0xf] %vm8406_vm3, %v10270_v42  ;;  %v3349_v49 = vadd.f32 %v12553_v37, %v3348_v46  ;;  %v11157_v51 = vpop.f32.mrb[50].mxu0  ;;  %8744 = vst.msk [vmem:[%s12295_s27 + $0x544] sm:$0xf] %vm8406_vm3, %v10562_v52  ;;  %v4517_v56 = vadd.f32 %v12553_v37, %v4516_v50  ;;  %v11449_v58 = vpop.f32.mrb[50].mxu1 }
 0x148   : > { %v5540_v55 = vmax.f32 %v3357_v44, 0.0  ;;  %v3360_v57 = vadd.f32 %v12553_v37, %v11157_v51  ;;  %v3351_v59 = vpop.f32.mrb[51].mxu0  ;;  %v5832_v61 = vmax.f32 %v4525_v48, 0.0  ;;  %v4528_v63 = vadd.f32 %v12553_v37, %v11449_v58  ;;  %v4519_v1 = vpop.f32.mrb[51].mxu1 }
 0x149   : > { %v5538_v62 = vmax.f32 %v3349_v49, 0.0  ;;  %v3352_v0 = vadd.f32 %v12553_v37, %v3351_v59  ;;  %v5830_v3 = vmax.f32 %v4517_v56, 0.0  ;;  %v4520_v5 = vadd.f32 %v12553_v37, %v4519_v1 }
 0x14a   : > { %v10275_v2 = vpack.c.bf16 %v5540_v55, %v5540_v55  ;;  %v5541_v4 = vmax.f32 %v3360_v57, 0.0  ;;  %11263 = vmatmul.mubr.msk.bf16.gmra.mrb[156].mxu0 %vm2238_vm2, %v11863_v47  ;;  %v10567_v6 = vpack.c.bf16 %v5832_v61, %v5832_v61  ;;  %v5833_v8 = vmax.f32 %v4528_v63, 0.0  ;;  %11555 = vmatmul.mubr.msk.bf16.gmra.mrb[156].mxu1 %vm2238_vm2, %v11864_v53  ;;  %v11871_v57 = vld [vmem:[%s12054_s22 + $0x298] sm:$0xff]   ;;  %v11873_v63 = vld [vmem:[%s12054_s22 + $0x2a0] sm:$0xff]  }
 0x14b   : > { %v10273_v7 = vpack.c.bf16 %v5538_v62, %v5538_v62  ;;  %v5539_v9 = vmax.f32 %v3352_v0, 0.0  ;;  %11266 = vmatprep.mubr.msk.bf16.mxu0 %vm2238_vm2, %v11865_v54  ;;  %v10565_v10 = vpack.c.bf16 %v5830_v3, %v5830_v3  ;;  %v5831_v12 = vmax.f32 %v4520_v5, 0.0  ;;  %11558 = vmatprep.mubr.msk.bf16.mxu1 %vm2238_vm2, %v11866_v60  ;;  %v11872_v62 = vld [vmem:[%s12054_s22 + $0x728] sm:$0xff]   ;;  %v11874_v5 = vld [vmem:[%s12054_s22 + $0x730] sm:$0xff]  }
 0x14c   : > { %8457 = vst.msk [vmem:[%s12295_s27 + $0xc8] sm:$0xf] %vm8406_vm3, %v10275_v2  ;;  %v10276_v11 = vpack.c.bf16 %v5541_v4, %v5541_v4  ;;  %8749 = vst.msk [vmem:[%s12295_s27 + $0x558] sm:$0xf] %vm8406_vm3, %v10567_v6  ;;  %v10568_v13 = vpack.c.bf16 %v5833_v8, %v5833_v8 }
 0x14d   : > { %8455 = vst.msk [vmem:[%s12295_s27 + $0xc0] sm:$0xf] %vm8406_vm3, %v10273_v7  ;;  %v10274_v14 = vpack.c.bf16 %v5539_v9, %v5539_v9  ;;  %v11160_v15 = vpop.f32.mrb[52].mxu0  ;;  %8747 = vst.msk [vmem:[%s12295_s27 + $0x550] sm:$0xf] %vm8406_vm3, %v10565_v10  ;;  %v10566_v16 = vpack.c.bf16 %v5831_v12, %v5831_v12  ;;  %v11452_v18 = vpop.f32.mrb[52].mxu1 }
 0x14e   : > { %8458 = vst.msk [vmem:[%s12295_s27 + $0xcc] sm:$0xf] %vm8406_vm3, %v10276_v11  ;;  %v3373_v17 = vadd.f32 %v12553_v37, %v11160_v15  ;;  %v3364_v19 = vpop.f32.mrb[53].mxu0  ;;  %8750 = vst.msk [vmem:[%s12295_s27 + $0x55c] sm:$0xf] %vm8406_vm3, %v10568_v13  ;;  %v4541_v21 = vadd.f32 %v12553_v37, %v11452_v18  ;;  %v4532_v23 = vpop.f32.mrb[53].mxu1 }
 0x14f   : > { %8456 = vst.msk [vmem:[%s12295_s27 + $0xc4] sm:$0xf] %vm8406_vm3, %v10274_v14  ;;  %v3365_v22 = vadd.f32 %v12553_v37, %v3364_v19  ;;  %v11161_v24 = vpop.f32.mrb[54].mxu0  ;;  %8748 = vst.msk [vmem:[%s12295_s27 + $0x554] sm:$0xf] %vm8406_vm3, %v10566_v16  ;;  %v4533_v28 = vadd.f32 %v12553_v37, %v4532_v23  ;;  %v11453_v30 = vpop.f32.mrb[54].mxu1 }
 0x150   : > { %v5544_v27 = vmax.f32 %v3373_v17, 0.0  ;;  %v3376_v29 = vadd.f32 %v12553_v37, %v11161_v24  ;;  %v3367_v31 = vpop.f32.mrb[55].mxu0  ;;  %v5836_v33 = vmax.f32 %v4541_v21, 0.0  ;;  %v4544_v35 = vadd.f32 %v12553_v37, %v11453_v30  ;;  %v4535_v38 = vpop.f32.mrb[55].mxu1 }
 0x151   : > { %v5542_v34 = vmax.f32 %v3365_v22, 0.0  ;;  %v3368_v36 = vadd.f32 %v12553_v37, %v3367_v31  ;;  %v5834_v40 = vmax.f32 %v4533_v28, 0.0  ;;  %v4536_v42 = vadd.f32 %v12553_v37, %v4535_v38 }
 0x152   : > { %v10279_v39 = vpack.c.bf16 %v5544_v27, %v5544_v27  ;;  %v5545_v41 = vmax.f32 %v3376_v29, 0.0  ;;  %11267 = vmatmul.mubr.msk.bf16.gmra.mrb[160].mxu0 %vm2238_vm2, %v11867_v20  ;;  %v10571_v43 = vpack.c.bf16 %v5836_v33, %v5836_v33  ;;  %v5837_v44 = vmax.f32 %v4544_v35, 0.0  ;;  %11559 = vmatmul.mubr.msk.bf16.gmra.mrb[160].mxu1 %vm2238_vm2, %v11868_v25  ;;  %v11875_v29 = vld [vmem:[%s12054_s22 + $0x2a8] sm:$0xff]   ;;  %v11877_v35 = vld [vmem:[%s12054_s22 + $0x2b0] sm:$0xff]  }
 0x153   : > { %v10277_v52 = vpack.c.bf16 %v5542_v34, %v5542_v34  ;;  %v5543_v45 = vmax.f32 %v3368_v36, 0.0  ;;  %11270 = vmatprep.mubr.msk.bf16.mxu0 %vm2238_vm2, %v11869_v26  ;;  %v10569_v46 = vpack.c.bf16 %v5834_v40, %v5834_v40  ;;  %v5835_v48 = vmax.f32 %v4536_v42, 0.0  ;;  %11562 = vmatprep.mubr.msk.bf16.mxu1 %vm2238_vm2, %v11870_v32  ;;  %v11876_v34 = vld [vmem:[%s12054_s22 + $0x738] sm:$0xff]   ;;  %v11878_v42 = vld [vmem:[%s12054_s22 + $0x740] sm:$0xff]  }
 0x154   : > { %8461 = vst.msk [vmem:[%s12295_s27 + $0xd8] sm:$0xf] %vm8406_vm3, %v10279_v39  ;;  %v10280_v47 = vpack.c.bf16 %v5545_v41, %v5545_v41  ;;  %8753 = vst.msk [vmem:[%s12295_s27 + $0x568] sm:$0xf] %vm8406_vm3, %v10571_v43  ;;  %v10572_v49 = vpack.c.bf16 %v5837_v44, %v5837_v44 }
 0x155   : > { %8459 = vst.msk [vmem:[%s12295_s27 + $0xd0] sm:$0xf] %vm8406_vm3, %v10277_v52  ;;  %v10278_v50 = vpack.c.bf16 %v5543_v45, %v5543_v45  ;;  %v11164_v51 = vpop.f32.mrb[56].mxu0  ;;  %8751 = vst.msk [vmem:[%s12295_s27 + $0x560] sm:$0xf] %vm8406_vm3, %v10569_v46  ;;  %v10570_v53 = vpack.c.bf16 %v5835_v48, %v5835_v48  ;;  %v11456_v55 = vpop.f32.mrb[56].mxu1 }
 0x156   : > { %8462 = vst.msk [vmem:[%s12295_s27 + $0xdc] sm:$0xf] %vm8406_vm3, %v10280_v47  ;;  %v3389_v54 = vadd.f32 %v12553_v37, %v11164_v51  ;;  %v3380_v56 = vpop.f32.mrb[57].mxu0  ;;  %8754 = vst.msk [vmem:[%s12295_s27 + $0x56c] sm:$0xf] %vm8406_vm3, %v10572_v49  ;;  %v4557_v58 = vadd.f32 %v12553_v37, %v11456_v55  ;;  %v4548_v60 = vpop.f32.mrb[57].mxu1 }
 0x157   : > { %8460 = vst.msk [vmem:[%s12295_s27 + $0xd4] sm:$0xf] %vm8406_vm3, %v10278_v50  ;;  %v3381_v59 = vadd.f32 %v12553_v37, %v3380_v56  ;;  %v11165_v61 = vpop.f32.mrb[58].mxu0  ;;  %8752 = vst.msk [vmem:[%s12295_s27 + $0x564] sm:$0xf] %vm8406_vm3, %v10570_v53  ;;  %v4549_v1 = vadd.f32 %v12553_v37, %v4548_v60  ;;  %v11457_v3 = vpop.f32.mrb[58].mxu1 }
 0x158   : > { %v5548_v0 = vmax.f32 %v3389_v54, 0.0  ;;  %v3392_v2 = vadd.f32 %v12553_v37, %v11165_v61  ;;  %v3383_v4 = vpop.f32.mrb[59].mxu0  ;;  %v5840_v6 = vmax.f32 %v4557_v58, 0.0  ;;  %v4560_v8 = vadd.f32 %v12553_v37, %v11457_v3  ;;  %v4551_v10 = vpop.f32.mrb[59].mxu1 }
 0x159   : > { %v5546_v7 = vmax.f32 %v3381_v59, 0.0  ;;  %v3384_v9 = vadd.f32 %v12553_v37, %v3383_v4  ;;  %v5838_v12 = vmax.f32 %v4549_v1, 0.0  ;;  %v4552_v14 = vadd.f32 %v12553_v37, %v4551_v10 }
 0x15a   : > { %v10283_v11 = vpack.c.bf16 %v5548_v0, %v5548_v0  ;;  %v5549_v13 = vmax.f32 %v3392_v2, 0.0  ;;  %11271 = vmatmul.mubr.msk.bf16.gmra.mrb[164].mxu0 %vm2238_vm2, %v11871_v57  ;;  %v10575_v15 = vpack.c.bf16 %v5840_v6, %v5840_v6  ;;  %v5841_v17 = vmax.f32 %v4560_v8, 0.0  ;;  %11563 = vmatmul.mubr.msk.bf16.gmra.mrb[164].mxu1 %vm2238_vm2, %v11872_v62  ;;  %v11879_v2 = vld [vmem:[%s12054_s22 + $0x2b8] sm:$0xff]   ;;  %v11881_v8 = vld [vmem:[%s12054_s22 + $0x2c0] sm:$0xff]  }
 0x15b   : > { %v10281_v16 = vpack.c.bf16 %v5546_v7, %v5546_v7  ;;  %v5547_v18 = vmax.f32 %v3384_v9, 0.0  ;;  %11274 = vmatprep.mubr.msk.bf16.mxu0 %vm2238_vm2, %v11873_v63  ;;  %v10573_v19 = vpack.c.bf16 %v5838_v12, %v5838_v12  ;;  %v5839_v21 = vmax.f32 %v4552_v14, 0.0  ;;  %11566 = vmatprep.mubr.msk.bf16.mxu1 %vm2238_vm2, %v11874_v5  ;;  %v11880_v7 = vld [vmem:[%s12054_s22 + $0x748] sm:$0xff]   ;;  %v11882_v14 = vld [vmem:[%s12054_s22 + $0x750] sm:$0xff]  }
 0x15c   : > { %8465 = vst.msk [vmem:[%s12295_s27 + $0xe8] sm:$0xf] %vm8406_vm3, %v10283_v11  ;;  %v10284_v20 = vpack.c.bf16 %v5549_v13, %v5549_v13  ;;  %8757 = vst.msk [vmem:[%s12295_s27 + $0x578] sm:$0xf] %vm8406_vm3, %v10575_v15  ;;  %v10576_v22 = vpack.c.bf16 %v5841_v17, %v5841_v17 }
 0x15d   : > { %8463 = vst.msk [vmem:[%s12295_s27 + $0xe0] sm:$0xf] %vm8406_vm3, %v10281_v16  ;;  %v10282_v23 = vpack.c.bf16 %v5547_v18, %v5547_v18  ;;  %v11168_v24 = vpop.f32.mrb[60].mxu0  ;;  %8755 = vst.msk [vmem:[%s12295_s27 + $0x570] sm:$0xf] %vm8406_vm3, %v10573_v19  ;;  %v10574_v25 = vpack.c.bf16 %v5839_v21, %v5839_v21  ;;  %v11460_v27 = vpop.f32.mrb[60].mxu1 }
 0x15e   : > { %8466 = vst.msk [vmem:[%s12295_s27 + $0xec] sm:$0xf] %vm8406_vm3, %v10284_v20  ;;  %v3405_v26 = vadd.f32 %v12553_v37, %v11168_v24  ;;  %v3396_v28 = vpop.f32.mrb[61].mxu0  ;;  %8758 = vst.msk [vmem:[%s12295_s27 + $0x57c] sm:$0xf] %vm8406_vm3, %v10576_v22  ;;  %v4573_v30 = vadd.f32 %v12553_v37, %v11460_v27  ;;  %v4564_v32 = vpop.f32.mrb[61].mxu1 }
 0x15f   : > { %8464 = vst.msk [vmem:[%s12295_s27 + $0xe4] sm:$0xf] %vm8406_vm3, %v10282_v23  ;;  %v3397_v31 = vadd.f32 %v12553_v37, %v3396_v28  ;;  %v11169_v33 = vpop.f32.mrb[62].mxu0  ;;  %8756 = vst.msk [vmem:[%s12295_s27 + $0x574] sm:$0xf] %vm8406_vm3, %v10574_v25  ;;  %v4565_v38 = vadd.f32 %v12553_v37, %v4564_v32  ;;  %v11461_v40 = vpop.f32.mrb[62].mxu1 }
 0x160   : > { %v5552_v36 = vmax.f32 %v3405_v26, 0.0  ;;  %v3408_v39 = vadd.f32 %v12553_v37, %v11169_v33  ;;  %v3399_v41 = vpop.f32.mrb[63].mxu0  ;;  %v5844_v43 = vmax.f32 %v4573_v30, 0.0  ;;  %v4576_v44 = vadd.f32 %v12553_v37, %v11461_v40  ;;  %v4567_v46 = vpop.f32.mrb[63].mxu1 }
 0x161   : > { %v5550_v52 = vmax.f32 %v3397_v31, 0.0  ;;  %v3400_v45 = vadd.f32 %v12553_v37, %v3399_v41  ;;  %v5842_v48 = vmax.f32 %v4565_v38, 0.0  ;;  %v4568_v50 = vadd.f32 %v12553_v37, %v4567_v46 }
 0x162   : > { %v10287_v47 = vpack.c.bf16 %v5552_v36, %v5552_v36  ;;  %v5553_v49 = vmax.f32 %v3408_v39, 0.0  ;;  %11275 = vmatmul.mubr.msk.bf16.gmra.mrb[168].mxu0 %vm2238_vm2, %v11875_v29  ;;  %v10579_v51 = vpack.c.bf16 %v5844_v43, %v5844_v43  ;;  %v5845_v54 = vmax.f32 %v4576_v44, 0.0  ;;  %11567 = vmatmul.mubr.msk.bf16.gmra.mrb[168].mxu1 %vm2238_vm2, %v11876_v34  ;;  %v11883_v39 = vld [vmem:[%s12054_s22 + $0x2c8] sm:$0xff]   ;;  %v11885_v44 = vld [vmem:[%s12054_s22 + $0x2d0] sm:$0xff]  }
 0x163   : > { %v10285_v53 = vpack.c.bf16 %v5550_v52, %v5550_v52  ;;  %v5551_v55 = vmax.f32 %v3400_v45, 0.0  ;;  %11278 = vmatprep.mubr.msk.bf16.mxu0 %vm2238_vm2, %v11877_v35  ;;  %v10577_v56 = vpack.c.bf16 %v5842_v48, %v5842_v48  ;;  %v5843_v58 = vmax.f32 %v4568_v50, 0.0  ;;  %11570 = vmatprep.mubr.msk.bf16.mxu1 %vm2238_vm2, %v11878_v42  ;;  %v11884_v52 = vld [vmem:[%s12054_s22 + $0x758] sm:$0xff]   ;;  %v11886_v50 = vld [vmem:[%s12054_s22 + $0x760] sm:$0xff]  }
 0x164   : > { %8469 = vst.msk [vmem:[%s12295_s27 + $0xf8] sm:$0xf] %vm8406_vm3, %v10287_v47  ;;  %v10288_v57 = vpack.c.bf16 %v5553_v49, %v5553_v49  ;;  %8761 = vst.msk [vmem:[%s12295_s27 + $0x588] sm:$0xf] %vm8406_vm3, %v10579_v51  ;;  %v10580_v59 = vpack.c.bf16 %v5845_v54, %v5845_v54 }
 0x165   : > { %8467 = vst.msk [vmem:[%s12295_s27 + $0xf0] sm:$0xf] %vm8406_vm3, %v10285_v53  ;;  %v10286_v60 = vpack.c.bf16 %v5551_v55, %v5551_v55  ;;  %v11172_v61 = vpop.f32.mrb[64].mxu0  ;;  %8759 = vst.msk [vmem:[%s12295_s27 + $0x580] sm:$0xf] %vm8406_vm3, %v10577_v56  ;;  %v10578_v62 = vpack.c.bf16 %v5843_v58, %v5843_v58  ;;  %v11464_v0 = vpop.f32.mrb[64].mxu1 }
 0x166   : > { %8470 = vst.msk [vmem:[%s12295_s27 + $0xfc] sm:$0xf] %vm8406_vm3, %v10288_v57  ;;  %v3421_v63 = vadd.f32 %v12553_v37, %v11172_v61  ;;  %v3412_v1 = vpop.f32.mrb[65].mxu0  ;;  %8762 = vst.msk [vmem:[%s12295_s27 + $0x58c] sm:$0xf] %vm8406_vm3, %v10580_v59  ;;  %v4589_v3 = vadd.f32 %v12553_v37, %v11464_v0  ;;  %v4580_v5 = vpop.f32.mrb[65].mxu1 }
 0x167   : > { %8468 = vst.msk [vmem:[%s12295_s27 + $0xf4] sm:$0xf] %vm8406_vm3, %v10286_v60  ;;  %v3413_v4 = vadd.f32 %v12553_v37, %v3412_v1  ;;  %v11173_v6 = vpop.f32.mrb[66].mxu0  ;;  %8760 = vst.msk [vmem:[%s12295_s27 + $0x584] sm:$0xf] %vm8406_vm3, %v10578_v62  ;;  %v4581_v10 = vadd.f32 %v12553_v37, %v4580_v5  ;;  %v11465_v12 = vpop.f32.mrb[66].mxu1 }
 0x168   : > { %v5556_v9 = vmax.f32 %v3421_v63, 0.0  ;;  %v3424_v11 = vadd.f32 %v12553_v37, %v11173_v6  ;;  %v3415_v13 = vpop.f32.mrb[67].mxu0  ;;  %v5848_v15 = vmax.f32 %v4589_v3, 0.0  ;;  %v4592_v17 = vadd.f32 %v12553_v37, %v11465_v12  ;;  %v4583_v19 = vpop.f32.mrb[67].mxu1 }
 0x169   : > { %v5554_v16 = vmax.f32 %v3413_v4, 0.0  ;;  %v3416_v18 = vadd.f32 %v12553_v37, %v3415_v13  ;;  %v5846_v21 = vmax.f32 %v4581_v10, 0.0  ;;  %v4584_v23 = vadd.f32 %v12553_v37, %v4583_v19 }
 0x16a   : > { %v10291_v20 = vpack.c.bf16 %v5556_v9, %v5556_v9  ;;  %v5557_v22 = vmax.f32 %v3424_v11, 0.0  ;;  %11279 = vmatmul.mubr.msk.bf16.gmra.mrb[172].mxu0 %vm2238_vm2, %v11879_v2  ;;  %v10583_v24 = vpack.c.bf16 %v5848_v15, %v5848_v15  ;;  %v5849_v26 = vmax.f32 %v4592_v17, 0.0  ;;  %11571 = vmatmul.mubr.msk.bf16.gmra.mrb[172].mxu1 %vm2238_vm2, %v11880_v7  ;;  %v11887_v11 = vld [vmem:[%s12054_s22 + $0x2d8] sm:$0xff]   ;;  %v11889_v17 = vld [vmem:[%s12054_s22 + $0x2e0] sm:$0xff]  }
 0x16b   : > { %v10289_v25 = vpack.c.bf16 %v5554_v16, %v5554_v16  ;;  %v5555_v27 = vmax.f32 %v3416_v18, 0.0  ;;  %11282 = vmatprep.mubr.msk.bf16.mxu0 %vm2238_vm2, %v11881_v8  ;;  %v10581_v28 = vpack.c.bf16 %v5846_v21, %v5846_v21  ;;  %v5847_v30 = vmax.f32 %v4584_v23, 0.0  ;;  %11574 = vmatprep.mubr.msk.bf16.mxu1 %vm2238_vm2, %v11882_v14  ;;  %v11888_v16 = vld [vmem:[%s12054_s22 + $0x768] sm:$0xff]   ;;  %v11890_v23 = vld [vmem:[%s12054_s22 + $0x770] sm:$0xff]  }
 0x16c   : > { %8473 = vst.msk [vmem:[%s12295_s27 + $0x108] sm:$0xf] %vm8406_vm3, %v10291_v20  ;;  %v10292_v29 = vpack.c.bf16 %v5557_v22, %v5557_v22  ;;  %8765 = vst.msk [vmem:[%s12295_s27 + $0x598] sm:$0xf] %vm8406_vm3, %v10583_v24  ;;  %v10584_v31 = vpack.c.bf16 %v5849_v26, %v5849_v26 }
 0x16d   : > { %8471 = vst.msk [vmem:[%s12295_s27 + $0x100] sm:$0xf] %vm8406_vm3, %v10289_v25  ;;  %v10290_v32 = vpack.c.bf16 %v5555_v27, %v5555_v27  ;;  %v11176_v33 = vpop.f32.mrb[68].mxu0  ;;  %8763 = vst.msk [vmem:[%s12295_s27 + $0x590] sm:$0xf] %vm8406_vm3, %v10581_v28  ;;  %v10582_v34 = vpack.c.bf16 %v5847_v30, %v5847_v30  ;;  %v11468_v36 = vpop.f32.mrb[68].mxu1 }
 0x16e   : > { %8474 = vst.msk [vmem:[%s12295_s27 + $0x10c] sm:$0xf] %vm8406_vm3, %v10292_v29  ;;  %v3437_v35 = vadd.f32 %v12553_v37, %v11176_v33  ;;  %v3428_v38 = vpop.f32.mrb[69].mxu0  ;;  %8766 = vst.msk [vmem:[%s12295_s27 + $0x59c] sm:$0xf] %vm8406_vm3, %v10584_v31  ;;  %v4605_v40 = vadd.f32 %v12553_v37, %v11468_v36  ;;  %v4596_v42 = vpop.f32.mrb[69].mxu1 }
 0x16f   : > { %8472 = vst.msk [vmem:[%s12295_s27 + $0x104] sm:$0xf] %vm8406_vm3, %v10290_v32  ;;  %v3429_v41 = vadd.f32 %v12553_v37, %v3428_v38  ;;  %v11177_v43 = vpop.f32.mrb[70].mxu0  ;;  %8764 = vst.msk [vmem:[%s12295_s27 + $0x594] sm:$0xf] %vm8406_vm3, %v10582_v34  ;;  %v4597_v46 = vadd.f32 %v12553_v37, %v4596_v42  ;;  %v11469_v48 = vpop.f32.mrb[70].mxu1 }
 0x170   : > { %v5560_v45 = vmax.f32 %v3437_v35, 0.0  ;;  %v3440_v47 = vadd.f32 %v12553_v37, %v11177_v43  ;;  %v3431_v49 = vpop.f32.mrb[71].mxu0  ;;  %v5852_v51 = vmax.f32 %v4605_v40, 0.0  ;;  %v4608_v54 = vadd.f32 %v12553_v37, %v11469_v48  ;;  %v4599_v56 = vpop.f32.mrb[71].mxu1 }
 0x171   : > { %v5558_v53 = vmax.f32 %v3429_v41, 0.0  ;;  %v3432_v55 = vadd.f32 %v12553_v37, %v3431_v49  ;;  %v5850_v58 = vmax.f32 %v4597_v46, 0.0  ;;  %v4600_v60 = vadd.f32 %v12553_v37, %v4599_v56 }
 0x172   : > { %v10295_v57 = vpack.c.bf16 %v5560_v45, %v5560_v45  ;;  %v5561_v59 = vmax.f32 %v3440_v47, 0.0  ;;  %11283 = vmatmul.mubr.msk.bf16.gmra.mrb[176].mxu0 %vm2238_vm2, %v11883_v39  ;;  %v10587_v61 = vpack.c.bf16 %v5852_v51, %v5852_v51  ;;  %v5853_v63 = vmax.f32 %v4608_v54, 0.0  ;;  %11575 = vmatmul.mubr.msk.bf16.gmra.mrb[176].mxu1 %vm2238_vm2, %v11884_v52  ;;  %v12898_v52 = vld [vmem:[%s14436_s2] ss:$0 sm:$0xff]  ;;  %v11891_v47 = vld [vmem:[%s12054_s22 + $0x2e8] sm:$0xff]   ;;  %v11893_v54 = vld [vmem:[%s12054_s22 + $0x2f0] sm:$0xff]  }
 0x173   : > { %v10293_v62 = vpack.c.bf16 %v5558_v53, %v5558_v53  ;;  %v5559_v0 = vmax.f32 %v3432_v55, 0.0  ;;  %11286 = vmatprep.mubr.msk.bf16.mxu0 %vm2238_vm2, %v11885_v44  ;;  %v10585_v1 = vpack.c.bf16 %v5850_v58, %v5850_v58  ;;  %v5851_v3 = vmax.f32 %v4600_v60, 0.0  ;;  %11578 = vmatprep.mubr.msk.bf16.mxu1 %vm2238_vm2, %v11886_v50  ;;  %v11892_v53 = vld [vmem:[%s12054_s22 + $0x778] sm:$0xff]   ;;  %v11894_v60 = vld [vmem:[%s12054_s22 + $0x780] sm:$0xff]  }
 0x174   : > { %8477 = vst.msk [vmem:[%s12295_s27 + $0x118] sm:$0xf] %vm8406_vm3, %v10295_v57  ;;  %v10296_v2 = vpack.c.bf16 %v5561_v59, %v5561_v59  ;;  %8769 = vst.msk [vmem:[%s12295_s27 + $0x5a8] sm:$0xf] %vm8406_vm3, %v10587_v61  ;;  %v10588_v4 = vpack.c.bf16 %v5853_v63, %v5853_v63 }
 0x175   : > { %8475 = vst.msk [vmem:[%s12295_s27 + $0x110] sm:$0xf] %vm8406_vm3, %v10293_v62  ;;  %v10294_v5 = vpack.c.bf16 %v5559_v0, %v5559_v0  ;;  %v11180_v6 = vpop.f32.mrb[72].mxu0  ;;  %8767 = vst.msk [vmem:[%s12295_s27 + $0x5a0] sm:$0xf] %vm8406_vm3, %v10585_v1  ;;  %v10586_v7 = vpack.c.bf16 %v5851_v3, %v5851_v3  ;;  %v11472_v9 = vpop.f32.mrb[72].mxu1 }
 0x176   : > { %8478 = vst.msk [vmem:[%s12295_s27 + $0x11c] sm:$0xf] %vm8406_vm3, %v10296_v2  ;;  %v3453_v8 = vadd.f32 %v12553_v37, %v11180_v6  ;;  %v3444_v10 = vpop.f32.mrb[73].mxu0  ;;  %8770 = vst.msk [vmem:[%s12295_s27 + $0x5ac] sm:$0xf] %vm8406_vm3, %v10588_v4  ;;  %v4621_v12 = vadd.f32 %v12553_v37, %v11472_v9  ;;  %v4612_v14 = vpop.f32.mrb[73].mxu1 }
 0x177   : > { %8476 = vst.msk [vmem:[%s12295_s27 + $0x114] sm:$0xf] %vm8406_vm3, %v10294_v5  ;;  %v3445_v13 = vadd.f32 %v12553_v37, %v3444_v10  ;;  %v11181_v15 = vpop.f32.mrb[74].mxu0  ;;  %8768 = vst.msk [vmem:[%s12295_s27 + $0x5a4] sm:$0xf] %vm8406_vm3, %v10586_v7  ;;  %v4613_v19 = vadd.f32 %v12553_v37, %v4612_v14  ;;  %v11473_v21 = vpop.f32.mrb[74].mxu1 }
 0x178   : > { %v5564_v18 = vmax.f32 %v3453_v8, 0.0  ;;  %v3456_v20 = vadd.f32 %v12553_v37, %v11181_v15  ;;  %v3447_v22 = vpop.f32.mrb[75].mxu0  ;;  %v5856_v24 = vmax.f32 %v4621_v12, 0.0  ;;  %v4624_v26 = vadd.f32 %v12553_v37, %v11473_v21  ;;  %v4615_v28 = vpop.f32.mrb[75].mxu1 }
 0x179   : > { %v5562_v25 = vmax.f32 %v3445_v13, 0.0  ;;  %v3448_v27 = vadd.f32 %v12553_v37, %v3447_v22  ;;  %v5854_v30 = vmax.f32 %v4613_v19, 0.0  ;;  %v4616_v32 = vadd.f32 %v12553_v37, %v4615_v28 }
 0x17a   : > { %v10299_v29 = vpack.c.bf16 %v5564_v18, %v5564_v18  ;;  %v5565_v31 = vmax.f32 %v3456_v20, 0.0  ;;  %11287 = vmatmul.mubr.msk.bf16.gmra.mrb[180].mxu0 %vm2238_vm2, %v11887_v11  ;;  %v10591_v33 = vpack.c.bf16 %v5856_v24, %v5856_v24  ;;  %v5857_v35 = vmax.f32 %v4624_v26, 0.0  ;;  %11579 = vmatmul.mubr.msk.bf16.gmra.mrb[180].mxu1 %vm2238_vm2, %v11888_v16  ;;  %v11895_v20 = vld [vmem:[%s12054_s22 + $0x2f8] sm:$0xff]   ;;  %v11897_v26 = vld [vmem:[%s12054_s22 + $0x300] sm:$0xff]  }
 0x17b   : > { %v10297_v34 = vpack.c.bf16 %v5562_v25, %v5562_v25  ;;  %v5563_v36 = vmax.f32 %v3448_v27, 0.0  ;;  %11290 = vmatprep.mubr.msk.bf16.mxu0 %vm2238_vm2, %v11889_v17  ;;  %v10589_v38 = vpack.c.bf16 %v5854_v30, %v5854_v30  ;;  %v5855_v40 = vmax.f32 %v4616_v32, 0.0  ;;  %11582 = vmatprep.mubr.msk.bf16.mxu1 %vm2238_vm2, %v11890_v23  ;;  %v11896_v25 = vld [vmem:[%s12054_s22 + $0x788] sm:$0xff]   ;;  %v11898_v32 = vld [vmem:[%s12054_s22 + $0x790] sm:$0xff]  }
 0x17c   : > { %8481 = vst.msk [vmem:[%s12295_s27 + $0x128] sm:$0xf] %vm8406_vm3, %v10299_v29  ;;  %v10300_v39 = vpack.c.bf16 %v5565_v31, %v5565_v31  ;;  %8773 = vst.msk [vmem:[%s12295_s27 + $0x5b8] sm:$0xf] %vm8406_vm3, %v10591_v33  ;;  %v10592_v37 = vpack.c.bf16 %v5857_v35, %v5857_v35 }
 0x17d   : > { %8479 = vst.msk [vmem:[%s12295_s27 + $0x120] sm:$0xf] %vm8406_vm3, %v10297_v34  ;;  %v10298_v41 = vpack.c.bf16 %v5563_v36, %v5563_v36  ;;  %v11184_v42 = vpop.f32.mrb[76].mxu0  ;;  %8771 = vst.msk [vmem:[%s12295_s27 + $0x5b0] sm:$0xf] %vm8406_vm3, %v10589_v38  ;;  %v10590_v43 = vpack.c.bf16 %v5855_v40, %v5855_v40  ;;  %v11476_v45 = vpop.f32.mrb[76].mxu1 }
 0x17e   : > { %8482 = vst.msk [vmem:[%s12295_s27 + $0x12c] sm:$0xf] %vm8406_vm3, %v10300_v39  ;;  %v3469_v44 = vadd.f32 %v12898_v52, %v11184_v42  ;;  %v3460_v46 = vpop.f32.mrb[77].mxu0  ;;  %8774 = vst.msk [vmem:[%s12295_s27 + $0x5bc] sm:$0xf] %vm8406_vm3, %v10592_v37  ;;  %v4637_v48 = vadd.f32 %v12898_v52, %v11476_v45  ;;  %v4628_v50 = vpop.f32.mrb[77].mxu1 }
 0x17f   : > { %8480 = vst.msk [vmem:[%s12295_s27 + $0x124] sm:$0xf] %vm8406_vm3, %v10298_v41  ;;  %v3461_v49 = vadd.f32 %v12898_v52, %v3460_v46  ;;  %v11185_v51 = vpop.f32.mrb[78].mxu0  ;;  %8772 = vst.msk [vmem:[%s12295_s27 + $0x5b4] sm:$0xf] %vm8406_vm3, %v10590_v43  ;;  %v4629_v56 = vadd.f32 %v12898_v52, %v4628_v50  ;;  %v11477_v58 = vpop.f32.mrb[78].mxu1 }
 0x180   : > { %v5568_v55 = vmax.f32 %v3469_v44, 0.0  ;;  %v3472_v57 = vadd.f32 %v12898_v52, %v11185_v51  ;;  %v3463_v59 = vpop.f32.mrb[79].mxu0  ;;  %v5860_v61 = vmax.f32 %v4637_v48, 0.0  ;;  %v4640_v63 = vadd.f32 %v12898_v52, %v11477_v58  ;;  %v4631_v1 = vpop.f32.mrb[79].mxu1 }
 0x181   : > { %v5566_v62 = vmax.f32 %v3461_v49, 0.0  ;;  %v3464_v0 = vadd.f32 %v12898_v52, %v3463_v59  ;;  %v5858_v3 = vmax.f32 %v4629_v56, 0.0  ;;  %v4632_v5 = vadd.f32 %v12898_v52, %v4631_v1 }
 0x182   : > { %v10303_v2 = vpack.c.bf16 %v5568_v55, %v5568_v55  ;;  %v5569_v4 = vmax.f32 %v3472_v57, 0.0  ;;  %11291 = vmatmul.mubr.msk.bf16.gmra.mrb[184].mxu0 %vm2238_vm2, %v11891_v47  ;;  %v10595_v6 = vpack.c.bf16 %v5860_v61, %v5860_v61  ;;  %v5861_v8 = vmax.f32 %v4640_v63, 0.0  ;;  %11583 = vmatmul.mubr.msk.bf16.gmra.mrb[184].mxu1 %vm2238_vm2, %v11892_v53  ;;  %v11899_v57 = vld [vmem:[%s12054_s22 + $0x308] sm:$0xff]   ;;  %v11901_v63 = vld [vmem:[%s12054_s22 + $0x310] sm:$0xff]  }
 0x183   : > { %v10301_v7 = vpack.c.bf16 %v5566_v62, %v5566_v62  ;;  %v5567_v9 = vmax.f32 %v3464_v0, 0.0  ;;  %11294 = vmatprep.mubr.msk.bf16.mxu0 %vm2238_vm2, %v11893_v54  ;;  %v10593_v10 = vpack.c.bf16 %v5858_v3, %v5858_v3  ;;  %v5859_v12 = vmax.f32 %v4632_v5, 0.0  ;;  %11586 = vmatprep.mubr.msk.bf16.mxu1 %vm2238_vm2, %v11894_v60  ;;  %v11900_v62 = vld [vmem:[%s12054_s22 + $0x798] sm:$0xff]   ;;  %v11902_v5 = vld [vmem:[%s12054_s22 + $0x7a0] sm:$0xff]  }
 0x184   : > { %8485 = vst.msk [vmem:[%s12295_s27 + $0x138] sm:$0xf] %vm8406_vm3, %v10303_v2  ;;  %v10304_v11 = vpack.c.bf16 %v5569_v4, %v5569_v4  ;;  %8777 = vst.msk [vmem:[%s12295_s27 + $0x5c8] sm:$0xf] %vm8406_vm3, %v10595_v6  ;;  %v10596_v13 = vpack.c.bf16 %v5861_v8, %v5861_v8 }
 0x185   : > { %8483 = vst.msk [vmem:[%s12295_s27 + $0x130] sm:$0xf] %vm8406_vm3, %v10301_v7  ;;  %v10302_v14 = vpack.c.bf16 %v5567_v9, %v5567_v9  ;;  %v11188_v15 = vpop.f32.mrb[80].mxu0  ;;  %8775 = vst.msk [vmem:[%s12295_s27 + $0x5c0] sm:$0xf] %vm8406_vm3, %v10593_v10  ;;  %v10594_v16 = vpack.c.bf16 %v5859_v12, %v5859_v12  ;;  %v11480_v18 = vpop.f32.mrb[80].mxu1 }
 0x186   : > { %8486 = vst.msk [vmem:[%s12295_s27 + $0x13c] sm:$0xf] %vm8406_vm3, %v10304_v11  ;;  %v3485_v17 = vadd.f32 %v12898_v52, %v11188_v15  ;;  %v3476_v19 = vpop.f32.mrb[81].mxu0  ;;  %8778 = vst.msk [vmem:[%s12295_s27 + $0x5cc] sm:$0xf] %vm8406_vm3, %v10596_v13  ;;  %v4653_v21 = vadd.f32 %v12898_v52, %v11480_v18  ;;  %v4644_v23 = vpop.f32.mrb[81].mxu1 }
 0x187   : > { %8484 = vst.msk [vmem:[%s12295_s27 + $0x134] sm:$0xf] %vm8406_vm3, %v10302_v14  ;;  %v3477_v22 = vadd.f32 %v12898_v52, %v3476_v19  ;;  %v11189_v24 = vpop.f32.mrb[82].mxu0  ;;  %8776 = vst.msk [vmem:[%s12295_s27 + $0x5c4] sm:$0xf] %vm8406_vm3, %v10594_v16  ;;  %v4645_v28 = vadd.f32 %v12898_v52, %v4644_v23  ;;  %v11481_v30 = vpop.f32.mrb[82].mxu1 }
 0x188   : > { %v5572_v27 = vmax.f32 %v3485_v17, 0.0  ;;  %v3488_v29 = vadd.f32 %v12898_v52, %v11189_v24  ;;  %v3479_v31 = vpop.f32.mrb[83].mxu0  ;;  %v5864_v33 = vmax.f32 %v4653_v21, 0.0  ;;  %v4656_v35 = vadd.f32 %v12898_v52, %v11481_v30  ;;  %v4647_v38 = vpop.f32.mrb[83].mxu1 }
 0x189   : > { %v5570_v34 = vmax.f32 %v3477_v22, 0.0  ;;  %v3480_v36 = vadd.f32 %v12898_v52, %v3479_v31  ;;  %v5862_v40 = vmax.f32 %v4645_v28, 0.0  ;;  %v4648_v41 = vadd.f32 %v12898_v52, %v4647_v38 }
 0x18a   : > { %v10307_v39 = vpack.c.bf16 %v5572_v27, %v5572_v27  ;;  %v5573_v37 = vmax.f32 %v3488_v29, 0.0  ;;  %11295 = vmatmul.mubr.msk.bf16.gmra.mrb[188].mxu0 %vm2238_vm2, %v11895_v20  ;;  %v10599_v42 = vpack.c.bf16 %v5864_v33, %v5864_v33  ;;  %v5865_v44 = vmax.f32 %v4656_v35, 0.0  ;;  %11587 = vmatmul.mubr.msk.bf16.gmra.mrb[188].mxu1 %vm2238_vm2, %v11896_v25  ;;  %v11903_v29 = vld [vmem:[%s12054_s22 + $0x318] sm:$0xff]   ;;  %v11905_v35 = vld [vmem:[%s12054_s22 + $0x320] sm:$0xff]  }
 0x18b   : > { %v10305_v43 = vpack.c.bf16 %v5570_v34, %v5570_v34  ;;  %v5571_v45 = vmax.f32 %v3480_v36, 0.0  ;;  %11298 = vmatprep.mubr.msk.bf16.mxu0 %vm2238_vm2, %v11897_v26  ;;  %v10597_v46 = vpack.c.bf16 %v5862_v40, %v5862_v40  ;;  %v5863_v48 = vmax.f32 %v4648_v41, 0.0  ;;  %11590 = vmatprep.mubr.msk.bf16.mxu1 %vm2238_vm2, %v11898_v32  ;;  %v11904_v34 = vld [vmem:[%s12054_s22 + $0x7a8] sm:$0xff]   ;;  %v11906_v41 = vld [vmem:[%s12054_s22 + $0x7b0] sm:$0xff]  }
 0x18c   : > { %8489 = vst.msk [vmem:[%s12295_s27 + $0x148] sm:$0xf] %vm8406_vm3, %v10307_v39  ;;  %v10308_v47 = vpack.c.bf16 %v5573_v37, %v5573_v37  ;;  %8781 = vst.msk [vmem:[%s12295_s27 + $0x5d8] sm:$0xf] %vm8406_vm3, %v10599_v42  ;;  %v10600_v49 = vpack.c.bf16 %v5865_v44, %v5865_v44 }
 0x18d   : > { %8487 = vst.msk [vmem:[%s12295_s27 + $0x140] sm:$0xf] %vm8406_vm3, %v10305_v43  ;;  %v10306_v50 = vpack.c.bf16 %v5571_v45, %v5571_v45  ;;  %v11192_v51 = vpop.f32.mrb[84].mxu0  ;;  %8779 = vst.msk [vmem:[%s12295_s27 + $0x5d0] sm:$0xf] %vm8406_vm3, %v10597_v46  ;;  %v10598_v53 = vpack.c.bf16 %v5863_v48, %v5863_v48  ;;  %v11484_v55 = vpop.f32.mrb[84].mxu1 }
 0x18e   : > { %8490 = vst.msk [vmem:[%s12295_s27 + $0x14c] sm:$0xf] %vm8406_vm3, %v10308_v47  ;;  %v3501_v54 = vadd.f32 %v12898_v52, %v11192_v51  ;;  %v3492_v56 = vpop.f32.mrb[85].mxu0  ;;  %8782 = vst.msk [vmem:[%s12295_s27 + $0x5dc] sm:$0xf] %vm8406_vm3, %v10600_v49  ;;  %v4669_v58 = vadd.f32 %v12898_v52, %v11484_v55  ;;  %v4660_v60 = vpop.f32.mrb[85].mxu1 }
 0x18f   : > { %8488 = vst.msk [vmem:[%s12295_s27 + $0x144] sm:$0xf] %vm8406_vm3, %v10306_v50  ;;  %v3493_v59 = vadd.f32 %v12898_v52, %v3492_v56  ;;  %v11193_v61 = vpop.f32.mrb[86].mxu0  ;;  %8780 = vst.msk [vmem:[%s12295_s27 + $0x5d4] sm:$0xf] %vm8406_vm3, %v10598_v53  ;;  %v4661_v1 = vadd.f32 %v12898_v52, %v4660_v60  ;;  %v11485_v3 = vpop.f32.mrb[86].mxu1 }
 0x190   : > { %v5576_v0 = vmax.f32 %v3501_v54, 0.0  ;;  %v3504_v2 = vadd.f32 %v12898_v52, %v11193_v61  ;;  %v3495_v4 = vpop.f32.mrb[87].mxu0  ;;  %v5868_v6 = vmax.f32 %v4669_v58, 0.0  ;;  %v4672_v8 = vadd.f32 %v12898_v52, %v11485_v3  ;;  %v4663_v10 = vpop.f32.mrb[87].mxu1 }
 0x191   : > { %v5574_v7 = vmax.f32 %v3493_v59, 0.0  ;;  %v3496_v9 = vadd.f32 %v12898_v52, %v3495_v4  ;;  %v5866_v12 = vmax.f32 %v4661_v1, 0.0  ;;  %v4664_v14 = vadd.f32 %v12898_v52, %v4663_v10 }
 0x192   : > { %v10311_v11 = vpack.c.bf16 %v5576_v0, %v5576_v0  ;;  %v5577_v13 = vmax.f32 %v3504_v2, 0.0  ;;  %11299 = vmatmul.mubr.msk.bf16.gmra.mrb[192].mxu0 %vm2238_vm2, %v11899_v57  ;;  %v10603_v15 = vpack.c.bf16 %v5868_v6, %v5868_v6  ;;  %v5869_v17 = vmax.f32 %v4672_v8, 0.0  ;;  %11591 = vmatmul.mubr.msk.bf16.gmra.mrb[192].mxu1 %vm2238_vm2, %v11900_v62  ;;  %v11907_v2 = vld [vmem:[%s12054_s22 + $0x328] sm:$0xff]   ;;  %v11909_v8 = vld [vmem:[%s12054_s22 + $0x330] sm:$0xff]  }
 0x193   : > { %v10309_v16 = vpack.c.bf16 %v5574_v7, %v5574_v7  ;;  %v5575_v18 = vmax.f32 %v3496_v9, 0.0  ;;  %11302 = vmatprep.mubr.msk.bf16.mxu0 %vm2238_vm2, %v11901_v63  ;;  %v10601_v19 = vpack.c.bf16 %v5866_v12, %v5866_v12  ;;  %v5867_v21 = vmax.f32 %v4664_v14, 0.0  ;;  %11594 = vmatprep.mubr.msk.bf16.mxu1 %vm2238_vm2, %v11902_v5  ;;  %v11908_v7 = vld [vmem:[%s12054_s22 + $0x7b8] sm:$0xff]   ;;  %v11910_v14 = vld [vmem:[%s12054_s22 + $0x7c0] sm:$0xff]  }
 0x194   : > { %8493 = vst.msk [vmem:[%s12295_s27 + $0x158] sm:$0xf] %vm8406_vm3, %v10311_v11  ;;  %v10312_v20 = vpack.c.bf16 %v5577_v13, %v5577_v13  ;;  %8785 = vst.msk [vmem:[%s12295_s27 + $0x5e8] sm:$0xf] %vm8406_vm3, %v10603_v15  ;;  %v10604_v22 = vpack.c.bf16 %v5869_v17, %v5869_v17 }
 0x195   : > { %8491 = vst.msk [vmem:[%s12295_s27 + $0x150] sm:$0xf] %vm8406_vm3, %v10309_v16  ;;  %v10310_v23 = vpack.c.bf16 %v5575_v18, %v5575_v18  ;;  %v11196_v24 = vpop.f32.mrb[88].mxu0  ;;  %8783 = vst.msk [vmem:[%s12295_s27 + $0x5e0] sm:$0xf] %vm8406_vm3, %v10601_v19  ;;  %v10602_v25 = vpack.c.bf16 %v5867_v21, %v5867_v21  ;;  %v11488_v27 = vpop.f32.mrb[88].mxu1 }
 0x196   : > { %8494 = vst.msk [vmem:[%s12295_s27 + $0x15c] sm:$0xf] %vm8406_vm3, %v10312_v20  ;;  %v3517_v26 = vadd.f32 %v12898_v52, %v11196_v24  ;;  %v3508_v28 = vpop.f32.mrb[89].mxu0  ;;  %8786 = vst.msk [vmem:[%s12295_s27 + $0x5ec] sm:$0xf] %vm8406_vm3, %v10604_v22  ;;  %v4685_v30 = vadd.f32 %v12898_v52, %v11488_v27  ;;  %v4676_v32 = vpop.f32.mrb[89].mxu1 }
 0x197   : > { %8492 = vst.msk [vmem:[%s12295_s27 + $0x154] sm:$0xf] %vm8406_vm3, %v10310_v23  ;;  %v3509_v31 = vadd.f32 %v12898_v52, %v3508_v28  ;;  %v11197_v33 = vpop.f32.mrb[90].mxu0  ;;  %8784 = vst.msk [vmem:[%s12295_s27 + $0x5e4] sm:$0xf] %vm8406_vm3, %v10602_v25  ;;  %v4677_v38 = vadd.f32 %v12898_v52, %v4676_v32  ;;  %v11489_v40 = vpop.f32.mrb[90].mxu1 }
 0x198   : > { %v5580_v36 = vmax.f32 %v3517_v26, 0.0  ;;  %v3520_v39 = vadd.f32 %v12898_v52, %v11197_v33  ;;  %v3511_v37 = vpop.f32.mrb[91].mxu0  ;;  %v5872_v42 = vmax.f32 %v4685_v30, 0.0  ;;  %v4688_v44 = vadd.f32 %v12898_v52, %v11489_v40  ;;  %v4679_v46 = vpop.f32.mrb[91].mxu1 }
 0x199   : > { %v5578_v43 = vmax.f32 %v3509_v31, 0.0  ;;  %v3512_v45 = vadd.f32 %v12898_v52, %v3511_v37  ;;  %v5870_v48 = vmax.f32 %v4677_v38, 0.0  ;;  %v4680_v50 = vadd.f32 %v12898_v52, %v4679_v46 }
 0x19a   : > { %v10315_v47 = vpack.c.bf16 %v5580_v36, %v5580_v36  ;;  %v5581_v49 = vmax.f32 %v3520_v39, 0.0  ;;  %11303 = vmatmul.mubr.msk.bf16.gmra.mrb[196].mxu0 %vm2238_vm2, %v11903_v29  ;;  %v10607_v51 = vpack.c.bf16 %v5872_v42, %v5872_v42  ;;  %v5873_v54 = vmax.f32 %v4688_v44, 0.0  ;;  %11595 = vmatmul.mubr.msk.bf16.gmra.mrb[196].mxu1 %vm2238_vm2, %v11904_v34  ;;  %v11911_v39 = vld [vmem:[%s12054_s22 + $0x338] sm:$0xff]   ;;  %v11913_v44 = vld [vmem:[%s12054_s22 + $0x340] sm:$0xff]  }
 0x19b   : > { %v10313_v53 = vpack.c.bf16 %v5578_v43, %v5578_v43  ;;  %v5579_v55 = vmax.f32 %v3512_v45, 0.0  ;;  %11306 = vmatprep.mubr.msk.bf16.mxu0 %vm2238_vm2, %v11905_v35  ;;  %v10605_v56 = vpack.c.bf16 %v5870_v48, %v5870_v48  ;;  %v5871_v58 = vmax.f32 %v4680_v50, 0.0  ;;  %11598 = vmatprep.mubr.msk.bf16.mxu1 %vm2238_vm2, %v11906_v41  ;;  %v11912_v43 = vld [vmem:[%s12054_s22 + $0x7c8] sm:$0xff]   ;;  %v11914_v50 = vld [vmem:[%s12054_s22 + $0x7d0] sm:$0xff]  }
 0x19c   : > { %8497 = vst.msk [vmem:[%s12295_s27 + $0x168] sm:$0xf] %vm8406_vm3, %v10315_v47  ;;  %v10316_v57 = vpack.c.bf16 %v5581_v49, %v5581_v49  ;;  %8789 = vst.msk [vmem:[%s12295_s27 + $0x5f8] sm:$0xf] %vm8406_vm3, %v10607_v51  ;;  %v10608_v59 = vpack.c.bf16 %v5873_v54, %v5873_v54 }
 0x19d   : > { %8495 = vst.msk [vmem:[%s12295_s27 + $0x160] sm:$0xf] %vm8406_vm3, %v10313_v53  ;;  %v10314_v60 = vpack.c.bf16 %v5579_v55, %v5579_v55  ;;  %v11200_v61 = vpop.f32.mrb[92].mxu0  ;;  %8787 = vst.msk [vmem:[%s12295_s27 + $0x5f0] sm:$0xf] %vm8406_vm3, %v10605_v56  ;;  %v10606_v62 = vpack.c.bf16 %v5871_v58, %v5871_v58  ;;  %v11492_v0 = vpop.f32.mrb[92].mxu1 }
 0x19e   : > { %8498 = vst.msk [vmem:[%s12295_s27 + $0x16c] sm:$0xf] %vm8406_vm3, %v10316_v57  ;;  %v3533_v63 = vadd.f32 %v12898_v52, %v11200_v61  ;;  %v3524_v1 = vpop.f32.mrb[93].mxu0  ;;  %8790 = vst.msk [vmem:[%s12295_s27 + $0x5fc] sm:$0xf] %vm8406_vm3, %v10608_v59  ;;  %v4701_v3 = vadd.f32 %v12898_v52, %v11492_v0  ;;  %v4692_v5 = vpop.f32.mrb[93].mxu1 }
 0x19f   : > { %8496 = vst.msk [vmem:[%s12295_s27 + $0x164] sm:$0xf] %vm8406_vm3, %v10314_v60  ;;  %v3525_v4 = vadd.f32 %v12898_v52, %v3524_v1  ;;  %v11201_v6 = vpop.f32.mrb[94].mxu0  ;;  %8788 = vst.msk [vmem:[%s12295_s27 + $0x5f4] sm:$0xf] %vm8406_vm3, %v10606_v62  ;;  %v4693_v10 = vadd.f32 %v12898_v52, %v4692_v5  ;;  %v11493_v12 = vpop.f32.mrb[94].mxu1 }
 0x1a0   : > { %v5584_v9 = vmax.f32 %v3533_v63, 0.0  ;;  %v3536_v11 = vadd.f32 %v12898_v52, %v11201_v6  ;;  %v3527_v13 = vpop.f32.mrb[95].mxu0  ;;  %v5876_v15 = vmax.f32 %v4701_v3, 0.0  ;;  %v4704_v17 = vadd.f32 %v12898_v52, %v11493_v12  ;;  %v4695_v19 = vpop.f32.mrb[95].mxu1 }
 0x1a1   : > { %v5582_v16 = vmax.f32 %v3525_v4, 0.0  ;;  %v3528_v18 = vadd.f32 %v12898_v52, %v3527_v13  ;;  %v5874_v21 = vmax.f32 %v4693_v10, 0.0  ;;  %v4696_v23 = vadd.f32 %v12898_v52, %v4695_v19 }
 0x1a2   : > { %v10319_v20 = vpack.c.bf16 %v5584_v9, %v5584_v9  ;;  %v5585_v22 = vmax.f32 %v3536_v11, 0.0  ;;  %11307 = vmatmul.mubr.msk.bf16.gmra.mrb[200].mxu0 %vm2238_vm2, %v11907_v2  ;;  %v10611_v24 = vpack.c.bf16 %v5876_v15, %v5876_v15  ;;  %v5877_v26 = vmax.f32 %v4704_v17, 0.0  ;;  %11599 = vmatmul.mubr.msk.bf16.gmra.mrb[200].mxu1 %vm2238_vm2, %v11908_v7  ;;  %v11915_v11 = vld [vmem:[%s12054_s22 + $0x348] sm:$0xff]   ;;  %v11917_v17 = vld [vmem:[%s12054_s22 + $0x350] sm:$0xff]  }
 0x1a3   : > { %v10317_v25 = vpack.c.bf16 %v5582_v16, %v5582_v16  ;;  %v5583_v27 = vmax.f32 %v3528_v18, 0.0  ;;  %11310 = vmatprep.mubr.msk.bf16.mxu0 %vm2238_vm2, %v11909_v8  ;;  %v10609_v28 = vpack.c.bf16 %v5874_v21, %v5874_v21  ;;  %v5875_v30 = vmax.f32 %v4696_v23, 0.0  ;;  %11602 = vmatprep.mubr.msk.bf16.mxu1 %vm2238_vm2, %v11910_v14  ;;  %v11916_v16 = vld [vmem:[%s12054_s22 + $0x7d8] sm:$0xff]   ;;  %v11918_v23 = vld [vmem:[%s12054_s22 + $0x7e0] sm:$0xff]  }
 0x1a4   : > { %8501 = vst.msk [vmem:[%s12295_s27 + $0x178] sm:$0xf] %vm8406_vm3, %v10319_v20  ;;  %v10320_v29 = vpack.c.bf16 %v5585_v22, %v5585_v22  ;;  %8793 = vst.msk [vmem:[%s12295_s27 + $0x608] sm:$0xf] %vm8406_vm3, %v10611_v24  ;;  %v10612_v31 = vpack.c.bf16 %v5877_v26, %v5877_v26 }
 0x1a5   : > { %8499 = vst.msk [vmem:[%s12295_s27 + $0x170] sm:$0xf] %vm8406_vm3, %v10317_v25  ;;  %v10318_v32 = vpack.c.bf16 %v5583_v27, %v5583_v27  ;;  %v11204_v33 = vpop.f32.mrb[96].mxu0  ;;  %8791 = vst.msk [vmem:[%s12295_s27 + $0x600] sm:$0xf] %vm8406_vm3, %v10609_v28  ;;  %v10610_v34 = vpack.c.bf16 %v5875_v30, %v5875_v30  ;;  %v11496_v36 = vpop.f32.mrb[96].mxu1 }
 0x1a6   : > { %8502 = vst.msk [vmem:[%s12295_s27 + $0x17c] sm:$0xf] %vm8406_vm3, %v10320_v29  ;;  %v3549_v35 = vadd.f32 %v12898_v52, %v11204_v33  ;;  %v3540_v38 = vpop.f32.mrb[97].mxu0  ;;  %8794 = vst.msk [vmem:[%s12295_s27 + $0x60c] sm:$0xf] %vm8406_vm3, %v10612_v31  ;;  %v4717_v40 = vadd.f32 %v12898_v52, %v11496_v36  ;;  %v4708_v41 = vpop.f32.mrb[97].mxu1 }
 0x1a7   : > { %8500 = vst.msk [vmem:[%s12295_s27 + $0x174] sm:$0xf] %vm8406_vm3, %v10318_v32  ;;  %v3541_v37 = vadd.f32 %v12898_v52, %v3540_v38  ;;  %v11205_v42 = vpop.f32.mrb[98].mxu0  ;;  %8792 = vst.msk [vmem:[%s12295_s27 + $0x604] sm:$0xf] %vm8406_vm3, %v10610_v34  ;;  %v4709_v46 = vadd.f32 %v12898_v52, %v4708_v41  ;;  %v11497_v48 = vpop.f32.mrb[98].mxu1 }
 0x1a8   : > { %v5588_v45 = vmax.f32 %v3549_v35, 0.0  ;;  %v3552_v47 = vadd.f32 %v12898_v52, %v11205_v42  ;;  %v3543_v49 = vpop.f32.mrb[99].mxu0  ;;  %v5880_v51 = vmax.f32 %v4717_v40, 0.0  ;;  %v4720_v54 = vadd.f32 %v12898_v52, %v11497_v48  ;;  %v4711_v56 = vpop.f32.mrb[99].mxu1 }
 0x1a9   : > { %v5586_v53 = vmax.f32 %v3541_v37, 0.0  ;;  %v3544_v55 = vadd.f32 %v12898_v52, %v3543_v49  ;;  %v5878_v58 = vmax.f32 %v4709_v46, 0.0  ;;  %v4712_v60 = vadd.f32 %v12898_v52, %v4711_v56 }
 0x1aa   : > { %v10323_v57 = vpack.c.bf16 %v5588_v45, %v5588_v45  ;;  %v5589_v59 = vmax.f32 %v3552_v47, 0.0  ;;  %11311 = vmatmul.mubr.msk.bf16.gmra.mrb[204].mxu0 %vm2238_vm2, %v11911_v39  ;;  %v10615_v61 = vpack.c.bf16 %v5880_v51, %v5880_v51  ;;  %v5881_v63 = vmax.f32 %v4720_v54, 0.0  ;;  %11603 = vmatmul.mubr.msk.bf16.gmra.mrb[204].mxu1 %vm2238_vm2, %v11912_v43  ;;  %v11919_v47 = vld [vmem:[%s12054_s22 + $0x358] sm:$0xff]   ;;  %v11921_v54 = vld [vmem:[%s12054_s22 + $0x360] sm:$0xff]  }
 0x1ab   : > { %v10321_v62 = vpack.c.bf16 %v5586_v53, %v5586_v53  ;;  %v5587_v0 = vmax.f32 %v3544_v55, 0.0  ;;  %11314 = vmatprep.mubr.msk.bf16.mxu0 %vm2238_vm2, %v11913_v44  ;;  %v10613_v1 = vpack.c.bf16 %v5878_v58, %v5878_v58  ;;  %v5879_v3 = vmax.f32 %v4712_v60, 0.0  ;;  %11606 = vmatprep.mubr.msk.bf16.mxu1 %vm2238_vm2, %v11914_v50  ;;  %v11920_v53 = vld [vmem:[%s12054_s22 + $0x7e8] sm:$0xff]   ;;  %v11922_v60 = vld [vmem:[%s12054_s22 + $0x7f0] sm:$0xff]  }
 0x1ac   : > { %8505 = vst.msk [vmem:[%s12295_s27 + $0x188] sm:$0xf] %vm8406_vm3, %v10323_v57  ;;  %v10324_v2 = vpack.c.bf16 %v5589_v59, %v5589_v59  ;;  %8797 = vst.msk [vmem:[%s12295_s27 + $0x618] sm:$0xf] %vm8406_vm3, %v10615_v61  ;;  %v10616_v4 = vpack.c.bf16 %v5881_v63, %v5881_v63 }
 0x1ad   : > { %8503 = vst.msk [vmem:[%s12295_s27 + $0x180] sm:$0xf] %vm8406_vm3, %v10321_v62  ;;  %v10322_v5 = vpack.c.bf16 %v5587_v0, %v5587_v0  ;;  %v11208_v6 = vpop.f32.mrb[100].mxu0  ;;  %8795 = vst.msk [vmem:[%s12295_s27 + $0x610] sm:$0xf] %vm8406_vm3, %v10613_v1  ;;  %v10614_v7 = vpack.c.bf16 %v5879_v3, %v5879_v3  ;;  %v11500_v9 = vpop.f32.mrb[100].mxu1 }
 0x1ae   : > { %8506 = vst.msk [vmem:[%s12295_s27 + $0x18c] sm:$0xf] %vm8406_vm3, %v10324_v2  ;;  %v3565_v8 = vadd.f32 %v12898_v52, %v11208_v6  ;;  %v3556_v10 = vpop.f32.mrb[101].mxu0  ;;  %8798 = vst.msk [vmem:[%s12295_s27 + $0x61c] sm:$0xf] %vm8406_vm3, %v10616_v4  ;;  %v4733_v12 = vadd.f32 %v12898_v52, %v11500_v9  ;;  %v4724_v14 = vpop.f32.mrb[101].mxu1 }
 0x1af   : > { %8504 = vst.msk [vmem:[%s12295_s27 + $0x184] sm:$0xf] %vm8406_vm3, %v10322_v5  ;;  %v3557_v13 = vadd.f32 %v12898_v52, %v3556_v10  ;;  %v11209_v15 = vpop.f32.mrb[102].mxu0  ;;  %8796 = vst.msk [vmem:[%s12295_s27 + $0x614] sm:$0xf] %vm8406_vm3, %v10614_v7  ;;  %v4725_v19 = vadd.f32 %v12898_v52, %v4724_v14  ;;  %v11501_v21 = vpop.f32.mrb[102].mxu1 }
 0x1b0   : > { %v5592_v18 = vmax.f32 %v3565_v8, 0.0  ;;  %v3568_v20 = vadd.f32 %v12898_v52, %v11209_v15  ;;  %v3559_v22 = vpop.f32.mrb[103].mxu0  ;;  %v5884_v24 = vmax.f32 %v4733_v12, 0.0  ;;  %v4736_v26 = vadd.f32 %v12898_v52, %v11501_v21  ;;  %v4727_v28 = vpop.f32.mrb[103].mxu1 }
 0x1b1   : > { %v5590_v25 = vmax.f32 %v3557_v13, 0.0  ;;  %v3560_v27 = vadd.f32 %v12898_v52, %v3559_v22  ;;  %v5882_v30 = vmax.f32 %v4725_v19, 0.0  ;;  %v4728_v32 = vadd.f32 %v12898_v52, %v4727_v28 }
 0x1b2   : > { %v10327_v29 = vpack.c.bf16 %v5592_v18, %v5592_v18  ;;  %v5593_v31 = vmax.f32 %v3568_v20, 0.0  ;;  %11315 = vmatmul.mubr.msk.bf16.gmra.mrb[208].mxu0 %vm2238_vm2, %v11915_v11  ;;  %v10619_v33 = vpack.c.bf16 %v5884_v24, %v5884_v24  ;;  %v5885_v35 = vmax.f32 %v4736_v26, 0.0  ;;  %11607 = vmatmul.mubr.msk.bf16.gmra.mrb[208].mxu1 %vm2238_vm2, %v11916_v16  ;;  %v11923_v20 = vld [vmem:[%s12054_s22 + $0x368] sm:$0xff]   ;;  %v11925_v26 = vld [vmem:[%s12054_s22 + $0x370] sm:$0xff]  }
 0x1b3   : > { %v10325_v34 = vpack.c.bf16 %v5590_v25, %v5590_v25  ;;  %v5591_v36 = vmax.f32 %v3560_v27, 0.0  ;;  %11318 = vmatprep.mubr.msk.bf16.mxu0 %vm2238_vm2, %v11917_v17  ;;  %v10617_v38 = vpack.c.bf16 %v5882_v30, %v5882_v30  ;;  %v5883_v40 = vmax.f32 %v4728_v32, 0.0  ;;  %11610 = vmatprep.mubr.msk.bf16.mxu1 %vm2238_vm2, %v11918_v23  ;;  %v11924_v25 = vld [vmem:[%s12054_s22 + $0x7f8] sm:$0xff]   ;;  %v11926_v32 = vld [vmem:[%s12054_s22 + $0x800] sm:$0xff]  }
 0x1b4   : > { %8509 = vst.msk [vmem:[%s12295_s27 + $0x198] sm:$0xf] %vm8406_vm3, %v10327_v29  ;;  %v10328_v39 = vpack.c.bf16 %v5593_v31, %v5593_v31  ;;  %8801 = vst.msk [vmem:[%s12295_s27 + $0x628] sm:$0xf] %vm8406_vm3, %v10619_v33  ;;  %v10620_v37 = vpack.c.bf16 %v5885_v35, %v5885_v35 }
 0x1b5   : > { %8507 = vst.msk [vmem:[%s12295_s27 + $0x190] sm:$0xf] %vm8406_vm3, %v10325_v34  ;;  %v10326_v41 = vpack.c.bf16 %v5591_v36, %v5591_v36  ;;  %v11212_v42 = vpop.f32.mrb[104].mxu0  ;;  %8799 = vst.msk [vmem:[%s12295_s27 + $0x620] sm:$0xf] %vm8406_vm3, %v10617_v38  ;;  %v10618_v43 = vpack.c.bf16 %v5883_v40, %v5883_v40  ;;  %v11504_v45 = vpop.f32.mrb[104].mxu1 }
 0x1b6   : > { %8510 = vst.msk [vmem:[%s12295_s27 + $0x19c] sm:$0xf] %vm8406_vm3, %v10328_v39  ;;  %v3581_v44 = vadd.f32 %v12898_v52, %v11212_v42  ;;  %v3572_v46 = vpop.f32.mrb[105].mxu0  ;;  %8802 = vst.msk [vmem:[%s12295_s27 + $0x62c] sm:$0xf] %vm8406_vm3, %v10620_v37  ;;  %v4749_v48 = vadd.f32 %v12898_v52, %v11504_v45  ;;  %v4740_v50 = vpop.f32.mrb[105].mxu1 }
 0x1b7   : > { %8508 = vst.msk [vmem:[%s12295_s27 + $0x194] sm:$0xf] %vm8406_vm3, %v10326_v41  ;;  %v3573_v49 = vadd.f32 %v12898_v52, %v3572_v46  ;;  %v11213_v51 = vpop.f32.mrb[106].mxu0  ;;  %8800 = vst.msk [vmem:[%s12295_s27 + $0x624] sm:$0xf] %vm8406_vm3, %v10618_v43  ;;  %v4741_v56 = vadd.f32 %v12898_v52, %v4740_v50  ;;  %v11505_v58 = vpop.f32.mrb[106].mxu1 }
 0x1b8   : > { %v5596_v55 = vmax.f32 %v3581_v44, 0.0  ;;  %v3584_v57 = vadd.f32 %v12898_v52, %v11213_v51  ;;  %v3575_v59 = vpop.f32.mrb[107].mxu0  ;;  %v5888_v61 = vmax.f32 %v4749_v48, 0.0  ;;  %v4752_v63 = vadd.f32 %v12898_v52, %v11505_v58  ;;  %v4743_v1 = vpop.f32.mrb[107].mxu1 }
 0x1b9   : > { %v5594_v62 = vmax.f32 %v3573_v49, 0.0  ;;  %v3576_v0 = vadd.f32 %v12898_v52, %v3575_v59  ;;  %v5886_v3 = vmax.f32 %v4741_v56, 0.0  ;;  %v4744_v5 = vadd.f32 %v12898_v52, %v4743_v1 }
 0x1ba   : > { %v10331_v2 = vpack.c.bf16 %v5596_v55, %v5596_v55  ;;  %v5597_v4 = vmax.f32 %v3584_v57, 0.0  ;;  %11319 = vmatmul.mubr.msk.bf16.gmra.mrb[212].mxu0 %vm2238_vm2, %v11919_v47  ;;  %v10623_v6 = vpack.c.bf16 %v5888_v61, %v5888_v61  ;;  %v5889_v8 = vmax.f32 %v4752_v63, 0.0  ;;  %11611 = vmatmul.mubr.msk.bf16.gmra.mrb[212].mxu1 %vm2238_vm2, %v11920_v53  ;;  %v11927_v57 = vld [vmem:[%s12054_s22 + $0x378] sm:$0xff]   ;;  %v11929_v63 = vld [vmem:[%s12054_s22 + $0x380] sm:$0xff]  }
 0x1bb   : > { %v10329_v7 = vpack.c.bf16 %v5594_v62, %v5594_v62  ;;  %v5595_v9 = vmax.f32 %v3576_v0, 0.0  ;;  %11322 = vmatprep.mubr.msk.bf16.mxu0 %vm2238_vm2, %v11921_v54  ;;  %v10621_v10 = vpack.c.bf16 %v5886_v3, %v5886_v3  ;;  %v5887_v12 = vmax.f32 %v4744_v5, 0.0  ;;  %11614 = vmatprep.mubr.msk.bf16.mxu1 %vm2238_vm2, %v11922_v60  ;;  %v11928_v62 = vld [vmem:[%s12054_s22 + $0x808] sm:$0xff]   ;;  %v11930_v5 = vld [vmem:[%s12054_s22 + $0x810] sm:$0xff]  }
 0x1bc   : > { %8513 = vst.msk [vmem:[%s12295_s27 + $0x1a8] sm:$0xf] %vm8406_vm3, %v10331_v2  ;;  %v10332_v11 = vpack.c.bf16 %v5597_v4, %v5597_v4  ;;  %8805 = vst.msk [vmem:[%s12295_s27 + $0x638] sm:$0xf] %vm8406_vm3, %v10623_v6  ;;  %v10624_v13 = vpack.c.bf16 %v5889_v8, %v5889_v8 }
 0x1bd   : > { %8511 = vst.msk [vmem:[%s12295_s27 + $0x1a0] sm:$0xf] %vm8406_vm3, %v10329_v7  ;;  %v10330_v14 = vpack.c.bf16 %v5595_v9, %v5595_v9  ;;  %v11216_v15 = vpop.f32.mrb[108].mxu0  ;;  %8803 = vst.msk [vmem:[%s12295_s27 + $0x630] sm:$0xf] %vm8406_vm3, %v10621_v10  ;;  %v10622_v16 = vpack.c.bf16 %v5887_v12, %v5887_v12  ;;  %v11508_v18 = vpop.f32.mrb[108].mxu1 }
 0x1be   : > { %8514 = vst.msk [vmem:[%s12295_s27 + $0x1ac] sm:$0xf] %vm8406_vm3, %v10332_v11  ;;  %v3597_v17 = vadd.f32 %v12898_v52, %v11216_v15  ;;  %v3588_v19 = vpop.f32.mrb[109].mxu0  ;;  %8806 = vst.msk [vmem:[%s12295_s27 + $0x63c] sm:$0xf] %vm8406_vm3, %v10624_v13  ;;  %v4765_v21 = vadd.f32 %v12898_v52, %v11508_v18  ;;  %v4756_v23 = vpop.f32.mrb[109].mxu1 }
 0x1bf   : > { %8512 = vst.msk [vmem:[%s12295_s27 + $0x1a4] sm:$0xf] %vm8406_vm3, %v10330_v14  ;;  %v3589_v22 = vadd.f32 %v12898_v52, %v3588_v19  ;;  %v11217_v24 = vpop.f32.mrb[110].mxu0  ;;  %8804 = vst.msk [vmem:[%s12295_s27 + $0x634] sm:$0xf] %vm8406_vm3, %v10622_v16  ;;  %v4757_v28 = vadd.f32 %v12898_v52, %v4756_v23  ;;  %v11509_v30 = vpop.f32.mrb[110].mxu1 }
 0x1c0   : > { %v5600_v27 = vmax.f32 %v3597_v17, 0.0  ;;  %v3600_v29 = vadd.f32 %v12898_v52, %v11217_v24  ;;  %v3591_v31 = vpop.f32.mrb[111].mxu0  ;;  %v5892_v33 = vmax.f32 %v4765_v21, 0.0  ;;  %v4768_v35 = vadd.f32 %v12898_v52, %v11509_v30  ;;  %v4759_v38 = vpop.f32.mrb[111].mxu1 }
 0x1c1   : > { %v5598_v34 = vmax.f32 %v3589_v22, 0.0  ;;  %v3592_v36 = vadd.f32 %v12898_v52, %v3591_v31  ;;  %v5890_v40 = vmax.f32 %v4757_v28, 0.0  ;;  %v4760_v41 = vadd.f32 %v12898_v52, %v4759_v38 }
 0x1c2   : > { %v10335_v39 = vpack.c.bf16 %v5600_v27, %v5600_v27  ;;  %v5601_v37 = vmax.f32 %v3600_v29, 0.0  ;;  %11323 = vmatmul.mubr.msk.bf16.gmra.mrb[216].mxu0 %vm2238_vm2, %v11923_v20  ;;  %v10627_v42 = vpack.c.bf16 %v5892_v33, %v5892_v33  ;;  %v5893_v44 = vmax.f32 %v4768_v35, 0.0  ;;  %11615 = vmatmul.mubr.msk.bf16.gmra.mrb[216].mxu1 %vm2238_vm2, %v11924_v25  ;;  %v11931_v29 = vld [vmem:[%s12054_s22 + $0x388] sm:$0xff]   ;;  %v11933_v35 = vld [vmem:[%s12054_s22 + $0x390] sm:$0xff]  }
 0x1c3   : > { %v10333_v43 = vpack.c.bf16 %v5598_v34, %v5598_v34  ;;  %v5599_v45 = vmax.f32 %v3592_v36, 0.0  ;;  %11326 = vmatprep.mubr.msk.bf16.mxu0 %vm2238_vm2, %v11925_v26  ;;  %v10625_v46 = vpack.c.bf16 %v5890_v40, %v5890_v40  ;;  %v5891_v48 = vmax.f32 %v4760_v41, 0.0  ;;  %11618 = vmatprep.mubr.msk.bf16.mxu1 %vm2238_vm2, %v11926_v32  ;;  %v11932_v34 = vld [vmem:[%s12054_s22 + $0x818] sm:$0xff]   ;;  %v11934_v41 = vld [vmem:[%s12054_s22 + $0x820] sm:$0xff]  }
 0x1c4   : > { %8517 = vst.msk [vmem:[%s12295_s27 + $0x1b8] sm:$0xf] %vm8406_vm3, %v10335_v39  ;;  %v10336_v47 = vpack.c.bf16 %v5601_v37, %v5601_v37  ;;  %8809 = vst.msk [vmem:[%s12295_s27 + $0x648] sm:$0xf] %vm8406_vm3, %v10627_v42  ;;  %v10628_v49 = vpack.c.bf16 %v5893_v44, %v5893_v44 }
 0x1c5   : > { %8515 = vst.msk [vmem:[%s12295_s27 + $0x1b0] sm:$0xf] %vm8406_vm3, %v10333_v43  ;;  %v10334_v50 = vpack.c.bf16 %v5599_v45, %v5599_v45  ;;  %v11220_v51 = vpop.f32.mrb[112].mxu0  ;;  %8807 = vst.msk [vmem:[%s12295_s27 + $0x640] sm:$0xf] %vm8406_vm3, %v10625_v46  ;;  %v10626_v53 = vpack.c.bf16 %v5891_v48, %v5891_v48  ;;  %v11512_v55 = vpop.f32.mrb[112].mxu1 }
 0x1c6   : > { %8518 = vst.msk [vmem:[%s12295_s27 + $0x1bc] sm:$0xf] %vm8406_vm3, %v10336_v47  ;;  %v3613_v54 = vadd.f32 %v12898_v52, %v11220_v51  ;;  %v3604_v56 = vpop.f32.mrb[113].mxu0  ;;  %8810 = vst.msk [vmem:[%s12295_s27 + $0x64c] sm:$0xf] %vm8406_vm3, %v10628_v49  ;;  %v4781_v58 = vadd.f32 %v12898_v52, %v11512_v55  ;;  %v4772_v60 = vpop.f32.mrb[113].mxu1 }
 0x1c7   : > { %8516 = vst.msk [vmem:[%s12295_s27 + $0x1b4] sm:$0xf] %vm8406_vm3, %v10334_v50  ;;  %v3605_v59 = vadd.f32 %v12898_v52, %v3604_v56  ;;  %v11221_v61 = vpop.f32.mrb[114].mxu0  ;;  %8808 = vst.msk [vmem:[%s12295_s27 + $0x644] sm:$0xf] %vm8406_vm3, %v10626_v53  ;;  %v4773_v1 = vadd.f32 %v12898_v52, %v4772_v60  ;;  %v11513_v3 = vpop.f32.mrb[114].mxu1 }
 0x1c8   : > { %v5604_v0 = vmax.f32 %v3613_v54, 0.0  ;;  %v3616_v2 = vadd.f32 %v12898_v52, %v11221_v61  ;;  %v3607_v4 = vpop.f32.mrb[115].mxu0  ;;  %v5896_v6 = vmax.f32 %v4781_v58, 0.0  ;;  %v4784_v8 = vadd.f32 %v12898_v52, %v11513_v3  ;;  %v4775_v10 = vpop.f32.mrb[115].mxu1 }
 0x1c9   : > { %v5602_v7 = vmax.f32 %v3605_v59, 0.0  ;;  %v3608_v9 = vadd.f32 %v12898_v52, %v3607_v4  ;;  %v5894_v12 = vmax.f32 %v4773_v1, 0.0  ;;  %v4776_v14 = vadd.f32 %v12898_v52, %v4775_v10 }
 0x1ca   : > { %v10339_v11 = vpack.c.bf16 %v5604_v0, %v5604_v0  ;;  %v5605_v13 = vmax.f32 %v3616_v2, 0.0  ;;  %11327 = vmatmul.mubr.msk.bf16.gmra.mrb[220].mxu0 %vm2238_vm2, %v11927_v57  ;;  %v10631_v15 = vpack.c.bf16 %v5896_v6, %v5896_v6  ;;  %v5897_v17 = vmax.f32 %v4784_v8, 0.0  ;;  %11619 = vmatmul.mubr.msk.bf16.gmra.mrb[220].mxu1 %vm2238_vm2, %v11928_v62  ;;  %v13255_v62 = vld [vmem:[%s14436_s2] ss:$0 sm:$0xff]  ;;  %v11935_v2 = vld [vmem:[%s12054_s22 + $0x398] sm:$0xff]  }
 0x1cb   : > { %v10337_v16 = vpack.c.bf16 %v5602_v7, %v5602_v7  ;;  %v5603_v18 = vmax.f32 %v3608_v9, 0.0  ;;  %11330 = vmatprep.mubr.msk.bf16.mxu0 %vm2238_vm2, %v11929_v63  ;;  %v10629_v19 = vpack.c.bf16 %v5894_v12, %v5894_v12  ;;  %v5895_v21 = vmax.f32 %v4776_v14, 0.0  ;;  %11622 = vmatprep.mubr.msk.bf16.mxu1 %vm2238_vm2, %v11930_v5  ;;  %v11936_v7 = vld [vmem:[%s12054_s22 + $0x828] sm:$0xff]   ;;  %v11937_v8 = vld [vmem:[%s12054_s22 + $0x3a0] sm:$0xff]   ;;  %v11938_v14 = vld [vmem:[%s12054_s22 + $0x830] sm:$0xff]  }
 0x1cc   : > { %8521 = vst.msk [vmem:[%s12295_s27 + $0x1c8] sm:$0xf] %vm8406_vm3, %v10339_v11  ;;  %v10340_v20 = vpack.c.bf16 %v5605_v13, %v5605_v13  ;;  %8813 = vst.msk [vmem:[%s12295_s27 + $0x658] sm:$0xf] %vm8406_vm3, %v10631_v15  ;;  %v10632_v22 = vpack.c.bf16 %v5897_v17, %v5897_v17 }
 0x1cd   : > { %8519 = vst.msk [vmem:[%s12295_s27 + $0x1c0] sm:$0xf] %vm8406_vm3, %v10337_v16  ;;  %v10338_v23 = vpack.c.bf16 %v5603_v18, %v5603_v18  ;;  %v11224_v24 = vpop.f32.mrb[116].mxu0  ;;  %8811 = vst.msk [vmem:[%s12295_s27 + $0x650] sm:$0xf] %vm8406_vm3, %v10629_v19  ;;  %v10630_v25 = vpack.c.bf16 %v5895_v21, %v5895_v21  ;;  %v11516_v27 = vpop.f32.mrb[116].mxu1 }
 0x1ce   : > { %8522 = vst.msk [vmem:[%s12295_s27 + $0x1cc] sm:$0xf] %vm8406_vm3, %v10340_v20  ;;  %v3629_v26 = vadd.f32 %v12898_v52, %v11224_v24  ;;  %v3620_v28 = vpop.f32.mrb[117].mxu0  ;;  %8814 = vst.msk [vmem:[%s12295_s27 + $0x65c] sm:$0xf] %vm8406_vm3, %v10632_v22  ;;  %v4797_v30 = vadd.f32 %v12898_v52, %v11516_v27  ;;  %v4788_v32 = vpop.f32.mrb[117].mxu1 }
 0x1cf   : > { %8520 = vst.msk [vmem:[%s12295_s27 + $0x1c4] sm:$0xf] %vm8406_vm3, %v10338_v23  ;;  %v3621_v31 = vadd.f32 %v12898_v52, %v3620_v28  ;;  %v11225_v33 = vpop.f32.mrb[118].mxu0  ;;  %8812 = vst.msk [vmem:[%s12295_s27 + $0x654] sm:$0xf] %vm8406_vm3, %v10630_v25  ;;  %v4789_v38 = vadd.f32 %v12898_v52, %v4788_v32  ;;  %v11517_v40 = vpop.f32.mrb[118].mxu1 }
 0x1d0   : > { %v5608_v36 = vmax.f32 %v3629_v26, 0.0  ;;  %v3632_v39 = vadd.f32 %v12898_v52, %v11225_v33  ;;  %v3623_v37 = vpop.f32.mrb[119].mxu0  ;;  %v5900_v42 = vmax.f32 %v4797_v30, 0.0  ;;  %v4800_v44 = vadd.f32 %v12898_v52, %v11517_v40  ;;  %v4791_v46 = vpop.f32.mrb[119].mxu1 }
 0x1d1   : > { %v5606_v43 = vmax.f32 %v3621_v31, 0.0  ;;  %v3624_v45 = vadd.f32 %v12898_v52, %v3623_v37  ;;  %v5898_v48 = vmax.f32 %v4789_v38, 0.0  ;;  %v4792_v50 = vadd.f32 %v12898_v52, %v4791_v46 }
 0x1d2   : > { %v10343_v47 = vpack.c.bf16 %v5608_v36, %v5608_v36  ;;  %v5609_v49 = vmax.f32 %v3632_v39, 0.0  ;;  %11331 = vmatmul.mubr.msk.bf16.gmra.mrb[224].mxu0 %vm2238_vm2, %v11931_v29  ;;  %v10635_v51 = vpack.c.bf16 %v5900_v42, %v5900_v42  ;;  %v5901_v54 = vmax.f32 %v4800_v44, 0.0  ;;  %11623 = vmatmul.mubr.msk.bf16.gmra.mrb[224].mxu1 %vm2238_vm2, %v11932_v34  ;;  %v11939_v39 = vld [vmem:[%s12054_s22 + $0x3a8] sm:$0xff]   ;;  %v11941_v44 = vld [vmem:[%s12054_s22 + $0x3b0] sm:$0xff]  }
 0x1d3   : > { %v10341_v53 = vpack.c.bf16 %v5606_v43, %v5606_v43  ;;  %v5607_v55 = vmax.f32 %v3624_v45, 0.0  ;;  %11334 = vmatprep.mubr.msk.bf16.mxu0 %vm2238_vm2, %v11933_v35  ;;  %v10633_v56 = vpack.c.bf16 %v5898_v48, %v5898_v48  ;;  %v5899_v58 = vmax.f32 %v4792_v50, 0.0  ;;  %11626 = vmatprep.mubr.msk.bf16.mxu1 %vm2238_vm2, %v11934_v41  ;;  %v11940_v43 = vld [vmem:[%s12054_s22 + $0x838] sm:$0xff]   ;;  %v11942_v50 = vld [vmem:[%s12054_s22 + $0x840] sm:$0xff]  }
 0x1d4   : > { %8525 = vst.msk [vmem:[%s12295_s27 + $0x1d8] sm:$0xf] %vm8406_vm3, %v10343_v47  ;;  %v10344_v57 = vpack.c.bf16 %v5609_v49, %v5609_v49  ;;  %8817 = vst.msk [vmem:[%s12295_s27 + $0x668] sm:$0xf] %vm8406_vm3, %v10635_v51  ;;  %v10636_v52 = vpack.c.bf16 %v5901_v54, %v5901_v54 }
 0x1d5   : > { %8523 = vst.msk [vmem:[%s12295_s27 + $0x1d0] sm:$0xf] %vm8406_vm3, %v10341_v53  ;;  %v10342_v59 = vpack.c.bf16 %v5607_v55, %v5607_v55  ;;  %v11228_v60 = vpop.f32.mrb[120].mxu0  ;;  %8815 = vst.msk [vmem:[%s12295_s27 + $0x660] sm:$0xf] %vm8406_vm3, %v10633_v56  ;;  %v10634_v61 = vpack.c.bf16 %v5899_v58, %v5899_v58  ;;  %v11520_v0 = vpop.f32.mrb[120].mxu1 }
 0x1d6   : > { %8526 = vst.msk [vmem:[%s12295_s27 + $0x1dc] sm:$0xf] %vm8406_vm3, %v10344_v57  ;;  %v3645_v63 = vadd.f32 %v13255_v62, %v11228_v60  ;;  %v3636_v1 = vpop.f32.mrb[121].mxu0  ;;  %8818 = vst.msk [vmem:[%s12295_s27 + $0x66c] sm:$0xf] %vm8406_vm3, %v10636_v52  ;;  %v4813_v3 = vadd.f32 %v13255_v62, %v11520_v0  ;;  %v4804_v5 = vpop.f32.mrb[121].mxu1 }
 0x1d7   : > { %8524 = vst.msk [vmem:[%s12295_s27 + $0x1d4] sm:$0xf] %vm8406_vm3, %v10342_v59  ;;  %v3637_v4 = vadd.f32 %v13255_v62, %v3636_v1  ;;  %v11229_v6 = vpop.f32.mrb[122].mxu0  ;;  %8816 = vst.msk [vmem:[%s12295_s27 + $0x664] sm:$0xf] %vm8406_vm3, %v10634_v61  ;;  %v4805_v10 = vadd.f32 %v13255_v62, %v4804_v5  ;;  %v11521_v12 = vpop.f32.mrb[122].mxu1 }
 0x1d8   : > { %v5612_v9 = vmax.f32 %v3645_v63, 0.0  ;;  %v3648_v11 = vadd.f32 %v13255_v62, %v11229_v6  ;;  %v3639_v13 = vpop.f32.mrb[123].mxu0  ;;  %v5904_v15 = vmax.f32 %v4813_v3, 0.0  ;;  %v4816_v17 = vadd.f32 %v13255_v62, %v11521_v12  ;;  %v4807_v19 = vpop.f32.mrb[123].mxu1 }
 0x1d9   : > { %v5610_v16 = vmax.f32 %v3637_v4, 0.0  ;;  %v3640_v18 = vadd.f32 %v13255_v62, %v3639_v13  ;;  %v5902_v21 = vmax.f32 %v4805_v10, 0.0  ;;  %v4808_v23 = vadd.f32 %v13255_v62, %v4807_v19 }
 0x1da   : > { %v10347_v20 = vpack.c.bf16 %v5612_v9, %v5612_v9  ;;  %v5613_v22 = vmax.f32 %v3648_v11, 0.0  ;;  %11335 = vmatmul.mubr.msk.bf16.gmra.mrb[228].mxu0 %vm2238_vm2, %v11935_v2  ;;  %v10639_v24 = vpack.c.bf16 %v5904_v15, %v5904_v15  ;;  %v5905_v26 = vmax.f32 %v4816_v17, 0.0  ;;  %11627 = vmatmul.mubr.msk.bf16.gmra.mrb[228].mxu1 %vm2238_vm2, %v11936_v7  ;;  %v11943_v11 = vld [vmem:[%s12054_s22 + $0x3b8] sm:$0xff]   ;;  %v11945_v17 = vld [vmem:[%s12054_s22 + $0x3c0] sm:$0xff]  }
 0x1db   : > { %v10345_v25 = vpack.c.bf16 %v5610_v16, %v5610_v16  ;;  %v5611_v27 = vmax.f32 %v3640_v18, 0.0  ;;  %11338 = vmatprep.mubr.msk.bf16.mxu0 %vm2238_vm2, %v11937_v8  ;;  %v10637_v28 = vpack.c.bf16 %v5902_v21, %v5902_v21  ;;  %v5903_v30 = vmax.f32 %v4808_v23, 0.0  ;;  %11630 = vmatprep.mubr.msk.bf16.mxu1 %vm2238_vm2, %v11938_v14  ;;  %v11944_v16 = vld [vmem:[%s12054_s22 + $0x848] sm:$0xff]   ;;  %v11946_v23 = vld [vmem:[%s12054_s22 + $0x850] sm:$0xff]  }
 0x1dc   : > { %8529 = vst.msk [vmem:[%s12295_s27 + $0x1e8] sm:$0xf] %vm8406_vm3, %v10347_v20  ;;  %v10348_v29 = vpack.c.bf16 %v5613_v22, %v5613_v22  ;;  %8821 = vst.msk [vmem:[%s12295_s27 + $0x678] sm:$0xf] %vm8406_vm3, %v10639_v24  ;;  %v10640_v31 = vpack.c.bf16 %v5905_v26, %v5905_v26 }
 0x1dd   : > { %8527 = vst.msk [vmem:[%s12295_s27 + $0x1e0] sm:$0xf] %vm8406_vm3, %v10345_v25  ;;  %v10346_v32 = vpack.c.bf16 %v5611_v27, %v5611_v27  ;;  %v11232_v33 = vpop.f32.mrb[124].mxu0  ;;  %8819 = vst.msk [vmem:[%s12295_s27 + $0x670] sm:$0xf] %vm8406_vm3, %v10637_v28  ;;  %v10638_v34 = vpack.c.bf16 %v5903_v30, %v5903_v30  ;;  %v11524_v36 = vpop.f32.mrb[124].mxu1 }
 0x1de   : > { %8530 = vst.msk [vmem:[%s12295_s27 + $0x1ec] sm:$0xf] %vm8406_vm3, %v10348_v29  ;;  %v3661_v35 = vadd.f32 %v13255_v62, %v11232_v33  ;;  %v3652_v38 = vpop.f32.mrb[125].mxu0  ;;  %8822 = vst.msk [vmem:[%s12295_s27 + $0x67c] sm:$0xf] %vm8406_vm3, %v10640_v31  ;;  %v4829_v40 = vadd.f32 %v13255_v62, %v11524_v36  ;;  %v4820_v41 = vpop.f32.mrb[125].mxu1 }
 0x1df   : > { %8528 = vst.msk [vmem:[%s12295_s27 + $0x1e4] sm:$0xf] %vm8406_vm3, %v10346_v32  ;;  %v3653_v37 = vadd.f32 %v13255_v62, %v3652_v38  ;;  %v11233_v42 = vpop.f32.mrb[126].mxu0  ;;  %8820 = vst.msk [vmem:[%s12295_s27 + $0x674] sm:$0xf] %vm8406_vm3, %v10638_v34  ;;  %v4821_v46 = vadd.f32 %v13255_v62, %v4820_v41  ;;  %v11525_v48 = vpop.f32.mrb[126].mxu1 }
 0x1e0   : > { %v5616_v45 = vmax.f32 %v3661_v35, 0.0  ;;  %v3664_v47 = vadd.f32 %v13255_v62, %v11233_v42  ;;  %v3655_v49 = vpop.f32.mrb[127].mxu0  ;;  %v5908_v51 = vmax.f32 %v4829_v40, 0.0  ;;  %v4832_v54 = vadd.f32 %v13255_v62, %v11525_v48  ;;  %v4823_v56 = vpop.f32.mrb[127].mxu1 }
 0x1e1   : > { %v5614_v53 = vmax.f32 %v3653_v37, 0.0  ;;  %v3656_v55 = vadd.f32 %v13255_v62, %v3655_v49  ;;  %v5906_v58 = vmax.f32 %v4821_v46, 0.0  ;;  %v4824_v59 = vadd.f32 %v13255_v62, %v4823_v56 }
 0x1e2   : > { %v10351_v57 = vpack.c.bf16 %v5616_v45, %v5616_v45  ;;  %v5617_v52 = vmax.f32 %v3664_v47, 0.0  ;;  %11339 = vmatmul.mubr.msk.bf16.gmra.mrb[232].mxu0 %vm2238_vm2, %v11939_v39  ;;  %v10643_v60 = vpack.c.bf16 %v5908_v51, %v5908_v51  ;;  %v5909_v63 = vmax.f32 %v4832_v54, 0.0  ;;  %11631 = vmatmul.mubr.msk.bf16.gmra.mrb[232].mxu1 %vm2238_vm2, %v11940_v43  ;;  %v11947_v47 = vld [vmem:[%s12054_s22 + $0x3c8] sm:$0xff]   ;;  %v11949_v54 = vld [vmem:[%s12054_s22 + $0x3d0] sm:$0xff]  }
 0x1e3   : > { %v10349_v61 = vpack.c.bf16 %v5614_v53, %v5614_v53  ;;  %v5615_v0 = vmax.f32 %v3656_v55, 0.0  ;;  %11342 = vmatprep.mubr.msk.bf16.mxu0 %vm2238_vm2, %v11941_v44  ;;  %v10641_v1 = vpack.c.bf16 %v5906_v58, %v5906_v58  ;;  %v5907_v3 = vmax.f32 %v4824_v59, 0.0  ;;  %11634 = vmatprep.mubr.msk.bf16.mxu1 %vm2238_vm2, %v11942_v50  ;;  %v11948_v53 = vld [vmem:[%s12054_s22 + $0x858] sm:$0xff]   ;;  %v11950_v59 = vld [vmem:[%s12054_s22 + $0x860] sm:$0xff]  }
 0x1e4   : > { %8533 = vst.msk [vmem:[%s12295_s27 + $0x1f8] sm:$0xf] %vm8406_vm3, %v10351_v57  ;;  %v10352_v2 = vpack.c.bf16 %v5617_v52, %v5617_v52  ;;  %8825 = vst.msk [vmem:[%s12295_s27 + $0x688] sm:$0xf] %vm8406_vm3, %v10643_v60  ;;  %v10644_v4 = vpack.c.bf16 %v5909_v63, %v5909_v63 }
 0x1e5   : > { %8531 = vst.msk [vmem:[%s12295_s27 + $0x1f0] sm:$0xf] %vm8406_vm3, %v10349_v61  ;;  %v10350_v5 = vpack.c.bf16 %v5615_v0, %v5615_v0  ;;  %v11236_v6 = vpop.f32.mrb[128].mxu0  ;;  %8823 = vst.msk [vmem:[%s12295_s27 + $0x680] sm:$0xf] %vm8406_vm3, %v10641_v1  ;;  %v10642_v7 = vpack.c.bf16 %v5907_v3, %v5907_v3  ;;  %v11528_v9 = vpop.f32.mrb[128].mxu1 }
 0x1e6   : > { %8534 = vst.msk [vmem:[%s12295_s27 + $0x1fc] sm:$0xf] %vm8406_vm3, %v10352_v2  ;;  %v3677_v8 = vadd.f32 %v13255_v62, %v11236_v6  ;;  %v3668_v10 = vpop.f32.mrb[129].mxu0  ;;  %8826 = vst.msk [vmem:[%s12295_s27 + $0x68c] sm:$0xf] %vm8406_vm3, %v10644_v4  ;;  %v4845_v12 = vadd.f32 %v13255_v62, %v11528_v9  ;;  %v4836_v14 = vpop.f32.mrb[129].mxu1 }
 0x1e7   : > { %8532 = vst.msk [vmem:[%s12295_s27 + $0x1f4] sm:$0xf] %vm8406_vm3, %v10350_v5  ;;  %v3669_v13 = vadd.f32 %v13255_v62, %v3668_v10  ;;  %v11237_v15 = vpop.f32.mrb[130].mxu0  ;;  %8824 = vst.msk [vmem:[%s12295_s27 + $0x684] sm:$0xf] %vm8406_vm3, %v10642_v7  ;;  %v4837_v19 = vadd.f32 %v13255_v62, %v4836_v14  ;;  %v11529_v21 = vpop.f32.mrb[130].mxu1 }
 0x1e8   : > { %v5620_v18 = vmax.f32 %v3677_v8, 0.0  ;;  %v3680_v20 = vadd.f32 %v13255_v62, %v11237_v15  ;;  %v3671_v22 = vpop.f32.mrb[131].mxu0  ;;  %v5912_v24 = vmax.f32 %v4845_v12, 0.0  ;;  %v4848_v26 = vadd.f32 %v13255_v62, %v11529_v21  ;;  %v4839_v28 = vpop.f32.mrb[131].mxu1 }
 0x1e9   : > { %v5618_v25 = vmax.f32 %v3669_v13, 0.0  ;;  %v3672_v27 = vadd.f32 %v13255_v62, %v3671_v22  ;;  %v5910_v30 = vmax.f32 %v4837_v19, 0.0  ;;  %v4840_v32 = vadd.f32 %v13255_v62, %v4839_v28 }
 0x1ea   : > { %v10355_v29 = vpack.c.bf16 %v5620_v18, %v5620_v18  ;;  %v5621_v31 = vmax.f32 %v3680_v20, 0.0  ;;  %11343 = vmatmul.mubr.msk.bf16.gmra.mrb[236].mxu0 %vm2238_vm2, %v11943_v11  ;;  %v10647_v33 = vpack.c.bf16 %v5912_v24, %v5912_v24  ;;  %v5913_v35 = vmax.f32 %v4848_v26, 0.0  ;;  %11635 = vmatmul.mubr.msk.bf16.gmra.mrb[236].mxu1 %vm2238_vm2, %v11944_v16  ;;  %v11951_v20 = vld [vmem:[%s12054_s22 + $0x3d8] sm:$0xff]   ;;  %v11953_v26 = vld [vmem:[%s12054_s22 + $0x3e0] sm:$0xff]  }
 0x1eb   : > { %v10353_v34 = vpack.c.bf16 %v5618_v25, %v5618_v25  ;;  %v5619_v36 = vmax.f32 %v3672_v27, 0.0  ;;  %11346 = vmatprep.mubr.msk.bf16.mxu0 %vm2238_vm2, %v11945_v17  ;;  %v10645_v38 = vpack.c.bf16 %v5910_v30, %v5910_v30  ;;  %v5911_v40 = vmax.f32 %v4840_v32, 0.0  ;;  %11638 = vmatprep.mubr.msk.bf16.mxu1 %vm2238_vm2, %v11946_v23  ;;  %v11952_v25 = vld [vmem:[%s12054_s22 + $0x868] sm:$0xff]   ;;  %v11954_v32 = vld [vmem:[%s12054_s22 + $0x870] sm:$0xff]  }
 0x1ec   : > { %8537 = vst.msk [vmem:[%s12295_s27 + $0x208] sm:$0xf] %vm8406_vm3, %v10355_v29  ;;  %v10356_v39 = vpack.c.bf16 %v5621_v31, %v5621_v31  ;;  %8829 = vst.msk [vmem:[%s12295_s27 + $0x698] sm:$0xf] %vm8406_vm3, %v10647_v33  ;;  %v10648_v37 = vpack.c.bf16 %v5913_v35, %v5913_v35 }
 0x1ed   : > { %8535 = vst.msk [vmem:[%s12295_s27 + $0x200] sm:$0xf] %vm8406_vm3, %v10353_v34  ;;  %v10354_v41 = vpack.c.bf16 %v5619_v36, %v5619_v36  ;;  %v11240_v42 = vpop.f32.mrb[132].mxu0  ;;  %8827 = vst.msk [vmem:[%s12295_s27 + $0x690] sm:$0xf] %vm8406_vm3, %v10645_v38  ;;  %v10646_v43 = vpack.c.bf16 %v5911_v40, %v5911_v40  ;;  %v11532_v45 = vpop.f32.mrb[132].mxu1 }
 0x1ee   : > { %8538 = vst.msk [vmem:[%s12295_s27 + $0x20c] sm:$0xf] %vm8406_vm3, %v10356_v39  ;;  %v3693_v44 = vadd.f32 %v13255_v62, %v11240_v42  ;;  %v3684_v46 = vpop.f32.mrb[133].mxu0  ;;  %8830 = vst.msk [vmem:[%s12295_s27 + $0x69c] sm:$0xf] %vm8406_vm3, %v10648_v37  ;;  %v4861_v48 = vadd.f32 %v13255_v62, %v11532_v45  ;;  %v4852_v50 = vpop.f32.mrb[133].mxu1 }
 0x1ef   : > { %8536 = vst.msk [vmem:[%s12295_s27 + $0x204] sm:$0xf] %vm8406_vm3, %v10354_v41  ;;  %v3685_v49 = vadd.f32 %v13255_v62, %v3684_v46  ;;  %v11241_v51 = vpop.f32.mrb[134].mxu0  ;;  %8828 = vst.msk [vmem:[%s12295_s27 + $0x694] sm:$0xf] %vm8406_vm3, %v10646_v43  ;;  %v4853_v56 = vadd.f32 %v13255_v62, %v4852_v50  ;;  %v11533_v58 = vpop.f32.mrb[134].mxu1 }
 0x1f0   : > { %v5624_v55 = vmax.f32 %v3693_v44, 0.0  ;;  %v3696_v57 = vadd.f32 %v13255_v62, %v11241_v51  ;;  %v3687_v52 = vpop.f32.mrb[135].mxu0  ;;  %v5916_v60 = vmax.f32 %v4861_v48, 0.0  ;;  %v4864_v63 = vadd.f32 %v13255_v62, %v11533_v58  ;;  %v4855_v1 = vpop.f32.mrb[135].mxu1 }
 0x1f1   : > { %v5622_v61 = vmax.f32 %v3685_v49, 0.0  ;;  %v3688_v0 = vadd.f32 %v13255_v62, %v3687_v52  ;;  %v5914_v3 = vmax.f32 %v4853_v56, 0.0  ;;  %v4856_v5 = vadd.f32 %v13255_v62, %v4855_v1 }
 0x1f2   : > { %v10359_v2 = vpack.c.bf16 %v5624_v55, %v5624_v55  ;;  %v5625_v4 = vmax.f32 %v3696_v57, 0.0  ;;  %11347 = vmatmul.mubr.msk.bf16.gmra.mrb[240].mxu0 %vm2238_vm2, %v11947_v47  ;;  %v10651_v6 = vpack.c.bf16 %v5916_v60, %v5916_v60  ;;  %v5917_v8 = vmax.f32 %v4864_v63, 0.0  ;;  %11639 = vmatmul.mubr.msk.bf16.gmra.mrb[240].mxu1 %vm2238_vm2, %v11948_v53  ;;  %v11955_v57 = vld [vmem:[%s12054_s22 + $0x3e8] sm:$0xff]   ;;  %v11957_v63 = vld [vmem:[%s12054_s22 + $0x3f0] sm:$0xff]  }
 0x1f3   : > { %v10357_v7 = vpack.c.bf16 %v5622_v61, %v5622_v61  ;;  %v5623_v9 = vmax.f32 %v3688_v0, 0.0  ;;  %11350 = vmatprep.mubr.msk.bf16.mxu0 %vm2238_vm2, %v11949_v54  ;;  %v10649_v10 = vpack.c.bf16 %v5914_v3, %v5914_v3  ;;  %v5915_v12 = vmax.f32 %v4856_v5, 0.0  ;;  %11642 = vmatprep.mubr.msk.bf16.mxu1 %vm2238_vm2, %v11950_v59  ;;  %v11956_v61 = vld [vmem:[%s12054_s22 + $0x878] sm:$0xff]   ;;  %v11958_v5 = vld [vmem:[%s12054_s22 + $0x880] sm:$0xff]  }
 0x1f4   : > { %8541 = vst.msk [vmem:[%s12295_s27 + $0x218] sm:$0xf] %vm8406_vm3, %v10359_v2  ;;  %v10360_v11 = vpack.c.bf16 %v5625_v4, %v5625_v4  ;;  %8833 = vst.msk [vmem:[%s12295_s27 + $0x6a8] sm:$0xf] %vm8406_vm3, %v10651_v6  ;;  %v10652_v13 = vpack.c.bf16 %v5917_v8, %v5917_v8 }
 0x1f5   : > { %8539 = vst.msk [vmem:[%s12295_s27 + $0x210] sm:$0xf] %vm8406_vm3, %v10357_v7  ;;  %v10358_v14 = vpack.c.bf16 %v5623_v9, %v5623_v9  ;;  %v11244_v15 = vpop.f32.mrb[136].mxu0  ;;  %8831 = vst.msk [vmem:[%s12295_s27 + $0x6a0] sm:$0xf] %vm8406_vm3, %v10649_v10  ;;  %v10650_v16 = vpack.c.bf16 %v5915_v12, %v5915_v12  ;;  %v11536_v18 = vpop.f32.mrb[136].mxu1 }
 0x1f6   : > { %8542 = vst.msk [vmem:[%s12295_s27 + $0x21c] sm:$0xf] %vm8406_vm3, %v10360_v11  ;;  %v3709_v17 = vadd.f32 %v13255_v62, %v11244_v15  ;;  %v3700_v19 = vpop.f32.mrb[137].mxu0  ;;  %8834 = vst.msk [vmem:[%s12295_s27 + $0x6ac] sm:$0xf] %vm8406_vm3, %v10652_v13  ;;  %v4877_v21 = vadd.f32 %v13255_v62, %v11536_v18  ;;  %v4868_v23 = vpop.f32.mrb[137].mxu1 }
 0x1f7   : > { %8540 = vst.msk [vmem:[%s12295_s27 + $0x214] sm:$0xf] %vm8406_vm3, %v10358_v14  ;;  %v3701_v22 = vadd.f32 %v13255_v62, %v3700_v19  ;;  %v11245_v24 = vpop.f32.mrb[138].mxu0  ;;  %8832 = vst.msk [vmem:[%s12295_s27 + $0x6a4] sm:$0xf] %vm8406_vm3, %v10650_v16  ;;  %v4869_v28 = vadd.f32 %v13255_v62, %v4868_v23  ;;  %v11537_v30 = vpop.f32.mrb[138].mxu1 }
 0x1f8   : > { %v5628_v27 = vmax.f32 %v3709_v17, 0.0  ;;  %v3712_v29 = vadd.f32 %v13255_v62, %v11245_v24  ;;  %v3703_v31 = vpop.f32.mrb[139].mxu0  ;;  %v5920_v33 = vmax.f32 %v4877_v21, 0.0  ;;  %v4880_v35 = vadd.f32 %v13255_v62, %v11537_v30  ;;  %v4871_v38 = vpop.f32.mrb[139].mxu1 }
 0x1f9   : > { %v5626_v34 = vmax.f32 %v3701_v22, 0.0  ;;  %v3704_v36 = vadd.f32 %v13255_v62, %v3703_v31  ;;  %v5918_v40 = vmax.f32 %v4869_v28, 0.0  ;;  %v4872_v41 = vadd.f32 %v13255_v62, %v4871_v38 }
 0x1fa   : > { %v10363_v39 = vpack.c.bf16 %v5628_v27, %v5628_v27  ;;  %v5629_v37 = vmax.f32 %v3712_v29, 0.0  ;;  %11351 = vmatmul.mubr.msk.bf16.gmra.mrb[244].mxu0 %vm2238_vm2, %v11951_v20  ;;  %v10655_v42 = vpack.c.bf16 %v5920_v33, %v5920_v33  ;;  %v5921_v44 = vmax.f32 %v4880_v35, 0.0  ;;  %11643 = vmatmul.mubr.msk.bf16.gmra.mrb[244].mxu1 %vm2238_vm2, %v11952_v25  ;;  %v11959_v29 = vld [vmem:[%s12054_s22 + $0x3f8] sm:$0xff]   ;;  %v11961_v35 = vld [vmem:[%s12054_s22 + $0x400] sm:$0xff]  }
 0x1fb   : > { %v10361_v43 = vpack.c.bf16 %v5626_v34, %v5626_v34  ;;  %v5627_v45 = vmax.f32 %v3704_v36, 0.0  ;;  %11354 = vmatprep.mubr.msk.bf16.mxu0 %vm2238_vm2, %v11953_v26  ;;  %v10653_v46 = vpack.c.bf16 %v5918_v40, %v5918_v40  ;;  %v5919_v48 = vmax.f32 %v4872_v41, 0.0  ;;  %11646 = vmatprep.mubr.msk.bf16.mxu1 %vm2238_vm2, %v11954_v32  ;;  %v11960_v34 = vld [vmem:[%s12054_s22 + $0x888] sm:$0xff]   ;;  %v11962_v41 = vld [vmem:[%s12054_s22 + $0x890] sm:$0xff]  }
 0x1fc   : > { %8545 = vst.msk [vmem:[%s12295_s27 + $0x228] sm:$0xf] %vm8406_vm3, %v10363_v39  ;;  %v10364_v47 = vpack.c.bf16 %v5629_v37, %v5629_v37  ;;  %8837 = vst.msk [vmem:[%s12295_s27 + $0x6b8] sm:$0xf] %vm8406_vm3, %v10655_v42  ;;  %v10656_v49 = vpack.c.bf16 %v5921_v44, %v5921_v44 }
 0x1fd   : > { %8543 = vst.msk [vmem:[%s12295_s27 + $0x220] sm:$0xf] %vm8406_vm3, %v10361_v43  ;;  %v10362_v50 = vpack.c.bf16 %v5627_v45, %v5627_v45  ;;  %v11248_v51 = vpop.f32.mrb[140].mxu0  ;;  %8835 = vst.msk [vmem:[%s12295_s27 + $0x6b0] sm:$0xf] %vm8406_vm3, %v10653_v46  ;;  %v10654_v53 = vpack.c.bf16 %v5919_v48, %v5919_v48  ;;  %v11540_v55 = vpop.f32.mrb[140].mxu1 }
 0x1fe   : > { %8546 = vst.msk [vmem:[%s12295_s27 + $0x22c] sm:$0xf] %vm8406_vm3, %v10364_v47  ;;  %v3725_v54 = vadd.f32 %v13255_v62, %v11248_v51  ;;  %v3716_v56 = vpop.f32.mrb[141].mxu0  ;;  %8838 = vst.msk [vmem:[%s12295_s27 + $0x6bc] sm:$0xf] %vm8406_vm3, %v10656_v49  ;;  %v4893_v58 = vadd.f32 %v13255_v62, %v11540_v55  ;;  %v4884_v59 = vpop.f32.mrb[141].mxu1 }
 0x1ff   : > { %8544 = vst.msk [vmem:[%s12295_s27 + $0x224] sm:$0xf] %vm8406_vm3, %v10362_v50  ;;  %v3717_v52 = vadd.f32 %v13255_v62, %v3716_v56  ;;  %v11249_v60 = vpop.f32.mrb[142].mxu0  ;;  %8836 = vst.msk [vmem:[%s12295_s27 + $0x6b4] sm:$0xf] %vm8406_vm3, %v10654_v53  ;;  %v4885_v1 = vadd.f32 %v13255_v62, %v4884_v59  ;;  %v11541_v3 = vpop.f32.mrb[142].mxu1 }
 0x200   : > { %v5632_v0 = vmax.f32 %v3725_v54, 0.0  ;;  %v3728_v2 = vadd.f32 %v13255_v62, %v11249_v60  ;;  %v3719_v4 = vpop.f32.mrb[143].mxu0  ;;  %v5924_v6 = vmax.f32 %v4893_v58, 0.0  ;;  %v4896_v8 = vadd.f32 %v13255_v62, %v11541_v3  ;;  %v4887_v10 = vpop.f32.mrb[143].mxu1 }
 0x201   : > { %v5630_v7 = vmax.f32 %v3717_v52, 0.0  ;;  %v3720_v9 = vadd.f32 %v13255_v62, %v3719_v4  ;;  %v5922_v12 = vmax.f32 %v4885_v1, 0.0  ;;  %v4888_v14 = vadd.f32 %v13255_v62, %v4887_v10 }
 0x202   : > { %v10367_v11 = vpack.c.bf16 %v5632_v0, %v5632_v0  ;;  %v5633_v13 = vmax.f32 %v3728_v2, 0.0  ;;  %11355 = vmatmul.mubr.msk.bf16.gmra.mrb[248].mxu0 %vm2238_vm2, %v11955_v57  ;;  %v10659_v15 = vpack.c.bf16 %v5924_v6, %v5924_v6  ;;  %v5925_v17 = vmax.f32 %v4896_v8, 0.0  ;;  %11647 = vmatmul.mubr.msk.bf16.gmra.mrb[248].mxu1 %vm2238_vm2, %v11956_v61  ;;  %v11963_v2 = vld [vmem:[%s12054_s22 + $0x408] sm:$0xff]   ;;  %v11965_v8 = vld [vmem:[%s12054_s22 + $0x410] sm:$0xff]  }
 0x203   : > { %v10365_v16 = vpack.c.bf16 %v5630_v7, %v5630_v7  ;;  %v5631_v18 = vmax.f32 %v3720_v9, 0.0  ;;  %11358 = vmatprep.mubr.msk.bf16.mxu0 %vm2238_vm2, %v11957_v63  ;;  %v10657_v19 = vpack.c.bf16 %v5922_v12, %v5922_v12  ;;  %v5923_v21 = vmax.f32 %v4888_v14, 0.0  ;;  %11650 = vmatprep.mubr.msk.bf16.mxu1 %vm2238_vm2, %v11958_v5  ;;  %v11964_v7 = vld [vmem:[%s12054_s22 + $0x898] sm:$0xff]   ;;  %v11966_v14 = vld [vmem:[%s12054_s22 + $0x8a0] sm:$0xff]  }
 0x204   : > { %8549 = vst.msk [vmem:[%s12295_s27 + $0x238] sm:$0xf] %vm8406_vm3, %v10367_v11  ;;  %v10368_v20 = vpack.c.bf16 %v5633_v13, %v5633_v13  ;;  %8841 = vst.msk [vmem:[%s12295_s27 + $0x6c8] sm:$0xf] %vm8406_vm3, %v10659_v15  ;;  %v10660_v22 = vpack.c.bf16 %v5925_v17, %v5925_v17 }
 0x205   : > { %8547 = vst.msk [vmem:[%s12295_s27 + $0x230] sm:$0xf] %vm8406_vm3, %v10365_v16  ;;  %v10366_v23 = vpack.c.bf16 %v5631_v18, %v5631_v18  ;;  %v11252_v24 = vpop.f32.mrb[144].mxu0  ;;  %8839 = vst.msk [vmem:[%s12295_s27 + $0x6c0] sm:$0xf] %vm8406_vm3, %v10657_v19  ;;  %v10658_v25 = vpack.c.bf16 %v5923_v21, %v5923_v21  ;;  %v11544_v27 = vpop.f32.mrb[144].mxu1 }
 0x206   : > { %8550 = vst.msk [vmem:[%s12295_s27 + $0x23c] sm:$0xf] %vm8406_vm3, %v10368_v20  ;;  %v3741_v26 = vadd.f32 %v13255_v62, %v11252_v24  ;;  %v3732_v28 = vpop.f32.mrb[145].mxu0  ;;  %8842 = vst.msk [vmem:[%s12295_s27 + $0x6cc] sm:$0xf] %vm8406_vm3, %v10660_v22  ;;  %v4909_v30 = vadd.f32 %v13255_v62, %v11544_v27  ;;  %v4900_v32 = vpop.f32.mrb[145].mxu1 }
 0x207   : > { %8548 = vst.msk [vmem:[%s12295_s27 + $0x234] sm:$0xf] %vm8406_vm3, %v10366_v23  ;;  %v3733_v31 = vadd.f32 %v13255_v62, %v3732_v28  ;;  %v11253_v33 = vpop.f32.mrb[146].mxu0  ;;  %8840 = vst.msk [vmem:[%s12295_s27 + $0x6c4] sm:$0xf] %vm8406_vm3, %v10658_v25  ;;  %v4901_v38 = vadd.f32 %v13255_v62, %v4900_v32  ;;  %v11545_v40 = vpop.f32.mrb[146].mxu1 }
 0x208   : > { %v5636_v36 = vmax.f32 %v3741_v26, 0.0  ;;  %v3744_v39 = vadd.f32 %v13255_v62, %v11253_v33  ;;  %v3735_v37 = vpop.f32.mrb[147].mxu0  ;;  %v5928_v42 = vmax.f32 %v4909_v30, 0.0  ;;  %v4912_v44 = vadd.f32 %v13255_v62, %v11545_v40  ;;  %v4903_v46 = vpop.f32.mrb[147].mxu1 }
 0x209   : > { %v5634_v43 = vmax.f32 %v3733_v31, 0.0  ;;  %v3736_v45 = vadd.f32 %v13255_v62, %v3735_v37  ;;  %v5926_v48 = vmax.f32 %v4901_v38, 0.0  ;;  %v4904_v50 = vadd.f32 %v13255_v62, %v4903_v46 }
 0x20a   : > { %v10371_v47 = vpack.c.bf16 %v5636_v36, %v5636_v36  ;;  %v5637_v49 = vmax.f32 %v3744_v39, 0.0  ;;  %11359 = vmatmul.mubr.msk.bf16.gmra.mrb[252].mxu0 %vm2238_vm2, %v11959_v29  ;;  %v10663_v51 = vpack.c.bf16 %v5928_v42, %v5928_v42  ;;  %v5929_v54 = vmax.f32 %v4912_v44, 0.0  ;;  %11651 = vmatmul.mubr.msk.bf16.gmra.mrb[252].mxu1 %vm2238_vm2, %v11960_v34  ;;  %v11967_v39 = vld [vmem:[%s12054_s22 + $0x418] sm:$0xff]   ;;  %v11969_v44 = vld [vmem:[%s12054_s22 + $0x420] sm:$0xff]  }
 0x20b   : > { %v10369_v53 = vpack.c.bf16 %v5634_v43, %v5634_v43  ;;  %v5635_v55 = vmax.f32 %v3736_v45, 0.0  ;;  %11362 = vmatprep.mubr.msk.bf16.mxu0 %vm2238_vm2, %v11961_v35  ;;  %v10661_v56 = vpack.c.bf16 %v5926_v48, %v5926_v48  ;;  %v5927_v58 = vmax.f32 %v4904_v50, 0.0  ;;  %11654 = vmatprep.mubr.msk.bf16.mxu1 %vm2238_vm2, %v11962_v41  ;;  %v11968_v43 = vld [vmem:[%s12054_s22 + $0x8a8] sm:$0xff]   ;;  %v11970_v50 = vld [vmem:[%s12054_s22 + $0x8b0] sm:$0xff]  }
 0x20c   : > { %8553 = vst.msk [vmem:[%s12295_s27 + $0x248] sm:$0xf] %vm8406_vm3, %v10371_v47  ;;  %v10372_v57 = vpack.c.bf16 %v5637_v49, %v5637_v49  ;;  %8845 = vst.msk [vmem:[%s12295_s27 + $0x6d8] sm:$0xf] %vm8406_vm3, %v10663_v51  ;;  %v10664_v52 = vpack.c.bf16 %v5929_v54, %v5929_v54 }
 0x20d   : > { %8551 = vst.msk [vmem:[%s12295_s27 + $0x240] sm:$0xf] %vm8406_vm3, %v10369_v53  ;;  %v10370_v59 = vpack.c.bf16 %v5635_v55, %v5635_v55  ;;  %v11256_v60 = vpop.f32.mrb[148].mxu0  ;;  %8843 = vst.msk [vmem:[%s12295_s27 + $0x6d0] sm:$0xf] %vm8406_vm3, %v10661_v56  ;;  %v10662_v61 = vpack.c.bf16 %v5927_v58, %v5927_v58  ;;  %v11548_v0 = vpop.f32.mrb[148].mxu1 }
 0x20e   : > { %8554 = vst.msk [vmem:[%s12295_s27 + $0x24c] sm:$0xf] %vm8406_vm3, %v10372_v57  ;;  %v3757_v63 = vadd.f32 %v13255_v62, %v11256_v60  ;;  %v3748_v1 = vpop.f32.mrb[149].mxu0  ;;  %8846 = vst.msk [vmem:[%s12295_s27 + $0x6dc] sm:$0xf] %vm8406_vm3, %v10664_v52  ;;  %v4925_v3 = vadd.f32 %v13255_v62, %v11548_v0  ;;  %v4916_v5 = vpop.f32.mrb[149].mxu1 }
 0x20f   : > { %8552 = vst.msk [vmem:[%s12295_s27 + $0x244] sm:$0xf] %vm8406_vm3, %v10370_v59  ;;  %v3749_v4 = vadd.f32 %v13255_v62, %v3748_v1  ;;  %v11257_v6 = vpop.f32.mrb[150].mxu0  ;;  %8844 = vst.msk [vmem:[%s12295_s27 + $0x6d4] sm:$0xf] %vm8406_vm3, %v10662_v61  ;;  %v4917_v10 = vadd.f32 %v13255_v62, %v4916_v5  ;;  %v11549_v12 = vpop.f32.mrb[150].mxu1 }
 0x210   : > { %v5640_v9 = vmax.f32 %v3757_v63, 0.0  ;;  %v3760_v11 = vadd.f32 %v13255_v62, %v11257_v6  ;;  %v3751_v13 = vpop.f32.mrb[151].mxu0  ;;  %v5932_v15 = vmax.f32 %v4925_v3, 0.0  ;;  %v4928_v17 = vadd.f32 %v13255_v62, %v11549_v12  ;;  %v4919_v19 = vpop.f32.mrb[151].mxu1 }
 0x211   : > { %v5638_v16 = vmax.f32 %v3749_v4, 0.0  ;;  %v3752_v18 = vadd.f32 %v13255_v62, %v3751_v13  ;;  %v5930_v21 = vmax.f32 %v4917_v10, 0.0  ;;  %v4920_v23 = vadd.f32 %v13255_v62, %v4919_v19 }
 0x212   : > { %v10375_v20 = vpack.c.bf16 %v5640_v9, %v5640_v9  ;;  %v5641_v22 = vmax.f32 %v3760_v11, 0.0  ;;  %11363 = vmatmul.mubr.msk.bf16.gmra.mrb[0].mxu0 %vm2238_vm2, %v11963_v2  ;;  %v10667_v24 = vpack.c.bf16 %v5932_v15, %v5932_v15  ;;  %v5933_v26 = vmax.f32 %v4928_v17, 0.0  ;;  %11655 = vmatmul.mubr.msk.bf16.gmra.mrb[0].mxu1 %vm2238_vm2, %v11964_v7  ;;  %v11971_v11 = vld [vmem:[%s12054_s22 + $0x428] sm:$0xff]   ;;  %v11973_v17 = vld [vmem:[%s12054_s22 + $0x430] sm:$0xff]  }
 0x213   : > { %v10373_v25 = vpack.c.bf16 %v5638_v16, %v5638_v16  ;;  %v5639_v27 = vmax.f32 %v3752_v18, 0.0  ;;  %11366 = vmatprep.mubr.msk.bf16.mxu0 %vm2238_vm2, %v11965_v8  ;;  %v10665_v28 = vpack.c.bf16 %v5930_v21, %v5930_v21  ;;  %v5931_v30 = vmax.f32 %v4920_v23, 0.0  ;;  %11658 = vmatprep.mubr.msk.bf16.mxu1 %vm2238_vm2, %v11966_v14  ;;  %v11972_v16 = vld [vmem:[%s12054_s22 + $0x8b8] sm:$0xff]   ;;  %v11974_v23 = vld [vmem:[%s12054_s22 + $0x8c0] sm:$0xff]  }
 0x214   : > { %8557 = vst.msk [vmem:[%s12295_s27 + $0x258] sm:$0xf] %vm8406_vm3, %v10375_v20  ;;  %v10376_v29 = vpack.c.bf16 %v5641_v22, %v5641_v22  ;;  %8849 = vst.msk [vmem:[%s12295_s27 + $0x6e8] sm:$0xf] %vm8406_vm3, %v10667_v24  ;;  %v10668_v31 = vpack.c.bf16 %v5933_v26, %v5933_v26 }
 0x215   : > { %8555 = vst.msk [vmem:[%s12295_s27 + $0x250] sm:$0xf] %vm8406_vm3, %v10373_v25  ;;  %v10374_v32 = vpack.c.bf16 %v5639_v27, %v5639_v27  ;;  %v11260_v33 = vpop.f32.mrb[152].mxu0  ;;  %8847 = vst.msk [vmem:[%s12295_s27 + $0x6e0] sm:$0xf] %vm8406_vm3, %v10665_v28  ;;  %v10666_v34 = vpack.c.bf16 %v5931_v30, %v5931_v30  ;;  %v11552_v36 = vpop.f32.mrb[152].mxu1 }
 0x216   : > { %8558 = vst.msk [vmem:[%s12295_s27 + $0x25c] sm:$0xf] %vm8406_vm3, %v10376_v29  ;;  %v3773_v35 = vadd.f32 %v13255_v62, %v11260_v33  ;;  %v3764_v38 = vpop.f32.mrb[153].mxu0  ;;  %8850 = vst.msk [vmem:[%s12295_s27 + $0x6ec] sm:$0xf] %vm8406_vm3, %v10668_v31  ;;  %v4941_v40 = vadd.f32 %v13255_v62, %v11552_v36  ;;  %v4932_v41 = vpop.f32.mrb[153].mxu1 }
 0x217   : > { %8556 = vst.msk [vmem:[%s12295_s27 + $0x254] sm:$0xf] %vm8406_vm3, %v10374_v32  ;;  %v3765_v37 = vadd.f32 %v13255_v62, %v3764_v38  ;;  %v11261_v42 = vpop.f32.mrb[154].mxu0  ;;  %8848 = vst.msk [vmem:[%s12295_s27 + $0x6e4] sm:$0xf] %vm8406_vm3, %v10666_v34  ;;  %v4933_v46 = vadd.f32 %v13255_v62, %v4932_v41  ;;  %v11553_v48 = vpop.f32.mrb[154].mxu1 }
 0x218   : > { %v5644_v45 = vmax.f32 %v3773_v35, 0.0  ;;  %v3776_v47 = vadd.f32 %v13255_v62, %v11261_v42  ;;  %v3767_v49 = vpop.f32.mrb[155].mxu0  ;;  %v5936_v51 = vmax.f32 %v4941_v40, 0.0  ;;  %v4944_v54 = vadd.f32 %v13255_v62, %v11553_v48  ;;  %v4935_v56 = vpop.f32.mrb[155].mxu1 }
 0x219   : > { %v5642_v53 = vmax.f32 %v3765_v37, 0.0  ;;  %v3768_v55 = vadd.f32 %v13255_v62, %v3767_v49  ;;  %v5934_v58 = vmax.f32 %v4933_v46, 0.0  ;;  %v4936_v59 = vadd.f32 %v13255_v62, %v4935_v56 }
 0x21a   : > { %v10379_v57 = vpack.c.bf16 %v5644_v45, %v5644_v45  ;;  %v5645_v52 = vmax.f32 %v3776_v47, 0.0  ;;  %11367 = vmatmul.mubr.msk.bf16.gmra.mrb[4].mxu0 %vm2238_vm2, %v11967_v39  ;;  %v10671_v60 = vpack.c.bf16 %v5936_v51, %v5936_v51  ;;  %v5937_v63 = vmax.f32 %v4944_v54, 0.0  ;;  %11659 = vmatmul.mubr.msk.bf16.gmra.mrb[4].mxu1 %vm2238_vm2, %v11968_v43  ;;  %v11975_v47 = vld [vmem:[%s12054_s22 + $0x438] sm:$0xff]   ;;  %v11977_v54 = vld [vmem:[%s12054_s22 + $0x440] sm:$0xff]  }
 0x21b   : > { %v10377_v61 = vpack.c.bf16 %v5642_v53, %v5642_v53  ;;  %v5643_v0 = vmax.f32 %v3768_v55, 0.0  ;;  %11370 = vmatprep.mubr.msk.bf16.mxu0 %vm2238_vm2, %v11969_v44  ;;  %v10669_v1 = vpack.c.bf16 %v5934_v58, %v5934_v58  ;;  %v5935_v3 = vmax.f32 %v4936_v59, 0.0  ;;  %11662 = vmatprep.mubr.msk.bf16.mxu1 %vm2238_vm2, %v11970_v50  ;;  %v11976_v53 = vld [vmem:[%s12054_s22 + $0x8c8] sm:$0xff]   ;;  %v11978_v59 = vld [vmem:[%s12054_s22 + $0x8d0] sm:$0xff]  }
 0x21c   : > { %8561 = vst.msk [vmem:[%s12295_s27 + $0x268] sm:$0xf] %vm8406_vm3, %v10379_v57  ;;  %v10380_v2 = vpack.c.bf16 %v5645_v52, %v5645_v52  ;;  %8853 = vst.msk [vmem:[%s12295_s27 + $0x6f8] sm:$0xf] %vm8406_vm3, %v10671_v60  ;;  %v10672_v4 = vpack.c.bf16 %v5937_v63, %v5937_v63 }
 0x21d   : > { %8559 = vst.msk [vmem:[%s12295_s27 + $0x260] sm:$0xf] %vm8406_vm3, %v10377_v61  ;;  %v10378_v5 = vpack.c.bf16 %v5643_v0, %v5643_v0  ;;  %v11264_v6 = vpop.f32.mrb[156].mxu0  ;;  %8851 = vst.msk [vmem:[%s12295_s27 + $0x6f0] sm:$0xf] %vm8406_vm3, %v10669_v1  ;;  %v10670_v7 = vpack.c.bf16 %v5935_v3, %v5935_v3  ;;  %v11556_v9 = vpop.f32.mrb[156].mxu1 }
 0x21e   : > { %8562 = vst.msk [vmem:[%s12295_s27 + $0x26c] sm:$0xf] %vm8406_vm3, %v10380_v2  ;;  %v3789_v8 = vadd.f32 %v13255_v62, %v11264_v6  ;;  %v3780_v10 = vpop.f32.mrb[157].mxu0  ;;  %8854 = vst.msk [vmem:[%s12295_s27 + $0x6fc] sm:$0xf] %vm8406_vm3, %v10672_v4  ;;  %v4957_v12 = vadd.f32 %v13255_v62, %v11556_v9  ;;  %v4948_v14 = vpop.f32.mrb[157].mxu1 }
 0x21f   : > { %8560 = vst.msk [vmem:[%s12295_s27 + $0x264] sm:$0xf] %vm8406_vm3, %v10378_v5  ;;  %v3781_v13 = vadd.f32 %v13255_v62, %v3780_v10  ;;  %v11265_v15 = vpop.f32.mrb[158].mxu0  ;;  %8852 = vst.msk [vmem:[%s12295_s27 + $0x6f4] sm:$0xf] %vm8406_vm3, %v10670_v7  ;;  %v4949_v19 = vadd.f32 %v13255_v62, %v4948_v14  ;;  %v11557_v21 = vpop.f32.mrb[158].mxu1 }
 0x220   : > { %v5648_v18 = vmax.f32 %v3789_v8, 0.0  ;;  %v3792_v20 = vadd.f32 %v13255_v62, %v11265_v15  ;;  %v3783_v22 = vpop.f32.mrb[159].mxu0  ;;  %v5940_v24 = vmax.f32 %v4957_v12, 0.0  ;;  %v4960_v26 = vadd.f32 %v13255_v62, %v11557_v21  ;;  %v4951_v28 = vpop.f32.mrb[159].mxu1 }
 0x221   : > { %v5646_v25 = vmax.f32 %v3781_v13, 0.0  ;;  %v3784_v27 = vadd.f32 %v13255_v62, %v3783_v22  ;;  %v5938_v30 = vmax.f32 %v4949_v19, 0.0  ;;  %v4952_v32 = vadd.f32 %v13255_v62, %v4951_v28 }
 0x222   : > { %v10383_v29 = vpack.c.bf16 %v5648_v18, %v5648_v18  ;;  %v5649_v31 = vmax.f32 %v3792_v20, 0.0  ;;  %11371 = vmatmul.mubr.msk.bf16.gmra.mrb[8].mxu0 %vm2238_vm2, %v11971_v11  ;;  %v10675_v33 = vpack.c.bf16 %v5940_v24, %v5940_v24  ;;  %v5941_v35 = vmax.f32 %v4960_v26, 0.0  ;;  %11663 = vmatmul.mubr.msk.bf16.gmra.mrb[8].mxu1 %vm2238_vm2, %v11972_v16  ;;  %v13612_v16 = vld [vmem:[%s14436_s2] ss:$0 sm:$0xff]  ;;  %v11979_v20 = vld [vmem:[%s12054_s22 + $0x448] sm:$0xff]   ;;  %v11981_v26 = vld [vmem:[%s12054_s22 + $0x450] sm:$0xff]  }
 0x223   : > { %v10381_v34 = vpack.c.bf16 %v5646_v25, %v5646_v25  ;;  %v5647_v36 = vmax.f32 %v3784_v27, 0.0  ;;  %11374 = vmatprep.mubr.msk.bf16.mxu0 %vm2238_vm2, %v11973_v17  ;;  %v10673_v38 = vpack.c.bf16 %v5938_v30, %v5938_v30  ;;  %v5939_v40 = vmax.f32 %v4952_v32, 0.0  ;;  %11666 = vmatprep.mubr.msk.bf16.mxu1 %vm2238_vm2, %v11974_v23  ;;  %v11980_v25 = vld [vmem:[%s12054_s22 + $0x8d8] sm:$0xff]   ;;  %v11982_v32 = vld [vmem:[%s12054_s22 + $0x8e0] sm:$0xff]  }
 0x224   : > { %8565 = vst.msk [vmem:[%s12295_s27 + $0x278] sm:$0xf] %vm8406_vm3, %v10383_v29  ;;  %v10384_v39 = vpack.c.bf16 %v5649_v31, %v5649_v31  ;;  %8857 = vst.msk [vmem:[%s12295_s27 + $0x708] sm:$0xf] %vm8406_vm3, %v10675_v33  ;;  %v10676_v37 = vpack.c.bf16 %v5941_v35, %v5941_v35 }
 0x225   : > { %8563 = vst.msk [vmem:[%s12295_s27 + $0x270] sm:$0xf] %vm8406_vm3, %v10381_v34  ;;  %v10382_v41 = vpack.c.bf16 %v5647_v36, %v5647_v36  ;;  %v11268_v42 = vpop.f32.mrb[160].mxu0  ;;  %8855 = vst.msk [vmem:[%s12295_s27 + $0x700] sm:$0xf] %vm8406_vm3, %v10673_v38  ;;  %v10674_v43 = vpack.c.bf16 %v5939_v40, %v5939_v40  ;;  %v11560_v45 = vpop.f32.mrb[160].mxu1 }
 0x226   : > { %8566 = vst.msk [vmem:[%s12295_s27 + $0x27c] sm:$0xf] %vm8406_vm3, %v10384_v39  ;;  %v3805_v44 = vadd.f32 %v13255_v62, %v11268_v42  ;;  %v3796_v46 = vpop.f32.mrb[161].mxu0  ;;  %8858 = vst.msk [vmem:[%s12295_s27 + $0x70c] sm:$0xf] %vm8406_vm3, %v10676_v37  ;;  %v4973_v48 = vadd.f32 %v13255_v62, %v11560_v45  ;;  %v4964_v50 = vpop.f32.mrb[161].mxu1 }
 0x227   : > { %8564 = vst.msk [vmem:[%s12295_s27 + $0x274] sm:$0xf] %vm8406_vm3, %v10382_v41  ;;  %v3797_v49 = vadd.f32 %v13255_v62, %v3796_v46  ;;  %v11269_v51 = vpop.f32.mrb[162].mxu0  ;;  %8856 = vst.msk [vmem:[%s12295_s27 + $0x704] sm:$0xf] %vm8406_vm3, %v10674_v43  ;;  %v4965_v56 = vadd.f32 %v13255_v62, %v4964_v50  ;;  %v11561_v58 = vpop.f32.mrb[162].mxu1 }
 0x228   : > { %v5652_v55 = vmax.f32 %v3805_v44, 0.0  ;;  %v3808_v57 = vadd.f32 %v13255_v62, %v11269_v51  ;;  %v3799_v52 = vpop.f32.mrb[163].mxu0  ;;  %v5944_v60 = vmax.f32 %v4973_v48, 0.0  ;;  %v4976_v63 = vadd.f32 %v13255_v62, %v11561_v58  ;;  %v4967_v1 = vpop.f32.mrb[163].mxu1 }
 0x229   : > { %v5650_v61 = vmax.f32 %v3797_v49, 0.0  ;;  %v3800_v0 = vadd.f32 %v13255_v62, %v3799_v52  ;;  %v5942_v3 = vmax.f32 %v4965_v56, 0.0  ;;  %v4968_v5 = vadd.f32 %v13255_v62, %v4967_v1 }
 0x22a   : > { %v10387_v2 = vpack.c.bf16 %v5652_v55, %v5652_v55  ;;  %v5653_v4 = vmax.f32 %v3808_v57, 0.0  ;;  %11375 = vmatmul.mubr.msk.bf16.gmra.mrb[12].mxu0 %vm2238_vm2, %v11975_v47  ;;  %v10679_v6 = vpack.c.bf16 %v5944_v60, %v5944_v60  ;;  %v5945_v8 = vmax.f32 %v4976_v63, 0.0  ;;  %11667 = vmatmul.mubr.msk.bf16.gmra.mrb[12].mxu1 %vm2238_vm2, %v11976_v53  ;;  %v11983_v57 = vld [vmem:[%s12054_s22 + $0x458] sm:$0xff]   ;;  %v11985_v63 = vld [vmem:[%s12054_s22 + $0x460] sm:$0xff]  }
 0x22b   : > { %v10385_v7 = vpack.c.bf16 %v5650_v61, %v5650_v61  ;;  %v5651_v9 = vmax.f32 %v3800_v0, 0.0  ;;  %11378 = vmatprep.mubr.msk.bf16.mxu0 %vm2238_vm2, %v11977_v54  ;;  %v10677_v10 = vpack.c.bf16 %v5942_v3, %v5942_v3  ;;  %v5943_v12 = vmax.f32 %v4968_v5, 0.0  ;;  %11670 = vmatprep.mubr.msk.bf16.mxu1 %vm2238_vm2, %v11978_v59  ;;  %v11984_v61 = vld [vmem:[%s12054_s22 + $0x8e8] sm:$0xff]   ;;  %v11986_v5 = vld [vmem:[%s12054_s22 + $0x8f0] sm:$0xff]  }
 0x22c   : > { %8569 = vst.msk [vmem:[%s12295_s27 + $0x288] sm:$0xf] %vm8406_vm3, %v10387_v2  ;;  %v10388_v11 = vpack.c.bf16 %v5653_v4, %v5653_v4  ;;  %8861 = vst.msk [vmem:[%s12295_s27 + $0x718] sm:$0xf] %vm8406_vm3, %v10679_v6  ;;  %v10680_v62 = vpack.c.bf16 %v5945_v8, %v5945_v8 }
 0x22d   : > { %8567 = vst.msk [vmem:[%s12295_s27 + $0x280] sm:$0xf] %vm8406_vm3, %v10385_v7  ;;  %v10386_v13 = vpack.c.bf16 %v5651_v9, %v5651_v9  ;;  %v11272_v14 = vpop.f32.mrb[164].mxu0  ;;  %8859 = vst.msk [vmem:[%s12295_s27 + $0x710] sm:$0xf] %vm8406_vm3, %v10677_v10  ;;  %v10678_v15 = vpack.c.bf16 %v5943_v12, %v5943_v12  ;;  %v11564_v18 = vpop.f32.mrb[164].mxu1 }
 0x22e   : > { %8570 = vst.msk [vmem:[%s12295_s27 + $0x28c] sm:$0xf] %vm8406_vm3, %v10388_v11  ;;  %v3821_v17 = vadd.f32 %v13612_v16, %v11272_v14  ;;  %v3812_v19 = vpop.f32.mrb[165].mxu0  ;;  %8862 = vst.msk [vmem:[%s12295_s27 + $0x71c] sm:$0xf] %vm8406_vm3, %v10680_v62  ;;  %v4989_v21 = vadd.f32 %v13612_v16, %v11564_v18  ;;  %v4980_v23 = vpop.f32.mrb[165].mxu1 }
 0x22f   : > { %8568 = vst.msk [vmem:[%s12295_s27 + $0x284] sm:$0xf] %vm8406_vm3, %v10386_v13  ;;  %v3813_v22 = vadd.f32 %v13612_v16, %v3812_v19  ;;  %v11273_v24 = vpop.f32.mrb[166].mxu0  ;;  %8860 = vst.msk [vmem:[%s12295_s27 + $0x714] sm:$0xf] %vm8406_vm3, %v10678_v15  ;;  %v4981_v28 = vadd.f32 %v13612_v16, %v4980_v23  ;;  %v11565_v30 = vpop.f32.mrb[166].mxu1 }
 0x230   : > { %v5656_v27 = vmax.f32 %v3821_v17, 0.0  ;;  %v3824_v29 = vadd.f32 %v13612_v16, %v11273_v24  ;;  %v3815_v31 = vpop.f32.mrb[167].mxu0  ;;  %v5948_v33 = vmax.f32 %v4989_v21, 0.0  ;;  %v4992_v35 = vadd.f32 %v13612_v16, %v11565_v30  ;;  %v4983_v38 = vpop.f32.mrb[167].mxu1 }
 0x231   : > { %v5654_v34 = vmax.f32 %v3813_v22, 0.0  ;;  %v3816_v36 = vadd.f32 %v13612_v16, %v3815_v31  ;;  %v5946_v40 = vmax.f32 %v4981_v28, 0.0  ;;  %v4984_v41 = vadd.f32 %v13612_v16, %v4983_v38 }
 0x232   : > { %v10391_v39 = vpack.c.bf16 %v5656_v27, %v5656_v27  ;;  %v5657_v37 = vmax.f32 %v3824_v29, 0.0  ;;  %11379 = vmatmul.mubr.msk.bf16.gmra.mrb[16].mxu0 %vm2238_vm2, %v11979_v20  ;;  %v10683_v42 = vpack.c.bf16 %v5948_v33, %v5948_v33  ;;  %v5949_v44 = vmax.f32 %v4992_v35, 0.0  ;;  %11671 = vmatmul.mubr.msk.bf16.gmra.mrb[16].mxu1 %vm2238_vm2, %v11980_v25  ;;  %v11987_v29 = vld [vmem:[%s12054_s22 + $0x468] sm:$0xff]   ;;  %v11989_v35 = vld [vmem:[%s12054_s22 + $0x470] sm:$0xff]  }
 0x233   : > { %v10389_v43 = vpack.c.bf16 %v5654_v34, %v5654_v34  ;;  %v5655_v45 = vmax.f32 %v3816_v36, 0.0  ;;  %11382 = vmatprep.mubr.msk.bf16.mxu0 %vm2238_vm2, %v11981_v26  ;;  %v10681_v46 = vpack.c.bf16 %v5946_v40, %v5946_v40  ;;  %v5947_v48 = vmax.f32 %v4984_v41, 0.0  ;;  %11674 = vmatprep.mubr.msk.bf16.mxu1 %vm2238_vm2, %v11982_v32  ;;  %v11988_v34 = vld [vmem:[%s12054_s22 + $0x8f8] sm:$0xff]   ;;  %v11990_v41 = vld [vmem:[%s12054_s22 + $0x900] sm:$0xff]  }
 0x234   : > { %8573 = vst.msk [vmem:[%s12295_s27 + $0x298] sm:$0xf] %vm8406_vm3, %v10391_v39  ;;  %v10392_v47 = vpack.c.bf16 %v5657_v37, %v5657_v37  ;;  %8865 = vst.msk [vmem:[%s12295_s27 + $0x728] sm:$0xf] %vm8406_vm3, %v10683_v42  ;;  %v10684_v49 = vpack.c.bf16 %v5949_v44, %v5949_v44 }
 0x235   : > { %8571 = vst.msk [vmem:[%s12295_s27 + $0x290] sm:$0xf] %vm8406_vm3, %v10389_v43  ;;  %v10390_v50 = vpack.c.bf16 %v5655_v45, %v5655_v45  ;;  %v11276_v51 = vpop.f32.mrb[168].mxu0  ;;  %8863 = vst.msk [vmem:[%s12295_s27 + $0x720] sm:$0xf] %vm8406_vm3, %v10681_v46  ;;  %v10682_v53 = vpack.c.bf16 %v5947_v48, %v5947_v48  ;;  %v11568_v55 = vpop.f32.mrb[168].mxu1 }
 0x236   : > { %8574 = vst.msk [vmem:[%s12295_s27 + $0x29c] sm:$0xf] %vm8406_vm3, %v10392_v47  ;;  %v3837_v54 = vadd.f32 %v13612_v16, %v11276_v51  ;;  %v3828_v56 = vpop.f32.mrb[169].mxu0  ;;  %8866 = vst.msk [vmem:[%s12295_s27 + $0x72c] sm:$0xf] %vm8406_vm3, %v10684_v49  ;;  %v5005_v58 = vadd.f32 %v13612_v16, %v11568_v55  ;;  %v4996_v59 = vpop.f32.mrb[169].mxu1 }
 0x237   : > { %8572 = vst.msk [vmem:[%s12295_s27 + $0x294] sm:$0xf] %vm8406_vm3, %v10390_v50  ;;  %v3829_v52 = vadd.f32 %v13612_v16, %v3828_v56  ;;  %v11277_v60 = vpop.f32.mrb[170].mxu0  ;;  %8864 = vst.msk [vmem:[%s12295_s27 + $0x724] sm:$0xf] %vm8406_vm3, %v10682_v53  ;;  %v4997_v1 = vadd.f32 %v13612_v16, %v4996_v59  ;;  %v11569_v3 = vpop.f32.mrb[170].mxu1 }
 0x238   : > { %v5660_v0 = vmax.f32 %v3837_v54, 0.0  ;;  %v3840_v2 = vadd.f32 %v13612_v16, %v11277_v60  ;;  %v3831_v4 = vpop.f32.mrb[171].mxu0  ;;  %v5952_v6 = vmax.f32 %v5005_v58, 0.0  ;;  %v5008_v8 = vadd.f32 %v13612_v16, %v11569_v3  ;;  %v4999_v10 = vpop.f32.mrb[171].mxu1 }
 0x239   : > { %v5658_v7 = vmax.f32 %v3829_v52, 0.0  ;;  %v3832_v9 = vadd.f32 %v13612_v16, %v3831_v4  ;;  %v5950_v12 = vmax.f32 %v4997_v1, 0.0  ;;  %v5000_v13 = vadd.f32 %v13612_v16, %v4999_v10 }
 0x23a   : > { %v10395_v11 = vpack.c.bf16 %v5660_v0, %v5660_v0  ;;  %v5661_v62 = vmax.f32 %v3840_v2, 0.0  ;;  %11383 = vmatmul.mubr.msk.bf16.gmra.mrb[20].mxu0 %vm2238_vm2, %v11983_v57  ;;  %v10687_v14 = vpack.c.bf16 %v5952_v6, %v5952_v6  ;;  %v5953_v17 = vmax.f32 %v5008_v8, 0.0  ;;  %11675 = vmatmul.mubr.msk.bf16.gmra.mrb[20].mxu1 %vm2238_vm2, %v11984_v61  ;;  %v11991_v2 = vld [vmem:[%s12054_s22 + $0x478] sm:$0xff]   ;;  %v11993_v8 = vld [vmem:[%s12054_s22 + $0x480] sm:$0xff]  }
 0x23b   : > { %v10393_v15 = vpack.c.bf16 %v5658_v7, %v5658_v7  ;;  %v5659_v18 = vmax.f32 %v3832_v9, 0.0  ;;  %11386 = vmatprep.mubr.msk.bf16.mxu0 %vm2238_vm2, %v11985_v63  ;;  %v10685_v19 = vpack.c.bf16 %v5950_v12, %v5950_v12  ;;  %v5951_v21 = vmax.f32 %v5000_v13, 0.0  ;;  %11678 = vmatprep.mubr.msk.bf16.mxu1 %vm2238_vm2, %v11986_v5  ;;  %v11992_v7 = vld [vmem:[%s12054_s22 + $0x908] sm:$0xff]   ;;  %v11994_v13 = vld [vmem:[%s12054_s22 + $0x910] sm:$0xff]  }
 0x23c   : > { %8577 = vst.msk [vmem:[%s12295_s27 + $0x2a8] sm:$0xf] %vm8406_vm3, %v10395_v11  ;;  %v10396_v20 = vpack.c.bf16 %v5661_v62, %v5661_v62  ;;  %8869 = vst.msk [vmem:[%s12295_s27 + $0x738] sm:$0xf] %vm8406_vm3, %v10687_v14  ;;  %v10688_v22 = vpack.c.bf16 %v5953_v17, %v5953_v17 }
 0x23d   : > { %8575 = vst.msk [vmem:[%s12295_s27 + $0x2a0] sm:$0xf] %vm8406_vm3, %v10393_v15  ;;  %v10394_v23 = vpack.c.bf16 %v5659_v18, %v5659_v18  ;;  %v11280_v24 = vpop.f32.mrb[172].mxu0  ;;  %8867 = vst.msk [vmem:[%s12295_s27 + $0x730] sm:$0xf] %vm8406_vm3, %v10685_v19  ;;  %v10686_v25 = vpack.c.bf16 %v5951_v21, %v5951_v21  ;;  %v11572_v27 = vpop.f32.mrb[172].mxu1 }
 0x23e   : > { %8578 = vst.msk [vmem:[%s12295_s27 + $0x2ac] sm:$0xf] %vm8406_vm3, %v10396_v20  ;;  %v3853_v26 = vadd.f32 %v13612_v16, %v11280_v24  ;;  %v3844_v28 = vpop.f32.mrb[173].mxu0  ;;  %8870 = vst.msk [vmem:[%s12295_s27 + $0x73c] sm:$0xf] %vm8406_vm3, %v10688_v22  ;;  %v5021_v30 = vadd.f32 %v13612_v16, %v11572_v27  ;;  %v5012_v32 = vpop.f32.mrb[173].mxu1 }
 0x23f   : > { %8576 = vst.msk [vmem:[%s12295_s27 + $0x2a4] sm:$0xf] %vm8406_vm3, %v10394_v23  ;;  %v3845_v31 = vadd.f32 %v13612_v16, %v3844_v28  ;;  %v11281_v33 = vpop.f32.mrb[174].mxu0  ;;  %8868 = vst.msk [vmem:[%s12295_s27 + $0x734] sm:$0xf] %vm8406_vm3, %v10686_v25  ;;  %v5013_v38 = vadd.f32 %v13612_v16, %v5012_v32  ;;  %v11573_v40 = vpop.f32.mrb[174].mxu1 }
 0x240   : > { %v5664_v36 = vmax.f32 %v3853_v26, 0.0  ;;  %v3856_v39 = vadd.f32 %v13612_v16, %v11281_v33  ;;  %v3847_v37 = vpop.f32.mrb[175].mxu0  ;;  %v5956_v42 = vmax.f32 %v5021_v30, 0.0  ;;  %v5024_v44 = vadd.f32 %v13612_v16, %v11573_v40  ;;  %v5015_v46 = vpop.f32.mrb[175].mxu1 }
 0x241   : > { %v5662_v43 = vmax.f32 %v3845_v31, 0.0  ;;  %v3848_v45 = vadd.f32 %v13612_v16, %v3847_v37  ;;  %v5954_v48 = vmax.f32 %v5013_v38, 0.0  ;;  %v5016_v50 = vadd.f32 %v13612_v16, %v5015_v46 }
 0x242   : > { %v10399_v47 = vpack.c.bf16 %v5664_v36, %v5664_v36  ;;  %v5665_v49 = vmax.f32 %v3856_v39, 0.0  ;;  %11387 = vmatmul.mubr.msk.bf16.gmra.mrb[24].mxu0 %vm2238_vm2, %v11987_v29  ;;  %v10691_v51 = vpack.c.bf16 %v5956_v42, %v5956_v42  ;;  %v5957_v54 = vmax.f32 %v5024_v44, 0.0  ;;  %11679 = vmatmul.mubr.msk.bf16.gmra.mrb[24].mxu1 %vm2238_vm2, %v11988_v34  ;;  %v11995_v39 = vld [vmem:[%s12054_s22 + $0x488] sm:$0xff]  }
 0x243   : > { %v10397_v53 = vpack.c.bf16 %v5662_v43, %v5662_v43  ;;  %v5663_v55 = vmax.f32 %v3848_v45, 0.0  ;;  %11390 = vmatprep.mubr.msk.bf16.mxu0 %vm2238_vm2, %v11989_v35  ;;  %v10689_v56 = vpack.c.bf16 %v5954_v48, %v5954_v48  ;;  %v5955_v58 = vmax.f32 %v5016_v50, 0.0  ;;  %11682 = vmatprep.mubr.msk.bf16.mxu1 %vm2238_vm2, %v11990_v41  ;;  %v11996_v43 = vld [vmem:[%s12054_s22 + $0x918] ss:$0 sps:$4 sm:$0xff]  }
 0x244   : > { %8581 = vst.msk [vmem:[%s12295_s27 + $0x2b8] sm:$0xf] %vm8406_vm3, %v10399_v47  ;;  %v10400_v57 = vpack.c.bf16 %v5665_v49, %v5665_v49  ;;  %8873 = vst.msk [vmem:[%s12295_s27 + $0x748] sm:$0xf] %vm8406_vm3, %v10691_v51  ;;  %v10692_v52 = vpack.c.bf16 %v5957_v54, %v5957_v54 }
 0x245   : > { %8579 = vst.msk [vmem:[%s12295_s27 + $0x2b0] sm:$0xf] %vm8406_vm3, %v10397_v53  ;;  %v10398_v59 = vpack.c.bf16 %v5663_v55, %v5663_v55  ;;  %v11284_v60 = vpop.f32.mrb[176].mxu0  ;;  %8871 = vst.msk [vmem:[%s12295_s27 + $0x740] sm:$0xf] %vm8406_vm3, %v10689_v56  ;;  %v10690_v61 = vpack.c.bf16 %v5955_v58, %v5955_v58  ;;  %v11576_v0 = vpop.f32.mrb[176].mxu1 }
 0x246   : > { %8582 = vst.msk [vmem:[%s12295_s27 + $0x2bc] sm:$0xf] %vm8406_vm3, %v10400_v57  ;;  %v3869_v63 = vadd.f32 %v13612_v16, %v11284_v60  ;;  %v3860_v1 = vpop.f32.mrb[177].mxu0  ;;  %8874 = vst.msk [vmem:[%s12295_s27 + $0x74c] sm:$0xf] %vm8406_vm3, %v10692_v52  ;;  %v5037_v3 = vadd.f32 %v13612_v16, %v11576_v0  ;;  %v5028_v5 = vpop.f32.mrb[177].mxu1 }
 0x247   : > { %8580 = vst.msk [vmem:[%s12295_s27 + $0x2b4] sm:$0xf] %vm8406_vm3, %v10398_v59  ;;  %v3861_v4 = vadd.f32 %v13612_v16, %v3860_v1  ;;  %v11285_v6 = vpop.f32.mrb[178].mxu0  ;;  %8872 = vst.msk [vmem:[%s12295_s27 + $0x744] sm:$0xf] %vm8406_vm3, %v10690_v61  ;;  %v5029_v10 = vadd.f32 %v13612_v16, %v5028_v5  ;;  %v11577_v12 = vpop.f32.mrb[178].mxu1 }
 0x248   : > { %v5668_v9 = vmax.f32 %v3869_v63, 0.0  ;;  %v3872_v11 = vadd.f32 %v13612_v16, %v11285_v6  ;;  %v3863_v62 = vpop.f32.mrb[179].mxu0  ;;  %v5960_v14 = vmax.f32 %v5037_v3, 0.0  ;;  %v5040_v17 = vadd.f32 %v13612_v16, %v11577_v12  ;;  %v5031_v19 = vpop.f32.mrb[179].mxu1 }
 0x249   : > { %v5666_v15 = vmax.f32 %v3861_v4, 0.0  ;;  %v3864_v18 = vadd.f32 %v13612_v16, %v3863_v62  ;;  %v5958_v21 = vmax.f32 %v5029_v10, 0.0  ;;  %v5032_v23 = vadd.f32 %v13612_v16, %v5031_v19 }
 0x24a   : > { %v10403_v20 = vpack.c.bf16 %v5668_v9, %v5668_v9  ;;  %v5669_v22 = vmax.f32 %v3872_v11, 0.0  ;;  %11391 = vmatmul.mubr.msk.bf16.gmra.mrb[28].mxu0 %vm2238_vm2, %v11991_v2  ;;  %v10695_v24 = vpack.c.bf16 %v5960_v14, %v5960_v14  ;;  %v5961_v26 = vmax.f32 %v5040_v17, 0.0  ;;  %11683 = vmatmul.mubr.msk.bf16.gmra.mrb[28].mxu1 %vm2238_vm2, %v11992_v7 }
 0x24b   : > { %v10401_v25 = vpack.c.bf16 %v5666_v15, %v5666_v15  ;;  %v5667_v27 = vmax.f32 %v3864_v18, 0.0  ;;  %11394 = vmatprep.mubr.msk.bf16.mxu0 %vm2238_vm2, %v11993_v8  ;;  %v10693_v28 = vpack.c.bf16 %v5958_v21, %v5958_v21  ;;  %v5959_v30 = vmax.f32 %v5032_v23, 0.0  ;;  %11686 = vmatprep.mubr.msk.bf16.mxu1 %vm2238_vm2, %v11994_v13 }
 0x24c   : > { %8585 = vst.msk [vmem:[%s12295_s27 + $0x2c8] sm:$0xf] %vm8406_vm3, %v10403_v20  ;;  %v10404_v29 = vpack.c.bf16 %v5669_v22, %v5669_v22  ;;  %8877 = vst.msk [vmem:[%s12295_s27 + $0x758] sm:$0xf] %vm8406_vm3, %v10695_v24  ;;  %v10696_v31 = vpack.c.bf16 %v5961_v26, %v5961_v26 }
 0x24d   : > { %8583 = vst.msk [vmem:[%s12295_s27 + $0x2c0] sm:$0xf] %vm8406_vm3, %v10401_v25  ;;  %v10402_v32 = vpack.c.bf16 %v5667_v27, %v5667_v27  ;;  %v11288_v33 = vpop.f32.mrb[180].mxu0  ;;  %8875 = vst.msk [vmem:[%s12295_s27 + $0x750] sm:$0xf] %vm8406_vm3, %v10693_v28  ;;  %v10694_v34 = vpack.c.bf16 %v5959_v30, %v5959_v30  ;;  %v11580_v36 = vpop.f32.mrb[180].mxu1 }
 0x24e   : > { %8586 = vst.msk [vmem:[%s12295_s27 + $0x2cc] sm:$0xf] %vm8406_vm3, %v10404_v29  ;;  %v3885_v35 = vadd.f32 %v13612_v16, %v11288_v33  ;;  %v3876_v38 = vpop.f32.mrb[181].mxu0  ;;  %8878 = vst.msk [vmem:[%s12295_s27 + $0x75c] sm:$0xf] %vm8406_vm3, %v10696_v31  ;;  %v5053_v40 = vadd.f32 %v13612_v16, %v11580_v36  ;;  %v5044_v41 = vpop.f32.mrb[181].mxu1 }
 0x24f   : > { %8584 = vst.msk [vmem:[%s12295_s27 + $0x2c4] sm:$0xf] %vm8406_vm3, %v10402_v32  ;;  %v3877_v37 = vadd.f32 %v13612_v16, %v3876_v38  ;;  %v11289_v42 = vpop.f32.mrb[182].mxu0  ;;  %8876 = vst.msk [vmem:[%s12295_s27 + $0x754] sm:$0xf] %vm8406_vm3, %v10694_v34  ;;  %v5045_v45 = vadd.f32 %v13612_v16, %v5044_v41  ;;  %v11581_v47 = vpop.f32.mrb[182].mxu1 }
 0x250   : > { %v5672_v44 = vmax.f32 %v3885_v35, 0.0  ;;  %v3888_v46 = vadd.f32 %v13612_v16, %v11289_v42  ;;  %v3879_v48 = vpop.f32.mrb[183].mxu0  ;;  %v5964_v49 = vmax.f32 %v5053_v40, 0.0  ;;  %v5056_v51 = vadd.f32 %v13612_v16, %v11581_v47  ;;  %v5047_v54 = vpop.f32.mrb[183].mxu1 }
 0x251   : > { %v5670_v50 = vmax.f32 %v3877_v37, 0.0  ;;  %v3880_v53 = vadd.f32 %v13612_v16, %v3879_v48  ;;  %v5962_v56 = vmax.f32 %v5045_v45, 0.0  ;;  %v5048_v58 = vadd.f32 %v13612_v16, %v5047_v54 }
 0x252   : > { %v10407_v55 = vpack.c.bf16 %v5672_v44, %v5672_v44  ;;  %v5673_v57 = vmax.f32 %v3888_v46, 0.0  ;;  %11395 = vmatmul.mubr.msk.bf16.gmra.mrb[32].mxu0 %vm2238_vm2, %v11995_v39  ;;  %v10699_v52 = vpack.c.bf16 %v5964_v49, %v5964_v49  ;;  %v5965_v60 = vmax.f32 %v5056_v51, 0.0  ;;  %11687 = vmatmul.mubr.msk.bf16.gmra.mrb[32].mxu1 %vm2238_vm2, %v11996_v43 }
 0x253   : > { %v10405_v59 = vpack.c.bf16 %v5670_v50, %v5670_v50  ;;  %v5671_v61 = vmax.f32 %v3880_v53, 0.0  ;;  %v10697_v63 = vpack.c.bf16 %v5962_v56, %v5962_v56  ;;  %v5963_v1 = vmax.f32 %v5048_v58, 0.0 }
 0x254   : > { %8589 = vst.msk [vmem:[%s12295_s27 + $0x2d8] sm:$0xf] %vm8406_vm3, %v10407_v55  ;;  %v10408_v0 = vpack.c.bf16 %v5673_v57, %v5673_v57  ;;  %8881 = vst.msk [vmem:[%s12295_s27 + $0x768] sm:$0xf] %vm8406_vm3, %v10699_v52  ;;  %v10700_v2 = vpack.c.bf16 %v5965_v60, %v5965_v60 }
 0x255   : > { %8587 = vst.msk [vmem:[%s12295_s27 + $0x2d0] sm:$0xf] %vm8406_vm3, %v10405_v59  ;;  %v10406_v3 = vpack.c.bf16 %v5671_v61, %v5671_v61  ;;  %v11292_v4 = vpop.f32.mrb[184].mxu0  ;;  %8879 = vst.msk [vmem:[%s12295_s27 + $0x760] sm:$0xf] %vm8406_vm3, %v10697_v63  ;;  %v10698_v5 = vpack.c.bf16 %v5963_v1, %v5963_v1  ;;  %v11584_v7 = vpop.f32.mrb[184].mxu1 }
 0x256   : > { %8590 = vst.msk [vmem:[%s12295_s27 + $0x2dc] sm:$0xf] %vm8406_vm3, %v10408_v0  ;;  %v3901_v6 = vadd.f32 %v13612_v16, %v11292_v4  ;;  %v3892_v8 = vpop.f32.mrb[185].mxu0  ;;  %8882 = vst.msk [vmem:[%s12295_s27 + $0x76c] sm:$0xf] %vm8406_vm3, %v10700_v2  ;;  %v5069_v9 = vadd.f32 %v13612_v16, %v11584_v7  ;;  %v5060_v11 = vpop.f32.mrb[185].mxu1 }
 0x257   : > { %8588 = vst.msk [vmem:[%s12295_s27 + $0x2d4] sm:$0xf] %vm8406_vm3, %v10406_v3  ;;  %v3893_v10 = vadd.f32 %v13612_v16, %v3892_v8  ;;  %v11293_v12 = vpop.f32.mrb[186].mxu0  ;;  %8880 = vst.msk [vmem:[%s12295_s27 + $0x764] sm:$0xf] %vm8406_vm3, %v10698_v5  ;;  %v5061_v13 = vadd.f32 %v13612_v16, %v5060_v11  ;;  %v11585_v15 = vpop.f32.mrb[186].mxu1 }
 0x258   : > { %v5676_v62 = vmax.f32 %v3901_v6, 0.0  ;;  %v3904_v14 = vadd.f32 %v13612_v16, %v11293_v12  ;;  %v3895_v17 = vpop.f32.mrb[187].mxu0  ;;  %v5968_v18 = vmax.f32 %v5069_v9, 0.0  ;;  %v5072_v20 = vadd.f32 %v13612_v16, %v11585_v15  ;;  %v5063_v22 = vpop.f32.mrb[187].mxu1 }
 0x259   : > { %v5674_v19 = vmax.f32 %v3893_v10, 0.0  ;;  %v3896_v21 = vadd.f32 %v13612_v16, %v3895_v17  ;;  %v5966_v24 = vmax.f32 %v5061_v13, 0.0  ;;  %v5064_v26 = vadd.f32 %v13612_v16, %v5063_v22 }
 0x25a   : > { %v10411_v23 = vpack.c.bf16 %v5676_v62, %v5676_v62  ;;  %v5677_v25 = vmax.f32 %v3904_v14, 0.0  ;;  %v10703_v27 = vpack.c.bf16 %v5968_v18, %v5968_v18  ;;  %v5969_v29 = vmax.f32 %v5072_v20, 0.0 }
 0x25b   : > { %v10409_v28 = vpack.c.bf16 %v5674_v19, %v5674_v19  ;;  %v5675_v30 = vmax.f32 %v3896_v21, 0.0  ;;  %v10701_v31 = vpack.c.bf16 %v5966_v24, %v5966_v24  ;;  %v5967_v33 = vmax.f32 %v5064_v26, 0.0 }
 0x25c   : > { %8593 = vst.msk [vmem:[%s12295_s27 + $0x2e8] sm:$0xf] %vm8406_vm3, %v10411_v23  ;;  %v10412_v32 = vpack.c.bf16 %v5677_v25, %v5677_v25  ;;  %8885 = vst.msk [vmem:[%s12295_s27 + $0x778] sm:$0xf] %vm8406_vm3, %v10703_v27  ;;  %v10704_v34 = vpack.c.bf16 %v5969_v29, %v5969_v29 }
 0x25d   : > { %8591 = vst.msk [vmem:[%s12295_s27 + $0x2e0] sm:$0xf] %vm8406_vm3, %v10409_v28  ;;  %v10410_v35 = vpack.c.bf16 %v5675_v30, %v5675_v30  ;;  %v11296_v36 = vpop.f32.mrb[188].mxu0  ;;  %8883 = vst.msk [vmem:[%s12295_s27 + $0x770] sm:$0xf] %vm8406_vm3, %v10701_v31  ;;  %v10702_v38 = vpack.c.bf16 %v5967_v33, %v5967_v33  ;;  %v11588_v40 = vpop.f32.mrb[188].mxu1 }
 0x25e   : > { %8594 = vst.msk [vmem:[%s12295_s27 + $0x2ec] sm:$0xf] %vm8406_vm3, %v10412_v32  ;;  %v3917_v39 = vadd.f32 %v13612_v16, %v11296_v36  ;;  %v3908_v37 = vpop.f32.mrb[189].mxu0  ;;  %8886 = vst.msk [vmem:[%s12295_s27 + $0x77c] sm:$0xf] %vm8406_vm3, %v10704_v34  ;;  %v5085_v41 = vadd.f32 %v13612_v16, %v11588_v40  ;;  %v5076_v43 = vpop.f32.mrb[189].mxu1 }
 0x25f   : > { %8592 = vst.msk [vmem:[%s12295_s27 + $0x2e4] sm:$0xf] %vm8406_vm3, %v10410_v35  ;;  %v3909_v42 = vadd.f32 %v13612_v16, %v3908_v37  ;;  %v11297_v44 = vpop.f32.mrb[190].mxu0  ;;  %8884 = vst.msk [vmem:[%s12295_s27 + $0x774] sm:$0xf] %vm8406_vm3, %v10702_v38  ;;  %v5077_v46 = vadd.f32 %v13612_v16, %v5076_v43  ;;  %v11589_v48 = vpop.f32.mrb[190].mxu1 }
 0x260   : > { %v5680_v45 = vmax.f32 %v3917_v39, 0.0  ;;  %v3920_v47 = vadd.f32 %v13612_v16, %v11297_v44  ;;  %v3911_v49 = vpop.f32.mrb[191].mxu0  ;;  %v5972_v50 = vmax.f32 %v5085_v41, 0.0  ;;  %v5088_v53 = vadd.f32 %v13612_v16, %v11589_v48  ;;  %v5079_v55 = vpop.f32.mrb[191].mxu1 }
 0x261   : > { %v5678_v51 = vmax.f32 %v3909_v42, 0.0  ;;  %v3912_v54 = vadd.f32 %v13612_v16, %v3911_v49  ;;  %v5970_v57 = vmax.f32 %v5077_v46, 0.0  ;;  %v5080_v52 = vadd.f32 %v13612_v16, %v5079_v55 }
 0x262   : > { %v10415_v56 = vpack.c.bf16 %v5680_v45, %v5680_v45  ;;  %v5681_v58 = vmax.f32 %v3920_v47, 0.0  ;;  %v10707_v59 = vpack.c.bf16 %v5972_v50, %v5972_v50  ;;  %v5973_v61 = vmax.f32 %v5088_v53, 0.0 }
 0x263   : > { %v10413_v60 = vpack.c.bf16 %v5678_v51, %v5678_v51  ;;  %v5679_v63 = vmax.f32 %v3912_v54, 0.0  ;;  %v10705_v0 = vpack.c.bf16 %v5970_v57, %v5970_v57  ;;  %v5971_v2 = vmax.f32 %v5080_v52, 0.0 }
 0x264   : > { %8597 = vst.msk [vmem:[%s12295_s27 + $0x2f8] sm:$0xf] %vm8406_vm3, %v10415_v56  ;;  %v10416_v1 = vpack.c.bf16 %v5681_v58, %v5681_v58  ;;  %8889 = vst.msk [vmem:[%s12295_s27 + $0x788] sm:$0xf] %vm8406_vm3, %v10707_v59  ;;  %v10708_v3 = vpack.c.bf16 %v5973_v61, %v5973_v61 }
 0x265   : > { %8595 = vst.msk [vmem:[%s12295_s27 + $0x2f0] sm:$0xf] %vm8406_vm3, %v10413_v60  ;;  %v10414_v4 = vpack.c.bf16 %v5679_v63, %v5679_v63  ;;  %v11300_v5 = vpop.f32.mrb[192].mxu0  ;;  %8887 = vst.msk [vmem:[%s12295_s27 + $0x780] sm:$0xf] %vm8406_vm3, %v10705_v0  ;;  %v10706_v6 = vpack.c.bf16 %v5971_v2, %v5971_v2  ;;  %v11592_v8 = vpop.f32.mrb[192].mxu1 }
 0x266   : > { %8598 = vst.msk [vmem:[%s12295_s27 + $0x2fc] sm:$0xf] %vm8406_vm3, %v10416_v1  ;;  %v3933_v7 = vadd.f32 %v13612_v16, %v11300_v5  ;;  %v3924_v9 = vpop.f32.mrb[193].mxu0  ;;  %8890 = vst.msk [vmem:[%s12295_s27 + $0x78c] sm:$0xf] %vm8406_vm3, %v10708_v3  ;;  %v5101_v10 = vadd.f32 %v13612_v16, %v11592_v8  ;;  %v5092_v12 = vpop.f32.mrb[193].mxu1 }
 0x267   : > { %8596 = vst.msk [vmem:[%s12295_s27 + $0x2f4] sm:$0xf] %vm8406_vm3, %v10414_v4  ;;  %v3925_v11 = vadd.f32 %v13612_v16, %v3924_v9  ;;  %v11301_v62 = vpop.f32.mrb[194].mxu0  ;;  %8888 = vst.msk [vmem:[%s12295_s27 + $0x784] sm:$0xf] %vm8406_vm3, %v10706_v6  ;;  %v5093_v14 = vadd.f32 %v13612_v16, %v5092_v12  ;;  %v11593_v17 = vpop.f32.mrb[194].mxu1 }
 0x268   : > { %v5684_v13 = vmax.f32 %v3933_v7, 0.0  ;;  %v3936_v15 = vadd.f32 %v13612_v16, %v11301_v62  ;;  %v3927_v18 = vpop.f32.mrb[195].mxu0  ;;  %v5976_v19 = vmax.f32 %v5101_v10, 0.0  ;;  %v5104_v21 = vadd.f32 %v13612_v16, %v11593_v17  ;;  %v5095_v23 = vpop.f32.mrb[195].mxu1 }
 0x269   : > { %v5682_v20 = vmax.f32 %v3925_v11, 0.0  ;;  %v3928_v22 = vadd.f32 %v13612_v16, %v3927_v18  ;;  %v5974_v25 = vmax.f32 %v5093_v14, 0.0  ;;  %v5096_v27 = vadd.f32 %v13612_v16, %v5095_v23 }
 0x26a   : > { %v10419_v24 = vpack.c.bf16 %v5684_v13, %v5684_v13  ;;  %v5685_v26 = vmax.f32 %v3936_v15, 0.0  ;;  %v10711_v28 = vpack.c.bf16 %v5976_v19, %v5976_v19  ;;  %v5977_v30 = vmax.f32 %v5104_v21, 0.0 }
 0x26b   : > { %v10417_v29 = vpack.c.bf16 %v5682_v20, %v5682_v20  ;;  %v5683_v31 = vmax.f32 %v3928_v22, 0.0  ;;  %v10709_v32 = vpack.c.bf16 %v5974_v25, %v5974_v25  ;;  %v5975_v34 = vmax.f32 %v5096_v27, 0.0 }
 0x26c   : > { %8601 = vst.msk [vmem:[%s12295_s27 + $0x308] sm:$0xf] %vm8406_vm3, %v10419_v24  ;;  %v10420_v33 = vpack.c.bf16 %v5685_v26, %v5685_v26  ;;  %8893 = vst.msk [vmem:[%s12295_s27 + $0x798] sm:$0xf] %vm8406_vm3, %v10711_v28  ;;  %v10712_v35 = vpack.c.bf16 %v5977_v30, %v5977_v30 }
 0x26d   : > { %8599 = vst.msk [vmem:[%s12295_s27 + $0x300] sm:$0xf] %vm8406_vm3, %v10417_v29  ;;  %v10418_v36 = vpack.c.bf16 %v5683_v31, %v5683_v31  ;;  %v11304_v38 = vpop.f32.mrb[196].mxu0  ;;  %8891 = vst.msk [vmem:[%s12295_s27 + $0x790] sm:$0xf] %vm8406_vm3, %v10709_v32  ;;  %v10710_v39 = vpack.c.bf16 %v5975_v34, %v5975_v34  ;;  %v11596_v37 = vpop.f32.mrb[196].mxu1 }
 0x26e   : > { %8602 = vst.msk [vmem:[%s12295_s27 + $0x30c] sm:$0xf] %vm8406_vm3, %v10420_v33  ;;  %v3949_v40 = vadd.f32 %v13612_v16, %v11304_v38  ;;  %v3940_v41 = vpop.f32.mrb[197].mxu0  ;;  %8894 = vst.msk [vmem:[%s12295_s27 + $0x79c] sm:$0xf] %vm8406_vm3, %v10712_v35  ;;  %v5117_v42 = vadd.f32 %v13612_v16, %v11596_v37  ;;  %v5108_v44 = vpop.f32.mrb[197].mxu1 }
 0x26f   : > { %8600 = vst.msk [vmem:[%s12295_s27 + $0x304] sm:$0xf] %vm8406_vm3, %v10418_v36  ;;  %v3941_v43 = vadd.f32 %v13612_v16, %v3940_v41  ;;  %v11305_v45 = vpop.f32.mrb[198].mxu0  ;;  %8892 = vst.msk [vmem:[%s12295_s27 + $0x794] sm:$0xf] %vm8406_vm3, %v10710_v39  ;;  %v5109_v47 = vadd.f32 %v13612_v16, %v5108_v44  ;;  %v11597_v49 = vpop.f32.mrb[198].mxu1 }
 0x270   : > { %v5688_v46 = vmax.f32 %v3949_v40, 0.0  ;;  %v3952_v48 = vadd.f32 %v13612_v16, %v11305_v45  ;;  %v3943_v50 = vpop.f32.mrb[199].mxu0  ;;  %v5980_v51 = vmax.f32 %v5117_v42, 0.0  ;;  %v5120_v54 = vadd.f32 %v13612_v16, %v11597_v49  ;;  %v5111_v56 = vpop.f32.mrb[199].mxu1 }
 0x271   : > { %v5686_v53 = vmax.f32 %v3941_v43, 0.0  ;;  %v3944_v55 = vadd.f32 %v13612_v16, %v3943_v50  ;;  %v5978_v58 = vmax.f32 %v5109_v47, 0.0  ;;  %v5112_v59 = vadd.f32 %v13612_v16, %v5111_v56 }
 0x272   : > { %v10423_v57 = vpack.c.bf16 %v5688_v46, %v5688_v46  ;;  %v5689_v52 = vmax.f32 %v3952_v48, 0.0  ;;  %v10715_v60 = vpack.c.bf16 %v5980_v51, %v5980_v51  ;;  %v5981_v63 = vmax.f32 %v5120_v54, 0.0 }
 0x273   : > { %v10421_v61 = vpack.c.bf16 %v5686_v53, %v5686_v53  ;;  %v5687_v0 = vmax.f32 %v3944_v55, 0.0  ;;  %v10713_v1 = vpack.c.bf16 %v5978_v58, %v5978_v58  ;;  %v5979_v3 = vmax.f32 %v5112_v59, 0.0 }
 0x274   : > { %8605 = vst.msk [vmem:[%s12295_s27 + $0x318] sm:$0xf] %vm8406_vm3, %v10423_v57  ;;  %v10424_v2 = vpack.c.bf16 %v5689_v52, %v5689_v52  ;;  %8897 = vst.msk [vmem:[%s12295_s27 + $0x7a8] sm:$0xf] %vm8406_vm3, %v10715_v60  ;;  %v10716_v4 = vpack.c.bf16 %v5981_v63, %v5981_v63 }
 0x275   : > { %8603 = vst.msk [vmem:[%s12295_s27 + $0x310] sm:$0xf] %vm8406_vm3, %v10421_v61  ;;  %v10422_v5 = vpack.c.bf16 %v5687_v0, %v5687_v0  ;;  %v11308_v6 = vpop.f32.mrb[200].mxu0  ;;  %8895 = vst.msk [vmem:[%s12295_s27 + $0x7a0] sm:$0xf] %vm8406_vm3, %v10713_v1  ;;  %v10714_v7 = vpack.c.bf16 %v5979_v3, %v5979_v3  ;;  %v11600_v9 = vpop.f32.mrb[200].mxu1 }
 0x276   : > { %8606 = vst.msk [vmem:[%s12295_s27 + $0x31c] sm:$0xf] %vm8406_vm3, %v10424_v2  ;;  %v3965_v8 = vadd.f32 %v13612_v16, %v11308_v6  ;;  %v3956_v10 = vpop.f32.mrb[201].mxu0  ;;  %8898 = vst.msk [vmem:[%s12295_s27 + $0x7ac] sm:$0xf] %vm8406_vm3, %v10716_v4  ;;  %v5133_v11 = vadd.f32 %v13612_v16, %v11600_v9  ;;  %v5124_v62 = vpop.f32.mrb[201].mxu1 }
 0x277   : > { %8604 = vst.msk [vmem:[%s12295_s27 + $0x314] sm:$0xf] %vm8406_vm3, %v10422_v5  ;;  %v3957_v12 = vadd.f32 %v13612_v16, %v3956_v10  ;;  %v11309_v13 = vpop.f32.mrb[202].mxu0  ;;  %8896 = vst.msk [vmem:[%s12295_s27 + $0x7a4] sm:$0xf] %vm8406_vm3, %v10714_v7  ;;  %v5125_v15 = vadd.f32 %v13612_v16, %v5124_v62  ;;  %v11601_v18 = vpop.f32.mrb[202].mxu1 }
 0x278   : > { %v5692_v14 = vmax.f32 %v3965_v8, 0.0  ;;  %v3968_v17 = vadd.f32 %v13612_v16, %v11309_v13  ;;  %v3959_v19 = vpop.f32.mrb[203].mxu0  ;;  %v5984_v20 = vmax.f32 %v5133_v11, 0.0  ;;  %v5136_v22 = vadd.f32 %v13612_v16, %v11601_v18  ;;  %v5127_v24 = vpop.f32.mrb[203].mxu1 }
 0x279   : > { %v5690_v21 = vmax.f32 %v3957_v12, 0.0  ;;  %v3960_v23 = vadd.f32 %v13612_v16, %v3959_v19  ;;  %v5982_v26 = vmax.f32 %v5125_v15, 0.0  ;;  %v5128_v28 = vadd.f32 %v13612_v16, %v5127_v24 }
 0x27a   : > { %v10427_v25 = vpack.c.bf16 %v5692_v14, %v5692_v14  ;;  %v5693_v27 = vmax.f32 %v3968_v17, 0.0  ;;  %v10719_v29 = vpack.c.bf16 %v5984_v20, %v5984_v20  ;;  %v5985_v31 = vmax.f32 %v5136_v22, 0.0 }
 0x27b   : > { %v10425_v30 = vpack.c.bf16 %v5690_v21, %v5690_v21  ;;  %v5691_v32 = vmax.f32 %v3960_v23, 0.0  ;;  %v10717_v33 = vpack.c.bf16 %v5982_v26, %v5982_v26  ;;  %v5983_v35 = vmax.f32 %v5128_v28, 0.0 }
 0x27c   : > { %8609 = vst.msk [vmem:[%s12295_s27 + $0x328] sm:$0xf] %vm8406_vm3, %v10427_v25  ;;  %v10428_v34 = vpack.c.bf16 %v5693_v27, %v5693_v27  ;;  %8901 = vst.msk [vmem:[%s12295_s27 + $0x7b8] sm:$0xf] %vm8406_vm3, %v10719_v29  ;;  %v10720_v36 = vpack.c.bf16 %v5985_v31, %v5985_v31 }
 0x27d   : > { %8607 = vst.msk [vmem:[%s12295_s27 + $0x320] sm:$0xf] %vm8406_vm3, %v10425_v30  ;;  %v10426_v38 = vpack.c.bf16 %v5691_v32, %v5691_v32  ;;  %v11312_v39 = vpop.f32.mrb[204].mxu0  ;;  %8899 = vst.msk [vmem:[%s12295_s27 + $0x7b0] sm:$0xf] %vm8406_vm3, %v10717_v33  ;;  %v10718_v40 = vpack.c.bf16 %v5983_v35, %v5983_v35  ;;  %v11604_v41 = vpop.f32.mrb[204].mxu1 }
 0x27e   : > { %8610 = vst.msk [vmem:[%s12295_s27 + $0x32c] sm:$0xf] %vm8406_vm3, %v10428_v34  ;;  %v3981_v37 = vadd.f32 %v13612_v16, %v11312_v39  ;;  %v3972_v42 = vpop.f32.mrb[205].mxu0  ;;  %8902 = vst.msk [vmem:[%s12295_s27 + $0x7bc] sm:$0xf] %vm8406_vm3, %v10720_v36  ;;  %v5149_v43 = vadd.f32 %v13612_v16, %v11604_v41  ;;  %v5140_v45 = vpop.f32.mrb[205].mxu1 }
 0x27f   : > { %8608 = vst.msk [vmem:[%s12295_s27 + $0x324] sm:$0xf] %vm8406_vm3, %v10426_v38  ;;  %v3973_v44 = vadd.f32 %v13612_v16, %v3972_v42  ;;  %v11313_v46 = vpop.f32.mrb[206].mxu0  ;;  %8900 = vst.msk [vmem:[%s12295_s27 + $0x7b4] sm:$0xf] %vm8406_vm3, %v10718_v40  ;;  %v5141_v48 = vadd.f32 %v13612_v16, %v5140_v45  ;;  %v11605_v50 = vpop.f32.mrb[206].mxu1 }
 0x280   : > { %v5696_v47 = vmax.f32 %v3981_v37, 0.0  ;;  %v3984_v49 = vadd.f32 %v13612_v16, %v11313_v46  ;;  %v3975_v51 = vpop.f32.mrb[207].mxu0  ;;  %v5988_v53 = vmax.f32 %v5149_v43, 0.0  ;;  %v5152_v55 = vadd.f32 %v13612_v16, %v11605_v50  ;;  %v5143_v57 = vpop.f32.mrb[207].mxu1  ;;  %v13941_v37 = vld [vmem:[%s14436_s2] ss:$0 sm:$0xff] }
 0x281   : > { %v5694_v54 = vmax.f32 %v3973_v44, 0.0  ;;  %v3976_v56 = vadd.f32 %v13612_v16, %v3975_v51  ;;  %v5986_v52 = vmax.f32 %v5141_v48, 0.0  ;;  %v5144_v60 = vadd.f32 %v13612_v16, %v5143_v57 }
 0x282   : > { %v10431_v58 = vpack.c.bf16 %v5696_v47, %v5696_v47  ;;  %v5697_v59 = vmax.f32 %v3984_v49, 0.0  ;;  %v10723_v61 = vpack.c.bf16 %v5988_v53, %v5988_v53  ;;  %v5989_v0 = vmax.f32 %v5152_v55, 0.0 }
 0x283   : > { %v10429_v63 = vpack.c.bf16 %v5694_v54, %v5694_v54  ;;  %v5695_v1 = vmax.f32 %v3976_v56, 0.0  ;;  %v10721_v2 = vpack.c.bf16 %v5986_v52, %v5986_v52  ;;  %v5987_v4 = vmax.f32 %v5144_v60, 0.0 }
 0x284   : > { %8613 = vst.msk [vmem:[%s12295_s27 + $0x338] sm:$0xf] %vm8406_vm3, %v10431_v58  ;;  %v10432_v3 = vpack.c.bf16 %v5697_v59, %v5697_v59  ;;  %8905 = vst.msk [vmem:[%s12295_s27 + $0x7c8] sm:$0xf] %vm8406_vm3, %v10723_v61  ;;  %v10724_v5 = vpack.c.bf16 %v5989_v0, %v5989_v0 }
 0x285   : > { %8611 = vst.msk [vmem:[%s12295_s27 + $0x330] sm:$0xf] %vm8406_vm3, %v10429_v63  ;;  %v10430_v6 = vpack.c.bf16 %v5695_v1, %v5695_v1  ;;  %v11316_v7 = vpop.f32.mrb[208].mxu0  ;;  %8903 = vst.msk [vmem:[%s12295_s27 + $0x7c0] sm:$0xf] %vm8406_vm3, %v10721_v2  ;;  %v10722_v8 = vpack.c.bf16 %v5987_v4, %v5987_v4  ;;  %v11608_v10 = vpop.f32.mrb[208].mxu1 }
 0x286   : > { %8614 = vst.msk [vmem:[%s12295_s27 + $0x33c] sm:$0xf] %vm8406_vm3, %v10432_v3  ;;  %v3997_v9 = vadd.f32 %v13612_v16, %v11316_v7  ;;  %v3988_v11 = vpop.f32.mrb[209].mxu0  ;;  %8906 = vst.msk [vmem:[%s12295_s27 + $0x7cc] sm:$0xf] %vm8406_vm3, %v10724_v5  ;;  %v5165_v12 = vadd.f32 %v13612_v16, %v11608_v10  ;;  %v5156_v13 = vpop.f32.mrb[209].mxu1 }
 0x287   : > { %8612 = vst.msk [vmem:[%s12295_s27 + $0x334] sm:$0xf] %vm8406_vm3, %v10430_v6  ;;  %v3989_v62 = vadd.f32 %v13612_v16, %v3988_v11  ;;  %v11317_v14 = vpop.f32.mrb[210].mxu0  ;;  %8904 = vst.msk [vmem:[%s12295_s27 + $0x7c4] sm:$0xf] %vm8406_vm3, %v10722_v8  ;;  %v5157_v17 = vadd.f32 %v13612_v16, %v5156_v13  ;;  %v11609_v19 = vpop.f32.mrb[210].mxu1 }
 0x288   : > { %v5700_v15 = vmax.f32 %v3997_v9, 0.0  ;;  %v4000_v18 = vadd.f32 %v13612_v16, %v11317_v14  ;;  %v3991_v20 = vpop.f32.mrb[211].mxu0  ;;  %v5992_v21 = vmax.f32 %v5165_v12, 0.0  ;;  %v5168_v23 = vadd.f32 %v13612_v16, %v11609_v19  ;;  %v5159_v25 = vpop.f32.mrb[211].mxu1 }
 0x289   : > { %v5698_v22 = vmax.f32 %v3989_v62, 0.0  ;;  %v3992_v24 = vadd.f32 %v13612_v16, %v3991_v20  ;;  %v5990_v27 = vmax.f32 %v5157_v17, 0.0  ;;  %v5160_v29 = vadd.f32 %v13612_v16, %v5159_v25 }
 0x28a   : > { %v10435_v26 = vpack.c.bf16 %v5700_v15, %v5700_v15  ;;  %v5701_v28 = vmax.f32 %v4000_v18, 0.0  ;;  %v10727_v30 = vpack.c.bf16 %v5992_v21, %v5992_v21  ;;  %v5993_v32 = vmax.f32 %v5168_v23, 0.0 }
 0x28b   : > { %v10433_v31 = vpack.c.bf16 %v5698_v22, %v5698_v22  ;;  %v5699_v33 = vmax.f32 %v3992_v24, 0.0  ;;  %v10725_v34 = vpack.c.bf16 %v5990_v27, %v5990_v27  ;;  %v5991_v36 = vmax.f32 %v5160_v29, 0.0 }
 0x28c   : > { %8617 = vst.msk [vmem:[%s12295_s27 + $0x348] sm:$0xf] %vm8406_vm3, %v10435_v26  ;;  %v10436_v35 = vpack.c.bf16 %v5701_v28, %v5701_v28  ;;  %8909 = vst.msk [vmem:[%s12295_s27 + $0x7d8] sm:$0xf] %vm8406_vm3, %v10727_v30  ;;  %v10728_v38 = vpack.c.bf16 %v5993_v32, %v5993_v32 }
 0x28d   : > { %8615 = vst.msk [vmem:[%s12295_s27 + $0x340] sm:$0xf] %vm8406_vm3, %v10433_v31  ;;  %v10434_v39 = vpack.c.bf16 %v5699_v33, %v5699_v33  ;;  %v11320_v40 = vpop.f32.mrb[212].mxu0  ;;  %8907 = vst.msk [vmem:[%s12295_s27 + $0x7d0] sm:$0xf] %vm8406_vm3, %v10725_v34  ;;  %v10726_v16 = vpack.c.bf16 %v5991_v36, %v5991_v36  ;;  %v11612_v42 = vpop.f32.mrb[212].mxu1 }
 0x28e   : > { %8618 = vst.msk [vmem:[%s12295_s27 + $0x34c] sm:$0xf] %vm8406_vm3, %v10436_v35  ;;  %v4013_v41 = vadd.f32 %v13941_v37, %v11320_v40  ;;  %v4004_v43 = vpop.f32.mrb[213].mxu0  ;;  %8910 = vst.msk [vmem:[%s12295_s27 + $0x7dc] sm:$0xf] %vm8406_vm3, %v10728_v38  ;;  %v5181_v44 = vadd.f32 %v13941_v37, %v11612_v42  ;;  %v5172_v46 = vpop.f32.mrb[213].mxu1 }
 0x28f   : > { %8616 = vst.msk [vmem:[%s12295_s27 + $0x344] sm:$0xf] %vm8406_vm3, %v10434_v39  ;;  %v4005_v45 = vadd.f32 %v13941_v37, %v4004_v43  ;;  %v11321_v47 = vpop.f32.mrb[214].mxu0  ;;  %8908 = vst.msk [vmem:[%s12295_s27 + $0x7d4] sm:$0xf] %vm8406_vm3, %v10726_v16  ;;  %v5173_v49 = vadd.f32 %v13941_v37, %v5172_v46  ;;  %v11613_v51 = vpop.f32.mrb[214].mxu1 }
 0x290   : > { %v5704_v48 = vmax.f32 %v4013_v41, 0.0  ;;  %v4016_v50 = vadd.f32 %v13941_v37, %v11321_v47  ;;  %v4007_v53 = vpop.f32.mrb[215].mxu0  ;;  %v5996_v54 = vmax.f32 %v5181_v44, 0.0  ;;  %v5184_v56 = vadd.f32 %v13941_v37, %v11613_v51  ;;  %v5175_v58 = vpop.f32.mrb[215].mxu1 }
 0x291   : > { %v5702_v55 = vmax.f32 %v4005_v45, 0.0  ;;  %v4008_v57 = vadd.f32 %v13941_v37, %v4007_v53  ;;  %v5994_v59 = vmax.f32 %v5173_v49, 0.0  ;;  %v5176_v61 = vadd.f32 %v13941_v37, %v5175_v58 }
 0x292   : > { %v10439_v52 = vpack.c.bf16 %v5704_v48, %v5704_v48  ;;  %v5705_v60 = vmax.f32 %v4016_v50, 0.0  ;;  %v10731_v63 = vpack.c.bf16 %v5996_v54, %v5996_v54  ;;  %v5997_v1 = vmax.f32 %v5184_v56, 0.0 }
 0x293   : > { %v10437_v0 = vpack.c.bf16 %v5702_v55, %v5702_v55  ;;  %v5703_v2 = vmax.f32 %v4008_v57, 0.0  ;;  %v10729_v3 = vpack.c.bf16 %v5994_v59, %v5994_v59  ;;  %v5995_v5 = vmax.f32 %v5176_v61, 0.0 }
 0x294   : > { %8621 = vst.msk [vmem:[%s12295_s27 + $0x358] sm:$0xf] %vm8406_vm3, %v10439_v52  ;;  %v10440_v4 = vpack.c.bf16 %v5705_v60, %v5705_v60  ;;  %8913 = vst.msk [vmem:[%s12295_s27 + $0x7e8] sm:$0xf] %vm8406_vm3, %v10731_v63  ;;  %v10732_v6 = vpack.c.bf16 %v5997_v1, %v5997_v1 }
 0x295   : > { %8619 = vst.msk [vmem:[%s12295_s27 + $0x350] sm:$0xf] %vm8406_vm3, %v10437_v0  ;;  %v10438_v7 = vpack.c.bf16 %v5703_v2, %v5703_v2  ;;  %v11324_v8 = vpop.f32.mrb[216].mxu0  ;;  %8911 = vst.msk [vmem:[%s12295_s27 + $0x7e0] sm:$0xf] %vm8406_vm3, %v10729_v3  ;;  %v10730_v9 = vpack.c.bf16 %v5995_v5, %v5995_v5  ;;  %v11616_v11 = vpop.f32.mrb[216].mxu1 }
 0x296   : > { %8622 = vst.msk [vmem:[%s12295_s27 + $0x35c] sm:$0xf] %vm8406_vm3, %v10440_v4  ;;  %v4029_v10 = vadd.f32 %v13941_v37, %v11324_v8  ;;  %v4020_v12 = vpop.f32.mrb[217].mxu0  ;;  %8914 = vst.msk [vmem:[%s12295_s27 + $0x7ec] sm:$0xf] %vm8406_vm3, %v10732_v6  ;;  %v5197_v62 = vadd.f32 %v13941_v37, %v11616_v11  ;;  %v5188_v14 = vpop.f32.mrb[217].mxu1 }
 0x297   : > { %8620 = vst.msk [vmem:[%s12295_s27 + $0x354] sm:$0xf] %vm8406_vm3, %v10438_v7  ;;  %v4021_v13 = vadd.f32 %v13941_v37, %v4020_v12  ;;  %v11325_v15 = vpop.f32.mrb[218].mxu0  ;;  %8912 = vst.msk [vmem:[%s12295_s27 + $0x7e4] sm:$0xf] %vm8406_vm3, %v10730_v9  ;;  %v5189_v18 = vadd.f32 %v13941_v37, %v5188_v14  ;;  %v11617_v20 = vpop.f32.mrb[218].mxu1 }
 0x298   : > { %v5708_v17 = vmax.f32 %v4029_v10, 0.0  ;;  %v4032_v19 = vadd.f32 %v13941_v37, %v11325_v15  ;;  %v4023_v21 = vpop.f32.mrb[219].mxu0  ;;  %v6000_v22 = vmax.f32 %v5197_v62, 0.0  ;;  %v5200_v24 = vadd.f32 %v13941_v37, %v11617_v20  ;;  %v5191_v26 = vpop.f32.mrb[219].mxu1 }
 0x299   : > { %v5706_v23 = vmax.f32 %v4021_v13, 0.0  ;;  %v4024_v25 = vadd.f32 %v13941_v37, %v4023_v21  ;;  %v5998_v28 = vmax.f32 %v5189_v18, 0.0  ;;  %v5192_v30 = vadd.f32 %v13941_v37, %v5191_v26 }
 0x29a   : > { %v10443_v27 = vpack.c.bf16 %v5708_v17, %v5708_v17  ;;  %v5709_v29 = vmax.f32 %v4032_v19, 0.0  ;;  %v10735_v31 = vpack.c.bf16 %v6000_v22, %v6000_v22  ;;  %v6001_v33 = vmax.f32 %v5200_v24, 0.0 }
 0x29b   : > { %v10441_v32 = vpack.c.bf16 %v5706_v23, %v5706_v23  ;;  %v5707_v34 = vmax.f32 %v4024_v25, 0.0  ;;  %v10733_v35 = vpack.c.bf16 %v5998_v28, %v5998_v28  ;;  %v5999_v38 = vmax.f32 %v5192_v30, 0.0 }
 0x29c   : > { %8625 = vst.msk [vmem:[%s12295_s27 + $0x368] sm:$0xf] %vm8406_vm3, %v10443_v27  ;;  %v10444_v36 = vpack.c.bf16 %v5709_v29, %v5709_v29  ;;  %8917 = vst.msk [vmem:[%s12295_s27 + $0x7f8] sm:$0xf] %vm8406_vm3, %v10735_v31  ;;  %v10736_v39 = vpack.c.bf16 %v6001_v33, %v6001_v33 }
 0x29d   : > { %8623 = vst.msk [vmem:[%s12295_s27 + $0x360] sm:$0xf] %vm8406_vm3, %v10441_v32  ;;  %v10442_v40 = vpack.c.bf16 %v5707_v34, %v5707_v34  ;;  %v11328_v16 = vpop.f32.mrb[220].mxu0  ;;  %8915 = vst.msk [vmem:[%s12295_s27 + $0x7f0] sm:$0xf] %vm8406_vm3, %v10733_v35  ;;  %v10734_v41 = vpack.c.bf16 %v5999_v38, %v5999_v38  ;;  %v11620_v43 = vpop.f32.mrb[220].mxu1 }
 0x29e   : > { %8626 = vst.msk [vmem:[%s12295_s27 + $0x36c] sm:$0xf] %vm8406_vm3, %v10444_v36  ;;  %v4045_v42 = vadd.f32 %v13941_v37, %v11328_v16  ;;  %v4036_v44 = vpop.f32.mrb[221].mxu0  ;;  %8918 = vst.msk [vmem:[%s12295_s27 + $0x7fc] sm:$0xf] %vm8406_vm3, %v10736_v39  ;;  %v5213_v45 = vadd.f32 %v13941_v37, %v11620_v43  ;;  %v5204_v47 = vpop.f32.mrb[221].mxu1 }
 0x29f   : > { %8624 = vst.msk [vmem:[%s12295_s27 + $0x364] sm:$0xf] %vm8406_vm3, %v10442_v40  ;;  %v4037_v46 = vadd.f32 %v13941_v37, %v4036_v44  ;;  %v11329_v48 = vpop.f32.mrb[222].mxu0  ;;  %8916 = vst.msk [vmem:[%s12295_s27 + $0x7f4] sm:$0xf] %vm8406_vm3, %v10734_v41  ;;  %v5205_v50 = vadd.f32 %v13941_v37, %v5204_v47  ;;  %v11621_v53 = vpop.f32.mrb[222].mxu1 }
 0x2a0   : > { %v5712_v49 = vmax.f32 %v4045_v42, 0.0  ;;  %v4048_v51 = vadd.f32 %v13941_v37, %v11329_v48  ;;  %v4039_v54 = vpop.f32.mrb[223].mxu0  ;;  %v6004_v55 = vmax.f32 %v5213_v45, 0.0  ;;  %v5216_v57 = vadd.f32 %v13941_v37, %v11621_v53  ;;  %v5207_v52 = vpop.f32.mrb[223].mxu1 }
 0x2a1   : > { %v5710_v56 = vmax.f32 %v4037_v46, 0.0  ;;  %v4040_v58 = vadd.f32 %v13941_v37, %v4039_v54  ;;  %v6002_v60 = vmax.f32 %v5205_v50, 0.0  ;;  %v5208_v63 = vadd.f32 %v13941_v37, %v5207_v52 }
 0x2a2   : > { %v10447_v59 = vpack.c.bf16 %v5712_v49, %v5712_v49  ;;  %v5713_v61 = vmax.f32 %v4048_v51, 0.0  ;;  %v10739_v0 = vpack.c.bf16 %v6004_v55, %v6004_v55  ;;  %v6005_v2 = vmax.f32 %v5216_v57, 0.0 }
 0x2a3   : > { %v10445_v1 = vpack.c.bf16 %v5710_v56, %v5710_v56  ;;  %v5711_v3 = vmax.f32 %v4040_v58, 0.0  ;;  %v10737_v4 = vpack.c.bf16 %v6002_v60, %v6002_v60  ;;  %v6003_v6 = vmax.f32 %v5208_v63, 0.0 }
 0x2a4   : > { %8629 = vst.msk [vmem:[%s12295_s27 + $0x378] sm:$0xf] %vm8406_vm3, %v10447_v59  ;;  %v10448_v5 = vpack.c.bf16 %v5713_v61, %v5713_v61  ;;  %8921 = vst.msk [vmem:[%s12295_s27 + $0x808] sm:$0xf] %vm8406_vm3, %v10739_v0  ;;  %v10740_v7 = vpack.c.bf16 %v6005_v2, %v6005_v2 }
 0x2a5   : > { %8627 = vst.msk [vmem:[%s12295_s27 + $0x370] sm:$0xf] %vm8406_vm3, %v10445_v1  ;;  %v10446_v8 = vpack.c.bf16 %v5711_v3, %v5711_v3  ;;  %v11332_v9 = vpop.f32.mrb[224].mxu0  ;;  %8919 = vst.msk [vmem:[%s12295_s27 + $0x800] sm:$0xf] %vm8406_vm3, %v10737_v4  ;;  %v10738_v10 = vpack.c.bf16 %v6003_v6, %v6003_v6  ;;  %v11624_v12 = vpop.f32.mrb[224].mxu1 }
 0x2a6   : > { %8630 = vst.msk [vmem:[%s12295_s27 + $0x37c] sm:$0xf] %vm8406_vm3, %v10448_v5  ;;  %v4061_v11 = vadd.f32 %v13941_v37, %v11332_v9  ;;  %v4052_v62 = vpop.f32.mrb[225].mxu0  ;;  %8922 = vst.msk [vmem:[%s12295_s27 + $0x80c] sm:$0xf] %vm8406_vm3, %v10740_v7  ;;  %v5229_v13 = vadd.f32 %v13941_v37, %v11624_v12  ;;  %v5220_v15 = vpop.f32.mrb[225].mxu1 }
 0x2a7   : > { %8628 = vst.msk [vmem:[%s12295_s27 + $0x374] sm:$0xf] %vm8406_vm3, %v10446_v8  ;;  %v4053_v14 = vadd.f32 %v13941_v37, %v4052_v62  ;;  %v11333_v17 = vpop.f32.mrb[226].mxu0  ;;  %8920 = vst.msk [vmem:[%s12295_s27 + $0x804] sm:$0xf] %vm8406_vm3, %v10738_v10  ;;  %v5221_v19 = vadd.f32 %v13941_v37, %v5220_v15  ;;  %v11625_v21 = vpop.f32.mrb[226].mxu1 }
 0x2a8   : > { %v5716_v18 = vmax.f32 %v4061_v11, 0.0  ;;  %v4064_v20 = vadd.f32 %v13941_v37, %v11333_v17  ;;  %v4055_v22 = vpop.f32.mrb[227].mxu0  ;;  %v6008_v23 = vmax.f32 %v5229_v13, 0.0  ;;  %v5232_v25 = vadd.f32 %v13941_v37, %v11625_v21  ;;  %v5223_v27 = vpop.f32.mrb[227].mxu1 }
 0x2a9   : > { %v5714_v24 = vmax.f32 %v4053_v14, 0.0  ;;  %v4056_v26 = vadd.f32 %v13941_v37, %v4055_v22  ;;  %v6006_v29 = vmax.f32 %v5221_v19, 0.0  ;;  %v5224_v31 = vadd.f32 %v13941_v37, %v5223_v27 }
 0x2aa   : > { %v10451_v28 = vpack.c.bf16 %v5716_v18, %v5716_v18  ;;  %v5717_v30 = vmax.f32 %v4064_v20, 0.0  ;;  %v10743_v32 = vpack.c.bf16 %v6008_v23, %v6008_v23  ;;  %v6009_v34 = vmax.f32 %v5232_v25, 0.0 }
 0x2ab   : > { %v10449_v33 = vpack.c.bf16 %v5714_v24, %v5714_v24  ;;  %v5715_v35 = vmax.f32 %v4056_v26, 0.0  ;;  %v10741_v36 = vpack.c.bf16 %v6006_v29, %v6006_v29  ;;  %v6007_v39 = vmax.f32 %v5224_v31, 0.0 }
 0x2ac   : > { %8633 = vst.msk [vmem:[%s12295_s27 + $0x388] sm:$0xf] %vm8406_vm3, %v10451_v28  ;;  %v10452_v38 = vpack.c.bf16 %v5717_v30, %v5717_v30  ;;  %8925 = vst.msk [vmem:[%s12295_s27 + $0x818] sm:$0xf] %vm8406_vm3, %v10743_v32  ;;  %v10744_v40 = vpack.c.bf16 %v6009_v34, %v6009_v34 }
 0x2ad   : > { %8631 = vst.msk [vmem:[%s12295_s27 + $0x380] sm:$0xf] %vm8406_vm3, %v10449_v33  ;;  %v10450_v16 = vpack.c.bf16 %v5715_v35, %v5715_v35  ;;  %v11336_v41 = vpop.f32.mrb[228].mxu0  ;;  %8923 = vst.msk [vmem:[%s12295_s27 + $0x810] sm:$0xf] %vm8406_vm3, %v10741_v36  ;;  %v10742_v42 = vpack.c.bf16 %v6007_v39, %v6007_v39  ;;  %v11628_v44 = vpop.f32.mrb[228].mxu1 }
 0x2ae   : > { %8634 = vst.msk [vmem:[%s12295_s27 + $0x38c] sm:$0xf] %vm8406_vm3, %v10452_v38  ;;  %v4077_v43 = vadd.f32 %v13941_v37, %v11336_v41  ;;  %v4068_v45 = vpop.f32.mrb[229].mxu0  ;;  %8926 = vst.msk [vmem:[%s12295_s27 + $0x81c] sm:$0xf] %vm8406_vm3, %v10744_v40  ;;  %v5245_v46 = vadd.f32 %v13941_v37, %v11628_v44  ;;  %v5236_v48 = vpop.f32.mrb[229].mxu1 }
 0x2af   : > { %8632 = vst.msk [vmem:[%s12295_s27 + $0x384] sm:$0xf] %vm8406_vm3, %v10450_v16  ;;  %v4069_v47 = vadd.f32 %v13941_v37, %v4068_v45  ;;  %v11337_v49 = vpop.f32.mrb[230].mxu0  ;;  %8924 = vst.msk [vmem:[%s12295_s27 + $0x814] sm:$0xf] %vm8406_vm3, %v10742_v42  ;;  %v5237_v51 = vadd.f32 %v13941_v37, %v5236_v48  ;;  %v11629_v54 = vpop.f32.mrb[230].mxu1 }
 0x2b0   : > { %v5720_v50 = vmax.f32 %v4077_v43, 0.0  ;;  %v4080_v53 = vadd.f32 %v13941_v37, %v11337_v49  ;;  %v4071_v55 = vpop.f32.mrb[231].mxu0  ;;  %v6012_v56 = vmax.f32 %v5245_v46, 0.0  ;;  %v5248_v58 = vadd.f32 %v13941_v37, %v11629_v54  ;;  %v5239_v59 = vpop.f32.mrb[231].mxu1 }
 0x2b1   : > { %v5718_v57 = vmax.f32 %v4069_v47, 0.0  ;;  %v4072_v52 = vadd.f32 %v13941_v37, %v4071_v55  ;;  %v6010_v61 = vmax.f32 %v5237_v51, 0.0  ;;  %v5240_v0 = vadd.f32 %v13941_v37, %v5239_v59 }
 0x2b2   : > { %v10455_v60 = vpack.c.bf16 %v5720_v50, %v5720_v50  ;;  %v5721_v63 = vmax.f32 %v4080_v53, 0.0  ;;  %v10747_v1 = vpack.c.bf16 %v6012_v56, %v6012_v56  ;;  %v6013_v3 = vmax.f32 %v5248_v58, 0.0 }
 0x2b3   : > { %v10453_v2 = vpack.c.bf16 %v5718_v57, %v5718_v57  ;;  %v5719_v4 = vmax.f32 %v4072_v52, 0.0  ;;  %v10745_v5 = vpack.c.bf16 %v6010_v61, %v6010_v61  ;;  %v6011_v7 = vmax.f32 %v5240_v0, 0.0 }
 0x2b4   : > { %8637 = vst.msk [vmem:[%s12295_s27 + $0x398] sm:$0xf] %vm8406_vm3, %v10455_v60  ;;  %v10456_v6 = vpack.c.bf16 %v5721_v63, %v5721_v63  ;;  %8929 = vst.msk [vmem:[%s12295_s27 + $0x828] sm:$0xf] %vm8406_vm3, %v10747_v1  ;;  %v10748_v8 = vpack.c.bf16 %v6013_v3, %v6013_v3 }
 0x2b5   : > { %8635 = vst.msk [vmem:[%s12295_s27 + $0x390] sm:$0xf] %vm8406_vm3, %v10453_v2  ;;  %v10454_v9 = vpack.c.bf16 %v5719_v4, %v5719_v4  ;;  %v11340_v10 = vpop.f32.mrb[232].mxu0  ;;  %8927 = vst.msk [vmem:[%s12295_s27 + $0x820] sm:$0xf] %vm8406_vm3, %v10745_v5  ;;  %v10746_v11 = vpack.c.bf16 %v6011_v7, %v6011_v7  ;;  %v11632_v62 = vpop.f32.mrb[232].mxu1 }
 0x2b6   : > { %8638 = vst.msk [vmem:[%s12295_s27 + $0x39c] sm:$0xf] %vm8406_vm3, %v10456_v6  ;;  %v4093_v12 = vadd.f32 %v13941_v37, %v11340_v10  ;;  %v4084_v13 = vpop.f32.mrb[233].mxu0  ;;  %8930 = vst.msk [vmem:[%s12295_s27 + $0x82c] sm:$0xf] %vm8406_vm3, %v10748_v8  ;;  %v5261_v14 = vadd.f32 %v13941_v37, %v11632_v62  ;;  %v5252_v17 = vpop.f32.mrb[233].mxu1 }
 0x2b7   : > { %8636 = vst.msk [vmem:[%s12295_s27 + $0x394] sm:$0xf] %vm8406_vm3, %v10454_v9  ;;  %v4085_v15 = vadd.f32 %v13941_v37, %v4084_v13  ;;  %v11341_v18 = vpop.f32.mrb[234].mxu0  ;;  %8928 = vst.msk [vmem:[%s12295_s27 + $0x824] sm:$0xf] %vm8406_vm3, %v10746_v11  ;;  %v5253_v20 = vadd.f32 %v13941_v37, %v5252_v17  ;;  %v11633_v22 = vpop.f32.mrb[234].mxu1 }
 0x2b8   : > { %v5724_v19 = vmax.f32 %v4093_v12, 0.0  ;;  %v4096_v21 = vadd.f32 %v13941_v37, %v11341_v18  ;;  %v4087_v23 = vpop.f32.mrb[235].mxu0  ;;  %v6016_v24 = vmax.f32 %v5261_v14, 0.0  ;;  %v5264_v26 = vadd.f32 %v13941_v37, %v11633_v22  ;;  %v5255_v28 = vpop.f32.mrb[235].mxu1 }
 0x2b9   : > { %v5722_v25 = vmax.f32 %v4085_v15, 0.0  ;;  %v4088_v27 = vadd.f32 %v13941_v37, %v4087_v23  ;;  %v6014_v30 = vmax.f32 %v5253_v20, 0.0  ;;  %v5256_v32 = vadd.f32 %v13941_v37, %v5255_v28 }
 0x2ba   : > { %v10459_v29 = vpack.c.bf16 %v5724_v19, %v5724_v19  ;;  %v5725_v31 = vmax.f32 %v4096_v21, 0.0  ;;  %v10751_v33 = vpack.c.bf16 %v6016_v24, %v6016_v24  ;;  %v6017_v35 = vmax.f32 %v5264_v26, 0.0 }
 0x2bb   : > { %v10457_v34 = vpack.c.bf16 %v5722_v25, %v5722_v25  ;;  %v5723_v36 = vmax.f32 %v4088_v27, 0.0  ;;  %v10749_v38 = vpack.c.bf16 %v6014_v30, %v6014_v30  ;;  %v6015_v40 = vmax.f32 %v5256_v32, 0.0 }
 0x2bc   : > { %8641 = vst.msk [vmem:[%s12295_s27 + $0x3a8] sm:$0xf] %vm8406_vm3, %v10459_v29  ;;  %v10460_v39 = vpack.c.bf16 %v5725_v31, %v5725_v31  ;;  %8933 = vst.msk [vmem:[%s12295_s27 + $0x838] sm:$0xf] %vm8406_vm3, %v10751_v33  ;;  %v10752_v16 = vpack.c.bf16 %v6017_v35, %v6017_v35 }
 0x2bd   : > { %8639 = vst.msk [vmem:[%s12295_s27 + $0x3a0] sm:$0xf] %vm8406_vm3, %v10457_v34  ;;  %v10458_v41 = vpack.c.bf16 %v5723_v36, %v5723_v36  ;;  %v11344_v42 = vpop.f32.mrb[236].mxu0  ;;  %8931 = vst.msk [vmem:[%s12295_s27 + $0x830] sm:$0xf] %vm8406_vm3, %v10749_v38  ;;  %v10750_v43 = vpack.c.bf16 %v6015_v40, %v6015_v40  ;;  %v11636_v45 = vpop.f32.mrb[236].mxu1 }
 0x2be   : > { %8642 = vst.msk [vmem:[%s12295_s27 + $0x3ac] sm:$0xf] %vm8406_vm3, %v10460_v39  ;;  %v4109_v44 = vadd.f32 %v13941_v37, %v11344_v42  ;;  %v4100_v46 = vpop.f32.mrb[237].mxu0  ;;  %8934 = vst.msk [vmem:[%s12295_s27 + $0x83c] sm:$0xf] %vm8406_vm3, %v10752_v16  ;;  %v5277_v47 = vadd.f32 %v13941_v37, %v11636_v45  ;;  %v5268_v49 = vpop.f32.mrb[237].mxu1 }
 0x2bf   : > { %8640 = vst.msk [vmem:[%s12295_s27 + $0x3a4] sm:$0xf] %vm8406_vm3, %v10458_v41  ;;  %v4101_v48 = vadd.f32 %v13941_v37, %v4100_v46  ;;  %v11345_v50 = vpop.f32.mrb[238].mxu0  ;;  %8932 = vst.msk [vmem:[%s12295_s27 + $0x834] sm:$0xf] %vm8406_vm3, %v10750_v43  ;;  %v5269_v53 = vadd.f32 %v13941_v37, %v5268_v49  ;;  %v11637_v55 = vpop.f32.mrb[238].mxu1 }
 0x2c0   : > { %v5728_v51 = vmax.f32 %v4109_v44, 0.0  ;;  %v4112_v54 = vadd.f32 %v13941_v37, %v11345_v50  ;;  %v4103_v56 = vpop.f32.mrb[239].mxu0  ;;  %v6020_v57 = vmax.f32 %v5277_v47, 0.0  ;;  %v5280_v52 = vadd.f32 %v13941_v37, %v11637_v55  ;;  %v5271_v60 = vpop.f32.mrb[239].mxu1 }
 0x2c1   : > { %v5726_v58 = vmax.f32 %v4101_v48, 0.0  ;;  %v4104_v59 = vadd.f32 %v13941_v37, %v4103_v56  ;;  %v6018_v63 = vmax.f32 %v5269_v53, 0.0  ;;  %v5272_v1 = vadd.f32 %v13941_v37, %v5271_v60 }
 0x2c2   : > { %v10463_v61 = vpack.c.bf16 %v5728_v51, %v5728_v51  ;;  %v5729_v0 = vmax.f32 %v4112_v54, 0.0  ;;  %v10755_v2 = vpack.c.bf16 %v6020_v57, %v6020_v57  ;;  %v6021_v4 = vmax.f32 %v5280_v52, 0.0 }
 0x2c3   : > { %v10461_v3 = vpack.c.bf16 %v5726_v58, %v5726_v58  ;;  %v5727_v5 = vmax.f32 %v4104_v59, 0.0  ;;  %v10753_v6 = vpack.c.bf16 %v6018_v63, %v6018_v63  ;;  %v6019_v8 = vmax.f32 %v5272_v1, 0.0 }
 0x2c4   : > { %8645 = vst.msk [vmem:[%s12295_s27 + $0x3b8] sm:$0xf] %vm8406_vm3, %v10463_v61  ;;  %v10464_v7 = vpack.c.bf16 %v5729_v0, %v5729_v0  ;;  %8937 = vst.msk [vmem:[%s12295_s27 + $0x848] sm:$0xf] %vm8406_vm3, %v10755_v2  ;;  %v10756_v9 = vpack.c.bf16 %v6021_v4, %v6021_v4 }
 0x2c5   : > { %8643 = vst.msk [vmem:[%s12295_s27 + $0x3b0] sm:$0xf] %vm8406_vm3, %v10461_v3  ;;  %v10462_v10 = vpack.c.bf16 %v5727_v5, %v5727_v5  ;;  %v11348_v11 = vpop.f32.mrb[240].mxu0  ;;  %8935 = vst.msk [vmem:[%s12295_s27 + $0x840] sm:$0xf] %vm8406_vm3, %v10753_v6  ;;  %v10754_v12 = vpack.c.bf16 %v6019_v8, %v6019_v8  ;;  %v11640_v13 = vpop.f32.mrb[240].mxu1 }
 0x2c6   : > { %8646 = vst.msk [vmem:[%s12295_s27 + $0x3bc] sm:$0xf] %vm8406_vm3, %v10464_v7  ;;  %v4125_v62 = vadd.f32 %v13941_v37, %v11348_v11  ;;  %v4116_v14 = vpop.f32.mrb[241].mxu0  ;;  %8938 = vst.msk [vmem:[%s12295_s27 + $0x84c] sm:$0xf] %vm8406_vm3, %v10756_v9  ;;  %v5293_v15 = vadd.f32 %v13941_v37, %v11640_v13  ;;  %v5284_v18 = vpop.f32.mrb[241].mxu1 }
 0x2c7   : > { %8644 = vst.msk [vmem:[%s12295_s27 + $0x3b4] sm:$0xf] %vm8406_vm3, %v10462_v10  ;;  %v4117_v17 = vadd.f32 %v13941_v37, %v4116_v14  ;;  %v11349_v19 = vpop.f32.mrb[242].mxu0  ;;  %8936 = vst.msk [vmem:[%s12295_s27 + $0x844] sm:$0xf] %vm8406_vm3, %v10754_v12  ;;  %v5285_v21 = vadd.f32 %v13941_v37, %v5284_v18  ;;  %v11641_v23 = vpop.f32.mrb[242].mxu1 }
 0x2c8   : > { %v5732_v20 = vmax.f32 %v4125_v62, 0.0  ;;  %v4128_v22 = vadd.f32 %v13941_v37, %v11349_v19  ;;  %v4119_v24 = vpop.f32.mrb[243].mxu0  ;;  %v6024_v25 = vmax.f32 %v5293_v15, 0.0  ;;  %v5296_v27 = vadd.f32 %v13941_v37, %v11641_v23  ;;  %v5287_v29 = vpop.f32.mrb[243].mxu1 }
 0x2c9   : > { %v5730_v26 = vmax.f32 %v4117_v17, 0.0  ;;  %v4120_v28 = vadd.f32 %v13941_v37, %v4119_v24  ;;  %v6022_v31 = vmax.f32 %v5285_v21, 0.0  ;;  %v5288_v33 = vadd.f32 %v13941_v37, %v5287_v29 }
 0x2ca   : > { %v10467_v30 = vpack.c.bf16 %v5732_v20, %v5732_v20  ;;  %v5733_v32 = vmax.f32 %v4128_v22, 0.0  ;;  %v10759_v34 = vpack.c.bf16 %v6024_v25, %v6024_v25  ;;  %v6025_v36 = vmax.f32 %v5296_v27, 0.0 }
 0x2cb   : > { %v10465_v35 = vpack.c.bf16 %v5730_v26, %v5730_v26  ;;  %v5731_v38 = vmax.f32 %v4120_v28, 0.0  ;;  %v10757_v39 = vpack.c.bf16 %v6022_v31, %v6022_v31  ;;  %v6023_v16 = vmax.f32 %v5288_v33, 0.0 }
 0x2cc   : > { %8649 = vst.msk [vmem:[%s12295_s27 + $0x3c8] sm:$0xf] %vm8406_vm3, %v10467_v30  ;;  %v10468_v40 = vpack.c.bf16 %v5733_v32, %v5733_v32  ;;  %8941 = vst.msk [vmem:[%s12295_s27 + $0x858] sm:$0xf] %vm8406_vm3, %v10759_v34  ;;  %v10760_v41 = vpack.c.bf16 %v6025_v36, %v6025_v36 }
 0x2cd   : > { %8647 = vst.msk [vmem:[%s12295_s27 + $0x3c0] sm:$0xf] %vm8406_vm3, %v10465_v35  ;;  %v10466_v42 = vpack.c.bf16 %v5731_v38, %v5731_v38  ;;  %v11352_v43 = vpop.f32.mrb[244].mxu0  ;;  %8939 = vst.msk [vmem:[%s12295_s27 + $0x850] sm:$0xf] %vm8406_vm3, %v10757_v39  ;;  %v10758_v44 = vpack.c.bf16 %v6023_v16, %v6023_v16  ;;  %v11644_v46 = vpop.f32.mrb[244].mxu1 }
 0x2ce   : > { %8650 = vst.msk [vmem:[%s12295_s27 + $0x3cc] sm:$0xf] %vm8406_vm3, %v10468_v40  ;;  %v4141_v45 = vadd.f32 %v13941_v37, %v11352_v43  ;;  %v4132_v47 = vpop.f32.mrb[245].mxu0  ;;  %8942 = vst.msk [vmem:[%s12295_s27 + $0x85c] sm:$0xf] %vm8406_vm3, %v10760_v41  ;;  %v5309_v48 = vadd.f32 %v13941_v37, %v11644_v46  ;;  %v5300_v50 = vpop.f32.mrb[245].mxu1 }
 0x2cf   : > { %8648 = vst.msk [vmem:[%s12295_s27 + $0x3c4] sm:$0xf] %vm8406_vm3, %v10466_v42  ;;  %v4133_v49 = vadd.f32 %v13941_v37, %v4132_v47  ;;  %v11353_v51 = vpop.f32.mrb[246].mxu0  ;;  %8940 = vst.msk [vmem:[%s12295_s27 + $0x854] sm:$0xf] %vm8406_vm3, %v10758_v44  ;;  %v5301_v54 = vadd.f32 %v13941_v37, %v5300_v50  ;;  %v11645_v56 = vpop.f32.mrb[246].mxu1 }
 0x2d0   : > { %v5736_v53 = vmax.f32 %v4141_v45, 0.0  ;;  %v4144_v55 = vadd.f32 %v13941_v37, %v11353_v51  ;;  %v4135_v57 = vpop.f32.mrb[247].mxu0  ;;  %v6028_v58 = vmax.f32 %v5309_v48, 0.0  ;;  %v5312_v59 = vadd.f32 %v13941_v37, %v11645_v56  ;;  %v5303_v61 = vpop.f32.mrb[247].mxu1 }
 0x2d1   : > { %v5734_v52 = vmax.f32 %v4133_v49, 0.0  ;;  %v4136_v60 = vadd.f32 %v13941_v37, %v4135_v57  ;;  %v6026_v0 = vmax.f32 %v5301_v54, 0.0  ;;  %v5304_v2 = vadd.f32 %v13941_v37, %v5303_v61 }
 0x2d2   : > { %v10471_v63 = vpack.c.bf16 %v5736_v53, %v5736_v53  ;;  %v5737_v1 = vmax.f32 %v4144_v55, 0.0  ;;  %v10763_v3 = vpack.c.bf16 %v6028_v58, %v6028_v58  ;;  %v6029_v5 = vmax.f32 %v5312_v59, 0.0 }
 0x2d3   : > { %v10469_v4 = vpack.c.bf16 %v5734_v52, %v5734_v52  ;;  %v5735_v6 = vmax.f32 %v4136_v60, 0.0  ;;  %v10761_v7 = vpack.c.bf16 %v6026_v0, %v6026_v0  ;;  %v6027_v9 = vmax.f32 %v5304_v2, 0.0 }
 0x2d4   : > { %8653 = vst.msk [vmem:[%s12295_s27 + $0x3d8] sm:$0xf] %vm8406_vm3, %v10471_v63  ;;  %v10472_v8 = vpack.c.bf16 %v5737_v1, %v5737_v1  ;;  %8945 = vst.msk [vmem:[%s12295_s27 + $0x868] sm:$0xf] %vm8406_vm3, %v10763_v3  ;;  %v10764_v10 = vpack.c.bf16 %v6029_v5, %v6029_v5 }
 0x2d5   : > { %8651 = vst.msk [vmem:[%s12295_s27 + $0x3d0] sm:$0xf] %vm8406_vm3, %v10469_v4  ;;  %v10470_v11 = vpack.c.bf16 %v5735_v6, %v5735_v6  ;;  %v11356_v12 = vpop.f32.mrb[248].mxu0  ;;  %8943 = vst.msk [vmem:[%s12295_s27 + $0x860] sm:$0xf] %vm8406_vm3, %v10761_v7  ;;  %v10762_v62 = vpack.c.bf16 %v6027_v9, %v6027_v9  ;;  %v11648_v14 = vpop.f32.mrb[248].mxu1 }
 0x2d6   : > { %8654 = vst.msk [vmem:[%s12295_s27 + $0x3dc] sm:$0xf] %vm8406_vm3, %v10472_v8  ;;  %v4157_v13 = vadd.f32 %v13941_v37, %v11356_v12  ;;  %v4148_v15 = vpop.f32.mrb[249].mxu0  ;;  %8946 = vst.msk [vmem:[%s12295_s27 + $0x86c] sm:$0xf] %vm8406_vm3, %v10764_v10  ;;  %v5325_v17 = vadd.f32 %v13941_v37, %v11648_v14  ;;  %v5316_v19 = vpop.f32.mrb[249].mxu1 }
 0x2d7   : > { %8652 = vst.msk [vmem:[%s12295_s27 + $0x3d4] sm:$0xf] %vm8406_vm3, %v10470_v11  ;;  %v4149_v18 = vadd.f32 %v13941_v37, %v4148_v15  ;;  %v11357_v20 = vpop.f32.mrb[250].mxu0  ;;  %8944 = vst.msk [vmem:[%s12295_s27 + $0x864] sm:$0xf] %vm8406_vm3, %v10762_v62  ;;  %v5317_v22 = vadd.f32 %v13941_v37, %v5316_v19  ;;  %v11649_v24 = vpop.f32.mrb[250].mxu1 }
 0x2d8   : > { %v5740_v21 = vmax.f32 %v4157_v13, 0.0  ;;  %v4160_v23 = vadd.f32 %v13941_v37, %v11357_v20  ;;  %v4151_v25 = vpop.f32.mrb[251].mxu0  ;;  %v6032_v26 = vmax.f32 %v5325_v17, 0.0  ;;  %v5328_v28 = vadd.f32 %v13941_v37, %v11649_v24  ;;  %v5319_v30 = vpop.f32.mrb[251].mxu1 }
 0x2d9   : > { %v5738_v27 = vmax.f32 %v4149_v18, 0.0  ;;  %v4152_v29 = vadd.f32 %v13941_v37, %v4151_v25  ;;  %v6030_v32 = vmax.f32 %v5317_v22, 0.0  ;;  %v5320_v34 = vadd.f32 %v13941_v37, %v5319_v30 }
 0x2da   : > { %v10475_v31 = vpack.c.bf16 %v5740_v21, %v5740_v21  ;;  %v5741_v33 = vmax.f32 %v4160_v23, 0.0  ;;  %v10767_v35 = vpack.c.bf16 %v6032_v26, %v6032_v26  ;;  %v6033_v38 = vmax.f32 %v5328_v28, 0.0 }
 0x2db   : > { %v10473_v36 = vpack.c.bf16 %v5738_v27, %v5738_v27  ;;  %v5739_v39 = vmax.f32 %v4152_v29, 0.0  ;;  %v10765_v40 = vpack.c.bf16 %v6030_v32, %v6030_v32  ;;  %v6031_v41 = vmax.f32 %v5320_v34, 0.0 }
 0x2dc   : > { %8657 = vst.msk [vmem:[%s12295_s27 + $0x3e8] sm:$0xf] %vm8406_vm3, %v10475_v31  ;;  %v10476_v16 = vpack.c.bf16 %v5741_v33, %v5741_v33  ;;  %8949 = vst.msk [vmem:[%s12295_s27 + $0x878] sm:$0xf] %vm8406_vm3, %v10767_v35  ;;  %v10768_v42 = vpack.c.bf16 %v6033_v38, %v6033_v38 }
 0x2dd   : > { %8655 = vst.msk [vmem:[%s12295_s27 + $0x3e0] sm:$0xf] %vm8406_vm3, %v10473_v36  ;;  %v10474_v43 = vpack.c.bf16 %v5739_v39, %v5739_v39  ;;  %v11360_v44 = vpop.f32.mrb[252].mxu0  ;;  %8947 = vst.msk [vmem:[%s12295_s27 + $0x870] sm:$0xf] %vm8406_vm3, %v10765_v40  ;;  %v10766_v45 = vpack.c.bf16 %v6031_v41, %v6031_v41  ;;  %v11652_v47 = vpop.f32.mrb[252].mxu1 }
 0x2de   : > { %8658 = vst.msk [vmem:[%s12295_s27 + $0x3ec] sm:$0xf] %vm8406_vm3, %v10476_v16  ;;  %v4173_v46 = vadd.f32 %v13941_v37, %v11360_v44  ;;  %v4164_v48 = vpop.f32.mrb[253].mxu0  ;;  %8950 = vst.msk [vmem:[%s12295_s27 + $0x87c] sm:$0xf] %vm8406_vm3, %v10768_v42  ;;  %v5341_v49 = vadd.f32 %v13941_v37, %v11652_v47  ;;  %v5332_v51 = vpop.f32.mrb[253].mxu1 }
 0x2df   : > { %8656 = vst.msk [vmem:[%s12295_s27 + $0x3e4] sm:$0xf] %vm8406_vm3, %v10474_v43  ;;  %v4165_v50 = vadd.f32 %v13941_v37, %v4164_v48  ;;  %v11361_v53 = vpop.f32.mrb[254].mxu0  ;;  %8948 = vst.msk [vmem:[%s12295_s27 + $0x874] sm:$0xf] %vm8406_vm3, %v10766_v45  ;;  %v5333_v55 = vadd.f32 %v13941_v37, %v5332_v51  ;;  %v11653_v57 = vpop.f32.mrb[254].mxu1 }
 0x2e0   : > { %v5744_v54 = vmax.f32 %v4173_v46, 0.0  ;;  %v4176_v56 = vadd.f32 %v13941_v37, %v11361_v53  ;;  %v4167_v58 = vpop.f32.mrb[255].mxu0  ;;  %v6036_v52 = vmax.f32 %v5341_v49, 0.0  ;;  %v5344_v60 = vadd.f32 %v13941_v37, %v11653_v57  ;;  %v5335_v63 = vpop.f32.mrb[255].mxu1 }
 0x2e1   : > { %v5742_v59 = vmax.f32 %v4165_v50, 0.0  ;;  %v4168_v61 = vadd.f32 %v13941_v37, %v4167_v58  ;;  %v6034_v1 = vmax.f32 %v5333_v55, 0.0  ;;  %v5336_v3 = vadd.f32 %v13941_v37, %v5335_v63 }
 0x2e2   : > { %v10479_v0 = vpack.c.bf16 %v5744_v54, %v5744_v54  ;;  %v5745_v2 = vmax.f32 %v4176_v56, 0.0  ;;  %v10771_v4 = vpack.c.bf16 %v6036_v52, %v6036_v52  ;;  %v6037_v6 = vmax.f32 %v5344_v60, 0.0 }
 0x2e3   : > { %v10477_v5 = vpack.c.bf16 %v5742_v59, %v5742_v59  ;;  %v5743_v7 = vmax.f32 %v4168_v61, 0.0  ;;  %v10769_v8 = vpack.c.bf16 %v6034_v1, %v6034_v1  ;;  %v6035_v10 = vmax.f32 %v5336_v3, 0.0 }
 0x2e4   : > { %8661 = vst.msk [vmem:[%s12295_s27 + $0x3f8] sm:$0xf] %vm8406_vm3, %v10479_v0  ;;  %v10480_v9 = vpack.c.bf16 %v5745_v2, %v5745_v2  ;;  %8953 = vst.msk [vmem:[%s12295_s27 + $0x888] sm:$0xf] %vm8406_vm3, %v10771_v4  ;;  %v10772_v11 = vpack.c.bf16 %v6037_v6, %v6037_v6 }
 0x2e5   : > { %8659 = vst.msk [vmem:[%s12295_s27 + $0x3f0] sm:$0xf] %vm8406_vm3, %v10477_v5  ;;  %v10478_v12 = vpack.c.bf16 %v5743_v7, %v5743_v7  ;;  %v11364_v62 = vpop.f32.mrb[0].mxu0  ;;  %8951 = vst.msk [vmem:[%s12295_s27 + $0x880] sm:$0xf] %vm8406_vm3, %v10769_v8  ;;  %v10770_v13 = vpack.c.bf16 %v6035_v10, %v6035_v10  ;;  %v11656_v15 = vpop.f32.mrb[0].mxu1 }
 0x2e6   : > { %8662 = vst.msk [vmem:[%s12295_s27 + $0x3fc] sm:$0xf] %vm8406_vm3, %v10480_v9  ;;  %v4189_v14 = vadd.f32 %v13941_v37, %v11364_v62  ;;  %v4180_v17 = vpop.f32.mrb[1].mxu0  ;;  %8954 = vst.msk [vmem:[%s12295_s27 + $0x88c] sm:$0xf] %vm8406_vm3, %v10772_v11  ;;  %v5357_v18 = vadd.f32 %v13941_v37, %v11656_v15  ;;  %v5348_v20 = vpop.f32.mrb[1].mxu1 }
 0x2e7   : > { %8660 = vst.msk [vmem:[%s12295_s27 + $0x3f4] sm:$0xf] %vm8406_vm3, %v10478_v12  ;;  %v4181_v19 = vadd.f32 %v13941_v37, %v4180_v17  ;;  %v11365_v21 = vpop.f32.mrb[2].mxu0  ;;  %8952 = vst.msk [vmem:[%s12295_s27 + $0x884] sm:$0xf] %vm8406_vm3, %v10770_v13  ;;  %v5349_v23 = vadd.f32 %v13941_v37, %v5348_v20  ;;  %v11657_v25 = vpop.f32.mrb[2].mxu1 }
 0x2e8   : > { %v5748_v22 = vmax.f32 %v4189_v14, 0.0  ;;  %v4192_v24 = vadd.f32 %v13941_v37, %v11365_v21  ;;  %v4183_v26 = vpop.f32.mrb[3].mxu0  ;;  %v6040_v27 = vmax.f32 %v5357_v18, 0.0  ;;  %v5360_v29 = vadd.f32 %v13941_v37, %v11657_v25  ;;  %v5351_v31 = vpop.f32.mrb[3].mxu1  ;;  %v14258_v14 = vld [vmem:[%s14436_s2] ss:$0 sm:$0xff] }
 0x2e9   : > { %v5746_v28 = vmax.f32 %v4181_v19, 0.0  ;;  %v4184_v30 = vadd.f32 %v13941_v37, %v4183_v26  ;;  %v6038_v33 = vmax.f32 %v5349_v23, 0.0  ;;  %v5352_v35 = vadd.f32 %v13941_v37, %v5351_v31 }
 0x2ea   : > { %v10483_v32 = vpack.c.bf16 %v5748_v22, %v5748_v22  ;;  %v5749_v34 = vmax.f32 %v4192_v24, 0.0  ;;  %v10775_v36 = vpack.c.bf16 %v6040_v27, %v6040_v27  ;;  %v6041_v39 = vmax.f32 %v5360_v29, 0.0 }
 0x2eb   : > { %v10481_v38 = vpack.c.bf16 %v5746_v28, %v5746_v28  ;;  %v5747_v40 = vmax.f32 %v4184_v30, 0.0  ;;  %v10773_v16 = vpack.c.bf16 %v6038_v33, %v6038_v33  ;;  %v6039_v42 = vmax.f32 %v5352_v35, 0.0 }
 0x2ec   : > { %8665 = vst.msk [vmem:[%s12295_s27 + $0x408] sm:$0xf] %vm8406_vm3, %v10483_v32  ;;  %v10484_v41 = vpack.c.bf16 %v5749_v34, %v5749_v34  ;;  %8957 = vst.msk [vmem:[%s12295_s27 + $0x898] sm:$0xf] %vm8406_vm3, %v10775_v36  ;;  %v10776_v43 = vpack.c.bf16 %v6041_v39, %v6041_v39 }
 0x2ed   : > { %8663 = vst.msk [vmem:[%s12295_s27 + $0x400] sm:$0xf] %vm8406_vm3, %v10481_v38  ;;  %v10482_v44 = vpack.c.bf16 %v5747_v40, %v5747_v40  ;;  %v11368_v45 = vpop.f32.mrb[4].mxu0  ;;  %8955 = vst.msk [vmem:[%s12295_s27 + $0x890] sm:$0xf] %vm8406_vm3, %v10773_v16  ;;  %v10774_v46 = vpack.c.bf16 %v6039_v42, %v6039_v42  ;;  %v11660_v48 = vpop.f32.mrb[4].mxu1 }
 0x2ee   : > { %8666 = vst.msk [vmem:[%s12295_s27 + $0x40c] sm:$0xf] %vm8406_vm3, %v10484_v41  ;;  %v4205_v47 = vadd.f32 %v13941_v37, %v11368_v45  ;;  %v4196_v49 = vpop.f32.mrb[5].mxu0  ;;  %8958 = vst.msk [vmem:[%s12295_s27 + $0x89c] sm:$0xf] %vm8406_vm3, %v10776_v43  ;;  %v5373_v50 = vadd.f32 %v13941_v37, %v11660_v48  ;;  %v5364_v53 = vpop.f32.mrb[5].mxu1 }
 0x2ef   : > { %8664 = vst.msk [vmem:[%s12295_s27 + $0x404] sm:$0xf] %vm8406_vm3, %v10482_v44  ;;  %v4197_v51 = vadd.f32 %v13941_v37, %v4196_v49  ;;  %v11369_v54 = vpop.f32.mrb[6].mxu0  ;;  %8956 = vst.msk [vmem:[%s12295_s27 + $0x894] sm:$0xf] %vm8406_vm3, %v10774_v46  ;;  %v5365_v56 = vadd.f32 %v13941_v37, %v5364_v53  ;;  %v11661_v58 = vpop.f32.mrb[6].mxu1 }
 0x2f0   : > { %v5752_v55 = vmax.f32 %v4205_v47, 0.0  ;;  %v4208_v57 = vadd.f32 %v13941_v37, %v11369_v54  ;;  %v4199_v52 = vpop.f32.mrb[7].mxu0  ;;  %v6044_v59 = vmax.f32 %v5373_v50, 0.0  ;;  %v5376_v61 = vadd.f32 %v13941_v37, %v11661_v58  ;;  %v5367_v0 = vpop.f32.mrb[7].mxu1 }
 0x2f1   : > { %v5750_v60 = vmax.f32 %v4197_v51, 0.0  ;;  %v4200_v63 = vadd.f32 %v13941_v37, %v4199_v52  ;;  %v6042_v2 = vmax.f32 %v5365_v56, 0.0  ;;  %v5368_v4 = vadd.f32 %v13941_v37, %v5367_v0 }
 0x2f2   : > { %v10487_v1 = vpack.c.bf16 %v5752_v55, %v5752_v55  ;;  %v5753_v3 = vmax.f32 %v4208_v57, 0.0  ;;  %v10779_v5 = vpack.c.bf16 %v6044_v59, %v6044_v59  ;;  %v6045_v7 = vmax.f32 %v5376_v61, 0.0 }
 0x2f3   : > { %v10485_v6 = vpack.c.bf16 %v5750_v60, %v5750_v60  ;;  %v5751_v8 = vmax.f32 %v4200_v63, 0.0  ;;  %v10777_v9 = vpack.c.bf16 %v6042_v2, %v6042_v2  ;;  %v6043_v11 = vmax.f32 %v5368_v4, 0.0 }
 0x2f4   : > { %8669 = vst.msk [vmem:[%s12295_s27 + $0x418] sm:$0xf] %vm8406_vm3, %v10487_v1  ;;  %v10488_v10 = vpack.c.bf16 %v5753_v3, %v5753_v3  ;;  %8961 = vst.msk [vmem:[%s12295_s27 + $0x8a8] sm:$0xf] %vm8406_vm3, %v10779_v5  ;;  %v10780_v12 = vpack.c.bf16 %v6045_v7, %v6045_v7 }
 0x2f5   : > { %8667 = vst.msk [vmem:[%s12295_s27 + $0x410] sm:$0xf] %vm8406_vm3, %v10485_v6  ;;  %v10486_v62 = vpack.c.bf16 %v5751_v8, %v5751_v8  ;;  %v11372_v13 = vpop.f32.mrb[8].mxu0  ;;  %8959 = vst.msk [vmem:[%s12295_s27 + $0x8a0] sm:$0xf] %vm8406_vm3, %v10777_v9  ;;  %v10778_v37 = vpack.c.bf16 %v6043_v11, %v6043_v11  ;;  %v11664_v17 = vpop.f32.mrb[8].mxu1 }
 0x2f6   : > { %8670 = vst.msk [vmem:[%s12295_s27 + $0x41c] sm:$0xf] %vm8406_vm3, %v10488_v10  ;;  %v4221_v15 = vadd.f32 %v14258_v14, %v11372_v13  ;;  %v4212_v18 = vpop.f32.mrb[9].mxu0  ;;  %8962 = vst.msk [vmem:[%s12295_s27 + $0x8ac] sm:$0xf] %vm8406_vm3, %v10780_v12  ;;  %v5389_v19 = vadd.f32 %v14258_v14, %v11664_v17  ;;  %v5380_v21 = vpop.f32.mrb[9].mxu1 }
 0x2f7   : > { %8668 = vst.msk [vmem:[%s12295_s27 + $0x414] sm:$0xf] %vm8406_vm3, %v10486_v62  ;;  %v4213_v20 = vadd.f32 %v14258_v14, %v4212_v18  ;;  %v11373_v22 = vpop.f32.mrb[10].mxu0  ;;  %8960 = vst.msk [vmem:[%s12295_s27 + $0x8a4] sm:$0xf] %vm8406_vm3, %v10778_v37  ;;  %v5381_v24 = vadd.f32 %v14258_v14, %v5380_v21  ;;  %v11665_v26 = vpop.f32.mrb[10].mxu1 }
 0x2f8   : > { %v5756_v23 = vmax.f32 %v4221_v15, 0.0  ;;  %v4224_v25 = vadd.f32 %v14258_v14, %v11373_v22  ;;  %v4215_v27 = vpop.f32.mrb[11].mxu0  ;;  %v6048_v28 = vmax.f32 %v5389_v19, 0.0  ;;  %v5392_v30 = vadd.f32 %v14258_v14, %v11665_v26  ;;  %v5383_v32 = vpop.f32.mrb[11].mxu1 }
 0x2f9   : > { %v5754_v29 = vmax.f32 %v4213_v20, 0.0  ;;  %v4216_v31 = vadd.f32 %v14258_v14, %v4215_v27  ;;  %v6046_v34 = vmax.f32 %v5381_v24, 0.0  ;;  %v5384_v36 = vadd.f32 %v14258_v14, %v5383_v32 }
 0x2fa   : > { %v10491_v33 = vpack.c.bf16 %v5756_v23, %v5756_v23  ;;  %v5757_v35 = vmax.f32 %v4224_v25, 0.0  ;;  %v10783_v38 = vpack.c.bf16 %v6048_v28, %v6048_v28  ;;  %v6049_v40 = vmax.f32 %v5392_v30, 0.0 }
 0x2fb   : > { %v10489_v39 = vpack.c.bf16 %v5754_v29, %v5754_v29  ;;  %v5755_v16 = vmax.f32 %v4216_v31, 0.0  ;;  %v10781_v41 = vpack.c.bf16 %v6046_v34, %v6046_v34  ;;  %v6047_v43 = vmax.f32 %v5384_v36, 0.0 }
 0x2fc   : > { %8673 = vst.msk [vmem:[%s12295_s27 + $0x428] sm:$0xf] %vm8406_vm3, %v10491_v33  ;;  %v10492_v42 = vpack.c.bf16 %v5757_v35, %v5757_v35  ;;  %8965 = vst.msk [vmem:[%s12295_s27 + $0x8b8] sm:$0xf] %vm8406_vm3, %v10783_v38  ;;  %v10784_v44 = vpack.c.bf16 %v6049_v40, %v6049_v40 }
 0x2fd   : > { %8671 = vst.msk [vmem:[%s12295_s27 + $0x420] sm:$0xf] %vm8406_vm3, %v10489_v39  ;;  %v10490_v45 = vpack.c.bf16 %v5755_v16, %v5755_v16  ;;  %v11376_v46 = vpop.f32.mrb[12].mxu0  ;;  %8963 = vst.msk [vmem:[%s12295_s27 + $0x8b0] sm:$0xf] %vm8406_vm3, %v10781_v41  ;;  %v10782_v47 = vpack.c.bf16 %v6047_v43, %v6047_v43  ;;  %v11668_v49 = vpop.f32.mrb[12].mxu1 }
 0x2fe   : > { %8674 = vst.msk [vmem:[%s12295_s27 + $0x42c] sm:$0xf] %vm8406_vm3, %v10492_v42  ;;  %v4237_v48 = vadd.f32 %v14258_v14, %v11376_v46  ;;  %v4228_v50 = vpop.f32.mrb[13].mxu0  ;;  %8966 = vst.msk [vmem:[%s12295_s27 + $0x8bc] sm:$0xf] %vm8406_vm3, %v10784_v44  ;;  %v5405_v51 = vadd.f32 %v14258_v14, %v11668_v49  ;;  %v5396_v54 = vpop.f32.mrb[13].mxu1 }
 0x2ff   : > { %8672 = vst.msk [vmem:[%s12295_s27 + $0x424] sm:$0xf] %vm8406_vm3, %v10490_v45  ;;  %v4229_v53 = vadd.f32 %v14258_v14, %v4228_v50  ;;  %v11377_v55 = vpop.f32.mrb[14].mxu0  ;;  %8964 = vst.msk [vmem:[%s12295_s27 + $0x8b4] sm:$0xf] %vm8406_vm3, %v10782_v47  ;;  %v5397_v57 = vadd.f32 %v14258_v14, %v5396_v54  ;;  %v11669_v52 = vpop.f32.mrb[14].mxu1 }
 0x300   : > { %v5760_v56 = vmax.f32 %v4237_v48, 0.0  ;;  %v4240_v58 = vadd.f32 %v14258_v14, %v11377_v55  ;;  %v4231_v59 = vpop.f32.mrb[15].mxu0  ;;  %v6052_v60 = vmax.f32 %v5405_v51, 0.0  ;;  %v5408_v63 = vadd.f32 %v14258_v14, %v11669_v52  ;;  %v5399_v1 = vpop.f32.mrb[15].mxu1 }
 0x301   : > { %v5758_v61 = vmax.f32 %v4229_v53, 0.0  ;;  %v4232_v0 = vadd.f32 %v14258_v14, %v4231_v59  ;;  %v6050_v3 = vmax.f32 %v5397_v57, 0.0  ;;  %v5400_v5 = vadd.f32 %v14258_v14, %v5399_v1 }
 0x302   : > { %v10495_v2 = vpack.c.bf16 %v5760_v56, %v5760_v56  ;;  %v5761_v4 = vmax.f32 %v4240_v58, 0.0  ;;  %v10787_v6 = vpack.c.bf16 %v6052_v60, %v6052_v60  ;;  %v6053_v8 = vmax.f32 %v5408_v63, 0.0 }
 0x303   : > { %v10493_v7 = vpack.c.bf16 %v5758_v61, %v5758_v61  ;;  %v5759_v9 = vmax.f32 %v4232_v0, 0.0  ;;  %v10785_v10 = vpack.c.bf16 %v6050_v3, %v6050_v3  ;;  %v6051_v12 = vmax.f32 %v5400_v5, 0.0 }
 0x304   : > { %8677 = vst.msk [vmem:[%s12295_s27 + $0x438] sm:$0xf] %vm8406_vm3, %v10495_v2  ;;  %v10496_v11 = vpack.c.bf16 %v5761_v4, %v5761_v4  ;;  %8969 = vst.msk [vmem:[%s12295_s27 + $0x8c8] sm:$0xf] %vm8406_vm3, %v10787_v6  ;;  %v10788_v62 = vpack.c.bf16 %v6053_v8, %v6053_v8 }
 0x305   : > { %8675 = vst.msk [vmem:[%s12295_s27 + $0x430] sm:$0xf] %vm8406_vm3, %v10493_v7  ;;  %v10494_v13 = vpack.c.bf16 %v5759_v9, %v5759_v9  ;;  %v11380_v37 = vpop.f32.mrb[16].mxu0  ;;  %8967 = vst.msk [vmem:[%s12295_s27 + $0x8c0] sm:$0xf] %vm8406_vm3, %v10785_v10  ;;  %v10786_v15 = vpack.c.bf16 %v6051_v12, %v6051_v12  ;;  %v11672_v18 = vpop.f32.mrb[16].mxu1 }
 0x306   : > { %8678 = vst.msk [vmem:[%s12295_s27 + $0x43c] sm:$0xf] %vm8406_vm3, %v10496_v11  ;;  %v4253_v17 = vadd.f32 %v14258_v14, %v11380_v37  ;;  %v4244_v19 = vpop.f32.mrb[17].mxu0  ;;  %8970 = vst.msk [vmem:[%s12295_s27 + $0x8cc] sm:$0xf] %vm8406_vm3, %v10788_v62  ;;  %v5421_v20 = vadd.f32 %v14258_v14, %v11672_v18  ;;  %v5412_v22 = vpop.f32.mrb[17].mxu1 }
 0x307   : > { %8676 = vst.msk [vmem:[%s12295_s27 + $0x434] sm:$0xf] %vm8406_vm3, %v10494_v13  ;;  %v4245_v21 = vadd.f32 %v14258_v14, %v4244_v19  ;;  %v11381_v23 = vpop.f32.mrb[18].mxu0  ;;  %8968 = vst.msk [vmem:[%s12295_s27 + $0x8c4] sm:$0xf] %vm8406_vm3, %v10786_v15  ;;  %v5413_v25 = vadd.f32 %v14258_v14, %v5412_v22  ;;  %v11673_v27 = vpop.f32.mrb[18].mxu1 }
 0x308   : > { %v5764_v24 = vmax.f32 %v4253_v17, 0.0  ;;  %v4256_v26 = vadd.f32 %v14258_v14, %v11381_v23  ;;  %v4247_v28 = vpop.f32.mrb[19].mxu0  ;;  %v6056_v29 = vmax.f32 %v5421_v20, 0.0  ;;  %v5424_v31 = vadd.f32 %v14258_v14, %v11673_v27  ;;  %v5415_v33 = vpop.f32.mrb[19].mxu1 }
 0x309   : > { %v5762_v30 = vmax.f32 %v4245_v21, 0.0  ;;  %v4248_v32 = vadd.f32 %v14258_v14, %v4247_v28  ;;  %v6054_v35 = vmax.f32 %v5413_v25, 0.0  ;;  %v5416_v38 = vadd.f32 %v14258_v14, %v5415_v33 }
 0x30a   : > { %v10499_v34 = vpack.c.bf16 %v5764_v24, %v5764_v24  ;;  %v5765_v36 = vmax.f32 %v4256_v26, 0.0  ;;  %v10791_v39 = vpack.c.bf16 %v6056_v29, %v6056_v29  ;;  %v6057_v16 = vmax.f32 %v5424_v31, 0.0 }
 0x30b   : > { %v10497_v40 = vpack.c.bf16 %v5762_v30, %v5762_v30  ;;  %v5763_v41 = vmax.f32 %v4248_v32, 0.0  ;;  %v10789_v42 = vpack.c.bf16 %v6054_v35, %v6054_v35  ;;  %v6055_v44 = vmax.f32 %v5416_v38, 0.0 }
 0x30c   : > { %8681 = vst.msk [vmem:[%s12295_s27 + $0x448] sm:$0xf] %vm8406_vm3, %v10499_v34  ;;  %v10500_v43 = vpack.c.bf16 %v5765_v36, %v5765_v36  ;;  %8973 = vst.msk [vmem:[%s12295_s27 + $0x8d8] sm:$0xf] %vm8406_vm3, %v10791_v39  ;;  %v10792_v45 = vpack.c.bf16 %v6057_v16, %v6057_v16 }
 0x30d   : > { %8679 = vst.msk [vmem:[%s12295_s27 + $0x440] sm:$0xf] %vm8406_vm3, %v10497_v40  ;;  %v10498_v46 = vpack.c.bf16 %v5763_v41, %v5763_v41  ;;  %v11384_v47 = vpop.f32.mrb[20].mxu0  ;;  %8971 = vst.msk [vmem:[%s12295_s27 + $0x8d0] sm:$0xf] %vm8406_vm3, %v10789_v42  ;;  %v10790_v48 = vpack.c.bf16 %v6055_v44, %v6055_v44  ;;  %v11676_v50 = vpop.f32.mrb[20].mxu1 }
 0x30e   : > { %8682 = vst.msk [vmem:[%s12295_s27 + $0x44c] sm:$0xf] %vm8406_vm3, %v10500_v43  ;;  %v4269_v49 = vadd.f32 %v14258_v14, %v11384_v47  ;;  %v4260_v51 = vpop.f32.mrb[21].mxu0  ;;  %8974 = vst.msk [vmem:[%s12295_s27 + $0x8dc] sm:$0xf] %vm8406_vm3, %v10792_v45  ;;  %v5437_v53 = vadd.f32 %v14258_v14, %v11676_v50  ;;  %v5428_v55 = vpop.f32.mrb[21].mxu1 }
 0x30f   : > { %8680 = vst.msk [vmem:[%s12295_s27 + $0x444] sm:$0xf] %vm8406_vm3, %v10498_v46  ;;  %v4261_v54 = vadd.f32 %v14258_v14, %v4260_v51  ;;  %v11385_v56 = vpop.f32.mrb[22].mxu0  ;;  %8972 = vst.msk [vmem:[%s12295_s27 + $0x8d4] sm:$0xf] %vm8406_vm3, %v10790_v48  ;;  %v5429_v58 = vadd.f32 %v14258_v14, %v5428_v55  ;;  %v11677_v59 = vpop.f32.mrb[22].mxu1 }
 0x310   : > { %v5768_v57 = vmax.f32 %v4269_v49, 0.0  ;;  %v4272_v52 = vadd.f32 %v14258_v14, %v11385_v56  ;;  %v4263_v60 = vpop.f32.mrb[23].mxu0  ;;  %v6060_v61 = vmax.f32 %v5437_v53, 0.0  ;;  %v5440_v0 = vadd.f32 %v14258_v14, %v11677_v59  ;;  %v5431_v2 = vpop.f32.mrb[23].mxu1 }
 0x311   : > { %v5766_v63 = vmax.f32 %v4261_v54, 0.0  ;;  %v4264_v1 = vadd.f32 %v14258_v14, %v4263_v60  ;;  %v6058_v4 = vmax.f32 %v5429_v58, 0.0  ;;  %v5432_v6 = vadd.f32 %v14258_v14, %v5431_v2 }
 0x312   : > { %v10503_v3 = vpack.c.bf16 %v5768_v57, %v5768_v57  ;;  %v5769_v5 = vmax.f32 %v4272_v52, 0.0  ;;  %v10795_v7 = vpack.c.bf16 %v6060_v61, %v6060_v61  ;;  %v6061_v9 = vmax.f32 %v5440_v0, 0.0 }
 0x313   : > { %v10501_v8 = vpack.c.bf16 %v5766_v63, %v5766_v63  ;;  %v5767_v10 = vmax.f32 %v4264_v1, 0.0  ;;  %v10793_v11 = vpack.c.bf16 %v6058_v4, %v6058_v4  ;;  %v6059_v62 = vmax.f32 %v5432_v6, 0.0 }
 0x314   : > { %8685 = vst.msk [vmem:[%s12295_s27 + $0x458] sm:$0xf] %vm8406_vm3, %v10503_v3  ;;  %v10504_v12 = vpack.c.bf16 %v5769_v5, %v5769_v5  ;;  %8977 = vst.msk [vmem:[%s12295_s27 + $0x8e8] sm:$0xf] %vm8406_vm3, %v10795_v7  ;;  %v10796_v13 = vpack.c.bf16 %v6061_v9, %v6061_v9 }
 0x315   : > { %8683 = vst.msk [vmem:[%s12295_s27 + $0x450] sm:$0xf] %vm8406_vm3, %v10501_v8  ;;  %v10502_v37 = vpack.c.bf16 %v5767_v10, %v5767_v10  ;;  %v11388_v15 = vpop.f32.mrb[24].mxu0  ;;  %8975 = vst.msk [vmem:[%s12295_s27 + $0x8e0] sm:$0xf] %vm8406_vm3, %v10793_v11  ;;  %v10794_v17 = vpack.c.bf16 %v6059_v62, %v6059_v62  ;;  %v11680_v19 = vpop.f32.mrb[24].mxu1 }
 0x316   : > { %8686 = vst.msk [vmem:[%s12295_s27 + $0x45c] sm:$0xf] %vm8406_vm3, %v10504_v12  ;;  %v4285_v18 = vadd.f32 %v14258_v14, %v11388_v15  ;;  %v4276_v20 = vpop.f32.mrb[25].mxu0  ;;  %8978 = vst.msk [vmem:[%s12295_s27 + $0x8ec] sm:$0xf] %vm8406_vm3, %v10796_v13  ;;  %v5453_v21 = vadd.f32 %v14258_v14, %v11680_v19  ;;  %v5444_v23 = vpop.f32.mrb[25].mxu1 }
 0x317   : > { %8684 = vst.msk [vmem:[%s12295_s27 + $0x454] sm:$0xf] %vm8406_vm3, %v10502_v37  ;;  %v4277_v22 = vadd.f32 %v14258_v14, %v4276_v20  ;;  %v11389_v24 = vpop.f32.mrb[26].mxu0  ;;  %8976 = vst.msk [vmem:[%s12295_s27 + $0x8e4] sm:$0xf] %vm8406_vm3, %v10794_v17  ;;  %v5445_v26 = vadd.f32 %v14258_v14, %v5444_v23  ;;  %v11681_v28 = vpop.f32.mrb[26].mxu1 }
 0x318   : > { %v5772_v25 = vmax.f32 %v4285_v18, 0.0  ;;  %v4288_v27 = vadd.f32 %v14258_v14, %v11389_v24  ;;  %v4279_v29 = vpop.f32.mrb[27].mxu0  ;;  %v6064_v30 = vmax.f32 %v5453_v21, 0.0  ;;  %v5456_v32 = vadd.f32 %v14258_v14, %v11681_v28  ;;  %v5447_v34 = vpop.f32.mrb[27].mxu1 }
 0x319   : > { %v5770_v31 = vmax.f32 %v4277_v22, 0.0  ;;  %v4280_v33 = vadd.f32 %v14258_v14, %v4279_v29  ;;  %v6062_v36 = vmax.f32 %v5445_v26, 0.0  ;;  %v5448_v39 = vadd.f32 %v14258_v14, %v5447_v34 }
 0x31a   : > { %v10507_v35 = vpack.c.bf16 %v5772_v25, %v5772_v25  ;;  %v5773_v38 = vmax.f32 %v4288_v27, 0.0  ;;  %v10799_v40 = vpack.c.bf16 %v6064_v30, %v6064_v30  ;;  %v6065_v41 = vmax.f32 %v5456_v32, 0.0 }
 0x31b   : > { %v10505_v16 = vpack.c.bf16 %v5770_v31, %v5770_v31  ;;  %v5771_v42 = vmax.f32 %v4280_v33, 0.0  ;;  %v10797_v43 = vpack.c.bf16 %v6062_v36, %v6062_v36  ;;  %v6063_v45 = vmax.f32 %v5448_v39, 0.0 }
 0x31c   : > { %8689 = vst.msk [vmem:[%s12295_s27 + $0x468] sm:$0xf] %vm8406_vm3, %v10507_v35  ;;  %v10508_v44 = vpack.c.bf16 %v5773_v38, %v5773_v38  ;;  %8981 = vst.msk [vmem:[%s12295_s27 + $0x8f8] sm:$0xf] %vm8406_vm3, %v10799_v40  ;;  %v10800_v46 = vpack.c.bf16 %v6065_v41, %v6065_v41 }
 0x31d   : > { %8687 = vst.msk [vmem:[%s12295_s27 + $0x460] sm:$0xf] %vm8406_vm3, %v10505_v16  ;;  %v10506_v47 = vpack.c.bf16 %v5771_v42, %v5771_v42  ;;  %v11392_v48 = vpop.f32.mrb[28].mxu0  ;;  %8979 = vst.msk [vmem:[%s12295_s27 + $0x8f0] sm:$0xf] %vm8406_vm3, %v10797_v43  ;;  %v10798_v49 = vpack.c.bf16 %v6063_v45, %v6063_v45  ;;  %v11684_v51 = vpop.f32.mrb[28].mxu1 }
 0x31e   : > { %8690 = vst.msk [vmem:[%s12295_s27 + $0x46c] sm:$0xf] %vm8406_vm3, %v10508_v44  ;;  %v4301_v50 = vadd.f32 %v14258_v14, %v11392_v48  ;;  %v4292_v53 = vpop.f32.mrb[29].mxu0  ;;  %8982 = vst.msk [vmem:[%s12295_s27 + $0x8fc] sm:$0xf] %vm8406_vm3, %v10800_v46  ;;  %v5469_v54 = vadd.f32 %v14258_v14, %v11684_v51  ;;  %v5460_v56 = vpop.f32.mrb[29].mxu1 }
 0x31f   : > { %8688 = vst.msk [vmem:[%s12295_s27 + $0x464] sm:$0xf] %vm8406_vm3, %v10506_v47  ;;  %v4293_v55 = vadd.f32 %v14258_v14, %v4292_v53  ;;  %v11393_v57 = vpop.f32.mrb[30].mxu0  ;;  %8980 = vst.msk [vmem:[%s12295_s27 + $0x8f4] sm:$0xf] %vm8406_vm3, %v10798_v49  ;;  %v5461_v52 = vadd.f32 %v14258_v14, %v5460_v56  ;;  %v11685_v60 = vpop.f32.mrb[30].mxu1 }
 0x320   : > { %v5776_v58 = vmax.f32 %v4301_v50, 0.0  ;;  %v4304_v59 = vadd.f32 %v14258_v14, %v11393_v57  ;;  %v4295_v61 = vpop.f32.mrb[31].mxu0  ;;  %v6068_v63 = vmax.f32 %v5469_v54, 0.0  ;;  %v5472_v1 = vadd.f32 %v14258_v14, %v11685_v60  ;;  %v5463_v3 = vpop.f32.mrb[31].mxu1 }
 0x321   : > { %v5774_v0 = vmax.f32 %v4293_v55, 0.0  ;;  %v4296_v2 = vadd.f32 %v14258_v14, %v4295_v61  ;;  %v6066_v5 = vmax.f32 %v5461_v52, 0.0  ;;  %v5464_v7 = vadd.f32 %v14258_v14, %v5463_v3 }
 0x322   : > { %v10511_v4 = vpack.c.bf16 %v5776_v58, %v5776_v58  ;;  %v5777_v6 = vmax.f32 %v4304_v59, 0.0  ;;  %v10803_v8 = vpack.c.bf16 %v6068_v63, %v6068_v63  ;;  %v6069_v10 = vmax.f32 %v5472_v1, 0.0 }
 0x323   : > { %v10509_v9 = vpack.c.bf16 %v5774_v0, %v5774_v0  ;;  %v5775_v11 = vmax.f32 %v4296_v2, 0.0  ;;  %v10801_v12 = vpack.c.bf16 %v6066_v5, %v6066_v5  ;;  %v6067_v13 = vmax.f32 %v5464_v7, 0.0 }
 0x324   : > { %8693 = vst.msk [vmem:[%s12295_s27 + $0x478] sm:$0xf] %vm8406_vm3, %v10511_v4  ;;  %v10512_v62 = vpack.c.bf16 %v5777_v6, %v5777_v6  ;;  %8985 = vst.msk [vmem:[%s12295_s27 + $0x908] sm:$0xf] %vm8406_vm3, %v10803_v8  ;;  %v10804_v37 = vpack.c.bf16 %v6069_v10, %v6069_v10 }
 0x325   : > { %8691 = vst.msk [vmem:[%s12295_s27 + $0x470] sm:$0xf] %vm8406_vm3, %v10509_v9  ;;  %v10510_v15 = vpack.c.bf16 %v5775_v11, %v5775_v11  ;;  %v11396_v17 = vpop.f32.mrb[32].mxu0  ;;  %8983 = vst.msk [vmem:[%s12295_s27 + $0x900] sm:$0xf] %vm8406_vm3, %v10801_v12  ;;  %v10802_v18 = vpack.c.bf16 %v6067_v13, %v6067_v13  ;;  %v11688_v20 = vpop.f32.mrb[32].mxu1 }
 0x326   : > { %8694 = vst.msk [vmem:[%s12295_s27 + $0x47c] sm:$0xf] %vm8406_vm3, %v10512_v62  ;;  %v4317_v19 = vadd.f32 %v14258_v14, %v11396_v17  ;;  %v4308_v21 = vpop.f32.mrb[33].mxu0  ;;  %8986 = vst.msk [vmem:[%s12295_s27 + $0x90c] sm:$0xf] %vm8406_vm3, %v10804_v37  ;;  %v5485_v22 = vadd.f32 %v14258_v14, %v11688_v20  ;;  %v5476_v24 = vpop.f32.mrb[33].mxu1 }
 0x327   : > { %8692 = vst.msk [vmem:[%s12295_s27 + $0x474] sm:$0xf] %vm8406_vm3, %v10510_v15  ;;  %v4309_v23 = vadd.f32 %v14258_v14, %v4308_v21  ;;  %v11397_v25 = vpop.f32.mrb[34].mxu0  ;;  %8984 = vst.msk [vmem:[%s12295_s27 + $0x904] sm:$0xf] %vm8406_vm3, %v10802_v18  ;;  %v5477_v27 = vadd.f32 %v14258_v14, %v5476_v24  ;;  %v11689_v29 = vpop.f32.mrb[34].mxu1 }
 0x328   : > { %v5780_v26 = vmax.f32 %v4317_v19, 0.0  ;;  %v4320_v28 = vadd.f32 %v14258_v14, %v11397_v25  ;;  %v4311_v30 = vpop.f32.mrb[35].mxu0  ;;  %v6072_v31 = vmax.f32 %v5485_v22, 0.0  ;;  %v5479_v34 = vpop.f32.mrb[35].mxu1 }
 0x329   : > { %v5778_v32 = vmax.f32 %v4309_v23, 0.0  ;;  %v4312_v33 = vadd.f32 %v14258_v14, %v4311_v30  ;;  %v6070_v36 = vmax.f32 %v5477_v27, 0.0  ;;  %v5480_v39 = vadd.f32 %v14258_v14, %v5479_v34 }
 0x32a   : > { %v10515_v35 = vpack.c.bf16 %v5780_v26, %v5780_v26  ;;  %v5781_v38 = vmax.f32 %v4320_v28, 0.0  ;;  %v10807_v40 = vpack.c.bf16 %v6072_v31, %v6072_v31 }
 0x32b   : > { %v10513_v16 = vpack.c.bf16 %v5778_v32, %v5778_v32  ;;  %v5779_v41 = vmax.f32 %v4312_v33, 0.0  ;;  %v10805_v42 = vpack.c.bf16 %v6070_v36, %v6070_v36  ;;  %v6071_v44 = vmax.f32 %v5480_v39, 0.0 }
 0x32c   : > { %8697 = vst.msk [vmem:[%s12295_s27 + $0x488] sm:$0xf] %vm8406_vm3, %v10515_v35  ;;  %v10516_v43 = vpack.c.bf16 %v5781_v38, %v5781_v38  ;;  %8989 = vst.msk [vmem:[%s12295_s27 + $0x918] sm:$0xf] %vm8406_vm3, %v10807_v40 }
 0x32d   : > { %8695 = vst.msk [vmem:[%s12295_s27 + $0x480] sm:$0xf] %vm8406_vm3, %v10513_v16  ;;  %v10514_v45 = vpack.c.bf16 %v5779_v41, %v5779_v41  ;;  %8987 = vst.msk [vmem:[%s12295_s27 + $0x910] sm:$0xf] %vm8406_vm3, %v10805_v42  ;;  %v10806_v46 = vpack.c.bf16 %v6071_v44, %v6071_v44 }
 0x32e   : > { %8698 = vst.msk [vmem:[%s12295_s27 + $0x48c] sm:$0xf] %vm8406_vm3, %v10516_v43 }
 0x32f   : > { %8696 = vst.msk [vmem:[%s12295_s27 + $0x484] sm:$0xf] %vm8406_vm3, %v10514_v45  ;;  %8988 = vst.msk [vmem:[%s12295_s27 + $0x914] sm:$0xf] %vm8406_vm3, %v10806_v46 }
 0x330 PF: > { %s13_s12 = sadd.s32 1, %s12009_s12  }
 0x331   : > { %p10_p4 = scmp.ge.s32.totalorder %s13_s12, 4  }
 0x333   :  { %12 = sbr.rel (!%p10_p4) target bundleno = 1 (0x1), region = 62 }

// kernel: simple_cnn_forward.5
= control target key start
LH: loop header
LB: loop body
LE: loop exit
PB: predicated region body
PF: predicated region fallthrough
CT: control target
= control target key end

     0   :  { %s3550_s12 = smov 0   ;;  %s4260_s0 = inlined_call_operand.vmem [shape: bf16[2272,144], index: 0, kind: input, shape index: {}]   ;;  %s4261_s1 = inlined_call_operand.vmem [shape: bf16[144,32], index: 1, kind: input, shape index: {}]   ;;  %s4262_s2 = inlined_call_operand.vmem [shape: f32[1,32], index: 2, kind: input, shape index: {}]   ;;  %s4263_s3 = inlined_call_operand.vmem [shape: bf16[2272,32], index: 3, kind: output, shape index: {}]  }
   0x1 LB: > { %s2762_s13 = sadd.s32 4294967295, %s3527_s12   ;;  %p2766_p0 = scmp.ge.s32.totalorder %s3527_s12, 1  ;;  %s3527_s12 = sphi %s3550_s12, %s13_s12  }
   0x2   : > { %p139_p1 = scmp.lt.s32.totalorder %s3527_s12, 3 }
   0x4   : > { %p140_p2 = pnand %p2766_p0, %p139_p1 }
   0x5   : > { %v3307_v0 = vld [vmem:[%s4261_s1] sm:$0xff] (!%p140_p2)   ;;  %v3529_v1 = vmov (!%p140_p2), 0   ;;  %s164_s16 = smul.u32 (!%p140_p2), 142, %s2762_s13  ;;  %v3308_v2 = vld [vmem:[%s4261_s1 + $0x8] sm:$0xff] (!%p140_p2)   ;;  %v3309_v3 = vld [vmem:[%s4261_s1 + $0x10] sm:$0xff] (!%p140_p2)   ;;  %vm1038_vm0 = vcmask (!%p140_p2), 130048  }
   0x6   : > { %143 = sbr.rel (%p140_p2) target bundleno = 543 (0x21f), region = 32  ;;  %1252 = vmatprep.subr.bf16.mxu0 (!%p140_p2), %v3529_v1  ;;  %3280 = vmatprep.subr.bf16.mxu1 (!%p140_p2), %v3529_v1  ;;  %v3310_v4 = vld [vmem:[%s4261_s1 + $0x18] sm:$0xff] (!%p140_p2)   ;;  %v3311_v7 = vld [vmem:[%s4261_s1 + $0x20] sm:$0xff] (!%p140_p2)   ;;  %v3312_v8 = vld [vmem:[%s4261_s1 + $0x28] sm:$0xff] (!%p140_p2)   ;;  %vm2563_vm1 = vcmask (!%p140_p2), 257024  }
   0x7   : > { %1253 = vmatpush1.bf16.msra.mxu0 (!%p140_p2), %v3307_v0  ;;  %3289 = vmatpush1.bf16.msra.mxu1 (!%p140_p2), %v3307_v0  ;;  %p165_p3 = scmp.lt.s32.totalorder (!%p140_p2), %s164_s16, 283  ;;  %v3313_v9 = vld [vmem:[%s4261_s1 + $0x30] sm:$0xff] (!%p140_p2)   ;;  %v3314_v10 = vld [vmem:[%s4261_s1 + $0x38] sm:$0xff] (!%p140_p2)   ;;  %v3315_v11 = vld [vmem:[%s4261_s1 + $0x40] sm:$0xff] (!%p140_p2)  }
   0x8   : > { %1254 = vmatprep.subr.bf16.mxu0 (!%p140_p2), %v3529_v1  ;;  %3281 = vmatprep.subr.bf16.mxu1 (!%p140_p2), %v3529_v1 }
   0xb   : > { %1255 = vmatpush1.bf16.msra.mxu0 (!%p140_p2), %v3308_v2  ;;  %3290 = vmatpush1.bf16.msra.mxu1 (!%p140_p2), %v3308_v2 }
   0xc   : > { %1256 = vmatprep.subr.bf16.mxu0 (!%p140_p2), %v3529_v1  ;;  %3282 = vmatprep.subr.bf16.mxu1 (!%p140_p2), %v3529_v1 }
   0xd   : > { %s4265_s16 = smov (!%p165_p3, %s164_s16), 283 }
   0xe   : > { %s3137_s21 = sshll.u32 %s4265_s16, 3  ;;  %s2769_s13 = sshll.u32 %s4265_s16, 2 }
   0xf   : > { %s3573_s24 = scalar_lea.vmem %s4260_s0, %s3137_s21  ;;  %1257 = vmatpush1.bf16.msra.mxu0 %v3309_v3  ;;  %3291 = vmatpush1.bf16.msra.mxu1 %v3309_v3  ;;  %s3778_s16 = scalar_lea.vmem %s4263_s3, %s2769_s13 }
  0x10   : > { %v3318_v5 = vld [vmem:[%s3573_s24 + $0x4] ss:$8 sps:$4 sm:$0xff]   ;;  %1258 = vmatprep.subr.bf16.mxu0 %v3529_v1  ;;  %3283 = vmatprep.subr.bf16.mxu1 %v3529_v1  ;;  %v3316_v12 = vld [vmem:[%s3573_s24] ss:$8 sps:$4 sm:$0xff]   ;;  %v3322_v14 = vld [vmem:[%s3573_s24 + $0x14] ss:$8 sps:$4 sm:$0xff]  }
  0x11   : > { %v3321_v6 = vld [vmem:[%s3573_s24 + $0x244] ss:$8 sps:$4 sm:$0xff]   ;;  %2922 = vmatprep.mubr.msk.bf16.mxu0 %vm1038_vm0, %v3318_v5  ;;  %v3319_v13 = vld [vmem:[%s3573_s24 + $0x240] ss:$8 sps:$4 sm:$0xff]   ;;  %v3325_v15 = vld [vmem:[%s3573_s24 + $0x254] ss:$8 sps:$4 sm:$0xff]  }
  0x12   : > { %2958 = vmatprep.mubr.msk.bf16.mxu1 %vm1038_vm0, %v3321_v6  ;;  %v3324_v16 = vld [vmem:[%s3573_s24 + $0x10] ss:$8 sps:$4 sm:$0xff]   ;;  %v3328_v18 = vld [vmem:[%s3573_s24 + $0x24] ss:$8 sps:$4 sm:$0xff]   ;;  %v3330_v20 = vld [vmem:[%s3573_s24 + $0x20] ss:$8 sps:$4 sm:$0xff]  }
  0x13   : > { %1259 = vmatpush1.bf16.msra.mxu0 %v3310_v4  ;;  %3292 = vmatpush1.bf16.msra.mxu1 %v3310_v4  ;;  %v3327_v17 = vld [vmem:[%s3573_s24 + $0x250] ss:$8 sps:$4 sm:$0xff]   ;;  %v3331_v19 = vld [vmem:[%s3573_s24 + $0x264] ss:$8 sps:$4 sm:$0xff]   ;;  %v3333_v21 = vld [vmem:[%s3573_s24 + $0x260] ss:$8 sps:$4 sm:$0xff]  }
  0x14   : > { %1260 = vmatprep.subr.bf16.mxu0 %v3529_v1  ;;  %3284 = vmatprep.subr.bf16.mxu1 %v3529_v1  ;;  %v3334_v22 = vld [vmem:[%s3573_s24 + $0x34] ss:$8 sps:$4 sm:$0xff]   ;;  %v3336_v24 = vld [vmem:[%s3573_s24 + $0x30] ss:$8 sps:$4 sm:$0xff]   ;;  %v3340_v26 = vld [vmem:[%s3573_s24 + $0x44] ss:$8 sps:$4 sm:$0xff]  }
  0x15   : > { %v3337_v23 = vld [vmem:[%s3573_s24 + $0x274] ss:$8 sps:$4 sm:$0xff]   ;;  %v3339_v25 = vld [vmem:[%s3573_s24 + $0x270] ss:$8 sps:$4 sm:$0xff]   ;;  %v3343_v27 = vld [vmem:[%s3573_s24 + $0x284] ss:$8 sps:$4 sm:$0xff]  }
  0x16   : > { %v3342_v28 = vld [vmem:[%s3573_s24 + $0x40] ss:$8 sps:$4 sm:$0xff]   ;;  %v3346_v30 = vld [vmem:[%s3573_s24 + $0x54] ss:$8 sps:$4 sm:$0xff]   ;;  %v3348_v32 = vld [vmem:[%s3573_s24 + $0x50] ss:$8 sps:$4 sm:$0xff]  }
  0x17   : > { %1261 = vmatpush1.bf16.msra.mxu0 %v3311_v7  ;;  %3293 = vmatpush1.bf16.msra.mxu1 %v3311_v7  ;;  %v3345_v29 = vld [vmem:[%s3573_s24 + $0x280] ss:$8 sps:$4 sm:$0xff]   ;;  %v3349_v31 = vld [vmem:[%s3573_s24 + $0x294] ss:$8 sps:$4 sm:$0xff]   ;;  %v3351_v33 = vld [vmem:[%s3573_s24 + $0x290] ss:$8 sps:$4 sm:$0xff]  }
  0x18   : > { %1262 = vmatprep.subr.bf16.mxu0 %v3529_v1  ;;  %3285 = vmatprep.subr.bf16.mxu1 %v3529_v1  ;;  %v3352_v34 = vld [vmem:[%s3573_s24 + $0x64] ss:$8 sps:$4 sm:$0xff]   ;;  %v3354_v36 = vld [vmem:[%s3573_s24 + $0x60] ss:$8 sps:$4 sm:$0xff]   ;;  %v3358_v38 = vld [vmem:[%s3573_s24 + $0x74] ss:$8 sps:$4 sm:$0xff]  }
  0x19   : > { %v3355_v35 = vld [vmem:[%s3573_s24 + $0x2a4] ss:$8 sps:$4 sm:$0xff]   ;;  %v3357_v37 = vld [vmem:[%s3573_s24 + $0x2a0] ss:$8 sps:$4 sm:$0xff]   ;;  %v3361_v39 = vld [vmem:[%s3573_s24 + $0x2b4] ss:$8 sps:$4 sm:$0xff]  }
  0x1a   : > { %v3360_v40 = vld [vmem:[%s3573_s24 + $0x70] ss:$8 sps:$4 sm:$0xff]   ;;  %v3364_v42 = vld [vmem:[%s3573_s24 + $0x84] ss:$8 sps:$4 sm:$0xff]   ;;  %v3366_v44 = vld [vmem:[%s3573_s24 + $0x80] ss:$8 sps:$4 sm:$0xff]  }
  0x1b   : > { %1263 = vmatpush1.bf16.msra.mxu0 %v3312_v8  ;;  %3294 = vmatpush1.bf16.msra.mxu1 %v3312_v8  ;;  %v3363_v41 = vld [vmem:[%s3573_s24 + $0x2b0] ss:$8 sps:$4 sm:$0xff]   ;;  %v3367_v43 = vld [vmem:[%s3573_s24 + $0x2c4] ss:$8 sps:$4 sm:$0xff]   ;;  %v3369_v45 = vld [vmem:[%s3573_s24 + $0x2c0] ss:$8 sps:$4 sm:$0xff]  }
  0x1c   : > { %1264 = vmatprep.subr.bf16.mxu0 %v3529_v1  ;;  %3286 = vmatprep.subr.bf16.mxu1 %v3529_v1  ;;  %v3370_v46 = vld [vmem:[%s3573_s24 + $0x94] ss:$8 sps:$4 sm:$0xff]   ;;  %v3372_v48 = vld [vmem:[%s3573_s24 + $0x90] ss:$8 sps:$4 sm:$0xff]   ;;  %v3376_v50 = vld [vmem:[%s3573_s24 + $0xa4] ss:$8 sps:$4 sm:$0xff]  }
  0x1d   : > { %v3373_v47 = vld [vmem:[%s3573_s24 + $0x2d4] ss:$8 sps:$4 sm:$0xff]   ;;  %v3375_v49 = vld [vmem:[%s3573_s24 + $0x2d0] ss:$8 sps:$4 sm:$0xff]   ;;  %v3379_v51 = vld [vmem:[%s3573_s24 + $0x2e4] ss:$8 sps:$4 sm:$0xff]  }
  0x1e   : > { %v3378_v52 = vld [vmem:[%s3573_s24 + $0xa0] ss:$8 sps:$4 sm:$0xff]   ;;  %v3382_v54 = vld [vmem:[%s3573_s24 + $0xb4] ss:$8 sps:$4 sm:$0xff]   ;;  %v3384_v56 = vld [vmem:[%s3573_s24 + $0xb0] ss:$8 sps:$4 sm:$0xff]  }
  0x1f   : > { %1265 = vmatpush1.bf16.msra.mxu0 %v3313_v9  ;;  %3295 = vmatpush1.bf16.msra.mxu1 %v3313_v9  ;;  %v3381_v53 = vld [vmem:[%s3573_s24 + $0x2e0] ss:$8 sps:$4 sm:$0xff]   ;;  %v3385_v55 = vld [vmem:[%s3573_s24 + $0x2f4] ss:$8 sps:$4 sm:$0xff]   ;;  %v3387_v57 = vld [vmem:[%s3573_s24 + $0x2f0] ss:$8 sps:$4 sm:$0xff]  }
  0x20   : > { %1266 = vmatprep.subr.bf16.mxu0 %v3529_v1  ;;  %3287 = vmatprep.subr.bf16.mxu1 %v3529_v1  ;;  %v3388_v58 = vld [vmem:[%s3573_s24 + $0xc4] ss:$8 sps:$4 sm:$0xff]   ;;  %v3390_v60 = vld [vmem:[%s3573_s24 + $0xc0] ss:$8 sps:$4 sm:$0xff]   ;;  %v3394_v62 = vld [vmem:[%s3573_s24 + $0xd4] ss:$8 sps:$4 sm:$0xff]  }
  0x21   : > { %v3391_v59 = vld [vmem:[%s3573_s24 + $0x304] ss:$8 sps:$4 sm:$0xff]   ;;  %v3393_v61 = vld [vmem:[%s3573_s24 + $0x300] ss:$8 sps:$4 sm:$0xff]   ;;  %v3397_v63 = vld [vmem:[%s3573_s24 + $0x314] ss:$8 sps:$4 sm:$0xff]  }
  0x22   : > { %v3396_v0 = vld [vmem:[%s3573_s24 + $0xd0] ss:$8 sps:$4 sm:$0xff]   ;;  %v3400_v2 = vld [vmem:[%s3573_s24 + $0xe4] ss:$8 sps:$4 sm:$0xff]   ;;  %v3402_v4 = vld [vmem:[%s3573_s24 + $0xe0] ss:$8 sps:$4 sm:$0xff]  }
  0x23   : > { %1267 = vmatpush1.bf16.msra.mxu0 %v3314_v10  ;;  %3296 = vmatpush1.bf16.msra.mxu1 %v3314_v10  ;;  %v3403_v3 = vld [vmem:[%s3573_s24 + $0x324] ss:$8 sps:$4 sm:$0xff]   ;;  %v3405_v5 = vld [vmem:[%s3573_s24 + $0x320] ss:$8 sps:$4 sm:$0xff]   ;;  %v3406_v6 = vld [vmem:[%s3573_s24 + $0xf4] ss:$8 sps:$4 sm:$0xff]  }
  0x24   : > { %1268 = vmatprep.subr.bf16.mxu0 %v3529_v1  ;;  %3288 = vmatprep.subr.bf16.mxu1 %v3529_v1  ;;  %v3399_v1 = vld [vmem:[%s3573_s24 + $0x310] ss:$8 sps:$4 sm:$0xff]   ;;  %v3409_v7 = vld [vmem:[%s3573_s24 + $0x334] ss:$8 sps:$4 sm:$0xff]   ;;  %v3412_v10 = vld [vmem:[%s3573_s24 + $0x104] ss:$8 sps:$4 sm:$0xff]  }
  0x25   : > { %v3408_v8 = vld [vmem:[%s3573_s24 + $0xf0] ss:$8 sps:$4 sm:$0xff]  }
  0x26   : > { %v3411_v9 = vld [vmem:[%s3573_s24 + $0x330] ss:$8 sps:$4 sm:$0xff]  }
  0x27   : > { %1269 = vmatpush1.bf16.msra.mxu0 %v3315_v11  ;;  %3297 = vmatpush1.bf16.msra.mxu1 %v3315_v11  ;;  %v3415_v11 = vld [vmem:[%s3573_s24 + $0x344] ss:$8 sps:$4 sm:$0xff]  }
  0x2a   : > { %1285 = vmatmul.mubr.bf16.vlgmr.msra.gmra.mrb[0].mxu0 %v3316_v12  ;;  %1573 = vmatmul.mubr.bf16.vlgmr.msra.gmra.mrb[0].mxu1 %v3319_v13  ;;  %v3414_v12 = vld [vmem:[%s3573_s24 + $0x100] ss:$8 sps:$4 sm:$0xff]  }
  0x2b   : > { %2923 = vmatprep.mubr.msk.bf16.mxu0 %vm1038_vm0, %v3322_v14  ;;  %2959 = vmatprep.mubr.msk.bf16.mxu1 %vm1038_vm0, %v3325_v15  ;;  %v3417_v13 = vld [vmem:[%s3573_s24 + $0x340] ss:$8 sps:$4 sm:$0xff]   ;;  %v3418_v14 = vld [vmem:[%s3573_s24 + $0x114] ss:$8 sps:$4 sm:$0xff]  }
  0x2c   : > { %v3421_v15 = vld [vmem:[%s3573_s24 + $0x354] ss:$8 sps:$4 sm:$0xff]  }
  0x32   : > { %1293 = vmatmul.mubr.bf16.gmra.mrb[4].mxu0 %v3324_v16  ;;  %1581 = vmatmul.mubr.bf16.gmra.mrb[4].mxu1 %v3327_v17  ;;  %v3420_v16 = vld [vmem:[%s3573_s24 + $0x110] ss:$8 sps:$4 sm:$0xff]  }
  0x33   : > { %2924 = vmatprep.mubr.msk.bf16.mxu0 %vm1038_vm0, %v3328_v18  ;;  %2960 = vmatprep.mubr.msk.bf16.mxu1 %vm1038_vm0, %v3331_v19  ;;  %v3423_v17 = vld [vmem:[%s3573_s24 + $0x350] ss:$8 sps:$4 sm:$0xff]   ;;  %v3424_v18 = vld [vmem:[%s3573_s24 + $0x124] ss:$8 sps:$4 sm:$0xff]  }
  0x34   : > { %v3427_v19 = vld [vmem:[%s3573_s24 + $0x364] ss:$8 sps:$4 sm:$0xff]  }
  0x3a   : > { %1301 = vmatmul.mubr.bf16.gmra.mrb[8].mxu0 %v3330_v20  ;;  %1589 = vmatmul.mubr.bf16.gmra.mrb[8].mxu1 %v3333_v21  ;;  %v3426_v20 = vld [vmem:[%s3573_s24 + $0x120] ss:$8 sps:$4 sm:$0xff]  }
  0x3b   : > { %2925 = vmatprep.mubr.msk.bf16.mxu0 %vm1038_vm0, %v3334_v22  ;;  %2961 = vmatprep.mubr.msk.bf16.mxu1 %vm1038_vm0, %v3337_v23  ;;  %v3429_v21 = vld [vmem:[%s3573_s24 + $0x360] ss:$8 sps:$4 sm:$0xff]   ;;  %v3430_v22 = vld [vmem:[%s3573_s24 + $0x134] ss:$8 sps:$4 sm:$0xff]  }
  0x3c   : > { %v3433_v23 = vld [vmem:[%s3573_s24 + $0x374] ss:$8 sps:$4 sm:$0xff]  }
  0x42   : > { %1309 = vmatmul.mubr.bf16.gmra.mrb[12].mxu0 %v3336_v24  ;;  %1597 = vmatmul.mubr.bf16.gmra.mrb[12].mxu1 %v3339_v25  ;;  %v3432_v24 = vld [vmem:[%s3573_s24 + $0x130] ss:$8 sps:$4 sm:$0xff]  }
  0x43   : > { %2926 = vmatprep.mubr.msk.bf16.mxu0 %vm1038_vm0, %v3340_v26  ;;  %2962 = vmatprep.mubr.msk.bf16.mxu1 %vm1038_vm0, %v3343_v27  ;;  %v3435_v25 = vld [vmem:[%s3573_s24 + $0x370] ss:$8 sps:$4 sm:$0xff]   ;;  %v3436_v26 = vld [vmem:[%s3573_s24 + $0x144] ss:$8 sps:$4 sm:$0xff]  }
  0x44   : > { %v3439_v27 = vld [vmem:[%s3573_s24 + $0x384] ss:$8 sps:$4 sm:$0xff]  }
  0x4a   : > { %1317 = vmatmul.mubr.bf16.gmra.mrb[16].mxu0 %v3342_v28  ;;  %1605 = vmatmul.mubr.bf16.gmra.mrb[16].mxu1 %v3345_v29  ;;  %v3438_v28 = vld [vmem:[%s3573_s24 + $0x140] ss:$8 sps:$4 sm:$0xff]  }
  0x4b   : > { %2927 = vmatprep.mubr.msk.bf16.mxu0 %vm1038_vm0, %v3346_v30  ;;  %2963 = vmatprep.mubr.msk.bf16.mxu1 %vm1038_vm0, %v3349_v31  ;;  %v3441_v29 = vld [vmem:[%s3573_s24 + $0x380] ss:$8 sps:$4 sm:$0xff]   ;;  %v3442_v30 = vld [vmem:[%s3573_s24 + $0x154] ss:$8 sps:$4 sm:$0xff]  }
  0x4c   : > { %v3445_v31 = vld [vmem:[%s3573_s24 + $0x394] ss:$8 sps:$4 sm:$0xff]  }
  0x52   : > { %1325 = vmatmul.mubr.bf16.gmra.mrb[20].mxu0 %v3348_v32  ;;  %1613 = vmatmul.mubr.bf16.gmra.mrb[20].mxu1 %v3351_v33  ;;  %v3444_v32 = vld [vmem:[%s3573_s24 + $0x150] ss:$8 sps:$4 sm:$0xff]  }
  0x53   : > { %2928 = vmatprep.mubr.msk.bf16.mxu0 %vm1038_vm0, %v3352_v34  ;;  %2964 = vmatprep.mubr.msk.bf16.mxu1 %vm1038_vm0, %v3355_v35  ;;  %v3447_v33 = vld [vmem:[%s3573_s24 + $0x390] ss:$8 sps:$4 sm:$0xff]   ;;  %v3448_v34 = vld [vmem:[%s3573_s24 + $0x164] ss:$8 sps:$4 sm:$0xff]  }
  0x54   : > { %v3451_v35 = vld [vmem:[%s3573_s24 + $0x3a4] ss:$8 sps:$4 sm:$0xff]  }
  0x5a   : > { %1333 = vmatmul.mubr.bf16.gmra.mrb[24].mxu0 %v3354_v36  ;;  %1621 = vmatmul.mubr.bf16.gmra.mrb[24].mxu1 %v3357_v37  ;;  %v3450_v36 = vld [vmem:[%s3573_s24 + $0x160] ss:$8 sps:$4 sm:$0xff]  }
  0x5b   : > { %2929 = vmatprep.mubr.msk.bf16.mxu0 %vm1038_vm0, %v3358_v38  ;;  %2965 = vmatprep.mubr.msk.bf16.mxu1 %vm1038_vm0, %v3361_v39  ;;  %v3453_v37 = vld [vmem:[%s3573_s24 + $0x3a0] ss:$8 sps:$4 sm:$0xff]   ;;  %v3454_v38 = vld [vmem:[%s3573_s24 + $0x174] ss:$8 sps:$4 sm:$0xff]  }
  0x5c   : > { %v3457_v39 = vld [vmem:[%s3573_s24 + $0x3b4] ss:$8 sps:$4 sm:$0xff]  }
  0x62   : > { %1341 = vmatmul.mubr.bf16.gmra.mrb[28].mxu0 %v3360_v40  ;;  %1629 = vmatmul.mubr.bf16.gmra.mrb[28].mxu1 %v3363_v41  ;;  %v3456_v40 = vld [vmem:[%s3573_s24 + $0x170] ss:$8 sps:$4 sm:$0xff]  }
  0x63   : > { %2930 = vmatprep.mubr.msk.bf16.mxu0 %vm1038_vm0, %v3364_v42  ;;  %2966 = vmatprep.mubr.msk.bf16.mxu1 %vm1038_vm0, %v3367_v43  ;;  %v3459_v41 = vld [vmem:[%s3573_s24 + $0x3b0] ss:$8 sps:$4 sm:$0xff]   ;;  %v3460_v42 = vld [vmem:[%s3573_s24 + $0x184] ss:$8 sps:$4 sm:$0xff]  }
  0x64   : > { %v3463_v43 = vld [vmem:[%s3573_s24 + $0x3c4] ss:$8 sps:$4 sm:$0xff]  }
  0x6a   : > { %1349 = vmatmul.mubr.bf16.gmra.mrb[32].mxu0 %v3366_v44  ;;  %1637 = vmatmul.mubr.bf16.gmra.mrb[32].mxu1 %v3369_v45  ;;  %v3462_v44 = vld [vmem:[%s3573_s24 + $0x180] ss:$8 sps:$4 sm:$0xff]  }
  0x6b   : > { %2931 = vmatprep.mubr.msk.bf16.mxu0 %vm1038_vm0, %v3370_v46  ;;  %2967 = vmatprep.mubr.msk.bf16.mxu1 %vm1038_vm0, %v3373_v47  ;;  %v3465_v45 = vld [vmem:[%s3573_s24 + $0x3c0] ss:$8 sps:$4 sm:$0xff]   ;;  %v3466_v46 = vld [vmem:[%s3573_s24 + $0x194] ss:$8 sps:$4 sm:$0xff]  }
  0x6c   : > { %v3469_v47 = vld [vmem:[%s3573_s24 + $0x3d4] ss:$8 sps:$4 sm:$0xff]  }
  0x72   : > { %1357 = vmatmul.mubr.bf16.gmra.mrb[36].mxu0 %v3372_v48  ;;  %1645 = vmatmul.mubr.bf16.gmra.mrb[36].mxu1 %v3375_v49  ;;  %v3468_v48 = vld [vmem:[%s3573_s24 + $0x190] ss:$8 sps:$4 sm:$0xff]  }
  0x73   : > { %2932 = vmatprep.mubr.msk.bf16.mxu0 %vm1038_vm0, %v3376_v50  ;;  %2968 = vmatprep.mubr.msk.bf16.mxu1 %vm1038_vm0, %v3379_v51  ;;  %v3471_v49 = vld [vmem:[%s3573_s24 + $0x3d0] ss:$8 sps:$4 sm:$0xff]   ;;  %v3472_v50 = vld [vmem:[%s3573_s24 + $0x1a4] ss:$8 sps:$4 sm:$0xff]  }
  0x74   : > { %v3475_v51 = vld [vmem:[%s3573_s24 + $0x3e4] ss:$8 sps:$4 sm:$0xff]  }
  0x7a   : > { %1365 = vmatmul.mubr.bf16.gmra.mrb[40].mxu0 %v3378_v52  ;;  %1653 = vmatmul.mubr.bf16.gmra.mrb[40].mxu1 %v3381_v53  ;;  %v302_v52 = vld [vmem:[%s3573_s24 + $0x3e0] sm:$0xff]  ;;  %v303_v53 = vld [vmem:[%s3573_s24 + $0x3e8] sm:$0xff] }
  0x7b   : > { %2933 = vmatprep.mubr.msk.bf16.mxu0 %vm1038_vm0, %v3382_v54  ;;  %2969 = vmatprep.mubr.msk.bf16.mxu1 %vm1038_vm0, %v3385_v55  ;;  %v3474_v54 = vld [vmem:[%s3573_s24 + $0x1a0] ss:$8 sps:$4 sm:$0xff]   ;;  %v2895_v55 = vcombine.low %v302_v52, %v303_v53  ;;  %v3489_v53 = vld [vmem:[%s3573_s24 + $0x1d0] ss:$8 sps:$4 sm:$0xff]  }
  0x82   : > { %1373 = vmatmul.mubr.bf16.gmra.mrb[44].mxu0 %v3384_v56  ;;  %1661 = vmatmul.mubr.bf16.gmra.mrb[44].mxu1 %v3387_v57  ;;  %v3477_v56 = vld [vmem:[%s3573_s24 + $0x1b4] ss:$8 sps:$4 sm:$0xff]  }
  0x83   : > { %2934 = vmatprep.mubr.msk.bf16.mxu0 %vm1038_vm0, %v3388_v58  ;;  %2970 = vmatprep.mubr.msk.bf16.mxu1 %vm1038_vm0, %v3391_v59  ;;  %v3480_v57 = vld [vmem:[%s3573_s24 + $0x3f4] ss:$8 sps:$4 sm:$0xff]   ;;  %v3761_v58 = vld [vmem:[%s4262_s2] ss:$0 sm:$0xff] }
  0x84   : > { %v304_v59 = vld [vmem:[%s3573_s24 + $0x3f0] sm:$0xff] }
  0x8a   : > { %1381 = vmatmul.mubr.bf16.gmra.mrb[48].mxu0 %v3390_v60  ;;  %1669 = vmatmul.mubr.bf16.gmra.mrb[48].mxu1 %v3393_v61  ;;  %v305_v60 = vld [vmem:[%s3573_s24 + $0x3f8] sm:$0xff] }
  0x8b   : > { %2935 = vmatprep.mubr.msk.bf16.mxu0 %vm1038_vm0, %v3394_v62  ;;  %2971 = vmatprep.mubr.msk.bf16.mxu1 %vm1038_vm0, %v3397_v63 }
  0x92   : > { %1389 = vmatmul.mubr.bf16.gmra.mrb[52].mxu0 %v3396_v0  ;;  %1677 = vmatmul.mubr.bf16.gmra.mrb[52].mxu1 %v3399_v1  ;;  %v3479_v1 = vld [vmem:[%s3573_s24 + $0x1b0] ss:$8 sps:$4 sm:$0xff]  }
  0x93   : > { %2936 = vmatprep.mubr.msk.bf16.mxu0 %vm1038_vm0, %v3400_v2  ;;  %2972 = vmatprep.mubr.msk.bf16.mxu1 %vm1038_vm0, %v3403_v3 }
  0x9a   : > { %1397 = vmatmul.mubr.bf16.gmra.mrb[56].mxu0 %v3402_v4  ;;  %1685 = vmatmul.mubr.bf16.gmra.mrb[56].mxu1 %v3405_v5  ;;  %v2897_v4 = vcombine.low %v304_v59, %v305_v60  ;;  %v3492_v60 = vld [vmem:[%s3573_s24 + $0x1e4] ss:$8 sps:$4 sm:$0xff]  }
  0x9b   : > { %2937 = vmatprep.mubr.msk.bf16.mxu0 %vm1038_vm0, %v3406_v6  ;;  %2973 = vmatprep.mubr.msk.bf16.mxu1 %vm1038_vm0, %v3409_v7  ;;  %v3482_v7 = vld [vmem:[%s3573_s24 + $0x1c4] ss:$8 sps:$4 sm:$0xff]  }
  0xa2   : > { %1405 = vmatmul.mubr.bf16.gmra.mrb[60].mxu0 %v3408_v8  ;;  %1693 = vmatmul.mubr.bf16.gmra.mrb[60].mxu1 %v3411_v9  ;;  %v3485_v8 = vld [vmem:[%s3573_s24 + $0x404] ss:$8 sps:$4 sm:$0xff]  }
  0xa3   : > { %2938 = vmatprep.mubr.msk.bf16.mxu0 %vm1038_vm0, %v3412_v10  ;;  %2974 = vmatprep.mubr.msk.bf16.mxu1 %vm1038_vm0, %v3415_v11 }
  0xaa   : > { %1413 = vmatmul.mubr.bf16.gmra.mrb[64].mxu0 %v3414_v12  ;;  %1701 = vmatmul.mubr.bf16.gmra.mrb[64].mxu1 %v3417_v13 }
  0xab   : > { %2939 = vmatprep.mubr.msk.bf16.mxu0 %vm1038_vm0, %v3418_v14  ;;  %2975 = vmatprep.mubr.msk.bf16.mxu1 %vm1038_vm0, %v3421_v15 }
  0xb2   : > { %1421 = vmatmul.mubr.bf16.gmra.mrb[68].mxu0 %v3420_v16  ;;  %1709 = vmatmul.mubr.bf16.gmra.mrb[68].mxu1 %v3423_v17 }
  0xb3   : > { %2940 = vmatprep.mubr.msk.bf16.mxu0 %vm1038_vm0, %v3424_v18  ;;  %2976 = vmatprep.mubr.msk.bf16.mxu1 %vm1038_vm0, %v3427_v19  ;;  %v306_v19 = vld [vmem:[%s3573_s24 + $0x400] sm:$0xff] }
  0xba   : > { %1429 = vmatmul.mubr.bf16.gmra.mrb[72].mxu0 %v3426_v20  ;;  %1717 = vmatmul.mubr.bf16.gmra.mrb[72].mxu1 %v3429_v21  ;;  %v307_v20 = vld [vmem:[%s3573_s24 + $0x408] sm:$0xff] }
  0xbb   : > { %2941 = vmatprep.mubr.msk.bf16.mxu0 %vm1038_vm0, %v3430_v22  ;;  %2977 = vmatprep.mubr.msk.bf16.mxu1 %vm1038_vm0, %v3433_v23 }
  0xc2   : > { %1437 = vmatmul.mubr.bf16.gmra.mrb[76].mxu0 %v3432_v24  ;;  %1725 = vmatmul.mubr.bf16.gmra.mrb[76].mxu1 %v3435_v25 }
  0xc3   : > { %2942 = vmatprep.mubr.msk.bf16.mxu0 %vm1038_vm0, %v3436_v26  ;;  %2978 = vmatprep.mubr.msk.bf16.mxu1 %vm1038_vm0, %v3439_v27  ;;  %v3484_v27 = vld [vmem:[%s3573_s24 + $0x1c0] ss:$8 sps:$4 sm:$0xff]  }
  0xca   : > { %1445 = vmatmul.mubr.bf16.gmra.mrb[80].mxu0 %v3438_v28  ;;  %1733 = vmatmul.mubr.bf16.gmra.mrb[80].mxu1 %v3441_v29 }
  0xcb   : > { %2943 = vmatprep.mubr.msk.bf16.mxu0 %vm1038_vm0, %v3442_v30  ;;  %2979 = vmatprep.mubr.msk.bf16.mxu1 %vm1038_vm0, %v3445_v31  ;;  %v2899_v30 = vcombine.low %v306_v19, %v307_v20 }
  0xd2   : > { %1453 = vmatmul.mubr.bf16.gmra.mrb[84].mxu0 %v3444_v32  ;;  %1741 = vmatmul.mubr.bf16.gmra.mrb[84].mxu1 %v3447_v33  ;;  %v3487_v33 = vld [vmem:[%s3573_s24 + $0x1d4] ss:$8 sps:$4 sm:$0xff]  }
  0xd3   : > { %2944 = vmatprep.mubr.msk.bf16.mxu0 %vm1038_vm0, %v3448_v34  ;;  %2980 = vmatprep.mubr.msk.bf16.mxu1 %vm1038_vm0, %v3451_v35  ;;  %v3490_v34 = vld [vmem:[%s3573_s24 + $0x414] ss:$8 sps:$4 sm:$0xff]  }
  0xda   : > { %1461 = vmatmul.mubr.bf16.gmra.mrb[88].mxu0 %v3450_v36  ;;  %1749 = vmatmul.mubr.bf16.gmra.mrb[88].mxu1 %v3453_v37 }
  0xdb   : > { %2945 = vmatprep.mubr.msk.bf16.mxu0 %vm1038_vm0, %v3454_v38  ;;  %2981 = vmatprep.mubr.msk.bf16.mxu1 %vm1038_vm0, %v3457_v39 }
  0xe2   : > { %1469 = vmatmul.mubr.bf16.gmra.mrb[92].mxu0 %v3456_v40  ;;  %1757 = vmatmul.mubr.bf16.gmra.mrb[92].mxu1 %v3459_v41 }
  0xe3   : > { %2946 = vmatprep.mubr.msk.bf16.mxu0 %vm1038_vm0, %v3460_v42  ;;  %2982 = vmatprep.mubr.msk.bf16.mxu1 %vm1038_vm0, %v3463_v43 }
  0xea   : > { %1477 = vmatmul.mubr.bf16.gmra.mrb[96].mxu0 %v3462_v44  ;;  %1765 = vmatmul.mubr.bf16.gmra.mrb[96].mxu1 %v3465_v45  ;;  %v308_v45 = vld [vmem:[%s3573_s24 + $0x410] sm:$0xff] }
  0xeb   : > { %2947 = vmatprep.mubr.msk.bf16.mxu0 %vm1038_vm0, %v3466_v46  ;;  %2983 = vmatprep.mubr.msk.bf16.mxu1 %vm1038_vm0, %v3469_v47  ;;  %v309_v46 = vld [vmem:[%s3573_s24 + $0x418] sm:$0xff] }
  0xf2   : > { %1485 = vmatmul.mubr.bf16.gmra.mrb[100].mxu0 %v3468_v48  ;;  %1773 = vmatmul.mubr.bf16.gmra.mrb[100].mxu1 %v3471_v49 }
  0xf3   : > { %2948 = vmatprep.mubr.msk.bf16.mxu0 %vm1038_vm0, %v3472_v50  ;;  %2984 = vmatprep.mubr.msk.bf16.mxu1 %vm1038_vm0, %v3475_v51 }
  0xfa   : > { %1493 = vmatmul.mubr.bf16.gmra.mrb[104].mxu0 %v3474_v54  ;;  %1781 = vmatmul.mubr.bf16.gmra.mrb[104].mxu1 %v2895_v55 }
  0xfb   : > { %2949 = vmatprep.mubr.msk.bf16.mxu0 %vm1038_vm0, %v3477_v56  ;;  %2985 = vmatprep.mubr.msk.bf16.mxu1 %vm1038_vm0, %v3480_v57  ;;  %v2901_v56 = vcombine.low %v308_v45, %v309_v46 }
  0xfd   : > { %v1286_v61 = vpop.f32.mrb[0].mxu0  ;;  %v1574_v62 = vpop.f32.mrb[0].mxu1 }
  0xfe   : > { %v1287_v63 = vadd.f32 %v3761_v58, %v1286_v61  ;;  %v1288_v0 = vpop.f32.mrb[1].mxu0  ;;  %v1575_v2 = vadd.f32 %v3761_v58, %v1574_v62  ;;  %v1576_v3 = vpop.f32.mrb[1].mxu1  ;;  %v3495_v61 = vld [vmem:[%s3573_s24 + $0x424] ss:$8 sps:$4 sm:$0xff]  }
  0xff   : > { %v1289_v5 = vpop.f32.mrb[2].mxu0  ;;  %v1577_v6 = vpop.f32.mrb[2].mxu1 }
 0x100   : > { %v1853_v9 = vmax.f32 %v1287_v63, 0.0  ;;  %v1290_v10 = vadd.f32 %v3761_v58, %v1289_v5  ;;  %v1291_v11 = vpop.f32.mrb[3].mxu0  ;;  %v1925_v12 = vmax.f32 %v1575_v2, 0.0  ;;  %v1578_v13 = vadd.f32 %v3761_v58, %v1577_v6  ;;  %v1579_v14 = vpop.f32.mrb[3].mxu1 }
 0x102   : > { %v3138_v15 = vpack.c.bf16 %v1853_v9, %v1853_v9  ;;  %v1854_v16 = vmax.f32 %v1290_v10, 0.0  ;;  %1501 = vmatmul.mubr.bf16.gmra.mrb[108].mxu0 %v3479_v1  ;;  %v3210_v17 = vpack.c.bf16 %v1925_v12, %v1925_v12  ;;  %v1926_v18 = vmax.f32 %v1578_v13, 0.0  ;;  %1789 = vmatmul.mubr.bf16.gmra.mrb[108].mxu1 %v2897_v4  ;;  %v311_v9 = vld [vmem:[%s3573_s24 + $0x428] sm:$0xff] }
 0x103   : > { %2950 = vmatprep.mubr.msk.bf16.mxu0 %vm1038_vm0, %v3482_v7  ;;  %2986 = vmatprep.mubr.msk.bf16.mxu1 %vm1038_vm0, %v3485_v8  ;;  %v310_v8 = vld [vmem:[%s3573_s24 + $0x420] sm:$0xff] }
 0x104   : > { %2564 = vst.msk [vmem:[%s3778_s16] sm:$0xf] %vm2563_vm1, %v3138_v15  ;;  %v3139_v21 = vpack.c.bf16 %v1854_v16, %v1854_v16  ;;  %2636 = vst.msk [vmem:[%s3778_s16 + $0x120] sm:$0xf] %vm2563_vm1, %v3210_v17  ;;  %v3211_v22 = vpack.c.bf16 %v1926_v18, %v1926_v18  ;;  %v3494_v16 = vld [vmem:[%s3573_s24 + $0x1e0] ss:$8 sps:$4 sm:$0xff]   ;;  %v2903_v19 = vcombine.low %v310_v8, %v311_v9 }
 0x105   : > { %v1294_v23 = vpop.f32.mrb[4].mxu0  ;;  %v1582_v24 = vpop.f32.mrb[4].mxu1 }
 0x106   : > { %2565 = vst.msk [vmem:[%s3778_s16 + $0x4] sm:$0xf] %vm2563_vm1, %v3139_v21  ;;  %2637 = vst.msk [vmem:[%s3778_s16 + $0x124] sm:$0xf] %vm2563_vm1, %v3211_v22  ;;  %v1295_v25 = vadd.f32 %v3761_v58, %v1294_v23  ;;  %v1296_v26 = vpop.f32.mrb[5].mxu0  ;;  %v1583_v28 = vadd.f32 %v3761_v58, %v1582_v24  ;;  %v1584_v29 = vpop.f32.mrb[5].mxu1 }
 0x107   : > { %v1297_v31 = vpop.f32.mrb[6].mxu0  ;;  %v1585_v32 = vpop.f32.mrb[6].mxu1  ;;  %v3497_v22 = vld [vmem:[%s3573_s24 + $0x1f4] ss:$8 sps:$4 sm:$0xff]  }
 0x108   : > { %v1855_v35 = vmax.f32 %v1295_v25, 0.0  ;;  %v1298_v36 = vadd.f32 %v3761_v58, %v1297_v31  ;;  %v1299_v37 = vpop.f32.mrb[7].mxu0  ;;  %v1927_v38 = vmax.f32 %v1583_v28, 0.0  ;;  %v1586_v39 = vadd.f32 %v3761_v58, %v1585_v32  ;;  %v1587_v40 = vpop.f32.mrb[7].mxu1  ;;  %v3500_v23 = vld [vmem:[%s3573_s24 + $0x434] ss:$8 sps:$4 sm:$0xff]  }
 0x10a   : > { %v3140_v41 = vpack.c.bf16 %v1855_v35, %v1855_v35  ;;  %v1856_v42 = vmax.f32 %v1298_v36, 0.0  ;;  %1509 = vmatmul.mubr.bf16.gmra.mrb[112].mxu0 %v3484_v27  ;;  %v3212_v43 = vpack.c.bf16 %v1927_v38, %v1927_v38  ;;  %v1928_v44 = vmax.f32 %v1586_v39, 0.0  ;;  %1797 = vmatmul.mubr.bf16.gmra.mrb[112].mxu1 %v2899_v30  ;;  %v313_v35 = vld [vmem:[%s3573_s24 + $0x438] sm:$0xff] }
 0x10b   : > { %2951 = vmatprep.mubr.msk.bf16.mxu0 %vm1038_vm0, %v3487_v33  ;;  %2987 = vmatprep.mubr.msk.bf16.mxu1 %vm1038_vm0, %v3490_v34  ;;  %v312_v34 = vld [vmem:[%s3573_s24 + $0x430] sm:$0xff] }
 0x10c   : > { %2566 = vst.msk [vmem:[%s3778_s16 + $0x8] sm:$0xf] %vm2563_vm1, %v3140_v41  ;;  %v3141_v47 = vpack.c.bf16 %v1856_v42, %v1856_v42  ;;  %2638 = vst.msk [vmem:[%s3778_s16 + $0x128] sm:$0xf] %vm2563_vm1, %v3212_v43  ;;  %v3213_v48 = vpack.c.bf16 %v1928_v44, %v1928_v44  ;;  %v3499_v42 = vld [vmem:[%s3573_s24 + $0x1f0] ss:$8 sps:$4 sm:$0xff]   ;;  %v2905_v45 = vcombine.low %v312_v34, %v313_v35 }
 0x10d   : > { %v1302_v49 = vpop.f32.mrb[8].mxu0  ;;  %v1590_v50 = vpop.f32.mrb[8].mxu1 }
 0x10e   : > { %2567 = vst.msk [vmem:[%s3778_s16 + $0xc] sm:$0xf] %vm2563_vm1, %v3141_v47  ;;  %2639 = vst.msk [vmem:[%s3778_s16 + $0x12c] sm:$0xf] %vm2563_vm1, %v3213_v48  ;;  %v1303_v51 = vadd.f32 %v3761_v58, %v1302_v49  ;;  %v1304_v52 = vpop.f32.mrb[9].mxu0  ;;  %v1591_v54 = vadd.f32 %v3761_v58, %v1590_v50  ;;  %v1592_v55 = vpop.f32.mrb[9].mxu1 }
 0x10f   : > { %v1305_v57 = vpop.f32.mrb[10].mxu0  ;;  %v1593_v59 = vpop.f32.mrb[10].mxu1  ;;  %v3502_v48 = vld [vmem:[%s3573_s24 + $0x204] ss:$8 sps:$4 sm:$0xff]  }
 0x110   : > { %v1857_v62 = vmax.f32 %v1303_v51, 0.0  ;;  %v1306_v63 = vadd.f32 %v3761_v58, %v1305_v57  ;;  %v1307_v0 = vpop.f32.mrb[11].mxu0  ;;  %v1929_v1 = vmax.f32 %v1591_v54, 0.0  ;;  %v1594_v2 = vadd.f32 %v3761_v58, %v1593_v59  ;;  %v1595_v3 = vpop.f32.mrb[11].mxu1  ;;  %v3505_v49 = vld [vmem:[%s3573_s24 + $0x444] ss:$8 sps:$4 sm:$0xff]  }
 0x112   : > { %v3142_v4 = vpack.c.bf16 %v1857_v62, %v1857_v62  ;;  %v1858_v5 = vmax.f32 %v1306_v63, 0.0  ;;  %1517 = vmatmul.mubr.bf16.gmra.mrb[116].mxu0 %v3489_v53  ;;  %v3214_v6 = vpack.c.bf16 %v1929_v1, %v1929_v1  ;;  %v1930_v7 = vmax.f32 %v1594_v2, 0.0  ;;  %1805 = vmatmul.mubr.bf16.gmra.mrb[116].mxu1 %v2901_v56  ;;  %v315_v62 = vld [vmem:[%s3573_s24 + $0x448] sm:$0xff] }
 0x113   : > { %2952 = vmatprep.mubr.msk.bf16.mxu0 %vm1038_vm0, %v3492_v60  ;;  %2988 = vmatprep.mubr.msk.bf16.mxu1 %vm1038_vm0, %v3495_v61  ;;  %v314_v61 = vld [vmem:[%s3573_s24 + $0x440] sm:$0xff] }
 0x114   : > { %2568 = vst.msk [vmem:[%s3778_s16 + $0x10] sm:$0xf] %vm2563_vm1, %v3142_v4  ;;  %v3143_v10 = vpack.c.bf16 %v1858_v5, %v1858_v5  ;;  %2640 = vst.msk [vmem:[%s3778_s16 + $0x130] sm:$0xf] %vm2563_vm1, %v3214_v6  ;;  %v3215_v11 = vpack.c.bf16 %v1930_v7, %v1930_v7  ;;  %v3504_v5 = vld [vmem:[%s3573_s24 + $0x200] ss:$8 sps:$4 sm:$0xff]   ;;  %v2907_v8 = vcombine.low %v314_v61, %v315_v62 }
 0x115   : > { %v1310_v12 = vpop.f32.mrb[12].mxu0  ;;  %v1598_v13 = vpop.f32.mrb[12].mxu1 }
 0x116   : > { %2569 = vst.msk [vmem:[%s3778_s16 + $0x14] sm:$0xf] %vm2563_vm1, %v3143_v10  ;;  %2641 = vst.msk [vmem:[%s3778_s16 + $0x134] sm:$0xf] %vm2563_vm1, %v3215_v11  ;;  %v1311_v14 = vadd.f32 %v3761_v58, %v1310_v12  ;;  %v1312_v15 = vpop.f32.mrb[13].mxu0  ;;  %v1599_v17 = vadd.f32 %v3761_v58, %v1598_v13  ;;  %v1600_v18 = vpop.f32.mrb[13].mxu1 }
 0x117   : > { %v1313_v20 = vpop.f32.mrb[14].mxu0  ;;  %v1601_v21 = vpop.f32.mrb[14].mxu1  ;;  %v3507_v11 = vld [vmem:[%s3573_s24 + $0x214] ss:$8 sps:$4 sm:$0xff]  }
 0x118   : > { %v1859_v24 = vmax.f32 %v1311_v14, 0.0  ;;  %v1314_v25 = vadd.f32 %v3761_v58, %v1313_v20  ;;  %v1315_v26 = vpop.f32.mrb[15].mxu0  ;;  %v1931_v27 = vmax.f32 %v1599_v17, 0.0  ;;  %v1602_v28 = vadd.f32 %v3761_v58, %v1601_v21  ;;  %v1603_v29 = vpop.f32.mrb[15].mxu1  ;;  %v3510_v12 = vld [vmem:[%s3573_s24 + $0x454] ss:$8 sps:$4 sm:$0xff]  }
 0x11a   : > { %v3144_v30 = vpack.c.bf16 %v1859_v24, %v1859_v24  ;;  %v1860_v31 = vmax.f32 %v1314_v25, 0.0  ;;  %1525 = vmatmul.mubr.bf16.gmra.mrb[120].mxu0 %v3494_v16  ;;  %v3216_v32 = vpack.c.bf16 %v1931_v27, %v1931_v27  ;;  %v1932_v33 = vmax.f32 %v1602_v28, 0.0  ;;  %1813 = vmatmul.mubr.bf16.gmra.mrb[120].mxu1 %v2903_v19  ;;  %v317_v24 = vld [vmem:[%s3573_s24 + $0x458] sm:$0xff] }
 0x11b   : > { %2953 = vmatprep.mubr.msk.bf16.mxu0 %vm1038_vm0, %v3497_v22  ;;  %2989 = vmatprep.mubr.msk.bf16.mxu1 %vm1038_vm0, %v3500_v23  ;;  %v316_v23 = vld [vmem:[%s3573_s24 + $0x450] sm:$0xff] }
 0x11c   : > { %2570 = vst.msk [vmem:[%s3778_s16 + $0x18] sm:$0xf] %vm2563_vm1, %v3144_v30  ;;  %v3145_v36 = vpack.c.bf16 %v1860_v31, %v1860_v31  ;;  %2642 = vst.msk [vmem:[%s3778_s16 + $0x138] sm:$0xf] %vm2563_vm1, %v3216_v32  ;;  %v3217_v37 = vpack.c.bf16 %v1932_v33, %v1932_v33  ;;  %v3509_v31 = vld [vmem:[%s3573_s24 + $0x210] ss:$8 sps:$4 sm:$0xff]   ;;  %v2909_v34 = vcombine.low %v316_v23, %v317_v24 }
 0x11d   : > { %v1318_v38 = vpop.f32.mrb[16].mxu0  ;;  %v1606_v39 = vpop.f32.mrb[16].mxu1 }
 0x11e   : > { %2571 = vst.msk [vmem:[%s3778_s16 + $0x1c] sm:$0xf] %vm2563_vm1, %v3145_v36  ;;  %2643 = vst.msk [vmem:[%s3778_s16 + $0x13c] sm:$0xf] %vm2563_vm1, %v3217_v37  ;;  %v1319_v40 = vadd.f32 %v3761_v58, %v1318_v38  ;;  %v1320_v41 = vpop.f32.mrb[17].mxu0  ;;  %v1607_v43 = vadd.f32 %v3761_v58, %v1606_v39  ;;  %v1608_v44 = vpop.f32.mrb[17].mxu1 }
 0x11f   : > { %v1321_v46 = vpop.f32.mrb[18].mxu0  ;;  %v1609_v47 = vpop.f32.mrb[18].mxu1  ;;  %v3512_v37 = vld [vmem:[%s3573_s24 + $0x224] ss:$8 sps:$4 sm:$0xff]  }
 0x120   : > { %v1861_v50 = vmax.f32 %v1319_v40, 0.0  ;;  %v1322_v51 = vadd.f32 %v3761_v58, %v1321_v46  ;;  %v1323_v52 = vpop.f32.mrb[19].mxu0  ;;  %v1933_v53 = vmax.f32 %v1607_v43, 0.0  ;;  %v1610_v54 = vadd.f32 %v3761_v58, %v1609_v47  ;;  %v1611_v55 = vpop.f32.mrb[19].mxu1  ;;  %v3515_v38 = vld [vmem:[%s3573_s24 + $0x464] ss:$8 sps:$4 sm:$0xff]  }
 0x122   : > { %v3146_v56 = vpack.c.bf16 %v1861_v50, %v1861_v50  ;;  %v1862_v57 = vmax.f32 %v1322_v51, 0.0  ;;  %1533 = vmatmul.mubr.bf16.gmra.mrb[124].mxu0 %v3499_v42  ;;  %v3218_v59 = vpack.c.bf16 %v1933_v53, %v1933_v53  ;;  %v1934_v60 = vmax.f32 %v1610_v54, 0.0  ;;  %1821 = vmatmul.mubr.bf16.gmra.mrb[124].mxu1 %v2905_v45  ;;  %v319_v50 = vld [vmem:[%s3573_s24 + $0x468] sm:$0xff] }
 0x123   : > { %2954 = vmatprep.mubr.msk.bf16.mxu0 %vm1038_vm0, %v3502_v48  ;;  %2990 = vmatprep.mubr.msk.bf16.mxu1 %vm1038_vm0, %v3505_v49  ;;  %v318_v49 = vld [vmem:[%s3573_s24 + $0x460] sm:$0xff] }
 0x124   : > { %2572 = vst.msk [vmem:[%s3778_s16 + $0x20] sm:$0xf] %vm2563_vm1, %v3146_v56  ;;  %v3147_v63 = vpack.c.bf16 %v1862_v57, %v1862_v57  ;;  %2644 = vst.msk [vmem:[%s3778_s16 + $0x140] sm:$0xf] %vm2563_vm1, %v3218_v59  ;;  %v3219_v0 = vpack.c.bf16 %v1934_v60, %v1934_v60  ;;  %v3514_v57 = vld [vmem:[%s3573_s24 + $0x220] ss:$8 sps:$4 sm:$0xff]   ;;  %v2911_v61 = vcombine.low %v318_v49, %v319_v50 }
 0x125   : > { %v1326_v1 = vpop.f32.mrb[20].mxu0  ;;  %v1614_v2 = vpop.f32.mrb[20].mxu1 }
 0x126   : > { %2573 = vst.msk [vmem:[%s3778_s16 + $0x24] sm:$0xf] %vm2563_vm1, %v3147_v63  ;;  %2645 = vst.msk [vmem:[%s3778_s16 + $0x144] sm:$0xf] %vm2563_vm1, %v3219_v0  ;;  %v1327_v3 = vadd.f32 %v3761_v58, %v1326_v1  ;;  %v1328_v4 = vpop.f32.mrb[21].mxu0  ;;  %v1615_v6 = vadd.f32 %v3761_v58, %v1614_v2  ;;  %v1616_v7 = vpop.f32.mrb[21].mxu1 }
 0x127   : > { %v1329_v9 = vpop.f32.mrb[22].mxu0  ;;  %v1617_v10 = vpop.f32.mrb[22].mxu1  ;;  %v3517_v0 = vld [vmem:[%s3573_s24 + $0x234] ss:$8 sps:$4 sm:$0xff]  }
 0x128   : > { %v1863_v13 = vmax.f32 %v1327_v3, 0.0  ;;  %v1330_v14 = vadd.f32 %v3761_v58, %v1329_v9  ;;  %v1331_v15 = vpop.f32.mrb[23].mxu0  ;;  %v1935_v16 = vmax.f32 %v1615_v6, 0.0  ;;  %v1618_v17 = vadd.f32 %v3761_v58, %v1617_v10  ;;  %v1619_v18 = vpop.f32.mrb[23].mxu1 }
 0x12a   : > { %v3148_v19 = vpack.c.bf16 %v1863_v13, %v1863_v13  ;;  %v1864_v20 = vmax.f32 %v1330_v14, 0.0  ;;  %1541 = vmatmul.mubr.bf16.gmra.mrb[128].mxu0 %v3504_v5  ;;  %v3220_v21 = vpack.c.bf16 %v1935_v16, %v1935_v16  ;;  %v1936_v22 = vmax.f32 %v1618_v17, 0.0  ;;  %1829 = vmatmul.mubr.bf16.gmra.mrb[128].mxu1 %v2907_v8  ;;  %v3519_v17 = vld [vmem:[%s3573_s24 + $0x230] ss:$8 sps:$4 sm:$0xff]  }
 0x12b   : > { %2955 = vmatprep.mubr.msk.bf16.mxu0 %vm1038_vm0, %v3507_v11  ;;  %2991 = vmatprep.mubr.msk.bf16.mxu1 %vm1038_vm0, %v3510_v12 }
 0x12c   : > { %2574 = vst.msk [vmem:[%s3778_s16 + $0x28] sm:$0xf] %vm2563_vm1, %v3148_v19  ;;  %v3149_v25 = vpack.c.bf16 %v1864_v20, %v1864_v20  ;;  %2646 = vst.msk [vmem:[%s3778_s16 + $0x148] sm:$0xf] %vm2563_vm1, %v3220_v21  ;;  %v3221_v26 = vpack.c.bf16 %v1936_v22, %v1936_v22 }
 0x12d   : > { %v1334_v27 = vpop.f32.mrb[24].mxu0  ;;  %v1622_v28 = vpop.f32.mrb[24].mxu1 }
 0x12e   : > { %2575 = vst.msk [vmem:[%s3778_s16 + $0x2c] sm:$0xf] %vm2563_vm1, %v3149_v25  ;;  %2647 = vst.msk [vmem:[%s3778_s16 + $0x14c] sm:$0xf] %vm2563_vm1, %v3221_v26  ;;  %v1335_v29 = vadd.f32 %v3761_v58, %v1334_v27  ;;  %v1336_v30 = vpop.f32.mrb[25].mxu0  ;;  %v1623_v32 = vadd.f32 %v3761_v58, %v1622_v28  ;;  %v1624_v33 = vpop.f32.mrb[25].mxu1 }
 0x12f   : > { %v1337_v35 = vpop.f32.mrb[26].mxu0  ;;  %v1625_v36 = vpop.f32.mrb[26].mxu1 }
 0x130   : > { %v1865_v39 = vmax.f32 %v1335_v29, 0.0  ;;  %v1338_v40 = vadd.f32 %v3761_v58, %v1337_v35  ;;  %v1339_v41 = vpop.f32.mrb[27].mxu0  ;;  %v1937_v42 = vmax.f32 %v1623_v32, 0.0  ;;  %v1626_v43 = vadd.f32 %v3761_v58, %v1625_v36  ;;  %v1627_v44 = vpop.f32.mrb[27].mxu1 }
 0x132   : > { %v3150_v45 = vpack.c.bf16 %v1865_v39, %v1865_v39  ;;  %v1866_v46 = vmax.f32 %v1338_v40, 0.0  ;;  %1549 = vmatmul.mubr.bf16.gmra.mrb[132].mxu0 %v3509_v31  ;;  %v3222_v47 = vpack.c.bf16 %v1937_v42, %v1937_v42  ;;  %v1938_v48 = vmax.f32 %v1626_v43, 0.0  ;;  %1837 = vmatmul.mubr.bf16.gmra.mrb[132].mxu1 %v2909_v34 }
 0x133   : > { %2956 = vmatprep.mubr.msk.bf16.mxu0 %vm1038_vm0, %v3512_v37  ;;  %2992 = vmatprep.mubr.msk.bf16.mxu1 %vm1038_vm0, %v3515_v38 }
 0x134   : > { %2576 = vst.msk [vmem:[%s3778_s16 + $0x30] sm:$0xf] %vm2563_vm1, %v3150_v45  ;;  %v3151_v51 = vpack.c.bf16 %v1866_v46, %v1866_v46  ;;  %2648 = vst.msk [vmem:[%s3778_s16 + $0x150] sm:$0xf] %vm2563_vm1, %v3222_v47  ;;  %v3223_v52 = vpack.c.bf16 %v1938_v48, %v1938_v48 }
 0x135   : > { %v1342_v53 = vpop.f32.mrb[28].mxu0  ;;  %v1630_v54 = vpop.f32.mrb[28].mxu1 }
 0x136   : > { %2577 = vst.msk [vmem:[%s3778_s16 + $0x34] sm:$0xf] %vm2563_vm1, %v3151_v51  ;;  %2649 = vst.msk [vmem:[%s3778_s16 + $0x154] sm:$0xf] %vm2563_vm1, %v3223_v52  ;;  %v1343_v55 = vadd.f32 %v3761_v58, %v1342_v53  ;;  %v1344_v56 = vpop.f32.mrb[29].mxu0  ;;  %v1631_v59 = vadd.f32 %v3761_v58, %v1630_v54  ;;  %v1632_v60 = vpop.f32.mrb[29].mxu1 }
 0x137   : > { %v1345_v62 = vpop.f32.mrb[30].mxu0  ;;  %v1633_v63 = vpop.f32.mrb[30].mxu1 }
 0x138   : > { %v1867_v1 = vmax.f32 %v1343_v55, 0.0  ;;  %v1346_v2 = vadd.f32 %v3761_v58, %v1345_v62  ;;  %v1347_v3 = vpop.f32.mrb[31].mxu0  ;;  %v1939_v4 = vmax.f32 %v1631_v59, 0.0  ;;  %v1634_v5 = vadd.f32 %v3761_v58, %v1633_v63  ;;  %v1635_v6 = vpop.f32.mrb[31].mxu1 }
 0x13a   : > { %v3152_v7 = vpack.c.bf16 %v1867_v1, %v1867_v1  ;;  %v1868_v8 = vmax.f32 %v1346_v2, 0.0  ;;  %1557 = vmatmul.mubr.bf16.gmra.mrb[136].mxu0 %v3514_v57  ;;  %v3224_v9 = vpack.c.bf16 %v1939_v4, %v1939_v4  ;;  %v1940_v10 = vmax.f32 %v1634_v5, 0.0  ;;  %1845 = vmatmul.mubr.bf16.gmra.mrb[136].mxu1 %v2911_v61 }
 0x13b   : > { %2957 = vmatprep.mubr.msk.bf16.mxu0 %vm1038_vm0, %v3517_v0 }
 0x13c   : > { %2578 = vst.msk [vmem:[%s3778_s16 + $0x38] sm:$0xf] %vm2563_vm1, %v3152_v7  ;;  %v3153_v11 = vpack.c.bf16 %v1868_v8, %v1868_v8  ;;  %2650 = vst.msk [vmem:[%s3778_s16 + $0x158] sm:$0xf] %vm2563_vm1, %v3224_v9  ;;  %v3225_v12 = vpack.c.bf16 %v1940_v10, %v1940_v10 }
 0x13d   : > { %v1350_v13 = vpop.f32.mrb[32].mxu0  ;;  %v1638_v14 = vpop.f32.mrb[32].mxu1 }
 0x13e   : > { %2579 = vst.msk [vmem:[%s3778_s16 + $0x3c] sm:$0xf] %vm2563_vm1, %v3153_v11  ;;  %2651 = vst.msk [vmem:[%s3778_s16 + $0x15c] sm:$0xf] %vm2563_vm1, %v3225_v12  ;;  %v1351_v15 = vadd.f32 %v3761_v58, %v1350_v13  ;;  %v1352_v16 = vpop.f32.mrb[33].mxu0  ;;  %v1639_v18 = vadd.f32 %v3761_v58, %v1638_v14  ;;  %v1640_v19 = vpop.f32.mrb[33].mxu1 }
 0x13f   : > { %v1353_v20 = vpop.f32.mrb[34].mxu0  ;;  %v1641_v21 = vpop.f32.mrb[34].mxu1 }
 0x140   : > { %v1869_v22 = vmax.f32 %v1351_v15, 0.0  ;;  %v1354_v23 = vadd.f32 %v3761_v58, %v1353_v20  ;;  %v1355_v24 = vpop.f32.mrb[35].mxu0  ;;  %v1941_v25 = vmax.f32 %v1639_v18, 0.0  ;;  %v1642_v26 = vadd.f32 %v3761_v58, %v1641_v21  ;;  %v1643_v27 = vpop.f32.mrb[35].mxu1 }
 0x142   : > { %v3154_v28 = vpack.c.bf16 %v1869_v22, %v1869_v22  ;;  %v1870_v29 = vmax.f32 %v1354_v23, 0.0  ;;  %1565 = vmatmul.mubr.bf16.gmra.mrb[140].mxu0 %v3519_v17  ;;  %v3226_v30 = vpack.c.bf16 %v1941_v25, %v1941_v25  ;;  %v1942_v31 = vmax.f32 %v1642_v26, 0.0 }
 0x144   : > { %2580 = vst.msk [vmem:[%s3778_s16 + $0x40] sm:$0xf] %vm2563_vm1, %v3154_v28  ;;  %v3155_v32 = vpack.c.bf16 %v1870_v29, %v1870_v29  ;;  %2652 = vst.msk [vmem:[%s3778_s16 + $0x160] sm:$0xf] %vm2563_vm1, %v3226_v30  ;;  %v3227_v33 = vpack.c.bf16 %v1942_v31, %v1942_v31 }
 0x145   : > { %v1358_v34 = vpop.f32.mrb[36].mxu0  ;;  %v1646_v35 = vpop.f32.mrb[36].mxu1 }
 0x146   : > { %2581 = vst.msk [vmem:[%s3778_s16 + $0x44] sm:$0xf] %vm2563_vm1, %v3155_v32  ;;  %2653 = vst.msk [vmem:[%s3778_s16 + $0x164] sm:$0xf] %vm2563_vm1, %v3227_v33  ;;  %v1359_v36 = vadd.f32 %v3761_v58, %v1358_v34  ;;  %v1360_v37 = vpop.f32.mrb[37].mxu0  ;;  %v1647_v38 = vadd.f32 %v3761_v58, %v1646_v35  ;;  %v1648_v39 = vpop.f32.mrb[37].mxu1 }
 0x147   : > { %v1361_v40 = vpop.f32.mrb[38].mxu0  ;;  %v1649_v41 = vpop.f32.mrb[38].mxu1 }
 0x148   : > { %v1871_v42 = vmax.f32 %v1359_v36, 0.0  ;;  %v1362_v43 = vadd.f32 %v3761_v58, %v1361_v40  ;;  %v1363_v44 = vpop.f32.mrb[39].mxu0  ;;  %v1943_v45 = vmax.f32 %v1647_v38, 0.0  ;;  %v1650_v46 = vadd.f32 %v3761_v58, %v1649_v41  ;;  %v1651_v47 = vpop.f32.mrb[39].mxu1 }
 0x14a   : > { %v3156_v48 = vpack.c.bf16 %v1871_v42, %v1871_v42  ;;  %v1872_v49 = vmax.f32 %v1362_v43, 0.0  ;;  %v3228_v50 = vpack.c.bf16 %v1943_v45, %v1943_v45  ;;  %v1944_v51 = vmax.f32 %v1650_v46, 0.0 }
 0x14c   : > { %2582 = vst.msk [vmem:[%s3778_s16 + $0x48] sm:$0xf] %vm2563_vm1, %v3156_v48  ;;  %v3157_v52 = vpack.c.bf16 %v1872_v49, %v1872_v49  ;;  %2654 = vst.msk [vmem:[%s3778_s16 + $0x168] sm:$0xf] %vm2563_vm1, %v3228_v50  ;;  %v3229_v53 = vpack.c.bf16 %v1944_v51, %v1944_v51 }
 0x14d   : > { %v1366_v54 = vpop.f32.mrb[40].mxu0  ;;  %v1654_v55 = vpop.f32.mrb[40].mxu1 }
 0x14e   : > { %2583 = vst.msk [vmem:[%s3778_s16 + $0x4c] sm:$0xf] %vm2563_vm1, %v3157_v52  ;;  %2655 = vst.msk [vmem:[%s3778_s16 + $0x16c] sm:$0xf] %vm2563_vm1, %v3229_v53  ;;  %v1367_v56 = vadd.f32 %v3761_v58, %v1366_v54  ;;  %v1368_v57 = vpop.f32.mrb[41].mxu0  ;;  %v1655_v59 = vadd.f32 %v3761_v58, %v1654_v55  ;;  %v1656_v60 = vpop.f32.mrb[41].mxu1 }
 0x14f   : > { %v1369_v61 = vpop.f32.mrb[42].mxu0  ;;  %v1657_v62 = vpop.f32.mrb[42].mxu1 }
 0x150   : > { %v1873_v63 = vmax.f32 %v1367_v56, 0.0  ;;  %v1370_v0 = vadd.f32 %v3761_v58, %v1369_v61  ;;  %v1371_v1 = vpop.f32.mrb[43].mxu0  ;;  %v1945_v2 = vmax.f32 %v1655_v59, 0.0  ;;  %v1658_v3 = vadd.f32 %v3761_v58, %v1657_v62  ;;  %v1659_v4 = vpop.f32.mrb[43].mxu1 }
 0x152   : > { %v3158_v5 = vpack.c.bf16 %v1873_v63, %v1873_v63  ;;  %v1874_v6 = vmax.f32 %v1370_v0, 0.0  ;;  %v3230_v7 = vpack.c.bf16 %v1945_v2, %v1945_v2  ;;  %v1946_v8 = vmax.f32 %v1658_v3, 0.0 }
 0x154   : > { %2584 = vst.msk [vmem:[%s3778_s16 + $0x50] sm:$0xf] %vm2563_vm1, %v3158_v5  ;;  %v3159_v9 = vpack.c.bf16 %v1874_v6, %v1874_v6  ;;  %2656 = vst.msk [vmem:[%s3778_s16 + $0x170] sm:$0xf] %vm2563_vm1, %v3230_v7  ;;  %v3231_v10 = vpack.c.bf16 %v1946_v8, %v1946_v8 }
 0x155   : > { %v1374_v11 = vpop.f32.mrb[44].mxu0  ;;  %v1662_v12 = vpop.f32.mrb[44].mxu1 }
 0x156   : > { %2585 = vst.msk [vmem:[%s3778_s16 + $0x54] sm:$0xf] %vm2563_vm1, %v3159_v9  ;;  %2657 = vst.msk [vmem:[%s3778_s16 + $0x174] sm:$0xf] %vm2563_vm1, %v3231_v10  ;;  %v1375_v13 = vadd.f32 %v3761_v58, %v1374_v11  ;;  %v1376_v14 = vpop.f32.mrb[45].mxu0  ;;  %v1663_v15 = vadd.f32 %v3761_v58, %v1662_v12  ;;  %v1664_v16 = vpop.f32.mrb[45].mxu1 }
 0x157   : > { %v1377_v17 = vpop.f32.mrb[46].mxu0  ;;  %v1665_v18 = vpop.f32.mrb[46].mxu1 }
 0x158   : > { %v1875_v19 = vmax.f32 %v1375_v13, 0.0  ;;  %v1378_v20 = vadd.f32 %v3761_v58, %v1377_v17  ;;  %v1379_v21 = vpop.f32.mrb[47].mxu0  ;;  %v1947_v22 = vmax.f32 %v1663_v15, 0.0  ;;  %v1666_v23 = vadd.f32 %v3761_v58, %v1665_v18  ;;  %v1667_v24 = vpop.f32.mrb[47].mxu1 }
 0x15a   : > { %v3160_v25 = vpack.c.bf16 %v1875_v19, %v1875_v19  ;;  %v1876_v26 = vmax.f32 %v1378_v20, 0.0  ;;  %v3232_v27 = vpack.c.bf16 %v1947_v22, %v1947_v22  ;;  %v1948_v28 = vmax.f32 %v1666_v23, 0.0 }
 0x15c   : > { %2586 = vst.msk [vmem:[%s3778_s16 + $0x58] sm:$0xf] %vm2563_vm1, %v3160_v25  ;;  %v3161_v29 = vpack.c.bf16 %v1876_v26, %v1876_v26  ;;  %2658 = vst.msk [vmem:[%s3778_s16 + $0x178] sm:$0xf] %vm2563_vm1, %v3232_v27  ;;  %v3233_v30 = vpack.c.bf16 %v1948_v28, %v1948_v28 }
 0x15d   : > { %v1382_v31 = vpop.f32.mrb[48].mxu0  ;;  %v1670_v32 = vpop.f32.mrb[48].mxu1 }
 0x15e   : > { %2587 = vst.msk [vmem:[%s3778_s16 + $0x5c] sm:$0xf] %vm2563_vm1, %v3161_v29  ;;  %2659 = vst.msk [vmem:[%s3778_s16 + $0x17c] sm:$0xf] %vm2563_vm1, %v3233_v30  ;;  %v1383_v33 = vadd.f32 %v3761_v58, %v1382_v31  ;;  %v1384_v34 = vpop.f32.mrb[49].mxu0  ;;  %v1671_v35 = vadd.f32 %v3761_v58, %v1670_v32  ;;  %v1672_v36 = vpop.f32.mrb[49].mxu1 }
 0x15f   : > { %v1385_v37 = vpop.f32.mrb[50].mxu0  ;;  %v1673_v38 = vpop.f32.mrb[50].mxu1 }
 0x160   : > { %v1877_v39 = vmax.f32 %v1383_v33, 0.0  ;;  %v1386_v40 = vadd.f32 %v3761_v58, %v1385_v37  ;;  %v1387_v41 = vpop.f32.mrb[51].mxu0  ;;  %v1949_v42 = vmax.f32 %v1671_v35, 0.0  ;;  %v1674_v43 = vadd.f32 %v3761_v58, %v1673_v38  ;;  %v1675_v44 = vpop.f32.mrb[51].mxu1 }
 0x162   : > { %v3162_v45 = vpack.c.bf16 %v1877_v39, %v1877_v39  ;;  %v1878_v46 = vmax.f32 %v1386_v40, 0.0  ;;  %v3234_v47 = vpack.c.bf16 %v1949_v42, %v1949_v42  ;;  %v1950_v48 = vmax.f32 %v1674_v43, 0.0 }
 0x164   : > { %2588 = vst.msk [vmem:[%s3778_s16 + $0x60] sm:$0xf] %vm2563_vm1, %v3162_v45  ;;  %v3163_v49 = vpack.c.bf16 %v1878_v46, %v1878_v46  ;;  %2660 = vst.msk [vmem:[%s3778_s16 + $0x180] sm:$0xf] %vm2563_vm1, %v3234_v47  ;;  %v3235_v50 = vpack.c.bf16 %v1950_v48, %v1950_v48 }
 0x165   : > { %v1390_v51 = vpop.f32.mrb[52].mxu0  ;;  %v1678_v52 = vpop.f32.mrb[52].mxu1 }
 0x166   : > { %2589 = vst.msk [vmem:[%s3778_s16 + $0x64] sm:$0xf] %vm2563_vm1, %v3163_v49  ;;  %2661 = vst.msk [vmem:[%s3778_s16 + $0x184] sm:$0xf] %vm2563_vm1, %v3235_v50  ;;  %v1391_v53 = vadd.f32 %v3761_v58, %v1390_v51  ;;  %v1392_v54 = vpop.f32.mrb[53].mxu0  ;;  %v1679_v55 = vadd.f32 %v3761_v58, %v1678_v52  ;;  %v1680_v56 = vpop.f32.mrb[53].mxu1 }
 0x167   : > { %v1393_v57 = vpop.f32.mrb[54].mxu0  ;;  %v1681_v59 = vpop.f32.mrb[54].mxu1 }
 0x168   : > { %v1879_v60 = vmax.f32 %v1391_v53, 0.0  ;;  %v1394_v61 = vadd.f32 %v3761_v58, %v1393_v57  ;;  %v1395_v62 = vpop.f32.mrb[55].mxu0  ;;  %v1951_v63 = vmax.f32 %v1679_v55, 0.0  ;;  %v1682_v0 = vadd.f32 %v3761_v58, %v1681_v59  ;;  %v1683_v1 = vpop.f32.mrb[55].mxu1 }
 0x16a   : > { %v3164_v2 = vpack.c.bf16 %v1879_v60, %v1879_v60  ;;  %v1880_v3 = vmax.f32 %v1394_v61, 0.0  ;;  %v3236_v4 = vpack.c.bf16 %v1951_v63, %v1951_v63  ;;  %v1952_v5 = vmax.f32 %v1682_v0, 0.0 }
 0x16c   : > { %2590 = vst.msk [vmem:[%s3778_s16 + $0x68] sm:$0xf] %vm2563_vm1, %v3164_v2  ;;  %v3165_v6 = vpack.c.bf16 %v1880_v3, %v1880_v3  ;;  %2662 = vst.msk [vmem:[%s3778_s16 + $0x188] sm:$0xf] %vm2563_vm1, %v3236_v4  ;;  %v3237_v7 = vpack.c.bf16 %v1952_v5, %v1952_v5 }
 0x16d   : > { %v1398_v8 = vpop.f32.mrb[56].mxu0  ;;  %v1686_v9 = vpop.f32.mrb[56].mxu1 }
 0x16e   : > { %2591 = vst.msk [vmem:[%s3778_s16 + $0x6c] sm:$0xf] %vm2563_vm1, %v3165_v6  ;;  %2663 = vst.msk [vmem:[%s3778_s16 + $0x18c] sm:$0xf] %vm2563_vm1, %v3237_v7  ;;  %v1399_v10 = vadd.f32 %v3761_v58, %v1398_v8  ;;  %v1400_v11 = vpop.f32.mrb[57].mxu0  ;;  %v1687_v12 = vadd.f32 %v3761_v58, %v1686_v9  ;;  %v1688_v13 = vpop.f32.mrb[57].mxu1 }
 0x16f   : > { %v1401_v14 = vpop.f32.mrb[58].mxu0  ;;  %v1689_v15 = vpop.f32.mrb[58].mxu1 }
 0x170   : > { %v1881_v16 = vmax.f32 %v1399_v10, 0.0  ;;  %v1402_v17 = vadd.f32 %v3761_v58, %v1401_v14  ;;  %v1403_v18 = vpop.f32.mrb[59].mxu0  ;;  %v1953_v19 = vmax.f32 %v1687_v12, 0.0  ;;  %v1690_v20 = vadd.f32 %v3761_v58, %v1689_v15  ;;  %v1691_v21 = vpop.f32.mrb[59].mxu1 }
 0x172   : > { %v3166_v22 = vpack.c.bf16 %v1881_v16, %v1881_v16  ;;  %v1882_v23 = vmax.f32 %v1402_v17, 0.0  ;;  %v3238_v24 = vpack.c.bf16 %v1953_v19, %v1953_v19  ;;  %v1954_v25 = vmax.f32 %v1690_v20, 0.0 }
 0x174   : > { %2592 = vst.msk [vmem:[%s3778_s16 + $0x70] sm:$0xf] %vm2563_vm1, %v3166_v22  ;;  %v3167_v26 = vpack.c.bf16 %v1882_v23, %v1882_v23  ;;  %2664 = vst.msk [vmem:[%s3778_s16 + $0x190] sm:$0xf] %vm2563_vm1, %v3238_v24  ;;  %v3239_v27 = vpack.c.bf16 %v1954_v25, %v1954_v25 }
 0x175   : > { %v1406_v28 = vpop.f32.mrb[60].mxu0  ;;  %v1694_v29 = vpop.f32.mrb[60].mxu1 }
 0x176   : > { %2593 = vst.msk [vmem:[%s3778_s16 + $0x74] sm:$0xf] %vm2563_vm1, %v3167_v26  ;;  %2665 = vst.msk [vmem:[%s3778_s16 + $0x194] sm:$0xf] %vm2563_vm1, %v3239_v27  ;;  %v1407_v30 = vadd.f32 %v3761_v58, %v1406_v28  ;;  %v1408_v31 = vpop.f32.mrb[61].mxu0  ;;  %v1695_v32 = vadd.f32 %v3761_v58, %v1694_v29  ;;  %v1696_v33 = vpop.f32.mrb[61].mxu1 }
 0x177   : > { %v1409_v34 = vpop.f32.mrb[62].mxu0  ;;  %v1697_v35 = vpop.f32.mrb[62].mxu1 }
 0x178   : > { %v1883_v36 = vmax.f32 %v1407_v30, 0.0  ;;  %v1410_v37 = vadd.f32 %v3761_v58, %v1409_v34  ;;  %v1411_v38 = vpop.f32.mrb[63].mxu0  ;;  %v1955_v39 = vmax.f32 %v1695_v32, 0.0  ;;  %v1698_v40 = vadd.f32 %v3761_v58, %v1697_v35  ;;  %v1699_v41 = vpop.f32.mrb[63].mxu1 }
 0x17a   : > { %v3168_v42 = vpack.c.bf16 %v1883_v36, %v1883_v36  ;;  %v1884_v43 = vmax.f32 %v1410_v37, 0.0  ;;  %v3240_v44 = vpack.c.bf16 %v1955_v39, %v1955_v39  ;;  %v1956_v45 = vmax.f32 %v1698_v40, 0.0 }
 0x17c   : > { %2594 = vst.msk [vmem:[%s3778_s16 + $0x78] sm:$0xf] %vm2563_vm1, %v3168_v42  ;;  %v3169_v46 = vpack.c.bf16 %v1884_v43, %v1884_v43  ;;  %2666 = vst.msk [vmem:[%s3778_s16 + $0x198] sm:$0xf] %vm2563_vm1, %v3240_v44  ;;  %v3241_v47 = vpack.c.bf16 %v1956_v45, %v1956_v45 }
 0x17d   : > { %v1414_v48 = vpop.f32.mrb[64].mxu0  ;;  %v1702_v49 = vpop.f32.mrb[64].mxu1 }
 0x17e   : > { %2595 = vst.msk [vmem:[%s3778_s16 + $0x7c] sm:$0xf] %vm2563_vm1, %v3169_v46  ;;  %2667 = vst.msk [vmem:[%s3778_s16 + $0x19c] sm:$0xf] %vm2563_vm1, %v3241_v47  ;;  %v1415_v50 = vadd.f32 %v3761_v58, %v1414_v48  ;;  %v1416_v51 = vpop.f32.mrb[65].mxu0  ;;  %v1703_v52 = vadd.f32 %v3761_v58, %v1702_v49  ;;  %v1704_v53 = vpop.f32.mrb[65].mxu1 }
 0x17f   : > { %v1417_v54 = vpop.f32.mrb[66].mxu0  ;;  %v1705_v55 = vpop.f32.mrb[66].mxu1 }
 0x180   : > { %v1885_v56 = vmax.f32 %v1415_v50, 0.0  ;;  %v1418_v57 = vadd.f32 %v3761_v58, %v1417_v54  ;;  %v1419_v59 = vpop.f32.mrb[67].mxu0  ;;  %v1957_v60 = vmax.f32 %v1703_v52, 0.0  ;;  %v1706_v61 = vadd.f32 %v3761_v58, %v1705_v55  ;;  %v1707_v62 = vpop.f32.mrb[67].mxu1 }
 0x182   : > { %v3170_v63 = vpack.c.bf16 %v1885_v56, %v1885_v56  ;;  %v1886_v0 = vmax.f32 %v1418_v57, 0.0  ;;  %v3242_v1 = vpack.c.bf16 %v1957_v60, %v1957_v60  ;;  %v1958_v2 = vmax.f32 %v1706_v61, 0.0 }
 0x184   : > { %2596 = vst.msk [vmem:[%s3778_s16 + $0x80] sm:$0xf] %vm2563_vm1, %v3170_v63  ;;  %v3171_v3 = vpack.c.bf16 %v1886_v0, %v1886_v0  ;;  %2668 = vst.msk [vmem:[%s3778_s16 + $0x1a0] sm:$0xf] %vm2563_vm1, %v3242_v1  ;;  %v3243_v4 = vpack.c.bf16 %v1958_v2, %v1958_v2 }
 0x185   : > { %v1422_v5 = vpop.f32.mrb[68].mxu0  ;;  %v1710_v6 = vpop.f32.mrb[68].mxu1 }
 0x186   : > { %2597 = vst.msk [vmem:[%s3778_s16 + $0x84] sm:$0xf] %vm2563_vm1, %v3171_v3  ;;  %2669 = vst.msk [vmem:[%s3778_s16 + $0x1a4] sm:$0xf] %vm2563_vm1, %v3243_v4  ;;  %v1423_v7 = vadd.f32 %v3761_v58, %v1422_v5  ;;  %v1424_v8 = vpop.f32.mrb[69].mxu0  ;;  %v1711_v9 = vadd.f32 %v3761_v58, %v1710_v6  ;;  %v1712_v10 = vpop.f32.mrb[69].mxu1 }
 0x187   : > { %v1425_v11 = vpop.f32.mrb[70].mxu0  ;;  %v1713_v12 = vpop.f32.mrb[70].mxu1 }
 0x188   : > { %v1887_v13 = vmax.f32 %v1423_v7, 0.0  ;;  %v1426_v14 = vadd.f32 %v3761_v58, %v1425_v11  ;;  %v1427_v15 = vpop.f32.mrb[71].mxu0  ;;  %v1959_v16 = vmax.f32 %v1711_v9, 0.0  ;;  %v1714_v17 = vadd.f32 %v3761_v58, %v1713_v12  ;;  %v1715_v18 = vpop.f32.mrb[71].mxu1  ;;  %v4045_v58 = vld [vmem:[%s4262_s2] ss:$0 sm:$0xff] }
 0x18a   : > { %v3172_v19 = vpack.c.bf16 %v1887_v13, %v1887_v13  ;;  %v1888_v20 = vmax.f32 %v1426_v14, 0.0  ;;  %v3244_v21 = vpack.c.bf16 %v1959_v16, %v1959_v16  ;;  %v1960_v22 = vmax.f32 %v1714_v17, 0.0 }
 0x18c   : > { %2598 = vst.msk [vmem:[%s3778_s16 + $0x88] sm:$0xf] %vm2563_vm1, %v3172_v19  ;;  %v3173_v23 = vpack.c.bf16 %v1888_v20, %v1888_v20  ;;  %2670 = vst.msk [vmem:[%s3778_s16 + $0x1a8] sm:$0xf] %vm2563_vm1, %v3244_v21  ;;  %v3245_v24 = vpack.c.bf16 %v1960_v22, %v1960_v22 }
 0x18d   : > { %v1430_v25 = vpop.f32.mrb[72].mxu0  ;;  %v1718_v26 = vpop.f32.mrb[72].mxu1 }
 0x18e   : > { %2599 = vst.msk [vmem:[%s3778_s16 + $0x8c] sm:$0xf] %vm2563_vm1, %v3173_v23  ;;  %2671 = vst.msk [vmem:[%s3778_s16 + $0x1ac] sm:$0xf] %vm2563_vm1, %v3245_v24  ;;  %v1431_v27 = vadd.f32 %v4045_v58, %v1430_v25  ;;  %v1432_v28 = vpop.f32.mrb[73].mxu0  ;;  %v1719_v29 = vadd.f32 %v4045_v58, %v1718_v26  ;;  %v1720_v30 = vpop.f32.mrb[73].mxu1 }
 0x18f   : > { %v1433_v31 = vpop.f32.mrb[74].mxu0  ;;  %v1721_v32 = vpop.f32.mrb[74].mxu1 }
 0x190   : > { %v1889_v33 = vmax.f32 %v1431_v27, 0.0  ;;  %v1434_v34 = vadd.f32 %v4045_v58, %v1433_v31  ;;  %v1435_v35 = vpop.f32.mrb[75].mxu0  ;;  %v1961_v36 = vmax.f32 %v1719_v29, 0.0  ;;  %v1722_v37 = vadd.f32 %v4045_v58, %v1721_v32  ;;  %v1723_v38 = vpop.f32.mrb[75].mxu1 }
 0x192   : > { %v3174_v39 = vpack.c.bf16 %v1889_v33, %v1889_v33  ;;  %v1890_v40 = vmax.f32 %v1434_v34, 0.0  ;;  %v3246_v41 = vpack.c.bf16 %v1961_v36, %v1961_v36  ;;  %v1962_v42 = vmax.f32 %v1722_v37, 0.0 }
 0x194   : > { %2600 = vst.msk [vmem:[%s3778_s16 + $0x90] sm:$0xf] %vm2563_vm1, %v3174_v39  ;;  %v3175_v43 = vpack.c.bf16 %v1890_v40, %v1890_v40  ;;  %2672 = vst.msk [vmem:[%s3778_s16 + $0x1b0] sm:$0xf] %vm2563_vm1, %v3246_v41  ;;  %v3247_v44 = vpack.c.bf16 %v1962_v42, %v1962_v42 }
 0x195   : > { %v1438_v45 = vpop.f32.mrb[76].mxu0  ;;  %v1726_v46 = vpop.f32.mrb[76].mxu1 }
 0x196   : > { %2601 = vst.msk [vmem:[%s3778_s16 + $0x94] sm:$0xf] %vm2563_vm1, %v3175_v43  ;;  %2673 = vst.msk [vmem:[%s3778_s16 + $0x1b4] sm:$0xf] %vm2563_vm1, %v3247_v44  ;;  %v1439_v47 = vadd.f32 %v4045_v58, %v1438_v45  ;;  %v1440_v48 = vpop.f32.mrb[77].mxu0  ;;  %v1727_v49 = vadd.f32 %v4045_v58, %v1726_v46  ;;  %v1728_v50 = vpop.f32.mrb[77].mxu1 }
 0x197   : > { %v1441_v51 = vpop.f32.mrb[78].mxu0  ;;  %v1729_v52 = vpop.f32.mrb[78].mxu1 }
 0x198   : > { %v1891_v53 = vmax.f32 %v1439_v47, 0.0  ;;  %v1442_v54 = vadd.f32 %v4045_v58, %v1441_v51  ;;  %v1443_v55 = vpop.f32.mrb[79].mxu0  ;;  %v1963_v56 = vmax.f32 %v1727_v49, 0.0  ;;  %v1730_v57 = vadd.f32 %v4045_v58, %v1729_v52  ;;  %v1731_v59 = vpop.f32.mrb[79].mxu1 }
 0x19a   : > { %v3176_v60 = vpack.c.bf16 %v1891_v53, %v1891_v53  ;;  %v1892_v61 = vmax.f32 %v1442_v54, 0.0  ;;  %v3248_v62 = vpack.c.bf16 %v1963_v56, %v1963_v56  ;;  %v1964_v63 = vmax.f32 %v1730_v57, 0.0 }
 0x19c   : > { %2602 = vst.msk [vmem:[%s3778_s16 + $0x98] sm:$0xf] %vm2563_vm1, %v3176_v60  ;;  %v3177_v0 = vpack.c.bf16 %v1892_v61, %v1892_v61  ;;  %2674 = vst.msk [vmem:[%s3778_s16 + $0x1b8] sm:$0xf] %vm2563_vm1, %v3248_v62  ;;  %v3249_v1 = vpack.c.bf16 %v1964_v63, %v1964_v63 }
 0x19d   : > { %v1446_v2 = vpop.f32.mrb[80].mxu0  ;;  %v1734_v3 = vpop.f32.mrb[80].mxu1 }
 0x19e   : > { %2603 = vst.msk [vmem:[%s3778_s16 + $0x9c] sm:$0xf] %vm2563_vm1, %v3177_v0  ;;  %2675 = vst.msk [vmem:[%s3778_s16 + $0x1bc] sm:$0xf] %vm2563_vm1, %v3249_v1  ;;  %v1447_v4 = vadd.f32 %v4045_v58, %v1446_v2  ;;  %v1448_v5 = vpop.f32.mrb[81].mxu0  ;;  %v1735_v6 = vadd.f32 %v4045_v58, %v1734_v3  ;;  %v1736_v7 = vpop.f32.mrb[81].mxu1 }
 0x19f   : > { %v1449_v8 = vpop.f32.mrb[82].mxu0  ;;  %v1737_v9 = vpop.f32.mrb[82].mxu1 }
 0x1a0   : > { %v1893_v10 = vmax.f32 %v1447_v4, 0.0  ;;  %v1450_v11 = vadd.f32 %v4045_v58, %v1449_v8  ;;  %v1451_v12 = vpop.f32.mrb[83].mxu0  ;;  %v1965_v13 = vmax.f32 %v1735_v6, 0.0  ;;  %v1738_v14 = vadd.f32 %v4045_v58, %v1737_v9  ;;  %v1739_v15 = vpop.f32.mrb[83].mxu1 }
 0x1a2   : > { %v3178_v16 = vpack.c.bf16 %v1893_v10, %v1893_v10  ;;  %v1894_v17 = vmax.f32 %v1450_v11, 0.0  ;;  %v3250_v18 = vpack.c.bf16 %v1965_v13, %v1965_v13  ;;  %v1966_v19 = vmax.f32 %v1738_v14, 0.0 }
 0x1a4   : > { %2604 = vst.msk [vmem:[%s3778_s16 + $0xa0] sm:$0xf] %vm2563_vm1, %v3178_v16  ;;  %v3179_v20 = vpack.c.bf16 %v1894_v17, %v1894_v17  ;;  %2676 = vst.msk [vmem:[%s3778_s16 + $0x1c0] sm:$0xf] %vm2563_vm1, %v3250_v18  ;;  %v3251_v21 = vpack.c.bf16 %v1966_v19, %v1966_v19 }
 0x1a5   : > { %v1454_v22 = vpop.f32.mrb[84].mxu0  ;;  %v1742_v23 = vpop.f32.mrb[84].mxu1 }
 0x1a6   : > { %2605 = vst.msk [vmem:[%s3778_s16 + $0xa4] sm:$0xf] %vm2563_vm1, %v3179_v20  ;;  %2677 = vst.msk [vmem:[%s3778_s16 + $0x1c4] sm:$0xf] %vm2563_vm1, %v3251_v21  ;;  %v1455_v24 = vadd.f32 %v4045_v58, %v1454_v22  ;;  %v1456_v25 = vpop.f32.mrb[85].mxu0  ;;  %v1743_v26 = vadd.f32 %v4045_v58, %v1742_v23  ;;  %v1744_v27 = vpop.f32.mrb[85].mxu1 }
 0x1a7   : > { %v1457_v28 = vpop.f32.mrb[86].mxu0  ;;  %v1745_v29 = vpop.f32.mrb[86].mxu1 }
 0x1a8   : > { %v1895_v30 = vmax.f32 %v1455_v24, 0.0  ;;  %v1458_v31 = vadd.f32 %v4045_v58, %v1457_v28  ;;  %v1459_v32 = vpop.f32.mrb[87].mxu0  ;;  %v1967_v33 = vmax.f32 %v1743_v26, 0.0  ;;  %v1746_v34 = vadd.f32 %v4045_v58, %v1745_v29  ;;  %v1747_v35 = vpop.f32.mrb[87].mxu1 }
 0x1aa   : > { %v3180_v36 = vpack.c.bf16 %v1895_v30, %v1895_v30  ;;  %v1896_v37 = vmax.f32 %v1458_v31, 0.0  ;;  %v3252_v38 = vpack.c.bf16 %v1967_v33, %v1967_v33  ;;  %v1968_v39 = vmax.f32 %v1746_v34, 0.0 }
 0x1ac   : > { %2606 = vst.msk [vmem:[%s3778_s16 + $0xa8] sm:$0xf] %vm2563_vm1, %v3180_v36  ;;  %v3181_v40 = vpack.c.bf16 %v1896_v37, %v1896_v37  ;;  %2678 = vst.msk [vmem:[%s3778_s16 + $0x1c8] sm:$0xf] %vm2563_vm1, %v3252_v38  ;;  %v3253_v41 = vpack.c.bf16 %v1968_v39, %v1968_v39 }
 0x1ad   : > { %v1462_v42 = vpop.f32.mrb[88].mxu0  ;;  %v1750_v43 = vpop.f32.mrb[88].mxu1 }
 0x1ae   : > { %2607 = vst.msk [vmem:[%s3778_s16 + $0xac] sm:$0xf] %vm2563_vm1, %v3181_v40  ;;  %2679 = vst.msk [vmem:[%s3778_s16 + $0x1cc] sm:$0xf] %vm2563_vm1, %v3253_v41  ;;  %v1463_v44 = vadd.f32 %v4045_v58, %v1462_v42  ;;  %v1464_v45 = vpop.f32.mrb[89].mxu0  ;;  %v1751_v46 = vadd.f32 %v4045_v58, %v1750_v43  ;;  %v1752_v47 = vpop.f32.mrb[89].mxu1 }
 0x1af   : > { %v1465_v48 = vpop.f32.mrb[90].mxu0  ;;  %v1753_v49 = vpop.f32.mrb[90].mxu1 }
 0x1b0   : > { %v1897_v50 = vmax.f32 %v1463_v44, 0.0  ;;  %v1466_v51 = vadd.f32 %v4045_v58, %v1465_v48  ;;  %v1467_v52 = vpop.f32.mrb[91].mxu0  ;;  %v1969_v53 = vmax.f32 %v1751_v46, 0.0  ;;  %v1754_v54 = vadd.f32 %v4045_v58, %v1753_v49  ;;  %v1755_v55 = vpop.f32.mrb[91].mxu1 }
 0x1b2   : > { %v3182_v56 = vpack.c.bf16 %v1897_v50, %v1897_v50  ;;  %v1898_v57 = vmax.f32 %v1466_v51, 0.0  ;;  %v3254_v59 = vpack.c.bf16 %v1969_v53, %v1969_v53  ;;  %v1970_v60 = vmax.f32 %v1754_v54, 0.0 }
 0x1b4   : > { %2608 = vst.msk [vmem:[%s3778_s16 + $0xb0] sm:$0xf] %vm2563_vm1, %v3182_v56  ;;  %v3183_v61 = vpack.c.bf16 %v1898_v57, %v1898_v57  ;;  %2680 = vst.msk [vmem:[%s3778_s16 + $0x1d0] sm:$0xf] %vm2563_vm1, %v3254_v59  ;;  %v3255_v62 = vpack.c.bf16 %v1970_v60, %v1970_v60 }
 0x1b5   : > { %v1470_v63 = vpop.f32.mrb[92].mxu0  ;;  %v1758_v0 = vpop.f32.mrb[92].mxu1 }
 0x1b6   : > { %2609 = vst.msk [vmem:[%s3778_s16 + $0xb4] sm:$0xf] %vm2563_vm1, %v3183_v61  ;;  %2681 = vst.msk [vmem:[%s3778_s16 + $0x1d4] sm:$0xf] %vm2563_vm1, %v3255_v62  ;;  %v1471_v1 = vadd.f32 %v4045_v58, %v1470_v63  ;;  %v1472_v2 = vpop.f32.mrb[93].mxu0  ;;  %v1759_v3 = vadd.f32 %v4045_v58, %v1758_v0  ;;  %v1760_v4 = vpop.f32.mrb[93].mxu1 }
 0x1b7   : > { %v1473_v5 = vpop.f32.mrb[94].mxu0  ;;  %v1761_v6 = vpop.f32.mrb[94].mxu1 }
 0x1b8   : > { %v1899_v7 = vmax.f32 %v1471_v1, 0.0  ;;  %v1474_v8 = vadd.f32 %v4045_v58, %v1473_v5  ;;  %v1475_v9 = vpop.f32.mrb[95].mxu0  ;;  %v1971_v10 = vmax.f32 %v1759_v3, 0.0  ;;  %v1762_v11 = vadd.f32 %v4045_v58, %v1761_v6  ;;  %v1763_v12 = vpop.f32.mrb[95].mxu1 }
 0x1ba   : > { %v3184_v13 = vpack.c.bf16 %v1899_v7, %v1899_v7  ;;  %v1900_v14 = vmax.f32 %v1474_v8, 0.0  ;;  %v3256_v15 = vpack.c.bf16 %v1971_v10, %v1971_v10  ;;  %v1972_v16 = vmax.f32 %v1762_v11, 0.0 }
 0x1bc   : > { %2610 = vst.msk [vmem:[%s3778_s16 + $0xb8] sm:$0xf] %vm2563_vm1, %v3184_v13  ;;  %v3185_v17 = vpack.c.bf16 %v1900_v14, %v1900_v14  ;;  %2682 = vst.msk [vmem:[%s3778_s16 + $0x1d8] sm:$0xf] %vm2563_vm1, %v3256_v15  ;;  %v3257_v18 = vpack.c.bf16 %v1972_v16, %v1972_v16 }
 0x1bd   : > { %v1478_v19 = vpop.f32.mrb[96].mxu0  ;;  %v1766_v20 = vpop.f32.mrb[96].mxu1 }
 0x1be   : > { %2611 = vst.msk [vmem:[%s3778_s16 + $0xbc] sm:$0xf] %vm2563_vm1, %v3185_v17  ;;  %2683 = vst.msk [vmem:[%s3778_s16 + $0x1dc] sm:$0xf] %vm2563_vm1, %v3257_v18  ;;  %v1479_v21 = vadd.f32 %v4045_v58, %v1478_v19  ;;  %v1480_v22 = vpop.f32.mrb[97].mxu0  ;;  %v1767_v23 = vadd.f32 %v4045_v58, %v1766_v20  ;;  %v1768_v24 = vpop.f32.mrb[97].mxu1 }
 0x1bf   : > { %v1481_v25 = vpop.f32.mrb[98].mxu0  ;;  %v1769_v26 = vpop.f32.mrb[98].mxu1 }
 0x1c0   : > { %v1901_v27 = vmax.f32 %v1479_v21, 0.0  ;;  %v1482_v28 = vadd.f32 %v4045_v58, %v1481_v25  ;;  %v1483_v29 = vpop.f32.mrb[99].mxu0  ;;  %v1973_v30 = vmax.f32 %v1767_v23, 0.0  ;;  %v1770_v31 = vadd.f32 %v4045_v58, %v1769_v26  ;;  %v1771_v32 = vpop.f32.mrb[99].mxu1 }
 0x1c2   : > { %v3186_v33 = vpack.c.bf16 %v1901_v27, %v1901_v27  ;;  %v1902_v34 = vmax.f32 %v1482_v28, 0.0  ;;  %v3258_v35 = vpack.c.bf16 %v1973_v30, %v1973_v30  ;;  %v1974_v36 = vmax.f32 %v1770_v31, 0.0 }
 0x1c4   : > { %2612 = vst.msk [vmem:[%s3778_s16 + $0xc0] sm:$0xf] %vm2563_vm1, %v3186_v33  ;;  %v3187_v37 = vpack.c.bf16 %v1902_v34, %v1902_v34  ;;  %2684 = vst.msk [vmem:[%s3778_s16 + $0x1e0] sm:$0xf] %vm2563_vm1, %v3258_v35  ;;  %v3259_v38 = vpack.c.bf16 %v1974_v36, %v1974_v36 }
 0x1c5   : > { %v1486_v39 = vpop.f32.mrb[100].mxu0  ;;  %v1774_v40 = vpop.f32.mrb[100].mxu1 }
 0x1c6   : > { %2613 = vst.msk [vmem:[%s3778_s16 + $0xc4] sm:$0xf] %vm2563_vm1, %v3187_v37  ;;  %2685 = vst.msk [vmem:[%s3778_s16 + $0x1e4] sm:$0xf] %vm2563_vm1, %v3259_v38  ;;  %v1487_v41 = vadd.f32 %v4045_v58, %v1486_v39  ;;  %v1488_v42 = vpop.f32.mrb[101].mxu0  ;;  %v1775_v43 = vadd.f32 %v4045_v58, %v1774_v40  ;;  %v1776_v44 = vpop.f32.mrb[101].mxu1 }
 0x1c7   : > { %v1489_v45 = vpop.f32.mrb[102].mxu0  ;;  %v1777_v46 = vpop.f32.mrb[102].mxu1 }
 0x1c8   : > { %v1903_v47 = vmax.f32 %v1487_v41, 0.0  ;;  %v1490_v48 = vadd.f32 %v4045_v58, %v1489_v45  ;;  %v1491_v49 = vpop.f32.mrb[103].mxu0  ;;  %v1975_v50 = vmax.f32 %v1775_v43, 0.0  ;;  %v1778_v51 = vadd.f32 %v4045_v58, %v1777_v46  ;;  %v1779_v52 = vpop.f32.mrb[103].mxu1 }
 0x1ca   : > { %v3188_v53 = vpack.c.bf16 %v1903_v47, %v1903_v47  ;;  %v1904_v54 = vmax.f32 %v1490_v48, 0.0  ;;  %v3260_v55 = vpack.c.bf16 %v1975_v50, %v1975_v50  ;;  %v1976_v56 = vmax.f32 %v1778_v51, 0.0 }
 0x1cc   : > { %2614 = vst.msk [vmem:[%s3778_s16 + $0xc8] sm:$0xf] %vm2563_vm1, %v3188_v53  ;;  %v3189_v57 = vpack.c.bf16 %v1904_v54, %v1904_v54  ;;  %2686 = vst.msk [vmem:[%s3778_s16 + $0x1e8] sm:$0xf] %vm2563_vm1, %v3260_v55  ;;  %v3261_v59 = vpack.c.bf16 %v1976_v56, %v1976_v56 }
 0x1cd   : > { %v1494_v60 = vpop.f32.mrb[104].mxu0  ;;  %v1782_v61 = vpop.f32.mrb[104].mxu1 }
 0x1ce   : > { %2615 = vst.msk [vmem:[%s3778_s16 + $0xcc] sm:$0xf] %vm2563_vm1, %v3189_v57  ;;  %2687 = vst.msk [vmem:[%s3778_s16 + $0x1ec] sm:$0xf] %vm2563_vm1, %v3261_v59  ;;  %v1495_v62 = vadd.f32 %v4045_v58, %v1494_v60  ;;  %v1496_v63 = vpop.f32.mrb[105].mxu0  ;;  %v1783_v0 = vadd.f32 %v4045_v58, %v1782_v61  ;;  %v1784_v1 = vpop.f32.mrb[105].mxu1 }
 0x1cf   : > { %v1497_v2 = vpop.f32.mrb[106].mxu0  ;;  %v1785_v3 = vpop.f32.mrb[106].mxu1 }
 0x1d0   : > { %v1905_v4 = vmax.f32 %v1495_v62, 0.0  ;;  %v1498_v5 = vadd.f32 %v4045_v58, %v1497_v2  ;;  %v1499_v6 = vpop.f32.mrb[107].mxu0  ;;  %v1977_v7 = vmax.f32 %v1783_v0, 0.0  ;;  %v1786_v8 = vadd.f32 %v4045_v58, %v1785_v3  ;;  %v1787_v9 = vpop.f32.mrb[107].mxu1 }
 0x1d2   : > { %v3190_v10 = vpack.c.bf16 %v1905_v4, %v1905_v4  ;;  %v1906_v11 = vmax.f32 %v1498_v5, 0.0  ;;  %v3262_v12 = vpack.c.bf16 %v1977_v7, %v1977_v7  ;;  %v1978_v13 = vmax.f32 %v1786_v8, 0.0 }
 0x1d4   : > { %2616 = vst.msk [vmem:[%s3778_s16 + $0xd0] sm:$0xf] %vm2563_vm1, %v3190_v10  ;;  %v3191_v14 = vpack.c.bf16 %v1906_v11, %v1906_v11  ;;  %2688 = vst.msk [vmem:[%s3778_s16 + $0x1f0] sm:$0xf] %vm2563_vm1, %v3262_v12  ;;  %v3263_v15 = vpack.c.bf16 %v1978_v13, %v1978_v13 }
 0x1d5   : > { %v1502_v16 = vpop.f32.mrb[108].mxu0  ;;  %v1790_v17 = vpop.f32.mrb[108].mxu1 }
 0x1d6   : > { %2617 = vst.msk [vmem:[%s3778_s16 + $0xd4] sm:$0xf] %vm2563_vm1, %v3191_v14  ;;  %2689 = vst.msk [vmem:[%s3778_s16 + $0x1f4] sm:$0xf] %vm2563_vm1, %v3263_v15  ;;  %v1503_v18 = vadd.f32 %v4045_v58, %v1502_v16  ;;  %v1504_v19 = vpop.f32.mrb[109].mxu0  ;;  %v1791_v20 = vadd.f32 %v4045_v58, %v1790_v17  ;;  %v1792_v21 = vpop.f32.mrb[109].mxu1 }
 0x1d7   : > { %v1505_v22 = vpop.f32.mrb[110].mxu0  ;;  %v1793_v23 = vpop.f32.mrb[110].mxu1 }
 0x1d8   : > { %v1907_v24 = vmax.f32 %v1503_v18, 0.0  ;;  %v1506_v25 = vadd.f32 %v4045_v58, %v1505_v22  ;;  %v1507_v26 = vpop.f32.mrb[111].mxu0  ;;  %v1979_v27 = vmax.f32 %v1791_v20, 0.0  ;;  %v1794_v28 = vadd.f32 %v4045_v58, %v1793_v23  ;;  %v1795_v29 = vpop.f32.mrb[111].mxu1 }
 0x1da   : > { %v3192_v30 = vpack.c.bf16 %v1907_v24, %v1907_v24  ;;  %v1908_v31 = vmax.f32 %v1506_v25, 0.0  ;;  %v3264_v32 = vpack.c.bf16 %v1979_v27, %v1979_v27  ;;  %v1980_v33 = vmax.f32 %v1794_v28, 0.0 }
 0x1dc   : > { %2618 = vst.msk [vmem:[%s3778_s16 + $0xd8] sm:$0xf] %vm2563_vm1, %v3192_v30  ;;  %v3193_v34 = vpack.c.bf16 %v1908_v31, %v1908_v31  ;;  %2690 = vst.msk [vmem:[%s3778_s16 + $0x1f8] sm:$0xf] %vm2563_vm1, %v3264_v32  ;;  %v3265_v35 = vpack.c.bf16 %v1980_v33, %v1980_v33 }
 0x1dd   : > { %v1510_v36 = vpop.f32.mrb[112].mxu0  ;;  %v1798_v37 = vpop.f32.mrb[112].mxu1 }
 0x1de   : > { %2619 = vst.msk [vmem:[%s3778_s16 + $0xdc] sm:$0xf] %vm2563_vm1, %v3193_v34  ;;  %2691 = vst.msk [vmem:[%s3778_s16 + $0x1fc] sm:$0xf] %vm2563_vm1, %v3265_v35  ;;  %v1511_v38 = vadd.f32 %v4045_v58, %v1510_v36  ;;  %v1512_v39 = vpop.f32.mrb[113].mxu0  ;;  %v1799_v40 = vadd.f32 %v4045_v58, %v1798_v37  ;;  %v1800_v41 = vpop.f32.mrb[113].mxu1 }
 0x1df   : > { %v1513_v42 = vpop.f32.mrb[114].mxu0  ;;  %v1801_v43 = vpop.f32.mrb[114].mxu1 }
 0x1e0   : > { %v1909_v44 = vmax.f32 %v1511_v38, 0.0  ;;  %v1514_v45 = vadd.f32 %v4045_v58, %v1513_v42  ;;  %v1515_v46 = vpop.f32.mrb[115].mxu0  ;;  %v1981_v47 = vmax.f32 %v1799_v40, 0.0  ;;  %v1802_v48 = vadd.f32 %v4045_v58, %v1801_v43  ;;  %v1803_v49 = vpop.f32.mrb[115].mxu1 }
 0x1e2   : > { %v3194_v50 = vpack.c.bf16 %v1909_v44, %v1909_v44  ;;  %v1910_v51 = vmax.f32 %v1514_v45, 0.0  ;;  %v3266_v52 = vpack.c.bf16 %v1981_v47, %v1981_v47  ;;  %v1982_v53 = vmax.f32 %v1802_v48, 0.0 }
 0x1e4   : > { %2620 = vst.msk [vmem:[%s3778_s16 + $0xe0] sm:$0xf] %vm2563_vm1, %v3194_v50  ;;  %v3195_v54 = vpack.c.bf16 %v1910_v51, %v1910_v51  ;;  %2692 = vst.msk [vmem:[%s3778_s16 + $0x200] sm:$0xf] %vm2563_vm1, %v3266_v52  ;;  %v3267_v55 = vpack.c.bf16 %v1982_v53, %v1982_v53 }
 0x1e5   : > { %v1518_v56 = vpop.f32.mrb[116].mxu0  ;;  %v1806_v57 = vpop.f32.mrb[116].mxu1 }
 0x1e6   : > { %2621 = vst.msk [vmem:[%s3778_s16 + $0xe4] sm:$0xf] %vm2563_vm1, %v3195_v54  ;;  %2693 = vst.msk [vmem:[%s3778_s16 + $0x204] sm:$0xf] %vm2563_vm1, %v3267_v55  ;;  %v1519_v59 = vadd.f32 %v4045_v58, %v1518_v56  ;;  %v1520_v60 = vpop.f32.mrb[117].mxu0  ;;  %v1807_v61 = vadd.f32 %v4045_v58, %v1806_v57  ;;  %v1808_v62 = vpop.f32.mrb[117].mxu1 }
 0x1e7   : > { %v1521_v63 = vpop.f32.mrb[118].mxu0  ;;  %v1809_v0 = vpop.f32.mrb[118].mxu1 }
 0x1e8   : > { %v1911_v1 = vmax.f32 %v1519_v59, 0.0  ;;  %v1522_v2 = vadd.f32 %v4045_v58, %v1521_v63  ;;  %v1523_v3 = vpop.f32.mrb[119].mxu0  ;;  %v1983_v4 = vmax.f32 %v1807_v61, 0.0  ;;  %v1810_v5 = vadd.f32 %v4045_v58, %v1809_v0  ;;  %v1811_v6 = vpop.f32.mrb[119].mxu1 }
 0x1ea   : > { %v3196_v7 = vpack.c.bf16 %v1911_v1, %v1911_v1  ;;  %v1912_v8 = vmax.f32 %v1522_v2, 0.0  ;;  %v3268_v9 = vpack.c.bf16 %v1983_v4, %v1983_v4  ;;  %v1984_v10 = vmax.f32 %v1810_v5, 0.0 }
 0x1ec   : > { %2622 = vst.msk [vmem:[%s3778_s16 + $0xe8] sm:$0xf] %vm2563_vm1, %v3196_v7  ;;  %v3197_v11 = vpack.c.bf16 %v1912_v8, %v1912_v8  ;;  %2694 = vst.msk [vmem:[%s3778_s16 + $0x208] sm:$0xf] %vm2563_vm1, %v3268_v9  ;;  %v3269_v12 = vpack.c.bf16 %v1984_v10, %v1984_v10 }
 0x1ed   : > { %v1526_v13 = vpop.f32.mrb[120].mxu0  ;;  %v1814_v14 = vpop.f32.mrb[120].mxu1 }
 0x1ee   : > { %2623 = vst.msk [vmem:[%s3778_s16 + $0xec] sm:$0xf] %vm2563_vm1, %v3197_v11  ;;  %2695 = vst.msk [vmem:[%s3778_s16 + $0x20c] sm:$0xf] %vm2563_vm1, %v3269_v12  ;;  %v1527_v15 = vadd.f32 %v4045_v58, %v1526_v13  ;;  %v1528_v16 = vpop.f32.mrb[121].mxu0  ;;  %v1815_v17 = vadd.f32 %v4045_v58, %v1814_v14  ;;  %v1816_v18 = vpop.f32.mrb[121].mxu1 }
 0x1ef   : > { %v1529_v19 = vpop.f32.mrb[122].mxu0  ;;  %v1817_v20 = vpop.f32.mrb[122].mxu1 }
 0x1f0   : > { %v1913_v21 = vmax.f32 %v1527_v15, 0.0  ;;  %v1530_v22 = vadd.f32 %v4045_v58, %v1529_v19  ;;  %v1531_v23 = vpop.f32.mrb[123].mxu0  ;;  %v1985_v24 = vmax.f32 %v1815_v17, 0.0  ;;  %v1818_v25 = vadd.f32 %v4045_v58, %v1817_v20  ;;  %v1819_v26 = vpop.f32.mrb[123].mxu1 }
 0x1f2   : > { %v3198_v27 = vpack.c.bf16 %v1913_v21, %v1913_v21  ;;  %v1914_v28 = vmax.f32 %v1530_v22, 0.0  ;;  %v3270_v29 = vpack.c.bf16 %v1985_v24, %v1985_v24  ;;  %v1986_v30 = vmax.f32 %v1818_v25, 0.0 }
 0x1f4   : > { %2624 = vst.msk [vmem:[%s3778_s16 + $0xf0] sm:$0xf] %vm2563_vm1, %v3198_v27  ;;  %v3199_v31 = vpack.c.bf16 %v1914_v28, %v1914_v28  ;;  %2696 = vst.msk [vmem:[%s3778_s16 + $0x210] sm:$0xf] %vm2563_vm1, %v3270_v29  ;;  %v3271_v32 = vpack.c.bf16 %v1986_v30, %v1986_v30 }
 0x1f5   : > { %v1534_v33 = vpop.f32.mrb[124].mxu0  ;;  %v1822_v34 = vpop.f32.mrb[124].mxu1 }
 0x1f6   : > { %2625 = vst.msk [vmem:[%s3778_s16 + $0xf4] sm:$0xf] %vm2563_vm1, %v3199_v31  ;;  %2697 = vst.msk [vmem:[%s3778_s16 + $0x214] sm:$0xf] %vm2563_vm1, %v3271_v32  ;;  %v1535_v35 = vadd.f32 %v4045_v58, %v1534_v33  ;;  %v1536_v36 = vpop.f32.mrb[125].mxu0  ;;  %v1823_v37 = vadd.f32 %v4045_v58, %v1822_v34  ;;  %v1824_v38 = vpop.f32.mrb[125].mxu1 }
 0x1f7   : > { %v1537_v39 = vpop.f32.mrb[126].mxu0  ;;  %v1825_v40 = vpop.f32.mrb[126].mxu1 }
 0x1f8   : > { %v1915_v41 = vmax.f32 %v1535_v35, 0.0  ;;  %v1538_v42 = vadd.f32 %v4045_v58, %v1537_v39  ;;  %v1539_v43 = vpop.f32.mrb[127].mxu0  ;;  %v1987_v44 = vmax.f32 %v1823_v37, 0.0  ;;  %v1826_v45 = vadd.f32 %v4045_v58, %v1825_v40  ;;  %v1827_v46 = vpop.f32.mrb[127].mxu1 }
 0x1fa   : > { %v3200_v47 = vpack.c.bf16 %v1915_v41, %v1915_v41  ;;  %v1916_v48 = vmax.f32 %v1538_v42, 0.0  ;;  %v3272_v49 = vpack.c.bf16 %v1987_v44, %v1987_v44  ;;  %v1988_v50 = vmax.f32 %v1826_v45, 0.0 }
 0x1fc   : > { %2626 = vst.msk [vmem:[%s3778_s16 + $0xf8] sm:$0xf] %vm2563_vm1, %v3200_v47  ;;  %v3201_v51 = vpack.c.bf16 %v1916_v48, %v1916_v48  ;;  %2698 = vst.msk [vmem:[%s3778_s16 + $0x218] sm:$0xf] %vm2563_vm1, %v3272_v49  ;;  %v3273_v52 = vpack.c.bf16 %v1988_v50, %v1988_v50 }
 0x1fd   : > { %v1542_v53 = vpop.f32.mrb[128].mxu0  ;;  %v1830_v54 = vpop.f32.mrb[128].mxu1 }
 0x1fe   : > { %2627 = vst.msk [vmem:[%s3778_s16 + $0xfc] sm:$0xf] %vm2563_vm1, %v3201_v51  ;;  %2699 = vst.msk [vmem:[%s3778_s16 + $0x21c] sm:$0xf] %vm2563_vm1, %v3273_v52  ;;  %v1543_v55 = vadd.f32 %v4045_v58, %v1542_v53  ;;  %v1544_v56 = vpop.f32.mrb[129].mxu0  ;;  %v1831_v57 = vadd.f32 %v4045_v58, %v1830_v54  ;;  %v1832_v59 = vpop.f32.mrb[129].mxu1 }
 0x1ff   : > { %v1545_v60 = vpop.f32.mrb[130].mxu0  ;;  %v1833_v61 = vpop.f32.mrb[130].mxu1 }
 0x200   : > { %v1917_v62 = vmax.f32 %v1543_v55, 0.0  ;;  %v1546_v63 = vadd.f32 %v4045_v58, %v1545_v60  ;;  %v1547_v0 = vpop.f32.mrb[131].mxu0  ;;  %v1989_v1 = vmax.f32 %v1831_v57, 0.0  ;;  %v1834_v2 = vadd.f32 %v4045_v58, %v1833_v61  ;;  %v1835_v3 = vpop.f32.mrb[131].mxu1 }
 0x202   : > { %v3202_v4 = vpack.c.bf16 %v1917_v62, %v1917_v62  ;;  %v1918_v5 = vmax.f32 %v1546_v63, 0.0  ;;  %v3274_v6 = vpack.c.bf16 %v1989_v1, %v1989_v1  ;;  %v1990_v7 = vmax.f32 %v1834_v2, 0.0 }
 0x204   : > { %2628 = vst.msk [vmem:[%s3778_s16 + $0x100] sm:$0xf] %vm2563_vm1, %v3202_v4  ;;  %v3203_v8 = vpack.c.bf16 %v1918_v5, %v1918_v5  ;;  %2700 = vst.msk [vmem:[%s3778_s16 + $0x220] sm:$0xf] %vm2563_vm1, %v3274_v6  ;;  %v3275_v9 = vpack.c.bf16 %v1990_v7, %v1990_v7 }
 0x205   : > { %v1550_v10 = vpop.f32.mrb[132].mxu0  ;;  %v1838_v11 = vpop.f32.mrb[132].mxu1 }
 0x206   : > { %2629 = vst.msk [vmem:[%s3778_s16 + $0x104] sm:$0xf] %vm2563_vm1, %v3203_v8  ;;  %2701 = vst.msk [vmem:[%s3778_s16 + $0x224] sm:$0xf] %vm2563_vm1, %v3275_v9  ;;  %v1551_v12 = vadd.f32 %v4045_v58, %v1550_v10  ;;  %v1552_v13 = vpop.f32.mrb[133].mxu0  ;;  %v1839_v14 = vadd.f32 %v4045_v58, %v1838_v11  ;;  %v1840_v15 = vpop.f32.mrb[133].mxu1 }
 0x207   : > { %v1553_v16 = vpop.f32.mrb[134].mxu0  ;;  %v1841_v17 = vpop.f32.mrb[134].mxu1 }
 0x208   : > { %v1919_v18 = vmax.f32 %v1551_v12, 0.0  ;;  %v1554_v19 = vadd.f32 %v4045_v58, %v1553_v16  ;;  %v1555_v20 = vpop.f32.mrb[135].mxu0  ;;  %v1991_v21 = vmax.f32 %v1839_v14, 0.0  ;;  %v1842_v22 = vadd.f32 %v4045_v58, %v1841_v17  ;;  %v1843_v23 = vpop.f32.mrb[135].mxu1 }
 0x20a   : > { %v3204_v24 = vpack.c.bf16 %v1919_v18, %v1919_v18  ;;  %v1920_v25 = vmax.f32 %v1554_v19, 0.0  ;;  %v3276_v26 = vpack.c.bf16 %v1991_v21, %v1991_v21  ;;  %v1992_v27 = vmax.f32 %v1842_v22, 0.0 }
 0x20c   : > { %2630 = vst.msk [vmem:[%s3778_s16 + $0x108] sm:$0xf] %vm2563_vm1, %v3204_v24  ;;  %v3205_v28 = vpack.c.bf16 %v1920_v25, %v1920_v25  ;;  %2702 = vst.msk [vmem:[%s3778_s16 + $0x228] sm:$0xf] %vm2563_vm1, %v3276_v26  ;;  %v3277_v29 = vpack.c.bf16 %v1992_v27, %v1992_v27 }
 0x20d   : > { %v1558_v30 = vpop.f32.mrb[136].mxu0  ;;  %v1846_v31 = vpop.f32.mrb[136].mxu1 }
 0x20e   : > { %2631 = vst.msk [vmem:[%s3778_s16 + $0x10c] sm:$0xf] %vm2563_vm1, %v3205_v28  ;;  %2703 = vst.msk [vmem:[%s3778_s16 + $0x22c] sm:$0xf] %vm2563_vm1, %v3277_v29  ;;  %v1559_v32 = vadd.f32 %v4045_v58, %v1558_v30  ;;  %v1560_v33 = vpop.f32.mrb[137].mxu0  ;;  %v1847_v34 = vadd.f32 %v4045_v58, %v1846_v31  ;;  %v1848_v35 = vpop.f32.mrb[137].mxu1 }
 0x20f   : > { %v1561_v36 = vpop.f32.mrb[138].mxu0  ;;  %v1849_v37 = vpop.f32.mrb[138].mxu1 }
 0x210   : > { %v1921_v38 = vmax.f32 %v1559_v32, 0.0  ;;  %v1562_v39 = vadd.f32 %v4045_v58, %v1561_v36  ;;  %v1563_v40 = vpop.f32.mrb[139].mxu0  ;;  %v1993_v41 = vmax.f32 %v1847_v34, 0.0  ;;  %v1850_v42 = vadd.f32 %v4045_v58, %v1849_v37  ;;  %v1851_v43 = vpop.f32.mrb[139].mxu1 }
 0x212   : > { %v3206_v44 = vpack.c.bf16 %v1921_v38, %v1921_v38  ;;  %v1922_v45 = vmax.f32 %v1562_v39, 0.0  ;;  %v3278_v46 = vpack.c.bf16 %v1993_v41, %v1993_v41  ;;  %v1994_v47 = vmax.f32 %v1850_v42, 0.0 }
 0x214   : > { %2632 = vst.msk [vmem:[%s3778_s16 + $0x110] sm:$0xf] %vm2563_vm1, %v3206_v44  ;;  %v3207_v48 = vpack.c.bf16 %v1922_v45, %v1922_v45  ;;  %2704 = vst.msk [vmem:[%s3778_s16 + $0x230] sm:$0xf] %vm2563_vm1, %v3278_v46  ;;  %v3279_v49 = vpack.c.bf16 %v1994_v47, %v1994_v47 }
 0x215   : > { %v1566_v50 = vpop.f32.mrb[140].mxu0 }
 0x216   : > { %2633 = vst.msk [vmem:[%s3778_s16 + $0x114] sm:$0xf] %vm2563_vm1, %v3207_v48  ;;  %2705 = vst.msk [vmem:[%s3778_s16 + $0x234] sm:$0xf] %vm2563_vm1, %v3279_v49  ;;  %v1567_v51 = vadd.f32 %v4045_v58, %v1566_v50  ;;  %v1568_v52 = vpop.f32.mrb[141].mxu0 }
 0x217   : > { %v1569_v53 = vpop.f32.mrb[142].mxu0 }
 0x218   : > { %v1923_v54 = vmax.f32 %v1567_v51, 0.0  ;;  %v1570_v55 = vadd.f32 %v4045_v58, %v1569_v53  ;;  %v1571_v56 = vpop.f32.mrb[143].mxu0 }
 0x21a   : > { %v3208_v57 = vpack.c.bf16 %v1923_v54, %v1923_v54  ;;  %v1924_v59 = vmax.f32 %v1570_v55, 0.0 }
 0x21c   : > { %2634 = vst.msk [vmem:[%s3778_s16 + $0x118] sm:$0xf] %vm2563_vm1, %v3208_v57  ;;  %v3209_v60 = vpack.c.bf16 %v1924_v59, %v1924_v59 }
 0x21e   : > { %2635 = vst.msk [vmem:[%s3778_s16 + $0x11c] sm:$0xf] %vm2563_vm1, %v3209_v60 }
 0x21f PF: > { %s13_s12 = sadd.s32 1, %s3527_s12  }
 0x220   : > { %p10_p4 = scmp.ge.s32.totalorder %s13_s12, 4  }
 0x222   :  { %12 = sbr.rel (!%p10_p4) target bundleno = 1 (0x1), region = 62 }

// kernel: simple_cnn_forward.6
= control target key start
LH: loop header
LB: loop body
LE: loop exit
PB: predicated region body
PF: predicated region fallthrough
CT: control target
= control target key end

     0   :  { %s1755_s12 = smov 0   ;;  %s2145_s0 = inlined_call_operand.vmem [shape: bf16[544,288], index: 0, kind: input, shape index: {}]   ;;  %s2146_s1 = inlined_call_operand.vmem [shape: bf16[288,64], index: 1, kind: input, shape index: {}]   ;;  %s2147_s2 = inlined_call_operand.vmem [shape: f32[1,64], index: 2, kind: input, shape index: {}]   ;;  %s2148_s3 = inlined_call_operand.vmem [shape: bf16[544,64], index: 3, kind: output, shape index: {}]  }
   0x1 LB: > { %s1303_s13 = sadd.s32 4294967295, %s1730_s12   ;;  %p1307_p0 = scmp.ge.s32.totalorder %s1730_s12, 1  ;;  %s1730_s12 = sphi %s1755_s12, %s13_s12  }
   0x2   : > { %p139_p1 = scmp.lt.s32.totalorder %s1730_s12, 3 }
   0x4   : > { %p140_p2 = pnand %p1307_p0, %p139_p1 }
   0x5   : > { %v1638_v0 = vld [vmem:[%s2146_s1] sm:$0xff] (!%p140_p2)   ;;  %v1732_v1 = vmov (!%p140_p2), 0   ;;  %v1639_v2 = vld [vmem:[%s2146_s1 + $0x8] sm:$0xff] (!%p140_p2)   ;;  %v1733_v3 = vmov (!%p140_p2), 0.0   ;;  %vm1734_vm0 = vmmov (!%p140_p2), 0   ;;  %s164_s18 = smul.u32 (!%p140_p2), 34, %s1303_s13 }
   0x6   : > { %143 = sbr.rel (%p140_p2) target bundleno = 421 (0x1a5), region = 32  ;;  %704 = vmatprep.subr.bf16.mxu1 (!%p140_p2), %v1732_v1  ;;  %1486 = vmatprep.subr.bf16.mxu0 (!%p140_p2), %v1733_v3  ;;  %v1640_v4 = vld [vmem:[%s2146_s1 + $0x10] sm:$0xff] (!%p140_p2)   ;;  %v1641_v5 = vld [vmem:[%s2146_s1 + $0x18] sm:$0xff] (!%p140_p2)   ;;  %v1642_v6 = vld [vmem:[%s2146_s1 + $0x20] sm:$0xff] (!%p140_p2)   ;;  %vm652_vm1 = vcmask (!%p140_p2), 261120   ;;  %vm1212_vm2 = vcmask (!%p140_p2), 519168  }
   0x7   : > { %705 = vmatpush1.bf16.msra.mxu1 (!%p140_p2), %v1638_v0  ;;  %1490 = vmatprep.mubr.msk.bf16.mxu0 (!%p140_p2), %vm1734_vm0, %v1733_v3  ;;  %p165_p3 = scmp.lt.s32.totalorder (!%p140_p2), %s164_s18, 67  ;;  %v1652_v7 = vld [vmem:[%s2146_s1 + $0x80] sm:$0xff] (!%p140_p2)   ;;  %v1654_v8 = vld [vmem:[%s2146_s1 + $0x88] sm:$0xff] (!%p140_p2)   ;;  %v1644_v12 = vld [vmem:[%s2146_s1 + $0x30] sm:$0xff] (!%p140_p2)  }
   0x8   : > { %706 = vmatprep.subr.bf16.mxu1 (!%p140_p2), %v1732_v1  ;;  %1487 = vmatpush3.bf16.msra.mxu0 (!%p140_p2), %v1652_v7  ;;  %v1643_v9 = vld [vmem:[%s2146_s1 + $0x28] sm:$0xff] (!%p140_p2)   ;;  %v1645_v13 = vld [vmem:[%s2146_s1 + $0x38] sm:$0xff] (!%p140_p2)   ;;  %v1646_v15 = vld [vmem:[%s2146_s1 + $0x40] sm:$0xff] (!%p140_p2)  }
   0x9   : > { %1488 = vmatprep.subr.bf16.mxu0 (!%p140_p2), %v1733_v3  ;;  %v1647_v16 = vld [vmem:[%s2146_s1 + $0x48] sm:$0xff] (!%p140_p2)   ;;  %v1648_v18 = vld [vmem:[%s2146_s1 + $0x50] sm:$0xff] (!%p140_p2)   ;;  %v1649_v19 = vld [vmem:[%s2146_s1 + $0x58] sm:$0xff] (!%p140_p2)  }
   0xa   : > { %v1650_v21 = vld [vmem:[%s2146_s1 + $0x60] sm:$0xff] (!%p140_p2)   ;;  %v1651_v22 = vld [vmem:[%s2146_s1 + $0x68] sm:$0xff] (!%p140_p2)   ;;  %v1653_v24 = vld [vmem:[%s2146_s1 + $0x70] sm:$0xff] (!%p140_p2)  }
   0xb   : > { %707 = vmatpush1.bf16.msra.mxu1 (!%p140_p2), %v1639_v2  ;;  %v1655_v25 = vld [vmem:[%s2146_s1 + $0x78] sm:$0xff] (!%p140_p2)  }
   0xc   : > { %708 = vmatprep.subr.bf16.mxu1 (!%p140_p2), %v1732_v1  ;;  %1489 = vmatpush3.bf16.msra.mxu0 (!%p140_p2), %v1654_v8 }
   0xd   : > { %s2150_s18 = smov (!%p165_p3, %s164_s18), 67 }
   0xe   : > { %s1626_s23 = smul.u32 12, %s2150_s18 }
   0xf   : > { %709 = vmatpush1.bf16.msra.mxu1 %v1640_v4 }
  0x10   : > { %710 = vmatprep.subr.bf16.mxu1 %v1732_v1  ;;  %s1798_s5 = scalar_lea.vmem %s2145_s0, %s1626_s23 }
  0x11   : > { %v1658_v10 = vld [vmem:[%s1798_s5 + $0x4] ss:$12 sps:$4 sm:$0xff]   ;;  %v1659_v11 = vld [vmem:[%s1798_s5 + $0x8] ss:$12 sps:$4 sm:$0xff]   ;;  %v1662_v14 = vld [vmem:[%s1798_s5 + $0x20] ss:$12 sps:$4 sm:$0xff]  }
  0x12   : > { %736 = vmatprep.mubr.bf16.mxu1 %v1658_v10  ;;  %1491 = vmatmul.mubr.msk.bf16.vlgmr.msra.gmra.mrb[0].mxu0 %vm652_vm1, %v1659_v11  ;;  %v1666_v17 = vld [vmem:[%s1798_s5 + $0x38] ss:$12 sps:$4 sm:$0xff]   ;;  %v1670_v20 = vld [vmem:[%s1798_s5 + $0x50] ss:$12 sps:$4 sm:$0xff]   ;;  %v1674_v23 = vld [vmem:[%s1798_s5 + $0x68] ss:$12 sps:$4 sm:$0xff]  }
  0x13   : > { %711 = vmatpush1.bf16.msra.mxu1 %v1641_v5  ;;  %1494 = vmatprep.mubr.msk.bf16.mxu0 %vm1734_vm0, %v1733_v3  ;;  %v1678_v26 = vld [vmem:[%s1798_s5 + $0x80] ss:$12 sps:$4 sm:$0xff]   ;;  %v1660_v28 = vld [vmem:[%s1798_s5 + $0x1c] ss:$12 sps:$4 sm:$0xff]   ;;  %v1682_v29 = vld [vmem:[%s1798_s5 + $0x98] ss:$12 sps:$4 sm:$0xff]  }
  0x14   : > { %712 = vmatprep.subr.bf16.mxu1 %v1732_v1  ;;  %v1656_v27 = vld [vmem:[%s1798_s5] ss:$12 sps:$4 sm:$0xff]   ;;  %v1663_v30 = vld [vmem:[%s1798_s5 + $0x18] ss:$12 sps:$4 sm:$0xff]   ;;  %v1686_v32 = vld [vmem:[%s1798_s5 + $0xb0] ss:$12 sps:$4 sm:$0xff]  }
  0x15   : > { %v1664_v31 = vld [vmem:[%s1798_s5 + $0x34] ss:$12 sps:$4 sm:$0xff]   ;;  %v1667_v33 = vld [vmem:[%s1798_s5 + $0x30] ss:$12 sps:$4 sm:$0xff]   ;;  %v1668_v34 = vld [vmem:[%s1798_s5 + $0x4c] ss:$12 sps:$4 sm:$0xff]  }
  0x16   : > { %v1690_v35 = vld [vmem:[%s1798_s5 + $0xc8] ss:$12 sps:$4 sm:$0xff]   ;;  %v1672_v37 = vld [vmem:[%s1798_s5 + $0x64] ss:$12 sps:$4 sm:$0xff]   ;;  %v1694_v38 = vld [vmem:[%s1798_s5 + $0xe0] ss:$12 sps:$4 sm:$0xff]  }
  0x17   : > { %713 = vmatpush1.bf16.msra.mxu1 %v1642_v6  ;;  %v1671_v36 = vld [vmem:[%s1798_s5 + $0x48] ss:$12 sps:$4 sm:$0xff]   ;;  %v1675_v39 = vld [vmem:[%s1798_s5 + $0x60] ss:$12 sps:$4 sm:$0xff]   ;;  %v1698_v41 = vld [vmem:[%s1798_s5 + $0xf8] ss:$12 sps:$4 sm:$0xff]  }
  0x18   : > { %714 = vmatprep.subr.bf16.mxu1 %v1732_v1  ;;  %v1676_v40 = vld [vmem:[%s1798_s5 + $0x7c] ss:$12 sps:$4 sm:$0xff]   ;;  %v1679_v42 = vld [vmem:[%s1798_s5 + $0x78] ss:$12 sps:$4 sm:$0xff]   ;;  %v1680_v43 = vld [vmem:[%s1798_s5 + $0x94] ss:$12 sps:$4 sm:$0xff]  }
  0x19   : > { %v1702_v44 = vld [vmem:[%s1798_s5 + $0x110] ss:$12 sps:$4 sm:$0xff]   ;;  %v1684_v46 = vld [vmem:[%s1798_s5 + $0xac] ss:$12 sps:$4 sm:$0xff]   ;;  %v1706_v47 = vld [vmem:[%s1798_s5 + $0x128] ss:$12 sps:$4 sm:$0xff]  }
  0x1a   : > { %1495 = vmatmul.mubr.msk.bf16.gmra.mrb[4].mxu0 %vm652_vm1, %v1662_v14  ;;  %v1683_v45 = vld [vmem:[%s1798_s5 + $0x90] ss:$12 sps:$4 sm:$0xff]   ;;  %v1687_v48 = vld [vmem:[%s1798_s5 + $0xa8] ss:$12 sps:$4 sm:$0xff]   ;;  %v1710_v50 = vld [vmem:[%s1798_s5 + $0x140] ss:$12 sps:$4 sm:$0xff]  }
  0x1b   : > { %715 = vmatpush1.bf16.msra.mxu1 %v1643_v9  ;;  %1498 = vmatprep.mubr.msk.bf16.mxu0 %vm1734_vm0, %v1733_v3  ;;  %v1688_v49 = vld [vmem:[%s1798_s5 + $0xc4] ss:$12 sps:$4 sm:$0xff]   ;;  %v1691_v51 = vld [vmem:[%s1798_s5 + $0xc0] ss:$12 sps:$4 sm:$0xff]   ;;  %v1692_v52 = vld [vmem:[%s1798_s5 + $0xdc] ss:$12 sps:$4 sm:$0xff]  }
  0x1c   : > { %716 = vmatprep.subr.bf16.mxu1 %v1732_v1  ;;  %v1714_v53 = vld [vmem:[%s1798_s5 + $0x158] ss:$12 sps:$4 sm:$0xff]   ;;  %v1696_v55 = vld [vmem:[%s1798_s5 + $0xf4] ss:$12 sps:$4 sm:$0xff]   ;;  %v1718_v56 = vld [vmem:[%s1798_s5 + $0x170] ss:$12 sps:$4 sm:$0xff]  }
  0x1d   : > { %v1695_v54 = vld [vmem:[%s1798_s5 + $0xd8] ss:$12 sps:$4 sm:$0xff]   ;;  %v1699_v57 = vld [vmem:[%s1798_s5 + $0xf0] ss:$12 sps:$4 sm:$0xff]   ;;  %v1722_v59 = vld [vmem:[%s1798_s5 + $0x188] ss:$12 sps:$4 sm:$0xff]  }
  0x1e   : > { %v1700_v58 = vld [vmem:[%s1798_s5 + $0x10c] ss:$12 sps:$4 sm:$0xff]   ;;  %v1703_v60 = vld [vmem:[%s1798_s5 + $0x108] ss:$12 sps:$4 sm:$0xff]   ;;  %v1704_v61 = vld [vmem:[%s1798_s5 + $0x124] ss:$12 sps:$4 sm:$0xff]  }
  0x1f   : > { %717 = vmatpush1.bf16.msra.mxu1 %v1644_v12  ;;  %v1707_v62 = vld [vmem:[%s1798_s5 + $0x120] ss:$12 sps:$4 sm:$0xff]   ;;  %v1708_v63 = vld [vmem:[%s1798_s5 + $0x13c] ss:$12 sps:$4 sm:$0xff]   ;;  %v1711_v0 = vld [vmem:[%s1798_s5 + $0x138] ss:$12 sps:$4 sm:$0xff]  }
  0x20   : > { %718 = vmatprep.subr.bf16.mxu1 %v1732_v1  ;;  %v1715_v2 = vld [vmem:[%s1798_s5 + $0x150] ss:$12 sps:$4 sm:$0xff]   ;;  %v1719_v4 = vld [vmem:[%s1798_s5 + $0x168] ss:$12 sps:$4 sm:$0xff]   ;;  %v1723_v6 = vld [vmem:[%s1798_s5 + $0x180] ss:$12 sps:$4 sm:$0xff]  }
  0x21   : > { %v1720_v5 = vld [vmem:[%s1798_s5 + $0x184] ss:$12 sps:$4 sm:$0xff]  }
  0x22   : > { %1499 = vmatmul.mubr.msk.bf16.gmra.mrb[8].mxu0 %vm652_vm1, %v1666_v17 }
  0x23   : > { %719 = vmatpush1.bf16.msra.mxu1 %v1645_v13  ;;  %1502 = vmatprep.mubr.msk.bf16.mxu0 %vm1734_vm0, %v1733_v3 }
  0x24   : > { %720 = vmatprep.subr.bf16.mxu1 %v1732_v1 }
  0x27   : > { %721 = vmatpush1.bf16.msra.mxu1 %v1646_v15 }
  0x28   : > { %722 = vmatprep.subr.bf16.mxu1 %v1732_v1 }
  0x2a   : > { %1503 = vmatmul.mubr.msk.bf16.gmra.mrb[12].mxu0 %vm652_vm1, %v1670_v20 }
  0x2b   : > { %723 = vmatpush1.bf16.msra.mxu1 %v1647_v16  ;;  %1506 = vmatprep.mubr.msk.bf16.mxu0 %vm1734_vm0, %v1733_v3 }
  0x2c   : > { %724 = vmatprep.subr.bf16.mxu1 %v1732_v1 }
  0x2f   : > { %725 = vmatpush1.bf16.msra.mxu1 %v1648_v18 }
  0x30   : > { %726 = vmatprep.subr.bf16.mxu1 %v1732_v1 }
  0x32   : > { %1507 = vmatmul.mubr.msk.bf16.gmra.mrb[16].mxu0 %vm652_vm1, %v1674_v23 }
  0x33   : > { %727 = vmatpush1.bf16.msra.mxu1 %v1649_v19  ;;  %1510 = vmatprep.mubr.msk.bf16.mxu0 %vm1734_vm0, %v1733_v3 }
  0x34   : > { %728 = vmatprep.subr.bf16.mxu1 %v1732_v1 }
  0x37   : > { %729 = vmatpush1.bf16.msra.mxu1 %v1650_v21 }
  0x38   : > { %730 = vmatprep.subr.bf16.mxu1 %v1732_v1 }
  0x3a   : > { %1511 = vmatmul.mubr.msk.bf16.gmra.mrb[20].mxu0 %vm652_vm1, %v1678_v26 }
  0x3b   : > { %731 = vmatpush1.bf16.msra.mxu1 %v1651_v22  ;;  %1514 = vmatprep.mubr.msk.bf16.mxu0 %vm1734_vm0, %v1733_v3 }
  0x3c   : > { %732 = vmatprep.subr.bf16.mxu1 %v1732_v1 }
  0x3f   : > { %733 = vmatpush1.bf16.msra.mxu1 %v1653_v24 }
  0x40   : > { %734 = vmatprep.subr.bf16.mxu1 %v1732_v1  ;;  %v1712_v1 = vld [vmem:[%s1798_s5 + $0x154] ss:$12 sps:$4 sm:$0xff]  }
  0x42   : > { %1515 = vmatmul.mubr.msk.bf16.gmra.mrb[24].mxu0 %vm652_vm1, %v1682_v29 }
  0x43   : > { %735 = vmatpush1.bf16.msra.mxu1 %v1655_v25  ;;  %1518 = vmatprep.mubr.msk.bf16.mxu0 %vm1734_vm0, %v1733_v3 }
  0x46   : > { %737 = vmatmul.mubr.bf16.vlgmr.msra.gmra.mrb[0].mxu1 %v1656_v27  ;;  %v1956_v27 = vld [vmem:[%s2147_s2] ss:$0 sm:$0xff] }
  0x47   : > { %744 = vmatprep.mubr.bf16.mxu1 %v1660_v28 }
  0x4a   : > { %1519 = vmatmul.mubr.msk.bf16.gmra.mrb[28].mxu0 %vm652_vm1, %v1686_v32 }
  0x4b   : > { %1522 = vmatprep.mubr.msk.bf16.mxu0 %vm1734_vm0, %v1733_v3 }
  0x4e   : > { %745 = vmatmul.mubr.bf16.gmra.mrb[4].mxu1 %v1663_v30 }
  0x4f   : > { %752 = vmatprep.mubr.bf16.mxu1 %v1664_v31 }
  0x52   : > { %1523 = vmatmul.mubr.msk.bf16.gmra.mrb[32].mxu0 %vm652_vm1, %v1690_v35 }
  0x53   : > { %1526 = vmatprep.mubr.msk.bf16.mxu0 %vm1734_vm0, %v1733_v3 }
  0x56   : > { %753 = vmatmul.mubr.bf16.gmra.mrb[8].mxu1 %v1667_v33 }
  0x57   : > { %760 = vmatprep.mubr.bf16.mxu1 %v1668_v34 }
  0x5a   : > { %1527 = vmatmul.mubr.msk.bf16.gmra.mrb[36].mxu0 %vm652_vm1, %v1694_v38 }
  0x5b   : > { %1530 = vmatprep.mubr.msk.bf16.mxu0 %vm1734_vm0, %v1733_v3 }
  0x5e   : > { %761 = vmatmul.mubr.bf16.gmra.mrb[12].mxu1 %v1671_v36 }
  0x5f   : > { %768 = vmatprep.mubr.bf16.mxu1 %v1672_v37 }
  0x62   : > { %1531 = vmatmul.mubr.msk.bf16.gmra.mrb[40].mxu0 %vm652_vm1, %v1698_v41 }
  0x63   : > { %1534 = vmatprep.mubr.msk.bf16.mxu0 %vm1734_vm0, %v1733_v3 }
  0x66   : > { %769 = vmatmul.mubr.bf16.gmra.mrb[16].mxu1 %v1675_v39 }
  0x67   : > { %776 = vmatprep.mubr.bf16.mxu1 %v1676_v40 }
  0x6a   : > { %1535 = vmatmul.mubr.msk.bf16.gmra.mrb[44].mxu0 %vm652_vm1, %v1702_v44 }
  0x6b   : > { %1538 = vmatprep.mubr.msk.bf16.mxu0 %vm1734_vm0, %v1733_v3 }
  0x6e   : > { %777 = vmatmul.mubr.bf16.gmra.mrb[20].mxu1 %v1679_v42 }
  0x6f   : > { %784 = vmatprep.mubr.bf16.mxu1 %v1680_v43 }
  0x72   : > { %1539 = vmatmul.mubr.msk.bf16.gmra.mrb[48].mxu0 %vm652_vm1, %v1706_v47 }
  0x73   : > { %1542 = vmatprep.mubr.msk.bf16.mxu0 %vm1734_vm0, %v1733_v3 }
  0x76   : > { %785 = vmatmul.mubr.bf16.gmra.mrb[24].mxu1 %v1683_v45 }
  0x77   : > { %792 = vmatprep.mubr.bf16.mxu1 %v1684_v46 }
  0x7a   : > { %1543 = vmatmul.mubr.msk.bf16.gmra.mrb[52].mxu0 %vm652_vm1, %v1710_v50 }
  0x7b   : > { %1546 = vmatprep.mubr.msk.bf16.mxu0 %vm1734_vm0, %v1733_v3 }
  0x7e   : > { %793 = vmatmul.mubr.bf16.gmra.mrb[28].mxu1 %v1687_v48 }
  0x7f   : > { %800 = vmatprep.mubr.bf16.mxu1 %v1688_v49 }
  0x82   : > { %1547 = vmatmul.mubr.msk.bf16.gmra.mrb[56].mxu0 %vm652_vm1, %v1714_v53 }
  0x83   : > { %1550 = vmatprep.mubr.msk.bf16.mxu0 %vm1734_vm0, %v1733_v3 }
  0x86   : > { %801 = vmatmul.mubr.bf16.gmra.mrb[32].mxu1 %v1691_v51 }
  0x87   : > { %808 = vmatprep.mubr.bf16.mxu1 %v1692_v52 }
  0x8a   : > { %1551 = vmatmul.mubr.msk.bf16.gmra.mrb[60].mxu0 %vm652_vm1, %v1718_v56 }
  0x8b   : > { %1554 = vmatprep.mubr.msk.bf16.mxu0 %vm1734_vm0, %v1733_v3  ;;  %v1716_v3 = vld [vmem:[%s1798_s5 + $0x16c] ss:$12 sps:$4 sm:$0xff]   ;;  %s1309_s5 = sshll.u32 %s2150_s18, 2 }
  0x8c   : > { %s1968_s8 = scalar_lea.vmem %s2148_s3, %s1309_s5 }
  0x8e   : > { %809 = vmatmul.mubr.bf16.gmra.mrb[36].mxu1 %v1695_v54 }
  0x8f   : > { %816 = vmatprep.mubr.bf16.mxu1 %v1696_v55 }
  0x92   : > { %1555 = vmatmul.mubr.msk.bf16.gmra.mrb[64].mxu0 %vm652_vm1, %v1722_v59 }
  0x96   : > { %817 = vmatmul.mubr.bf16.gmra.mrb[40].mxu1 %v1699_v57 }
  0x97   : > { %824 = vmatprep.mubr.bf16.mxu1 %v1700_v58 }
  0x9e   : > { %825 = vmatmul.mubr.bf16.gmra.mrb[44].mxu1 %v1703_v60 }
  0x9f   : > { %832 = vmatprep.mubr.bf16.mxu1 %v1704_v61 }
  0xa6   : > { %833 = vmatmul.mubr.bf16.gmra.mrb[48].mxu1 %v1707_v62 }
  0xa7   : > { %840 = vmatprep.mubr.bf16.mxu1 %v1708_v63 }
  0xae   : > { %841 = vmatmul.mubr.bf16.gmra.mrb[52].mxu1 %v1711_v0 }
  0xaf   : > { %848 = vmatprep.mubr.bf16.mxu1 %v1712_v1 }
  0xb6   : > { %849 = vmatmul.mubr.bf16.gmra.mrb[56].mxu1 %v1715_v2 }
  0xb7   : > { %856 = vmatprep.mubr.bf16.mxu1 %v1716_v3 }
  0xbe   : > { %857 = vmatmul.mubr.bf16.gmra.mrb[60].mxu1 %v1719_v4 }
  0xbf   : > { %864 = vmatprep.mubr.bf16.mxu1 %v1720_v5 }
  0xc6   : > { %865 = vmatmul.mubr.bf16.gmra.mrb[64].mxu1 %v1723_v6 }
  0xe5   : > { %v907_v7 = vpop.f32.mrb[0].mxu0 }
  0xe6   : > { %v1492_v8 = vpop.f32.mrb[1].mxu0 }
  0xe7   : > { %v910_v9 = vpop.f32.mrb[2].mxu0 }
  0xe8   : > { %v1493_v10 = vpop.f32.mrb[3].mxu0 }
  0xed   : > { %v915_v11 = vpop.f32.mrb[4].mxu0 }
  0xee   : > { %v1496_v12 = vpop.f32.mrb[5].mxu0 }
  0xef   : > { %v918_v13 = vpop.f32.mrb[6].mxu0 }
  0xf0   : > { %v1497_v14 = vpop.f32.mrb[7].mxu0 }
  0xf5   : > { %v923_v15 = vpop.f32.mrb[8].mxu0 }
  0xf6   : > { %v1500_v16 = vpop.f32.mrb[9].mxu0 }
  0xf7   : > { %v926_v17 = vpop.f32.mrb[10].mxu0 }
  0xf8   : > { %v1501_v18 = vpop.f32.mrb[11].mxu0 }
  0xfd   : > { %v1945_v19 = vpop.f32.mrb[12].mxu0 }
  0xfe   : > { %v1504_v20 = vpop.f32.mrb[13].mxu0 }
  0xff   : > { %v1947_v21 = vpop.f32.mrb[14].mxu0 }
 0x100   : > { %v1505_v22 = vpop.f32.mrb[15].mxu0 }
 0x105   : > { %v1949_v23 = vpop.f32.mrb[16].mxu0 }
 0x106   : > { %v1508_v24 = vpop.f32.mrb[17].mxu0 }
 0x107   : > { %v1951_v25 = vpop.f32.mrb[18].mxu0 }
 0x108   : > { %v1509_v26 = vpop.f32.mrb[19].mxu0 }
 0x10d   : > { %v1958_v28 = vpop.f32.mrb[20].mxu0 }
 0x10e   : > { %v1512_v29 = vpop.f32.mrb[21].mxu0 }
 0x10f   : > { %v1960_v31 = vpop.f32.mrb[22].mxu0 }
 0x110   : > { %v1513_v34 = vpop.f32.mrb[23].mxu0 }
 0x115   : > { %v1970_v41 = vpop.f32.mrb[24].mxu0 }
 0x116   : > { %v1516_v44 = vpop.f32.mrb[25].mxu0 }
 0x117   : > { %v1972_v46 = vpop.f32.mrb[26].mxu0 }
 0x118   : > { %v1517_v50 = vpop.f32.mrb[27].mxu0 }
 0x119   : > { %v738_v30 = vpop.f32.mrb[0].mxu1 }
 0x11a   : > { %v739_v32 = vadd.f32 %v1956_v27, %v738_v30  ;;  %v740_v33 = vpop.f32.mrb[1].mxu1 }
 0x11b   : > { %v741_v35 = vpop.f32.mrb[2].mxu1 }
 0x11c   : > { %v908_v36 = vadd.f32 %v907_v7, %v739_v32  ;;  %v742_v37 = vadd.f32 %v1956_v27, %v741_v35  ;;  %v743_v38 = vpop.f32.mrb[3].mxu1 }
 0x11d   : > { %v1980_v57 = vpop.f32.mrb[28].mxu0 }
 0x11e   : > { %v1042_v39 = vmax.f32 %v908_v36, 0.0  ;;  %v911_v40 = vadd.f32 %v910_v9, %v742_v37  ;;  %v1520_v60 = vpop.f32.mrb[29].mxu0 }
 0x11f   : > { %v1982_v62 = vpop.f32.mrb[30].mxu0 }
 0x120   : > { %v1433_v42 = vpack.c.bf16 %v1042_v39, %v1042_v39  ;;  %v1043_v43 = vmax.f32 %v911_v40, 0.0  ;;  %v1521_v2 = vpop.f32.mrb[31].mxu0 }
 0x121   : > { %v746_v45 = vpop.f32.mrb[4].mxu1 }
 0x122   : > { %1213 = vst.msk [vmem:[%s1968_s8] sm:$0xf] %vm1212_vm2, %v1433_v42  ;;  %v1434_v47 = vpack.c.bf16 %v1043_v43, %v1043_v43  ;;  %v747_v48 = vadd.f32 %v1956_v27, %v746_v45  ;;  %v748_v49 = vpop.f32.mrb[5].mxu1 }
 0x123   : > { %v749_v51 = vpop.f32.mrb[6].mxu1 }
 0x124   : > { %1214 = vst.msk [vmem:[%s1968_s8 + $0x4] sm:$0xf] %vm1212_vm2, %v1434_v47  ;;  %v916_v52 = vadd.f32 %v915_v11, %v747_v48  ;;  %v750_v53 = vadd.f32 %v1956_v27, %v749_v51  ;;  %v751_v54 = vpop.f32.mrb[7].mxu1 }
 0x125   : > { %v1990_v9 = vpop.f32.mrb[32].mxu0 }
 0x126   : > { %v1044_v55 = vmax.f32 %v916_v52, 0.0  ;;  %v919_v56 = vadd.f32 %v918_v13, %v750_v53  ;;  %v1524_v12 = vpop.f32.mrb[33].mxu0 }
 0x127   : > { %v1992_v14 = vpop.f32.mrb[34].mxu0 }
 0x128   : > { %v1435_v58 = vpack.c.bf16 %v1044_v55, %v1044_v55  ;;  %v1045_v59 = vmax.f32 %v919_v56, 0.0  ;;  %v1525_v20 = vpop.f32.mrb[35].mxu0 }
 0x129   : > { %v754_v61 = vpop.f32.mrb[8].mxu1 }
 0x12a   : > { %1215 = vst.msk [vmem:[%s1968_s8 + $0x8] sm:$0xf] %vm1212_vm2, %v1435_v58  ;;  %v1436_v63 = vpack.c.bf16 %v1045_v59, %v1045_v59  ;;  %v755_v0 = vadd.f32 %v1956_v27, %v754_v61  ;;  %v756_v1 = vpop.f32.mrb[9].mxu1 }
 0x12b   : > { %v757_v3 = vpop.f32.mrb[10].mxu1 }
 0x12c   : > { %1216 = vst.msk [vmem:[%s1968_s8 + $0xc] sm:$0xf] %vm1212_vm2, %v1436_v63  ;;  %v924_v4 = vadd.f32 %v923_v15, %v755_v0  ;;  %v758_v5 = vadd.f32 %v1956_v27, %v757_v3  ;;  %v759_v6 = vpop.f32.mrb[11].mxu1 }
 0x12d   : > { %v2002_v32 = vpop.f32.mrb[36].mxu0 }
 0x12e   : > { %v1046_v7 = vmax.f32 %v924_v4, 0.0  ;;  %v927_v8 = vadd.f32 %v926_v17, %v758_v5  ;;  %v1528_v35 = vpop.f32.mrb[37].mxu0 }
 0x12f   : > { %v2004_v37 = vpop.f32.mrb[38].mxu0 }
 0x130   : > { %v1437_v10 = vpack.c.bf16 %v1046_v7, %v1046_v7  ;;  %v1047_v11 = vmax.f32 %v927_v8, 0.0  ;;  %v1529_v40 = vpop.f32.mrb[39].mxu0 }
 0x131   : > { %v762_v13 = vpop.f32.mrb[12].mxu1 }
 0x132   : > { %1217 = vst.msk [vmem:[%s1968_s8 + $0x10] sm:$0xf] %vm1212_vm2, %v1437_v10  ;;  %v1438_v16 = vpack.c.bf16 %v1047_v11, %v1047_v11  ;;  %v763_v18 = vadd.f32 %v1956_v27, %v762_v13  ;;  %v764_v15 = vpop.f32.mrb[13].mxu1 }
 0x133   : > { %v765_v22 = vpop.f32.mrb[14].mxu1 }
 0x134   : > { %1218 = vst.msk [vmem:[%s1968_s8 + $0x14] sm:$0xf] %vm1212_vm2, %v1438_v16  ;;  %v932_v17 = vadd.f32 %v1945_v19, %v763_v18  ;;  %v766_v24 = vadd.f32 %v1956_v27, %v765_v22  ;;  %v767_v26 = vpop.f32.mrb[15].mxu1 }
 0x135   : > { %v2014_v48 = vpop.f32.mrb[40].mxu0 }
 0x136   : > { %v1048_v29 = vmax.f32 %v932_v17, 0.0  ;;  %v935_v30 = vadd.f32 %v1947_v21, %v766_v24  ;;  %v1532_v51 = vpop.f32.mrb[41].mxu0 }
 0x137   : > { %v2016_v53 = vpop.f32.mrb[42].mxu0 }
 0x138   : > { %v1439_v33 = vpack.c.bf16 %v1048_v29, %v1048_v29  ;;  %v1049_v34 = vmax.f32 %v935_v30, 0.0  ;;  %v1533_v56 = vpop.f32.mrb[43].mxu0 }
 0x139   : > { %v770_v36 = vpop.f32.mrb[16].mxu1 }
 0x13a   : > { %1219 = vst.msk [vmem:[%s1968_s8 + $0x18] sm:$0xf] %vm1212_vm2, %v1439_v33  ;;  %v1440_v38 = vpack.c.bf16 %v1049_v34, %v1049_v34  ;;  %v771_v19 = vadd.f32 %v1956_v27, %v770_v36  ;;  %v772_v39 = vpop.f32.mrb[17].mxu1 }
 0x13b   : > { %v773_v42 = vpop.f32.mrb[18].mxu1 }
 0x13c   : > { %1220 = vst.msk [vmem:[%s1968_s8 + $0x1c] sm:$0xf] %vm1212_vm2, %v1440_v38  ;;  %v940_v21 = vadd.f32 %v1949_v23, %v771_v19  ;;  %v774_v43 = vadd.f32 %v1956_v27, %v773_v42  ;;  %v775_v44 = vpop.f32.mrb[19].mxu1 }
 0x13d   : > { %v2026_v0 = vpop.f32.mrb[44].mxu0 }
 0x13e   : > { %v1050_v45 = vmax.f32 %v940_v21, 0.0  ;;  %v943_v47 = vadd.f32 %v1951_v25, %v774_v43  ;;  %v1536_v3 = vpop.f32.mrb[45].mxu0 }
 0x13f   : > { %v2028_v5 = vpop.f32.mrb[46].mxu0 }
 0x140   : > { %v1441_v49 = vpack.c.bf16 %v1050_v45, %v1050_v45  ;;  %v1051_v50 = vmax.f32 %v943_v47, 0.0  ;;  %v1537_v8 = vpop.f32.mrb[47].mxu0 }
 0x141   : > { %v778_v52 = vpop.f32.mrb[20].mxu1 }
 0x142   : > { %1221 = vst.msk [vmem:[%s1968_s8 + $0x20] sm:$0xf] %vm1212_vm2, %v1441_v49  ;;  %v1442_v54 = vpack.c.bf16 %v1051_v50, %v1051_v50  ;;  %v779_v23 = vadd.f32 %v1956_v27, %v778_v52  ;;  %v780_v55 = vpop.f32.mrb[21].mxu1 }
 0x143   : > { %v781_v58 = vpop.f32.mrb[22].mxu1 }
 0x144   : > { %1222 = vst.msk [vmem:[%s1968_s8 + $0x24] sm:$0xf] %vm1212_vm2, %v1442_v54  ;;  %v948_v25 = vadd.f32 %v1958_v28, %v779_v23  ;;  %v782_v59 = vadd.f32 %v1956_v27, %v781_v58  ;;  %v783_v60 = vpop.f32.mrb[23].mxu1 }
 0x145   : > { %v2038_v18 = vpop.f32.mrb[48].mxu0 }
 0x146   : > { %v1052_v61 = vmax.f32 %v948_v25, 0.0  ;;  %v951_v63 = vadd.f32 %v1960_v31, %v782_v59  ;;  %v1540_v22 = vpop.f32.mrb[49].mxu0 }
 0x147   : > { %v2040_v24 = vpop.f32.mrb[50].mxu0 }
 0x148   : > { %v1443_v1 = vpack.c.bf16 %v1052_v61, %v1052_v61  ;;  %v1053_v2 = vmax.f32 %v951_v63, 0.0  ;;  %v1541_v30 = vpop.f32.mrb[51].mxu0 }
 0x149   : > { %v786_v4 = vpop.f32.mrb[24].mxu1 }
 0x14a   : > { %1223 = vst.msk [vmem:[%s1968_s8 + $0x28] sm:$0xf] %vm1212_vm2, %v1443_v1  ;;  %v1444_v6 = vpack.c.bf16 %v1053_v2, %v1053_v2  ;;  %v787_v28 = vadd.f32 %v1956_v27, %v786_v4  ;;  %v788_v7 = vpop.f32.mrb[25].mxu1 }
 0x14b   : > { %v789_v10 = vpop.f32.mrb[26].mxu1 }
 0x14c   : > { %1224 = vst.msk [vmem:[%s1968_s8 + $0x2c] sm:$0xf] %vm1212_vm2, %v1444_v6  ;;  %v956_v31 = vadd.f32 %v1970_v41, %v787_v28  ;;  %v790_v11 = vadd.f32 %v1956_v27, %v789_v10  ;;  %v791_v12 = vpop.f32.mrb[27].mxu1 }
 0x14d   : > { %v2050_v19 = vpop.f32.mrb[52].mxu0 }
 0x14e   : > { %v1054_v13 = vmax.f32 %v956_v31, 0.0  ;;  %v959_v16 = vadd.f32 %v1972_v46, %v790_v11  ;;  %v1544_v42 = vpop.f32.mrb[53].mxu0 }
 0x14f   : > { %v2052_v43 = vpop.f32.mrb[54].mxu0 }
 0x150   : > { %v1445_v15 = vpack.c.bf16 %v1054_v13, %v1054_v13  ;;  %v1055_v20 = vmax.f32 %v959_v16, 0.0  ;;  %v1545_v47 = vpop.f32.mrb[55].mxu0 }
 0x151   : > { %v794_v17 = vpop.f32.mrb[28].mxu1 }
 0x152   : > { %1225 = vst.msk [vmem:[%s1968_s8 + $0x30] sm:$0xf] %vm1212_vm2, %v1445_v15  ;;  %v1446_v26 = vpack.c.bf16 %v1055_v20, %v1055_v20  ;;  %v795_v41 = vadd.f32 %v1956_v27, %v794_v17  ;;  %v796_v29 = vpop.f32.mrb[29].mxu1 }
 0x153   : > { %v797_v33 = vpop.f32.mrb[30].mxu1 }
 0x154   : > { %1226 = vst.msk [vmem:[%s1968_s8 + $0x34] sm:$0xf] %vm1212_vm2, %v1446_v26  ;;  %v964_v46 = vadd.f32 %v1980_v57, %v795_v41  ;;  %v798_v34 = vadd.f32 %v1956_v27, %v797_v33  ;;  %v799_v35 = vpop.f32.mrb[31].mxu1 }
 0x155   : > { %v2062_v23 = vpop.f32.mrb[56].mxu0 }
 0x156   : > { %v1056_v36 = vmax.f32 %v964_v46, 0.0  ;;  %v967_v38 = vadd.f32 %v1982_v62, %v798_v34  ;;  %v1548_v58 = vpop.f32.mrb[57].mxu0 }
 0x157   : > { %v2064_v59 = vpop.f32.mrb[58].mxu0 }
 0x158   : > { %v1447_v39 = vpack.c.bf16 %v1056_v36, %v1056_v36  ;;  %v1057_v40 = vmax.f32 %v967_v38, 0.0  ;;  %v1549_v63 = vpop.f32.mrb[59].mxu0 }
 0x159   : > { %v802_v21 = vpop.f32.mrb[32].mxu1 }
 0x15a   : > { %1227 = vst.msk [vmem:[%s1968_s8 + $0x38] sm:$0xf] %vm1212_vm2, %v1447_v39  ;;  %v1448_v44 = vpack.c.bf16 %v1057_v40, %v1057_v40  ;;  %v803_v57 = vadd.f32 %v1956_v27, %v802_v21  ;;  %v804_v45 = vpop.f32.mrb[33].mxu1 }
 0x15b   : > { %v805_v49 = vpop.f32.mrb[34].mxu1 }
 0x15c   : > { %1228 = vst.msk [vmem:[%s1968_s8 + $0x3c] sm:$0xf] %vm1212_vm2, %v1448_v44  ;;  %v972_v62 = vadd.f32 %v1990_v9, %v803_v57  ;;  %v806_v50 = vadd.f32 %v1956_v27, %v805_v49  ;;  %v807_v51 = vpop.f32.mrb[35].mxu1 }
 0x15d   : > { %v2074_v28 = vpop.f32.mrb[60].mxu0 }
 0x15e   : > { %v1058_v52 = vmax.f32 %v972_v62, 0.0  ;;  %v975_v54 = vadd.f32 %v1992_v14, %v806_v50  ;;  %v1552_v10 = vpop.f32.mrb[61].mxu0 }
 0x15f   : > { %v2076_v11 = vpop.f32.mrb[62].mxu0 }
 0x160   : > { %v1449_v55 = vpack.c.bf16 %v1058_v52, %v1058_v52  ;;  %v1059_v56 = vmax.f32 %v975_v54, 0.0  ;;  %v1553_v16 = vpop.f32.mrb[63].mxu0 }
 0x161   : > { %v810_v25 = vpop.f32.mrb[36].mxu1 }
 0x162   : > { %1229 = vst.msk [vmem:[%s1968_s8 + $0x40] sm:$0xf] %vm1212_vm2, %v1449_v55  ;;  %v1450_v60 = vpack.c.bf16 %v1059_v56, %v1059_v56  ;;  %v811_v9 = vadd.f32 %v1956_v27, %v810_v25  ;;  %v812_v61 = vpop.f32.mrb[37].mxu1 }
 0x163   : > { %v813_v1 = vpop.f32.mrb[38].mxu1 }
 0x164   : > { %1230 = vst.msk [vmem:[%s1968_s8 + $0x44] sm:$0xf] %vm1212_vm2, %v1450_v60  ;;  %v980_v14 = vadd.f32 %v2002_v32, %v811_v9  ;;  %v814_v2 = vadd.f32 %v1956_v27, %v813_v1  ;;  %v815_v3 = vpop.f32.mrb[39].mxu1 }
 0x165   : > { %v2086_v41 = vpop.f32.mrb[64].mxu0 }
 0x166   : > { %v1060_v4 = vmax.f32 %v980_v14, 0.0  ;;  %v983_v6 = vadd.f32 %v2004_v37, %v814_v2  ;;  %v1556_v33 = vpop.f32.mrb[65].mxu0 }
 0x167   : > { %v2088_v34 = vpop.f32.mrb[66].mxu0 }
 0x168   : > { %v1451_v7 = vpack.c.bf16 %v1060_v4, %v1060_v4  ;;  %v1061_v8 = vmax.f32 %v983_v6, 0.0  ;;  %v1557_v38 = vpop.f32.mrb[67].mxu0 }
 0x169   : > { %v818_v31 = vpop.f32.mrb[40].mxu1 }
 0x16a   : > { %1231 = vst.msk [vmem:[%s1968_s8 + $0x48] sm:$0xf] %vm1212_vm2, %v1451_v7  ;;  %v1452_v12 = vpack.c.bf16 %v1061_v8, %v1061_v8  ;;  %v819_v32 = vadd.f32 %v1956_v27, %v818_v31  ;;  %v820_v13 = vpop.f32.mrb[41].mxu1 }
 0x16b   : > { %v821_v15 = vpop.f32.mrb[42].mxu1 }
 0x16c   : > { %1232 = vst.msk [vmem:[%s1968_s8 + $0x4c] sm:$0xf] %vm1212_vm2, %v1452_v12  ;;  %v988_v37 = vadd.f32 %v2014_v48, %v819_v32  ;;  %v822_v20 = vadd.f32 %v1956_v27, %v821_v15  ;;  %v823_v22 = vpop.f32.mrb[43].mxu1 }
 0x16e   : > { %v1062_v17 = vmax.f32 %v988_v37, 0.0  ;;  %v991_v26 = vadd.f32 %v2016_v53, %v822_v20 }
 0x170   : > { %v1453_v29 = vpack.c.bf16 %v1062_v17, %v1062_v17  ;;  %v1063_v30 = vmax.f32 %v991_v26, 0.0 }
 0x171   : > { %v826_v46 = vpop.f32.mrb[44].mxu1 }
 0x172   : > { %1233 = vst.msk [vmem:[%s1968_s8 + $0x50] sm:$0xf] %vm1212_vm2, %v1453_v29  ;;  %v1454_v35 = vpack.c.bf16 %v1063_v30, %v1063_v30  ;;  %v827_v48 = vadd.f32 %v1956_v27, %v826_v46  ;;  %v828_v36 = vpop.f32.mrb[45].mxu1 }
 0x173   : > { %v829_v39 = vpop.f32.mrb[46].mxu1 }
 0x174   : > { %1234 = vst.msk [vmem:[%s1968_s8 + $0x54] sm:$0xf] %vm1212_vm2, %v1454_v35  ;;  %v996_v53 = vadd.f32 %v2026_v0, %v827_v48  ;;  %v830_v40 = vadd.f32 %v1956_v27, %v829_v39  ;;  %v831_v42 = vpop.f32.mrb[47].mxu1 }
 0x176   : > { %v1064_v21 = vmax.f32 %v996_v53, 0.0  ;;  %v999_v44 = vadd.f32 %v2028_v5, %v830_v40 }
 0x178   : > { %v1455_v57 = vpack.c.bf16 %v1064_v21, %v1064_v21  ;;  %v1065_v45 = vmax.f32 %v999_v44, 0.0 }
 0x179   : > { %v834_v47 = vpop.f32.mrb[48].mxu1 }
 0x17a   : > { %1235 = vst.msk [vmem:[%s1968_s8 + $0x58] sm:$0xf] %vm1212_vm2, %v1455_v57  ;;  %v1456_v49 = vpack.c.bf16 %v1065_v45, %v1065_v45  ;;  %v835_v62 = vadd.f32 %v1956_v27, %v834_v47  ;;  %v836_v50 = vpop.f32.mrb[49].mxu1 }
 0x17b   : > { %v837_v51 = vpop.f32.mrb[50].mxu1 }
 0x17c   : > { %1236 = vst.msk [vmem:[%s1968_s8 + $0x5c] sm:$0xf] %vm1212_vm2, %v1456_v49  ;;  %v1004_v0 = vadd.f32 %v2038_v18, %v835_v62  ;;  %v838_v52 = vadd.f32 %v1956_v27, %v837_v51  ;;  %v839_v54 = vpop.f32.mrb[51].mxu1 }
 0x17e   : > { %v1066_v5 = vmax.f32 %v1004_v0, 0.0  ;;  %v1007_v55 = vadd.f32 %v2040_v24, %v838_v52 }
 0x180   : > { %v1457_v56 = vpack.c.bf16 %v1066_v5, %v1066_v5  ;;  %v1067_v58 = vmax.f32 %v1007_v55, 0.0 }
 0x181   : > { %v842_v25 = vpop.f32.mrb[52].mxu1 }
 0x182   : > { %1237 = vst.msk [vmem:[%s1968_s8 + $0x60] sm:$0xf] %vm1212_vm2, %v1457_v56  ;;  %v1458_v60 = vpack.c.bf16 %v1067_v58, %v1067_v58  ;;  %v843_v9 = vadd.f32 %v1956_v27, %v842_v25  ;;  %v844_v61 = vpop.f32.mrb[53].mxu1 }
 0x183   : > { %v845_v63 = vpop.f32.mrb[54].mxu1 }
 0x184   : > { %1238 = vst.msk [vmem:[%s1968_s8 + $0x64] sm:$0xf] %vm1212_vm2, %v1458_v60  ;;  %v1012_v18 = vadd.f32 %v2050_v19, %v843_v9  ;;  %v846_v1 = vadd.f32 %v1956_v27, %v845_v63  ;;  %v847_v14 = vpop.f32.mrb[55].mxu1 }
 0x186   : > { %v1068_v24 = vmax.f32 %v1012_v18, 0.0  ;;  %v1015_v2 = vadd.f32 %v2052_v43, %v846_v1 }
 0x188   : > { %v1459_v3 = vpack.c.bf16 %v1068_v24, %v1068_v24  ;;  %v1069_v4 = vmax.f32 %v1015_v2, 0.0 }
 0x189   : > { %v850_v6 = vpop.f32.mrb[56].mxu1 }
 0x18a   : > { %1239 = vst.msk [vmem:[%s1968_s8 + $0x68] sm:$0xf] %vm1212_vm2, %v1459_v3  ;;  %v1460_v7 = vpack.c.bf16 %v1069_v4, %v1069_v4  ;;  %v851_v8 = vadd.f32 %v1956_v27, %v850_v6  ;;  %v852_v10 = vpop.f32.mrb[57].mxu1 }
 0x18b   : > { %v853_v31 = vpop.f32.mrb[58].mxu1 }
 0x18c   : > { %1240 = vst.msk [vmem:[%s1968_s8 + $0x6c] sm:$0xf] %vm1212_vm2, %v1460_v7  ;;  %v1020_v19 = vadd.f32 %v2062_v23, %v851_v8  ;;  %v854_v12 = vadd.f32 %v1956_v27, %v853_v31  ;;  %v855_v32 = vpop.f32.mrb[59].mxu1 }
 0x18e   : > { %v1070_v43 = vmax.f32 %v1020_v19, 0.0  ;;  %v1023_v13 = vadd.f32 %v2064_v59, %v854_v12 }
 0x190   : > { %v1461_v16 = vpack.c.bf16 %v1070_v43, %v1070_v43  ;;  %v1071_v15 = vmax.f32 %v1023_v13, 0.0 }
 0x191   : > { %v858_v37 = vpop.f32.mrb[60].mxu1 }
 0x192   : > { %1241 = vst.msk [vmem:[%s1968_s8 + $0x70] sm:$0xf] %vm1212_vm2, %v1461_v16  ;;  %v1462_v20 = vpack.c.bf16 %v1071_v15, %v1071_v15  ;;  %v859_v22 = vadd.f32 %v1956_v27, %v858_v37  ;;  %v860_v17 = vpop.f32.mrb[61].mxu1 }
 0x193   : > { %v861_v26 = vpop.f32.mrb[62].mxu1 }
 0x194   : > { %1242 = vst.msk [vmem:[%s1968_s8 + $0x74] sm:$0xf] %vm1212_vm2, %v1462_v20  ;;  %v1028_v23 = vadd.f32 %v2074_v28, %v859_v22  ;;  %v862_v29 = vadd.f32 %v1956_v27, %v861_v26  ;;  %v863_v30 = vpop.f32.mrb[63].mxu1 }
 0x196   : > { %v1072_v59 = vmax.f32 %v1028_v23, 0.0  ;;  %v1031_v33 = vadd.f32 %v2076_v11, %v862_v29 }
 0x198   : > { %v1463_v46 = vpack.c.bf16 %v1072_v59, %v1072_v59  ;;  %v1073_v35 = vmax.f32 %v1031_v33, 0.0 }
 0x199   : > { %v866_v48 = vpop.f32.mrb[64].mxu1 }
 0x19a   : > { %1243 = vst.msk [vmem:[%s1968_s8 + $0x78] sm:$0xf] %vm1212_vm2, %v1463_v46  ;;  %v1464_v36 = vpack.c.bf16 %v1073_v35, %v1073_v35  ;;  %v867_v38 = vadd.f32 %v1956_v27, %v866_v48  ;;  %v868_v39 = vpop.f32.mrb[65].mxu1 }
 0x19b   : > { %v869_v53 = vpop.f32.mrb[66].mxu1 }
 0x19c   : > { %1244 = vst.msk [vmem:[%s1968_s8 + $0x7c] sm:$0xf] %vm1212_vm2, %v1464_v36  ;;  %v1036_v28 = vadd.f32 %v2086_v41, %v867_v38  ;;  %v870_v40 = vadd.f32 %v1956_v27, %v869_v53  ;;  %v871_v42 = vpop.f32.mrb[67].mxu1 }
 0x19e   : > { %v1074_v11 = vmax.f32 %v1036_v28, 0.0  ;;  %v1039_v21 = vadd.f32 %v2088_v34, %v870_v40 }
 0x1a0   : > { %v1465_v44 = vpack.c.bf16 %v1074_v11, %v1074_v11  ;;  %v1075_v57 = vmax.f32 %v1039_v21, 0.0 }
 0x1a2   : > { %1245 = vst.msk [vmem:[%s1968_s8 + $0x80] sm:$0xf] %vm1212_vm2, %v1465_v44  ;;  %v1466_v45 = vpack.c.bf16 %v1075_v57, %v1075_v57 }
 0x1a4   : > { %1246 = vst.msk [vmem:[%s1968_s8 + $0x84] sm:$0xf] %vm1212_vm2, %v1466_v45 }
 0x1a5 PF: > { %s13_s12 = sadd.s32 1, %s1730_s12  }
 0x1a6   : > { %p10_p4 = scmp.ge.s32.totalorder %s13_s12, 4  }
 0x1a8   :  { %12 = sbr.rel (!%p10_p4) target bundleno = 1 (0x1), region = 62 }

// kernel: simple_cnn_forward.7
= control target key start
LH: loop header
LB: loop body
LE: loop exit
PB: predicated region body
PF: predicated region fallthrough
CT: control target
= control target key end

     0   :  { %s8624_s15 = smov 0   ;;  %s8626_s16 = smov 0   ;;  %s9387_s0 = inlined_call_operand.vmem [shape: bf16[2,17152], index: 0, kind: input, shape index: {}]   ;;  %s9388_s1 = inlined_call_operand.vmem [shape: bf16[2,17152,64], index: 1, kind: input, shape index: {}]   ;;  %s9389_s2 = inlined_call_operand.vmem [shape: f32[2,1,64], index: 2, kind: input, shape index: {}]   ;;  %s9390_s3 = inlined_call_operand.vmem [shape: bf16[2,64,4], index: 3, kind: input, shape index: {}]   ;;  %s9391_s4 = inlined_call_operand.vmem [shape: f32[2,2,4], index: 4, kind: output, shape index: {}]  }
   0x1   :  { %s8628_s17 = smov 0   ;;  %s8630_s18 = smov 0  }
   0x2   :  { %s8632_s19 = smov 0  }
   0x3 LB: > { %s23_s20 = sadd.s32 1, %s8583_s17  ;;  %s26_s21 = sadd.s32 1, %s8587_s18  ;;  %s8591_s19 = sphi %s8632_s19, %s14_s19   ;;  %s8587_s18 = sphi %s8630_s18, %s9395_s18   ;;  %s8583_s17 = sphi %s8628_s17, %s9394_s17   ;;  %s8579_s16 = sphi %s8626_s16, %s9393_s16   ;;  %s8575_s15 = sphi %s8624_s15, %s9392_s15  }
   0x4   : > { %p24_p0 = scmp.ge.s32.totalorder %s23_s20, 2  ;;  %p6633_p1 = scmp.ge.s32.totalorder %s8591_s19, 1 }
   0x5   : > { %p209_p2 = scmp.lt.s32.totalorder %s8591_s19, 5 }
   0x6   : > { %s9397_s20 = smov (%p24_p0, %s23_s20), 0  ;;  %s9399_s21 = smov (!%p24_p0, %s26_s21), %s8587_s18 }
   0x7   : > { %p210_p3 = pnand %p6633_p1, %p209_p2  ;;  %p28_p4 = scmp.ge.s32.totalorder %s9399_s21, 2 }
   0x8   : > { %s250_s22 = smul.u32 (!%p210_p3), 67, %s8575_s15  ;;  %p256_p5 = scmp.lt.s32.totalorder (!%p210_p3), %s8579_s16, 1 }
   0x9   : > { %s9401_s21 = smov (%p28_p4, %s9399_s21), 0  ;;  %213 = sbr.rel (%p210_p3) target bundleno = 1025 (0x401), region = 36 }
   0xa   : > { %s255_s23 = smul.u32 (!%p210_p3), 1072, %s8575_s15  ;;  %p251_p6 = scmp.lt.s32.totalorder (!%p210_p3), %s250_s22, 133 }
   0xb   : > { %p6638_p8 = scmp.ne.s32.totalorder (!%p210_p3), %s8575_s15, 0 }
   0xc   : > { %p258_p7 = scmp.lt.s32.totalorder (!%p210_p3), %s255_s23, 2143 }
  0x10   : > { %s9403_s16 = smov (!%p256_p5, %s8579_s16), 1  ;;  %s9405_s22 = smov (!%p251_p6, %s250_s22), 133 }
  0x11   : > { %s7958_s24 = smul.u32 2144, %s9403_s16  ;;  %s8664_s27 = scalar_lea.vmem %s9387_s0, %s9405_s22  ;;  %vm282_vm0 = vcmask (!%p6638_p8), 517120   ;;  %v8593_v0 = vmov (!%p6638_p8), 0.0  }
  0x12   : > { %s267_s30 = scalar_lea.vmem %s9389_s2, %s9403_s16  ;;  %s9407_s23 = smov (!%p258_p7, %s255_s23), 2143  ;;  %283 = vst.msk [vmem:[#allocation2] sm:$0x3] (!%p6638_p8), %vm282_vm0, %v8593_v0 }
  0x13   : > { %s7185_s5 = sshll.u32 %s9403_s16, 5  ;;  %s6637_s6 = sshll.u32 %s9403_s16, 1 }
  0x14   : > { %s261_s7 = sadd.s32 %s7958_s24, %s9407_s23  ;;  %s8675_s10 = scalar_lea.vmem %s9390_s3, %s7185_s5 }
  0x15   : > { %s6634_s11 = sshll.u32 %s261_s7, 2  ;;  %s8680_s14 = scalar_lea.vmem %s9391_s4, %s6637_s6 }
  0x16   : > { %s8685_s26 = scalar_lea.vmem %s9388_s1, %s6634_s11  ;;  %281 = sbr.rel (%p6638_p8) target bundleno = 29 (0x1d), region = 40 }
  0x1d PF: > { %v8005_v1 = vld [vmem:[%s8685_s26 + $0x40] sm:$0xff]   ;;  %v8009_v5 = vld [vmem:[%s8685_s26 + $0x48] sm:$0xff]   ;;  %v8013_v9 = vld [vmem:[%s8685_s26 + $0x50] sm:$0xff]   ;;  %v1379_v30 = vlaneseq  ;;  %v8594_v36 = vmov 1966171168   ;;  %vm8596_vm1 = vmmov 0  }
  0x1e   : > { %v8006_v2 = vld [vmem:[%s8685_s26 + $0xc0] sm:$0xff]   ;;  %7186 = vmatprep.subr.bf16.mxu0 %v8005_v1  ;;  %v8010_v6 = vld [vmem:[%s8685_s26 + $0xc8] sm:$0xff]   ;;  %v8014_v10 = vld [vmem:[%s8685_s26 + $0xd0] sm:$0xff]   ;;  %v1377_v37 = vunpack.c.l.s4 %v8594_v36  ;;  %vm6434_vm2 = vcmask 517120   ;;  %p7176_p9 = scmp.ne.s32.totalorder %s8575_s15, 1 }
  0x1f   : > { %v8007_v3 = vld [vmem:[%s8685_s26] sm:$0xff]   ;;  %7208 = vmatprep.subr.bf16.mxu1 %v8006_v2  ;;  %v8011_v7 = vld [vmem:[%s8685_s26 + $0x8] sm:$0xff]   ;;  %v8015_v11 = vld [vmem:[%s8685_s26 + $0x10] sm:$0xff]   ;;  %v1380_v34 = vshrl.u32 %v1379_v30, 7  ;;  %vm8598_vm3 = vmmov (!%p7176_p9), 0   ;;  %vm6483_vm4 = vcmask (!%p7176_p9), 523264  }
  0x20   : > { %v8008_v4 = vld [vmem:[%s8685_s26 + $0x80] sm:$0xff]   ;;  %7187 = vmatpush3.bf16.msra.mxu0 %v8007_v3  ;;  %v8012_v8 = vld [vmem:[%s8685_s26 + $0x88] sm:$0xff]   ;;  %v8016_v12 = vld [vmem:[%s8685_s26 + $0x90] sm:$0xff]   ;;  %v1378_v40 = vunpack.c.0.s8 %v1377_v37  ;;  %vm6527_vm5 = vcmask (!%p7176_p9), 25600  }
  0x21   : > { %7209 = vmatpush3.bf16.msra.mxu1 %v8008_v4  ;;  %7188 = vmatprep.subr.bf16.mxu0 %v8009_v5  ;;  %v8017_v13 = vld [vmem:[%s8685_s26 + $0x58] sm:$0xff]   ;;  %v8021_v17 = vld [vmem:[%s8685_s26 + $0x60] sm:$0xff]   ;;  %v8025_v21 = vld [vmem:[%s8685_s26 + $0x68] sm:$0xff]  }
  0x22   : > { %7210 = vmatprep.subr.bf16.mxu1 %v8010_v6  ;;  %v8018_v14 = vld [vmem:[%s8685_s26 + $0xd8] sm:$0xff]   ;;  %v8022_v18 = vld [vmem:[%s8685_s26 + $0xe0] sm:$0xff]   ;;  %v8026_v22 = vld [vmem:[%s8685_s26 + $0xe8] sm:$0xff]   ;;  %v8723_v42 = vsub.s32 %v1378_v40, %v1380_v34 }
  0x23   : > { %v8019_v15 = vld [vmem:[%s8685_s26 + $0x18] sm:$0xff]   ;;  %v8023_v19 = vld [vmem:[%s8685_s26 + $0x20] sm:$0xff]   ;;  %v8027_v23 = vld [vmem:[%s8685_s26 + $0x28] sm:$0xff]  }
  0x24   : > { %7189 = vmatpush3.bf16.msra.mxu0 %v8011_v7  ;;  %v8020_v16 = vld [vmem:[%s8685_s26 + $0x98] sm:$0xff]   ;;  %v8024_v20 = vld [vmem:[%s8685_s26 + $0xa0] sm:$0xff]   ;;  %v8028_v24 = vld [vmem:[%s8685_s26 + $0xa8] sm:$0xff]  }
  0x25   : > { %7211 = vmatpush3.bf16.msra.mxu1 %v8012_v8  ;;  %7190 = vmatprep.subr.bf16.mxu0 %v8013_v9  ;;  %v8029_v25 = vld [vmem:[%s8685_s26 + $0x70] sm:$0xff]   ;;  %v8033_v29 = vld [vmem:[%s8685_s26 + $0x78] sm:$0xff]   ;;  %v8038_v35 = vld [vmem:[%s8685_s26 + $0x140] sm:$0xff]  }
  0x26   : > { %7212 = vmatprep.subr.bf16.mxu1 %v8014_v10  ;;  %v8030_v26 = vld [vmem:[%s8685_s26 + $0xf0] sm:$0xff]   ;;  %v8034_v31 = vld [vmem:[%s8685_s26 + $0xf8] sm:$0xff]   ;;  %v285_v38 = vld [vmem:[%s8664_s27] sm:$0xff] }
  0x27   : > { %v8031_v27 = vld [vmem:[%s8685_s26 + $0x30] sm:$0xff]   ;;  %v8035_v32 = vld [vmem:[%s8685_s26 + $0x38] sm:$0xff]   ;;  %v1375_v39 = vcombine.high %v285_v38, %v285_v38  ;;  %v8040_v41 = vld [vmem:[%s8685_s26 + $0x1c0] sm:$0xff]   ;;  %v1382_v43 = vrot.slane %v285_v38, %v8723_v42 }
  0x28   : > { %7191 = vmatpush3.bf16.msra.mxu0 %v8015_v11  ;;  %v8032_v28 = vld [vmem:[%s8685_s26 + $0xb0] sm:$0xff]   ;;  %v8036_v33 = vld [vmem:[%s8685_s26 + $0xb8] sm:$0xff]   ;;  %v8039_v48 = vld [vmem:[%s8685_s26 + $0x100] sm:$0xff]  }
  0x29   : > { %7213 = vmatpush3.bf16.msra.mxu1 %v8016_v12  ;;  %7192 = vmatprep.subr.bf16.mxu0 %v8017_v13  ;;  %v8727_v44 = vrot.slane %v1375_v39, %v8723_v42  ;;  %v1390_v45 = vcombine.high %v1382_v43, %v1382_v43  ;;  %v1398_v46 = vrot.slane %v1382_v43, %v8723_v42  ;;  %v8041_v50 = vld [vmem:[%s8685_s26 + $0x180] sm:$0xff]   ;;  %v8042_v53 = vld [vmem:[%s8685_s26 + $0x148] sm:$0xff]   ;;  %v8046_v59 = vld [vmem:[%s8685_s26 + $0x150] sm:$0xff]  }
  0x2a   : > { %7214 = vmatprep.subr.bf16.mxu1 %v8018_v14  ;;  %v8043_v55 = vld [vmem:[%s8685_s26 + $0x108] sm:$0xff]   ;;  %v8047_v60 = vld [vmem:[%s8685_s26 + $0x110] sm:$0xff]   ;;  %v8050_v63 = vld [vmem:[%s8685_s26 + $0x158] sm:$0xff]  }
  0x2b   : > { %v1391_v47 = vcombine.high %v8727_v44, %v8727_v44  ;;  %v1412_v49 = vrot.slane %v1390_v45, %v8723_v42  ;;  %v1420_v52 = vcombine.high %v1398_v46, %v1398_v46  ;;  %v8044_v56 = vld [vmem:[%s8685_s26 + $0x1c8] sm:$0xff]   ;;  %v8048_v61 = vld [vmem:[%s8685_s26 + $0x1d0] sm:$0xff]   ;;  %v8051_v0 = vld [vmem:[%s8685_s26 + $0x118] sm:$0xff]  }
  0x2c   : > { %7193 = vmatpush3.bf16.msra.mxu0 %v8019_v15  ;;  %v8045_v58 = vld [vmem:[%s8685_s26 + $0x188] sm:$0xff]   ;;  %v8049_v62 = vld [vmem:[%s8685_s26 + $0x190] sm:$0xff]   ;;  %v8052_v1 = vld [vmem:[%s8685_s26 + $0x1d8] sm:$0xff]  }
  0x2d   : > { %7215 = vmatpush3.bf16.msra.mxu1 %v8020_v16  ;;  %7194 = vmatprep.subr.bf16.mxu0 %v8021_v17  ;;  %v1419_v51 = vrot.slane %v1391_v47, %v8723_v42  ;;  %v1422_v54 = vcombine.high %v1412_v49, %v1412_v49  ;;  %v8053_v2 = vld [vmem:[%s8685_s26 + $0x198] sm:$0xff]   ;;  %v8054_v3 = vld [vmem:[%s8685_s26 + $0x160] sm:$0xff]   ;;  %v8058_v7 = vld [vmem:[%s8685_s26 + $0x168] sm:$0xff]  }
  0x2e   : > { %7216 = vmatprep.subr.bf16.mxu1 %v8022_v18  ;;  %5105 = vmatprep.mubr.bf16.mxu0 %v1412_v49  ;;  %v8055_v4 = vld [vmem:[%s8685_s26 + $0x120] sm:$0xff]   ;;  %v8059_v8 = vld [vmem:[%s8685_s26 + $0x128] sm:$0xff]   ;;  %v8062_v11 = vld [vmem:[%s8685_s26 + $0x170] sm:$0xff]  }
  0x2f   : > { %v1423_v57 = vcombine.high %v1419_v51, %v1419_v51  ;;  %5145 = vmatprep.mubr.bf16.mxu1 %v1422_v54  ;;  %v8056_v5 = vld [vmem:[%s8685_s26 + $0x1e0] sm:$0xff]   ;;  %v8060_v9 = vld [vmem:[%s8685_s26 + $0x1e8] sm:$0xff]   ;;  %v8063_v12 = vld [vmem:[%s8685_s26 + $0x130] sm:$0xff]  }
  0x30   : > { %7195 = vmatpush3.bf16.msra.mxu0 %v8023_v19  ;;  %v8057_v6 = vld [vmem:[%s8685_s26 + $0x1a0] sm:$0xff]   ;;  %v8061_v10 = vld [vmem:[%s8685_s26 + $0x1a8] sm:$0xff]   ;;  %v8064_v13 = vld [vmem:[%s8685_s26 + $0x1f0] sm:$0xff]   ;;  %v1405_v19 = vrot.slane %v8727_v44, %v8723_v42 }
  0x31   : > { %7217 = vmatpush3.bf16.msra.mxu1 %v8024_v20  ;;  %7196 = vmatprep.subr.bf16.mxu0 %v8025_v21  ;;  %v8065_v14 = vld [vmem:[%s8685_s26 + $0x1b0] sm:$0xff]   ;;  %v8066_v15 = vld [vmem:[%s8685_s26 + $0x178] sm:$0xff]   ;;  %v8070_v20 = vld [vmem:[%s8685_s26 + $0x240] sm:$0xff]  }
  0x32   : > { %7218 = vmatprep.subr.bf16.mxu1 %v8026_v22  ;;  %v8067_v16 = vld [vmem:[%s8685_s26 + $0x138] sm:$0xff]   ;;  %v8071_v21 = vld [vmem:[%s8685_s26 + $0x200] sm:$0xff]   ;;  %v8079_v30 = vld [vmem:[%s8685_s26 + $0x210] sm:$0xff]  }
  0x33   : > { %v8068_v17 = vld [vmem:[%s8685_s26 + $0x1f8] sm:$0xff]   ;;  %v8072_v22 = vld [vmem:[%s8685_s26 + $0x2c0] sm:$0xff]   ;;  %v8091_v43 = vld [vmem:[%s8685_s26 + $0x228] sm:$0xff]  }
  0x34   : > { %7197 = vmatpush3.bf16.msra.mxu0 %v8027_v23  ;;  %v8069_v18 = vld [vmem:[%s8685_s26 + $0x1b8] sm:$0xff]   ;;  %v8073_v23 = vld [vmem:[%s8685_s26 + $0x280] sm:$0xff]   ;;  %v8092_v44 = vld [vmem:[%s8685_s26 + $0x2e8] sm:$0xff]  }
  0x35   : > { %7219 = vmatpush3.bf16.msra.mxu1 %v8028_v24  ;;  %7198 = vmatprep.subr.bf16.mxu0 %v8029_v25  ;;  %v1421_v24 = vcombine.high %v1405_v19, %v1405_v19  ;;  %v8074_v25 = vld [vmem:[%s8685_s26 + $0x248] sm:$0xff]   ;;  %v8083_v34 = vld [vmem:[%s8685_s26 + $0x218] sm:$0xff]   ;;  %v8086_v37 = vld [vmem:[%s8685_s26 + $0x260] sm:$0xff]  }
  0x36   : > { %7220 = vmatprep.subr.bf16.mxu1 %v8030_v26  ;;  %v8075_v26 = vld [vmem:[%s8685_s26 + $0x208] sm:$0xff]   ;;  %v8085_v36 = vld [vmem:[%s8685_s26 + $0x298] sm:$0xff]   ;;  %v8087_v38 = vld [vmem:[%s8685_s26 + $0x220] sm:$0xff]  }
  0x37   : > { %v8088_v39 = vld [vmem:[%s8685_s26 + $0x2e0] sm:$0xff]   ;;  %v8093_v45 = vld [vmem:[%s8685_s26 + $0x2a8] sm:$0xff]   ;;  %v8094_v47 = vld [vmem:[%s8685_s26 + $0x270] sm:$0xff]  }
  0x38   : > { %7199 = vmatpush3.bf16.msra.mxu0 %v8031_v27  ;;  %v8076_v27 = vld [vmem:[%s8685_s26 + $0x2c8] sm:$0xff]   ;;  %v8089_v40 = vld [vmem:[%s8685_s26 + $0x2a0] sm:$0xff]   ;;  %v8097_v54 = vld [vmem:[%s8685_s26 + $0x2b0] sm:$0xff]  }
  0x39   : > { %7221 = vmatpush3.bf16.msra.mxu1 %v8032_v28  ;;  %7200 = vmatprep.subr.bf16.mxu0 %v8033_v29  ;;  %v8077_v28 = vld [vmem:[%s8685_s26 + $0x288] sm:$0xff]   ;;  %v8078_v29 = vld [vmem:[%s8685_s26 + $0x250] sm:$0xff]  }
  0x3a   : > { %7222 = vmatprep.subr.bf16.mxu1 %v8034_v31  ;;  %v8080_v31 = vld [vmem:[%s8685_s26 + $0x2d0] sm:$0xff]  }
  0x3c   : > { %7201 = vmatpush3.bf16.msra.mxu0 %v8035_v32  ;;  %v8081_v32 = vld [vmem:[%s8685_s26 + $0x290] sm:$0xff]  }
  0x3d   : > { %7223 = vmatpush3.bf16.msra.mxu1 %v8036_v33  ;;  %7230 = vmatprep.subr.bf16.mxu0 %v8038_v35  ;;  %v8082_v33 = vld [vmem:[%s8685_s26 + $0x258] sm:$0xff]  }
  0x3e   : > { %7252 = vmatprep.subr.bf16.mxu1 %v8040_v41  ;;  %v8084_v35 = vld [vmem:[%s8685_s26 + $0x2d8] sm:$0xff]   ;;  %v8090_v41 = vld [vmem:[%s8685_s26 + $0x268] sm:$0xff]  }
  0x3f   : > { %5106 = vmatmul.mubr.bf16.vlgmr.msra.gmra.mrb[0].mxu0 %v1398_v46  ;;  %v286_v46 = vld [vmem:[%s8664_s27 + $0x8] sm:$0xff] }
  0x40   : > { %7231 = vmatpush3.bf16.msra.mxu0 %v8039_v48  ;;  %5146 = vmatmul.mubr.bf16.vlgmr.msra.gmra.mrb[0].mxu1 %v1420_v52  ;;  %v1431_v48 = vrot.slane %v286_v46, %v8723_v42  ;;  %v1424_v49 = vcombine.high %v286_v46, %v286_v46  ;;  %v8144_v46 = vld [vmem:[%s8685_s26 + $0x410] sm:$0xff]  }
  0x41   : > { %7232 = vmatprep.subr.bf16.mxu0 %v8042_v53  ;;  %7253 = vmatpush3.bf16.msra.mxu1 %v8041_v50  ;;  %v8095_v50 = vld [vmem:[%s8685_s26 + $0x230] sm:$0xff]  }
  0x42   : > { %5185 = vmatprep.mubr.bf16.mxu0 %v1419_v51  ;;  %7254 = vmatprep.subr.bf16.mxu1 %v8044_v56  ;;  %v8096_v51 = vld [vmem:[%s8685_s26 + $0x2f0] sm:$0xff]   ;;  %v1439_v52 = vcombine.high %v1431_v48, %v1431_v48  ;;  %v8796_v53 = vrot.slane %v1424_v49, %v8723_v42  ;;  %v8147_v49 = vld [vmem:[%s8685_s26 + $0x458] sm:$0xff]  }
  0x43   : > { %5225 = vmatprep.mubr.bf16.mxu1 %v1423_v57  ;;  %v8099_v57 = vld [vmem:[%s8685_s26 + $0x238] sm:$0xff]  }
  0x44   : > { %7233 = vmatpush3.bf16.msra.mxu0 %v8043_v55  ;;  %v8098_v55 = vld [vmem:[%s8685_s26 + $0x278] sm:$0xff]   ;;  %v1461_v56 = vrot.slane %v1439_v52, %v8723_v42 }
  0x45   : > { %7234 = vmatprep.subr.bf16.mxu0 %v8046_v59  ;;  %7255 = vmatpush3.bf16.msra.mxu1 %v8045_v58  ;;  %v1440_v58 = vcombine.high %v8796_v53, %v8796_v53  ;;  %v8100_v59 = vld [vmem:[%s8685_s26 + $0x2f8] sm:$0xff]  }
  0x46   : > { %7256 = vmatprep.subr.bf16.mxu1 %v8048_v61  ;;  %v8101_v61 = vld [vmem:[%s8685_s26 + $0x2b8] sm:$0xff]  }
  0x47   : > { %v8150_v52 = vld [vmem:[%s8685_s26 + $0x498] sm:$0xff]  }
  0x48   : > { %7235 = vmatpush3.bf16.msra.mxu0 %v8047_v60  ;;  %v1471_v60 = vcombine.high %v1461_v56, %v1461_v56 }
  0x49   : > { %7236 = vmatprep.subr.bf16.mxu0 %v8050_v63  ;;  %7257 = vmatpush3.bf16.msra.mxu1 %v8049_v62  ;;  %v1447_v62 = vrot.slane %v1431_v48, %v8723_v42  ;;  %v8102_v63 = vld [vmem:[%s8685_s26 + $0x340] sm:$0xff]   ;;  %v8146_v48 = vld [vmem:[%s8685_s26 + $0x490] sm:$0xff]  }
  0x4a   : > { %7258 = vmatprep.subr.bf16.mxu1 %v8052_v1  ;;  %v1468_v1 = vrot.slane %v1440_v58, %v8723_v42  ;;  %v8156_v58 = vld [vmem:[%s8685_s26 + $0x428] sm:$0xff]  }
  0x4c   : > { %7237 = vmatpush3.bf16.msra.mxu0 %v8051_v0  ;;  %v8103_v0 = vld [vmem:[%s8685_s26 + $0x300] sm:$0xff]  }
  0x4d   : > { %7238 = vmatprep.subr.bf16.mxu0 %v8054_v3  ;;  %7259 = vmatpush3.bf16.msra.mxu1 %v8053_v2  ;;  %v8104_v2 = vld [vmem:[%s8685_s26 + $0x3c0] sm:$0xff]  }
  0x4e   : > { %7260 = vmatprep.subr.bf16.mxu1 %v8056_v5  ;;  %v8105_v3 = vld [vmem:[%s8685_s26 + $0x380] sm:$0xff]   ;;  %v8106_v5 = vld [vmem:[%s8685_s26 + $0x348] sm:$0xff]  }
  0x50   : > { %7239 = vmatpush3.bf16.msra.mxu0 %v8055_v4  ;;  %v1469_v4 = vcombine.high %v1447_v62, %v1447_v62 }
  0x51   : > { %7240 = vmatprep.subr.bf16.mxu0 %v8058_v7  ;;  %7261 = vmatpush3.bf16.msra.mxu1 %v8057_v6  ;;  %v8107_v6 = vld [vmem:[%s8685_s26 + $0x308] sm:$0xff]   ;;  %v1472_v7 = vcombine.high %v1468_v1, %v1468_v1 }
  0x52   : > { %7262 = vmatprep.subr.bf16.mxu1 %v8060_v9  ;;  %v8109_v9 = vld [vmem:[%s8685_s26 + $0x388] sm:$0xff]  }
  0x54   : > { %7241 = vmatpush3.bf16.msra.mxu0 %v8059_v8  ;;  %v8108_v8 = vld [vmem:[%s8685_s26 + $0x3c8] sm:$0xff]  }
  0x55   : > { %7242 = vmatprep.subr.bf16.mxu0 %v8062_v11  ;;  %7263 = vmatpush3.bf16.msra.mxu1 %v8061_v10  ;;  %v8110_v10 = vld [vmem:[%s8685_s26 + $0x350] sm:$0xff]  }
  0x56   : > { %7264 = vmatprep.subr.bf16.mxu1 %v8064_v13  ;;  %v8111_v11 = vld [vmem:[%s8685_s26 + $0x310] sm:$0xff]  }
  0x57   : > { %v8113_v13 = vld [vmem:[%s8685_s26 + $0x390] sm:$0xff]  }
  0x58   : > { %7243 = vmatpush3.bf16.msra.mxu0 %v8063_v12  ;;  %v8112_v12 = vld [vmem:[%s8685_s26 + $0x3d0] sm:$0xff]  }
  0x59   : > { %7244 = vmatprep.subr.bf16.mxu0 %v8066_v15  ;;  %7265 = vmatpush3.bf16.msra.mxu1 %v8065_v14  ;;  %v8114_v14 = vld [vmem:[%s8685_s26 + $0x358] sm:$0xff]  }
  0x5a   : > { %7266 = vmatprep.subr.bf16.mxu1 %v8068_v17  ;;  %v8115_v15 = vld [vmem:[%s8685_s26 + $0x318] sm:$0xff]  }
  0x5b   : > { %v8117_v17 = vld [vmem:[%s8685_s26 + $0x398] sm:$0xff]  }
  0x5c   : > { %7245 = vmatpush3.bf16.msra.mxu0 %v8067_v16  ;;  %v8116_v16 = vld [vmem:[%s8685_s26 + $0x3d8] sm:$0xff]  }
  0x5d   : > { %7274 = vmatprep.subr.bf16.mxu0 %v8070_v20  ;;  %7267 = vmatpush3.bf16.msra.mxu1 %v8069_v18  ;;  %v8118_v18 = vld [vmem:[%s8685_s26 + $0x360] sm:$0xff]  }
  0x5e   : > { %7296 = vmatprep.subr.bf16.mxu1 %v8072_v22  ;;  %v8120_v20 = vld [vmem:[%s8685_s26 + $0x3e0] sm:$0xff]   ;;  %v8122_v22 = vld [vmem:[%s8685_s26 + $0x368] sm:$0xff]  }
  0x5f   : > { %5186 = vmatmul.mubr.bf16.vlgmr.msra.gmra.mrb[4].mxu0 %v1405_v19  ;;  %v8119_v19 = vld [vmem:[%s8685_s26 + $0x320] sm:$0xff]  }
  0x60   : > { %7275 = vmatpush3.bf16.msra.mxu0 %v8071_v21  ;;  %5226 = vmatmul.mubr.bf16.vlgmr.msra.gmra.mrb[4].mxu1 %v1421_v24  ;;  %v8121_v21 = vld [vmem:[%s8685_s26 + $0x3a0] sm:$0xff]   ;;  %v8124_v24 = vld [vmem:[%s8685_s26 + $0x3e8] sm:$0xff]  }
  0x61   : > { %7276 = vmatprep.subr.bf16.mxu0 %v8074_v25  ;;  %7297 = vmatpush3.bf16.msra.mxu1 %v8073_v23  ;;  %v8123_v23 = vld [vmem:[%s8685_s26 + $0x328] sm:$0xff]  }
  0x62   : > { %7298 = vmatprep.subr.bf16.mxu1 %v8076_v27  ;;  %5265 = vmatprep.mubr.bf16.mxu0 %v1461_v56  ;;  %v8125_v25 = vld [vmem:[%s8685_s26 + $0x3a8] sm:$0xff]   ;;  %v8127_v27 = vld [vmem:[%s8685_s26 + $0x330] sm:$0xff]   ;;  %v8154_v56 = vld [vmem:[%s8685_s26 + $0x4a0] sm:$0xff]  }
  0x63   : > { %5305 = vmatprep.mubr.bf16.mxu1 %v1471_v60  ;;  %v8158_v60 = vld [vmem:[%s8685_s26 + $0x4a8] sm:$0xff]  }
  0x64   : > { %7277 = vmatpush3.bf16.msra.mxu0 %v8075_v26  ;;  %v8126_v26 = vld [vmem:[%s8685_s26 + $0x370] sm:$0xff]  }
  0x65   : > { %7278 = vmatprep.subr.bf16.mxu0 %v8078_v29  ;;  %7299 = vmatpush3.bf16.msra.mxu1 %v8077_v28  ;;  %v8128_v28 = vld [vmem:[%s8685_s26 + $0x3f0] sm:$0xff]  }
  0x66   : > { %7300 = vmatprep.subr.bf16.mxu1 %v8080_v31  ;;  %v8129_v29 = vld [vmem:[%s8685_s26 + $0x3b0] sm:$0xff]   ;;  %v8131_v31 = vld [vmem:[%s8685_s26 + $0x338] sm:$0xff]  }
  0x68   : > { %7279 = vmatpush3.bf16.msra.mxu0 %v8079_v30  ;;  %v8130_v30 = vld [vmem:[%s8685_s26 + $0x378] sm:$0xff]  }
  0x69   : > { %7280 = vmatprep.subr.bf16.mxu0 %v8082_v33  ;;  %7301 = vmatpush3.bf16.msra.mxu1 %v8081_v32  ;;  %v8132_v32 = vld [vmem:[%s8685_s26 + $0x3f8] sm:$0xff]  }
  0x6a   : > { %7302 = vmatprep.subr.bf16.mxu1 %v8084_v35  ;;  %v8134_v33 = vld [vmem:[%s8685_s26 + $0x3b8] sm:$0xff]   ;;  %v8135_v35 = vld [vmem:[%s8685_s26 + $0x440] sm:$0xff]  }
  0x6c   : > { %7281 = vmatpush3.bf16.msra.mxu0 %v8083_v34  ;;  %v1454_v34 = vrot.slane %v8796_v53, %v8723_v42  ;;  %v8151_v53 = vld [vmem:[%s8685_s26 + $0x460] sm:$0xff]  }
  0x6d   : > { %7282 = vmatprep.subr.bf16.mxu0 %v8086_v37  ;;  %7303 = vmatpush3.bf16.msra.mxu1 %v8085_v36  ;;  %v8136_v36 = vld [vmem:[%s8685_s26 + $0x400] sm:$0xff]  }
  0x6e   : > { %7304 = vmatprep.subr.bf16.mxu1 %v8088_v39  ;;  %v8137_v37 = vld [vmem:[%s8685_s26 + $0x4c0] sm:$0xff]   ;;  %v1470_v39 = vcombine.high %v1454_v34, %v1454_v34 }
  0x70   : > { %7283 = vmatpush3.bf16.msra.mxu0 %v8087_v38  ;;  %v8138_v38 = vld [vmem:[%s8685_s26 + $0x480] sm:$0xff]  }
  0x71   : > { %7284 = vmatprep.subr.bf16.mxu0 %v8090_v41  ;;  %7305 = vmatpush3.bf16.msra.mxu1 %v8089_v40  ;;  %v8139_v40 = vld [vmem:[%s8685_s26 + $0x448] sm:$0xff]  }
  0x72   : > { %7306 = vmatprep.subr.bf16.mxu1 %v8092_v44  ;;  %v8140_v41 = vld [vmem:[%s8685_s26 + $0x408] sm:$0xff]  }
  0x73   : > { %v8142_v44 = vld [vmem:[%s8685_s26 + $0x488] sm:$0xff]  }
  0x74   : > { %7285 = vmatpush3.bf16.msra.mxu0 %v8091_v43  ;;  %v8141_v43 = vld [vmem:[%s8685_s26 + $0x4c8] sm:$0xff]  }
  0x75   : > { %7286 = vmatprep.subr.bf16.mxu0 %v8094_v47  ;;  %7307 = vmatpush3.bf16.msra.mxu1 %v8093_v45  ;;  %v8143_v45 = vld [vmem:[%s8685_s26 + $0x450] sm:$0xff]  }
  0x76   : > { %7308 = vmatprep.subr.bf16.mxu1 %v8096_v51  ;;  %v8145_v47 = vld [vmem:[%s8685_s26 + $0x4d0] sm:$0xff]   ;;  %v8149_v51 = vld [vmem:[%s8685_s26 + $0x4d8] sm:$0xff]  }
  0x78   : > { %7287 = vmatpush3.bf16.msra.mxu0 %v8095_v50  ;;  %v8148_v50 = vld [vmem:[%s8685_s26 + $0x418] sm:$0xff]  }
  0x79   : > { %7288 = vmatprep.subr.bf16.mxu0 %v8098_v55  ;;  %7309 = vmatpush3.bf16.msra.mxu1 %v8097_v54  ;;  %v8152_v54 = vld [vmem:[%s8685_s26 + $0x420] sm:$0xff]  }
  0x7a   : > { %7310 = vmatprep.subr.bf16.mxu1 %v8100_v59  ;;  %v8153_v55 = vld [vmem:[%s8685_s26 + $0x4e0] sm:$0xff]   ;;  %v8157_v59 = vld [vmem:[%s8685_s26 + $0x4e8] sm:$0xff]  }
  0x7c   : > { %7289 = vmatpush3.bf16.msra.mxu0 %v8099_v57  ;;  %v8155_v57 = vld [vmem:[%s8685_s26 + $0x468] sm:$0xff]  }
  0x7d   : > { %7318 = vmatprep.subr.bf16.mxu0 %v8102_v63  ;;  %7311 = vmatpush3.bf16.msra.mxu1 %v8101_v61  ;;  %v287_v61 = vld [vmem:[%s8664_s27 + $0x10] sm:$0xff] }
  0x7e   : > { %7340 = vmatprep.subr.bf16.mxu1 %v8104_v2  ;;  %v1480_v63 = vrot.slane %v287_v61, %v8723_v42  ;;  %v8161_v2 = vld [vmem:[%s8685_s26 + $0x4f0] sm:$0xff]  }
  0x7f   : > { %5266 = vmatmul.mubr.bf16.vlgmr.msra.gmra.mrb[8].mxu0 %v1447_v62  ;;  %v8159_v62 = vld [vmem:[%s8685_s26 + $0x470] sm:$0xff]  }
  0x80   : > { %7319 = vmatpush3.bf16.msra.mxu0 %v8103_v0  ;;  %5345 = vmatprep.mubr.bf16.mxu0 %v1468_v1  ;;  %v1473_v0 = vcombine.high %v287_v61, %v287_v61  ;;  %v8160_v1 = vld [vmem:[%s8685_s26 + $0x430] sm:$0xff]  }
  0x81   : > { %5306 = vmatmul.mubr.bf16.vlgmr.msra.gmra.mrb[8].mxu1 %v1469_v4  ;;  %7320 = vmatprep.subr.bf16.mxu0 %v8106_v5  ;;  %v8162_v5 = vld [vmem:[%s8685_s26 + $0x4b0] sm:$0xff]  }
  0x82   : > { %7341 = vmatpush3.bf16.msra.mxu1 %v8105_v3  ;;  %5385 = vmatprep.mubr.bf16.mxu1 %v1472_v7  ;;  %v1488_v3 = vcombine.high %v1480_v63, %v1480_v63  ;;  %v8872_v4 = vrot.slane %v1473_v0, %v8723_v42  ;;  %v8209_v61 = vld [vmem:[%s8685_s26 + $0x610] sm:$0xff]   ;;  %v8212_v0 = vld [vmem:[%s8685_s26 + $0x658] sm:$0xff]  }
  0x83   : > { %7342 = vmatprep.subr.bf16.mxu1 %v8108_v8  ;;  %v8164_v8 = vld [vmem:[%s8685_s26 + $0x438] sm:$0xff]  }
  0x84   : > { %7321 = vmatpush3.bf16.msra.mxu0 %v8107_v6  ;;  %v8163_v6 = vld [vmem:[%s8685_s26 + $0x478] sm:$0xff]   ;;  %v1510_v7 = vrot.slane %v1488_v3, %v8723_v42 }
  0x85   : > { %7322 = vmatprep.subr.bf16.mxu0 %v8110_v10  ;;  %v8165_v10 = vld [vmem:[%s8685_s26 + $0x4f8] sm:$0xff]  }
  0x86   : > { %7343 = vmatpush3.bf16.msra.mxu1 %v8109_v9  ;;  %v1489_v9 = vcombine.high %v8872_v4, %v8872_v4  ;;  %v8215_v3 = vld [vmem:[%s8685_s26 + $0x698] sm:$0xff]  }
  0x87   : > { %7344 = vmatprep.subr.bf16.mxu1 %v8112_v12  ;;  %v8166_v12 = vld [vmem:[%s8685_s26 + $0x4b8] sm:$0xff]  }
  0x88   : > { %7323 = vmatpush3.bf16.msra.mxu0 %v8111_v11  ;;  %v1520_v11 = vcombine.high %v1510_v7, %v1510_v7 }
  0x89   : > { %7324 = vmatprep.subr.bf16.mxu0 %v8114_v14  ;;  %v8167_v14 = vld [vmem:[%s8685_s26 + $0x540] sm:$0xff]  }
  0x8a   : > { %7345 = vmatpush3.bf16.msra.mxu1 %v8113_v13  ;;  %v1496_v13 = vrot.slane %v1480_v63, %v8723_v42  ;;  %v8211_v63 = vld [vmem:[%s8685_s26 + $0x690] sm:$0xff]  }
  0x8b   : > { %7346 = vmatprep.subr.bf16.mxu1 %v8116_v16  ;;  %v1517_v16 = vrot.slane %v1489_v9, %v8723_v42  ;;  %v8221_v9 = vld [vmem:[%s8685_s26 + $0x628] sm:$0xff]  }
  0x8c   : > { %7325 = vmatpush3.bf16.msra.mxu0 %v8115_v15  ;;  %v8168_v15 = vld [vmem:[%s8685_s26 + $0x500] sm:$0xff]  }
  0x8d   : > { %7326 = vmatprep.subr.bf16.mxu0 %v8118_v18  ;;  %v8170_v18 = vld [vmem:[%s8685_s26 + $0x580] sm:$0xff]  }
  0x8e   : > { %7347 = vmatpush3.bf16.msra.mxu1 %v8117_v17  ;;  %v8169_v17 = vld [vmem:[%s8685_s26 + $0x5c0] sm:$0xff]  }
  0x8f   : > { %7348 = vmatprep.subr.bf16.mxu1 %v8120_v20  ;;  %v8171_v20 = vld [vmem:[%s8685_s26 + $0x548] sm:$0xff]  }
  0x90   : > { %7327 = vmatpush3.bf16.msra.mxu0 %v8119_v19  ;;  %v1518_v19 = vcombine.high %v1496_v13, %v1496_v13 }
  0x91   : > { %7328 = vmatprep.subr.bf16.mxu0 %v8122_v22  ;;  %v1521_v22 = vcombine.high %v1517_v16, %v1517_v16 }
  0x92   : > { %7349 = vmatpush3.bf16.msra.mxu1 %v8121_v21  ;;  %v8172_v21 = vld [vmem:[%s8685_s26 + $0x508] sm:$0xff]  }
  0x93   : > { %7350 = vmatprep.subr.bf16.mxu1 %v8124_v24  ;;  %v8174_v24 = vld [vmem:[%s8685_s26 + $0x588] sm:$0xff]  }
  0x94   : > { %7329 = vmatpush3.bf16.msra.mxu0 %v8123_v23  ;;  %v8173_v23 = vld [vmem:[%s8685_s26 + $0x5c8] sm:$0xff]  }
  0x95   : > { %7330 = vmatprep.subr.bf16.mxu0 %v8126_v26  ;;  %v8176_v26 = vld [vmem:[%s8685_s26 + $0x510] sm:$0xff]  }
  0x96   : > { %7351 = vmatpush3.bf16.msra.mxu1 %v8125_v25  ;;  %v8175_v25 = vld [vmem:[%s8685_s26 + $0x550] sm:$0xff]  }
  0x97   : > { %7352 = vmatprep.subr.bf16.mxu1 %v8128_v28  ;;  %v8178_v28 = vld [vmem:[%s8685_s26 + $0x590] sm:$0xff]  }
  0x98   : > { %7331 = vmatpush3.bf16.msra.mxu0 %v8127_v27  ;;  %v8177_v27 = vld [vmem:[%s8685_s26 + $0x5d0] sm:$0xff]  }
  0x99   : > { %7332 = vmatprep.subr.bf16.mxu0 %v8130_v30  ;;  %v8180_v30 = vld [vmem:[%s8685_s26 + $0x518] sm:$0xff]  }
  0x9a   : > { %7353 = vmatpush3.bf16.msra.mxu1 %v8129_v29  ;;  %v8179_v29 = vld [vmem:[%s8685_s26 + $0x558] sm:$0xff]  }
  0x9b   : > { %7354 = vmatprep.subr.bf16.mxu1 %v8132_v32  ;;  %v8182_v32 = vld [vmem:[%s8685_s26 + $0x598] sm:$0xff]  }
  0x9c   : > { %7333 = vmatpush3.bf16.msra.mxu0 %v8131_v31  ;;  %v8181_v31 = vld [vmem:[%s8685_s26 + $0x5d8] sm:$0xff]  }
  0x9d   : > { %7362 = vmatprep.subr.bf16.mxu0 %v8135_v35  ;;  %v8185_v35 = vld [vmem:[%s8685_s26 + $0x5e0] sm:$0xff]  }
  0x9e   : > { %7355 = vmatpush3.bf16.msra.mxu1 %v8134_v33  ;;  %v8183_v33 = vld [vmem:[%s8685_s26 + $0x560] sm:$0xff]  }
  0x9f   : > { %5346 = vmatmul.mubr.bf16.vlgmr.msra.gmra.mrb[12].mxu0 %v1454_v34  ;;  %7384 = vmatprep.subr.bf16.mxu1 %v8137_v37  ;;  %v8184_v34 = vld [vmem:[%s8685_s26 + $0x520] sm:$0xff]   ;;  %v8187_v37 = vld [vmem:[%s8685_s26 + $0x568] sm:$0xff]  }
  0xa0   : > { %7363 = vmatpush3.bf16.msra.mxu0 %v8136_v36  ;;  %5425 = vmatprep.mubr.bf16.mxu0 %v1510_v7  ;;  %v8186_v36 = vld [vmem:[%s8685_s26 + $0x5a0] sm:$0xff]  }
  0xa1   : > { %5386 = vmatmul.mubr.bf16.vlgmr.msra.gmra.mrb[12].mxu1 %v1470_v39  ;;  %7364 = vmatprep.subr.bf16.mxu0 %v8139_v40  ;;  %v8189_v39 = vld [vmem:[%s8685_s26 + $0x5e8] sm:$0xff]   ;;  %v8219_v7 = vld [vmem:[%s8685_s26 + $0x6a0] sm:$0xff]  }
  0xa2   : > { %7385 = vmatpush3.bf16.msra.mxu1 %v8138_v38  ;;  %5465 = vmatprep.mubr.bf16.mxu1 %v1520_v11  ;;  %v8188_v38 = vld [vmem:[%s8685_s26 + $0x528] sm:$0xff]  }
  0xa3   : > { %7386 = vmatprep.subr.bf16.mxu1 %v8141_v43  ;;  %v8190_v40 = vld [vmem:[%s8685_s26 + $0x5a8] sm:$0xff]   ;;  %v8192_v43 = vld [vmem:[%s8685_s26 + $0x530] sm:$0xff]  }
  0xa4   : > { %7365 = vmatpush3.bf16.msra.mxu0 %v8140_v41  ;;  %v8191_v41 = vld [vmem:[%s8685_s26 + $0x570] sm:$0xff]   ;;  %v8223_v11 = vld [vmem:[%s8685_s26 + $0x6a8] sm:$0xff]  }
  0xa5   : > { %7366 = vmatprep.subr.bf16.mxu0 %v8143_v45  ;;  %v8194_v45 = vld [vmem:[%s8685_s26 + $0x5b0] sm:$0xff]  }
  0xa6   : > { %7387 = vmatpush3.bf16.msra.mxu1 %v8142_v44  ;;  %v8193_v44 = vld [vmem:[%s8685_s26 + $0x5f0] sm:$0xff]  }
  0xa7   : > { %7388 = vmatprep.subr.bf16.mxu1 %v8145_v47  ;;  %v8196_v47 = vld [vmem:[%s8685_s26 + $0x538] sm:$0xff]  }
  0xa8   : > { %7367 = vmatpush3.bf16.msra.mxu0 %v8144_v46  ;;  %v8195_v46 = vld [vmem:[%s8685_s26 + $0x578] sm:$0xff]  }
  0xa9   : > { %7368 = vmatprep.subr.bf16.mxu0 %v8147_v49  ;;  %v8199_v49 = vld [vmem:[%s8685_s26 + $0x5b8] sm:$0xff]  }
  0xaa   : > { %7389 = vmatpush3.bf16.msra.mxu1 %v8146_v48  ;;  %v8197_v48 = vld [vmem:[%s8685_s26 + $0x5f8] sm:$0xff]  }
  0xab   : > { %7390 = vmatprep.subr.bf16.mxu1 %v8149_v51  ;;  %v8200_v51 = vld [vmem:[%s8685_s26 + $0x640] sm:$0xff]  }
  0xac   : > { %7369 = vmatpush3.bf16.msra.mxu0 %v8148_v50  ;;  %v1503_v50 = vrot.slane %v8872_v4, %v8723_v42  ;;  %v8216_v4 = vld [vmem:[%s8685_s26 + $0x660] sm:$0xff]  }
  0xad   : > { %7370 = vmatprep.subr.bf16.mxu0 %v8151_v53  ;;  %v8202_v53 = vld [vmem:[%s8685_s26 + $0x6c0] sm:$0xff]  }
  0xae   : > { %7391 = vmatpush3.bf16.msra.mxu1 %v8150_v52  ;;  %v8201_v52 = vld [vmem:[%s8685_s26 + $0x600] sm:$0xff]  }
  0xaf   : > { %7392 = vmatprep.subr.bf16.mxu1 %v8153_v55  ;;  %v1519_v55 = vcombine.high %v1503_v50, %v1503_v50 }
  0xb0   : > { %7371 = vmatpush3.bf16.msra.mxu0 %v8152_v54  ;;  %v8203_v54 = vld [vmem:[%s8685_s26 + $0x680] sm:$0xff]  }
  0xb1   : > { %7372 = vmatprep.subr.bf16.mxu0 %v8155_v57  ;;  %v8205_v57 = vld [vmem:[%s8685_s26 + $0x608] sm:$0xff]  }
  0xb2   : > { %7393 = vmatpush3.bf16.msra.mxu1 %v8154_v56  ;;  %v8204_v56 = vld [vmem:[%s8685_s26 + $0x648] sm:$0xff]  }
  0xb3   : > { %7394 = vmatprep.subr.bf16.mxu1 %v8157_v59  ;;  %v8207_v59 = vld [vmem:[%s8685_s26 + $0x688] sm:$0xff]  }
  0xb4   : > { %7373 = vmatpush3.bf16.msra.mxu0 %v8156_v58  ;;  %v8206_v58 = vld [vmem:[%s8685_s26 + $0x6c8] sm:$0xff]  }
  0xb5   : > { %7374 = vmatprep.subr.bf16.mxu0 %v8159_v62  ;;  %v8210_v62 = vld [vmem:[%s8685_s26 + $0x6d0] sm:$0xff]  }
  0xb6   : > { %7395 = vmatpush3.bf16.msra.mxu1 %v8158_v60  ;;  %v8208_v60 = vld [vmem:[%s8685_s26 + $0x650] sm:$0xff]  }
  0xb7   : > { %7396 = vmatprep.subr.bf16.mxu1 %v8161_v2  ;;  %v8214_v2 = vld [vmem:[%s8685_s26 + $0x6d8] sm:$0xff]  }
  0xb8   : > { %7375 = vmatpush3.bf16.msra.mxu0 %v8160_v1  ;;  %v8213_v1 = vld [vmem:[%s8685_s26 + $0x618] sm:$0xff]  }
  0xb9   : > { %7376 = vmatprep.subr.bf16.mxu0 %v8163_v6  ;;  %v8218_v6 = vld [vmem:[%s8685_s26 + $0x6e0] sm:$0xff]  }
  0xba   : > { %7397 = vmatpush3.bf16.msra.mxu1 %v8162_v5  ;;  %v8217_v5 = vld [vmem:[%s8685_s26 + $0x620] sm:$0xff]  }
  0xbb   : > { %7398 = vmatprep.subr.bf16.mxu1 %v8165_v10  ;;  %v8222_v10 = vld [vmem:[%s8685_s26 + $0x6e8] sm:$0xff]  }
  0xbc   : > { %7377 = vmatpush3.bf16.msra.mxu0 %v8164_v8  ;;  %v8220_v8 = vld [vmem:[%s8685_s26 + $0x668] sm:$0xff]  }
  0xbd   : > { %7406 = vmatprep.subr.bf16.mxu0 %v8167_v14  ;;  %v8225_v14 = vld [vmem:[%s8685_s26 + $0x630] sm:$0xff]  }
  0xbe   : > { %7399 = vmatpush3.bf16.msra.mxu1 %v8166_v12  ;;  %v8224_v12 = vld [vmem:[%s8685_s26 + $0x670] sm:$0xff]  }
  0xbf   : > { %5426 = vmatmul.mubr.bf16.vlgmr.msra.gmra.mrb[16].mxu0 %v1496_v13  ;;  %7428 = vmatprep.subr.bf16.mxu1 %v8169_v17  ;;  %v288_v13 = vld [vmem:[%s8664_s27 + $0x18] sm:$0xff]  ;;  %v8226_v17 = vld [vmem:[%s8685_s26 + $0x6f0] sm:$0xff]  }
  0xc0   : > { %7407 = vmatpush3.bf16.msra.mxu0 %v8168_v15  ;;  %5505 = vmatprep.mubr.bf16.mxu0 %v1517_v16  ;;  %v1529_v15 = vrot.slane %v288_v13, %v8723_v42  ;;  %v1522_v16 = vcombine.high %v288_v13, %v288_v13  ;;  %v8265_v13 = vld [vmem:[%s8685_s26 + $0x840] sm:$0xff]  }
  0xc1   : > { %5466 = vmatmul.mubr.bf16.vlgmr.msra.gmra.mrb[16].mxu1 %v1518_v19  ;;  %7408 = vmatprep.subr.bf16.mxu0 %v8171_v20 }
  0xc2   : > { %7429 = vmatpush3.bf16.msra.mxu1 %v8170_v18  ;;  %5545 = vmatprep.mubr.bf16.mxu1 %v1521_v22  ;;  %v8227_v18 = vld [vmem:[%s8685_s26 + $0x6b0] sm:$0xff]   ;;  %v1537_v19 = vcombine.high %v1529_v15, %v1529_v15  ;;  %v8949_v20 = vrot.slane %v1522_v16, %v8723_v42  ;;  %v8229_v22 = vld [vmem:[%s8685_s26 + $0x638] sm:$0xff]   ;;  %v8268_v16 = vld [vmem:[%s8685_s26 + $0x880] sm:$0xff]  }
  0xc3   : > { %7430 = vmatprep.subr.bf16.mxu1 %v8173_v23 }
  0xc4   : > { %7409 = vmatpush3.bf16.msra.mxu0 %v8172_v21  ;;  %v8228_v21 = vld [vmem:[%s8685_s26 + $0x678] sm:$0xff]   ;;  %v1559_v23 = vrot.slane %v1537_v19, %v8723_v42  ;;  %v8270_v19 = vld [vmem:[%s8685_s26 + $0x808] sm:$0xff]  }
  0xc5   : > { %7410 = vmatprep.subr.bf16.mxu0 %v8175_v25  ;;  %v8230_v25 = vld [vmem:[%s8685_s26 + $0x6f8] sm:$0xff]  }
  0xc6   : > { %7431 = vmatpush3.bf16.msra.mxu1 %v8174_v24  ;;  %v1538_v24 = vcombine.high %v8949_v20, %v8949_v20 }
  0xc7   : > { %7432 = vmatprep.subr.bf16.mxu1 %v8177_v27  ;;  %v1569_v27 = vcombine.high %v1559_v23, %v1559_v23 }
  0xc8   : > { %7411 = vmatpush3.bf16.msra.mxu0 %v8176_v26  ;;  %v8231_v26 = vld [vmem:[%s8685_s26 + $0x6b8] sm:$0xff]  }
  0xc9   : > { %7412 = vmatprep.subr.bf16.mxu0 %v8179_v29  ;;  %v8232_v29 = vld [vmem:[%s8685_s26 + $0x740] sm:$0xff]  }
  0xca   : > { %7433 = vmatpush3.bf16.msra.mxu1 %v8178_v28  ;;  %v1545_v28 = vrot.slane %v1529_v15, %v8723_v42  ;;  %v8267_v15 = vld [vmem:[%s8685_s26 + $0x8c0] sm:$0xff]  }
  0xcb   : > { %7434 = vmatprep.subr.bf16.mxu1 %v8181_v31  ;;  %v1566_v31 = vrot.slane %v1538_v24, %v8723_v42  ;;  %v8275_v24 = vld [vmem:[%s8685_s26 + $0x8d0] sm:$0xff]  }
  0xcc   : > { %7413 = vmatpush3.bf16.msra.mxu0 %v8180_v30  ;;  %v8233_v30 = vld [vmem:[%s8685_s26 + $0x700] sm:$0xff]  }
  0xcd   : > { %7414 = vmatprep.subr.bf16.mxu0 %v8183_v33  ;;  %v8235_v33 = vld [vmem:[%s8685_s26 + $0x780] sm:$0xff]  }
  0xce   : > { %7435 = vmatpush3.bf16.msra.mxu1 %v8182_v32  ;;  %v8234_v32 = vld [vmem:[%s8685_s26 + $0x7c0] sm:$0xff]  }
  0xcf   : > { %7436 = vmatprep.subr.bf16.mxu1 %v8185_v35  ;;  %v8236_v35 = vld [vmem:[%s8685_s26 + $0x748] sm:$0xff]  }
  0xd0   : > { %7415 = vmatpush3.bf16.msra.mxu0 %v8184_v34  ;;  %v1567_v34 = vcombine.high %v1545_v28, %v1545_v28 }
  0xd1   : > { %7416 = vmatprep.subr.bf16.mxu0 %v8187_v37  ;;  %v1570_v37 = vcombine.high %v1566_v31, %v1566_v31 }
  0xd2   : > { %7437 = vmatpush3.bf16.msra.mxu1 %v8186_v36  ;;  %v8237_v36 = vld [vmem:[%s8685_s26 + $0x708] sm:$0xff]  }
  0xd3   : > { %7438 = vmatprep.subr.bf16.mxu1 %v8189_v39  ;;  %v8239_v39 = vld [vmem:[%s8685_s26 + $0x788] sm:$0xff]  }
  0xd4   : > { %7417 = vmatpush3.bf16.msra.mxu0 %v8188_v38  ;;  %v8238_v38 = vld [vmem:[%s8685_s26 + $0x7c8] sm:$0xff]  }
  0xd5   : > { %7418 = vmatprep.subr.bf16.mxu0 %v8191_v41  ;;  %v8241_v41 = vld [vmem:[%s8685_s26 + $0x710] sm:$0xff]  }
  0xd6   : > { %7439 = vmatpush3.bf16.msra.mxu1 %v8190_v40  ;;  %v8240_v40 = vld [vmem:[%s8685_s26 + $0x750] sm:$0xff]  }
  0xd7   : > { %7440 = vmatprep.subr.bf16.mxu1 %v8193_v44  ;;  %v8243_v44 = vld [vmem:[%s8685_s26 + $0x790] sm:$0xff]  }
  0xd8   : > { %7419 = vmatpush3.bf16.msra.mxu0 %v8192_v43  ;;  %v8242_v43 = vld [vmem:[%s8685_s26 + $0x7d0] sm:$0xff]  }
  0xd9   : > { %7420 = vmatprep.subr.bf16.mxu0 %v8195_v46  ;;  %v8245_v46 = vld [vmem:[%s8685_s26 + $0x718] sm:$0xff]  }
  0xda   : > { %7441 = vmatpush3.bf16.msra.mxu1 %v8194_v45  ;;  %v8244_v45 = vld [vmem:[%s8685_s26 + $0x758] sm:$0xff]  }
  0xdb   : > { %7442 = vmatprep.subr.bf16.mxu1 %v8197_v48  ;;  %v8247_v48 = vld [vmem:[%s8685_s26 + $0x798] sm:$0xff]  }
  0xdc   : > { %7421 = vmatpush3.bf16.msra.mxu0 %v8196_v47  ;;  %v8246_v47 = vld [vmem:[%s8685_s26 + $0x7d8] sm:$0xff]  }
  0xdd   : > { %7450 = vmatprep.subr.bf16.mxu0 %v8200_v51  ;;  %v8250_v51 = vld [vmem:[%s8685_s26 + $0x7e0] sm:$0xff]  }
  0xde   : > { %7443 = vmatpush3.bf16.msra.mxu1 %v8199_v49  ;;  %v8248_v49 = vld [vmem:[%s8685_s26 + $0x760] sm:$0xff]  }
  0xdf   : > { %5506 = vmatmul.mubr.bf16.vlgmr.msra.gmra.mrb[20].mxu0 %v1503_v50  ;;  %7472 = vmatprep.subr.bf16.mxu1 %v8202_v53  ;;  %v8249_v50 = vld [vmem:[%s8685_s26 + $0x720] sm:$0xff]   ;;  %v8252_v53 = vld [vmem:[%s8685_s26 + $0x768] sm:$0xff]  }
  0xe0   : > { %7451 = vmatpush3.bf16.msra.mxu0 %v8201_v52  ;;  %5585 = vmatprep.mubr.bf16.mxu0 %v1559_v23  ;;  %v8251_v52 = vld [vmem:[%s8685_s26 + $0x7a0] sm:$0xff]   ;;  %v8274_v23 = vld [vmem:[%s8685_s26 + $0x810] sm:$0xff]  }
  0xe1   : > { %5546 = vmatmul.mubr.bf16.vlgmr.msra.gmra.mrb[20].mxu1 %v1519_v55  ;;  %7452 = vmatprep.subr.bf16.mxu0 %v8204_v56  ;;  %v8254_v55 = vld [vmem:[%s8685_s26 + $0x7e8] sm:$0xff]  }
  0xe2   : > { %7473 = vmatpush3.bf16.msra.mxu1 %v8203_v54  ;;  %5625 = vmatprep.mubr.bf16.mxu1 %v1569_v27  ;;  %v8253_v54 = vld [vmem:[%s8685_s26 + $0x728] sm:$0xff]   ;;  %v8278_v27 = vld [vmem:[%s8685_s26 + $0x818] sm:$0xff]  }
  0xe3   : > { %7474 = vmatprep.subr.bf16.mxu1 %v8206_v58  ;;  %v8255_v56 = vld [vmem:[%s8685_s26 + $0x7a8] sm:$0xff]  }
  0xe4   : > { %7453 = vmatpush3.bf16.msra.mxu0 %v8205_v57  ;;  %v8256_v57 = vld [vmem:[%s8685_s26 + $0x770] sm:$0xff]  }
  0xe5   : > { %7454 = vmatprep.subr.bf16.mxu0 %v8208_v60 }
  0xe6   : > { %7475 = vmatpush3.bf16.msra.mxu1 %v8207_v59  ;;  %v8257_v59 = vld [vmem:[%s8685_s26 + $0x730] sm:$0xff]  }
  0xe7   : > { %7476 = vmatprep.subr.bf16.mxu1 %v8210_v62 }
  0xe8   : > { %7455 = vmatpush3.bf16.msra.mxu0 %v8209_v61  ;;  %v8258_v61 = vld [vmem:[%s8685_s26 + $0x7f0] sm:$0xff]  }
  0xe9   : > { %7456 = vmatprep.subr.bf16.mxu0 %v8212_v0 }
  0xea   : > { %7477 = vmatpush3.bf16.msra.mxu1 %v8211_v63 }
  0xeb   : > { %7478 = vmatprep.subr.bf16.mxu1 %v8214_v2  ;;  %v8260_v2 = vld [vmem:[%s8685_s26 + $0x778] sm:$0xff]  }
  0xec   : > { %7457 = vmatpush3.bf16.msra.mxu0 %v8213_v1  ;;  %v8259_v1 = vld [vmem:[%s8685_s26 + $0x7b0] sm:$0xff]  }
  0xed   : > { %7458 = vmatprep.subr.bf16.mxu0 %v8216_v4 }
  0xee   : > { %7479 = vmatpush3.bf16.msra.mxu1 %v8215_v3 }
  0xef   : > { %7480 = vmatprep.subr.bf16.mxu1 %v8218_v6 }
  0xf0   : > { %7459 = vmatpush3.bf16.msra.mxu0 %v8217_v5 }
  0xf1   : > { %7460 = vmatprep.subr.bf16.mxu0 %v8220_v8 }
  0xf2   : > { %7481 = vmatpush3.bf16.msra.mxu1 %v8219_v7  ;;  %v8261_v7 = vld [vmem:[%s8685_s26 + $0x738] sm:$0xff]  }
  0xf3   : > { %7482 = vmatprep.subr.bf16.mxu1 %v8222_v10 }
  0xf4   : > { %7461 = vmatpush3.bf16.msra.mxu0 %v8221_v9  ;;  %v8262_v9 = vld [vmem:[%s8685_s26 + $0x7f8] sm:$0xff]  }
  0xf5   : > { %7462 = vmatprep.subr.bf16.mxu0 %v8224_v12  ;;  %v1552_v12 = vrot.slane %v8949_v20, %v8723_v42  ;;  %v8271_v20 = vld [vmem:[%s8685_s26 + $0x8c8] sm:$0xff]  }
  0xf6   : > { %7483 = vmatpush3.bf16.msra.mxu1 %v8223_v11  ;;  %v8264_v11 = vld [vmem:[%s8685_s26 + $0x7b8] sm:$0xff]  }
  0xf7   : > { %7484 = vmatprep.subr.bf16.mxu1 %v8226_v17  ;;  %v1568_v17 = vcombine.high %v1552_v12, %v1552_v12 }
  0xf8   : > { %7463 = vmatpush3.bf16.msra.mxu0 %v8225_v14  ;;  %v8266_v14 = vld [vmem:[%s8685_s26 + $0x800] sm:$0xff]  }
  0xf9   : > { %7464 = vmatprep.subr.bf16.mxu0 %v8228_v21  ;;  %v8272_v21 = vld [vmem:[%s8685_s26 + $0x888] sm:$0xff]  }
  0xfa   : > { %7485 = vmatpush3.bf16.msra.mxu1 %v8227_v18  ;;  %v8269_v18 = vld [vmem:[%s8685_s26 + $0x848] sm:$0xff]  }
  0xfb   : > { %7486 = vmatprep.subr.bf16.mxu1 %v8230_v25  ;;  %v8276_v25 = vld [vmem:[%s8685_s26 + $0x890] sm:$0xff]  }
  0xfc   : > { %7465 = vmatpush3.bf16.msra.mxu0 %v8229_v22  ;;  %v8273_v22 = vld [vmem:[%s8685_s26 + $0x850] sm:$0xff]  }
  0xfd   : > { %7494 = vmatprep.subr.bf16.mxu0 %v8232_v29  ;;  %v8280_v29 = vld [vmem:[%s8685_s26 + $0x898] sm:$0xff]  }
  0xfe   : > { %7487 = vmatpush3.bf16.msra.mxu1 %v8231_v26  ;;  %v8277_v26 = vld [vmem:[%s8685_s26 + $0x858] sm:$0xff]  }
  0xff   : > { %5586 = vmatmul.mubr.bf16.vlgmr.msra.gmra.mrb[24].mxu0 %v1545_v28  ;;  %7516 = vmatprep.subr.bf16.mxu1 %v8234_v32  ;;  %v8279_v28 = vld [vmem:[%s8685_s26 + $0x8d8] sm:$0xff]   ;;  %v8283_v32 = vld [vmem:[%s8685_s26 + $0x8e0] sm:$0xff]  }
 0x100   : > { %7495 = vmatpush3.bf16.msra.mxu0 %v8233_v30  ;;  %5665 = vmatprep.mubr.bf16.mxu0 %v1566_v31  ;;  %v8281_v30 = vld [vmem:[%s8685_s26 + $0x860] sm:$0xff]  }
 0x101   : > { %5626 = vmatmul.mubr.bf16.vlgmr.msra.gmra.mrb[24].mxu1 %v1567_v34  ;;  %7496 = vmatprep.subr.bf16.mxu0 %v8236_v35  ;;  %v8282_v31 = vld [vmem:[%s8685_s26 + $0x820] sm:$0xff]   ;;  %v8285_v34 = vld [vmem:[%s8685_s26 + $0x868] sm:$0xff]  }
 0x102   : > { %7517 = vmatpush3.bf16.msra.mxu1 %v8235_v33  ;;  %5705 = vmatprep.mubr.bf16.mxu1 %v1570_v37  ;;  %v8284_v33 = vld [vmem:[%s8685_s26 + $0x8a0] sm:$0xff]   ;;  %v8286_v35 = vld [vmem:[%s8685_s26 + $0x828] sm:$0xff]  }
 0x103   : > { %7518 = vmatprep.subr.bf16.mxu1 %v8238_v38  ;;  %v8288_v37 = vld [vmem:[%s8685_s26 + $0x8a8] sm:$0xff]   ;;  %v8289_v38 = vld [vmem:[%s8685_s26 + $0x870] sm:$0xff]  }
 0x104   : > { %7497 = vmatpush3.bf16.msra.mxu0 %v8237_v36  ;;  %v8287_v36 = vld [vmem:[%s8685_s26 + $0x8e8] sm:$0xff]  }
 0x105   : > { %7498 = vmatprep.subr.bf16.mxu0 %v8240_v40 }
 0x106   : > { %7519 = vmatpush3.bf16.msra.mxu1 %v8239_v39  ;;  %v289_v39 = vld [vmem:[%s8664_s27 + $0x20] sm:$0xff] }
 0x107   : > { %7520 = vmatprep.subr.bf16.mxu1 %v8242_v43  ;;  %v1578_v43 = vrot.slane %v289_v39, %v8723_v42 }
 0x108   : > { %7499 = vmatpush3.bf16.msra.mxu0 %v8241_v41  ;;  %v8290_v41 = vld [vmem:[%s8685_s26 + $0x830] sm:$0xff]  }
 0x109   : > { %7500 = vmatprep.subr.bf16.mxu0 %v8244_v45 }
 0x10a   : > { %7521 = vmatpush3.bf16.msra.mxu1 %v8243_v44  ;;  %v1571_v44 = vcombine.high %v289_v39, %v289_v39  ;;  %v8324_v39 = vld [vmem:[%s8685_s26 + $0x9b0] sm:$0xff]  }
 0x10b   : > { %7522 = vmatprep.subr.bf16.mxu1 %v8246_v47 }
 0x10c   : > { %7501 = vmatpush3.bf16.msra.mxu0 %v8245_v46  ;;  %v8291_v46 = vld [vmem:[%s8685_s26 + $0x8f0] sm:$0xff]  }
 0x10d   : > { %7502 = vmatprep.subr.bf16.mxu0 %v8248_v49 }
 0x10e   : > { %7523 = vmatpush3.bf16.msra.mxu1 %v8247_v48 }
 0x10f   : > { %7524 = vmatprep.subr.bf16.mxu1 %v8250_v51  ;;  %v9026_v51 = vrot.slane %v1571_v44, %v8723_v42 }
 0x110   : > { %7503 = vmatpush3.bf16.msra.mxu0 %v8249_v50  ;;  %v1586_v50 = vcombine.high %v1578_v43, %v1578_v43 }
 0x111   : > { %7504 = vmatprep.subr.bf16.mxu0 %v8252_v53 }
 0x112   : > { %v7202_v58 = vpop.f32.mrb[0].mxu0  ;;  %7525 = vmatpush3.bf16.msra.mxu1 %v8251_v52 }
 0x113   : > { %v7203_v60 = vpop.f32.mrb[1].mxu0  ;;  %7526 = vmatprep.subr.bf16.mxu1 %v8254_v55  ;;  %v7224_v62 = vpop.f32.mrb[0].mxu1  ;;  %v8293_v55 = vld [vmem:[%s8685_s26 + $0x878] sm:$0xff]  }
 0x114   : > { %v7204_v63 = vadd.f32 %v7203_v60, %v7202_v58  ;;  %v7205_v0 = vpop.f32.mrb[2].mxu0  ;;  %7505 = vmatpush3.bf16.msra.mxu0 %v8253_v54  ;;  %v7225_v3 = vpop.f32.mrb[1].mxu1  ;;  %v8292_v54 = vld [vmem:[%s8685_s26 + $0x8b0] sm:$0xff]   ;;  %v1608_v60 = vrot.slane %v1586_v50, %v8723_v42 }
 0x115   : > { %v7206_v4 = vpop.f32.mrb[3].mxu0  ;;  %7506 = vmatprep.subr.bf16.mxu0 %v8256_v57  ;;  %v7226_v5 = vadd.f32 %v7225_v3, %v7224_v62  ;;  %v7227_v6 = vpop.f32.mrb[2].mxu1  ;;  %v8295_v62 = vld [vmem:[%s8685_s26 + $0x8f8] sm:$0xff]   ;;  %v1594_v3 = vrot.slane %v1578_v43, %v8723_v42 }
 0x116   : > { %7527 = vmatpush3.bf16.msra.mxu1 %v8255_v56  ;;  %v7228_v8 = vpop.f32.mrb[3].mxu1  ;;  %v8297_v4 = vld [vmem:[%s8685_s26 + $0x940] sm:$0xff]  }
 0x117   : > { %7528 = vmatprep.subr.bf16.mxu1 %v8258_v61  ;;  %v8991_v10 = vadd.f32 %v7226_v5, %v7204_v63  ;;  %v1587_v63 = vcombine.high %v9026_v51, %v9026_v51  ;;  %v8298_v5 = vld [vmem:[%s8685_s26 + $0x900] sm:$0xff]  }
 0x118   : > { %7507 = vmatpush3.bf16.msra.mxu0 %v8257_v59  ;;  %v8294_v59 = vld [vmem:[%s8685_s26 + $0x838] sm:$0xff]   ;;  %v8300_v8 = vld [vmem:[%s8685_s26 + $0x980] sm:$0xff]  }
 0x119   : > { %7508 = vmatprep.subr.bf16.mxu0 %v8260_v2  ;;  %v1618_v2 = vcombine.high %v1608_v60, %v1608_v60  ;;  %v1615_v6 = vrot.slane %v1587_v63, %v8723_v42  ;;  %v8339_v63 = vld [vmem:[%s8685_s26 + $0xa10] sm:$0xff]  }
 0x11a   : > { %7529 = vmatpush3.bf16.msra.mxu1 %v8259_v1  ;;  %v8296_v1 = vld [vmem:[%s8685_s26 + $0x8b8] sm:$0xff]  }
 0x11b   : > { %7530 = vmatprep.subr.bf16.mxu1 %v8262_v9  ;;  %v1616_v9 = vcombine.high %v1594_v3, %v1594_v3 }
 0x11c   : > { %7509 = vmatpush3.bf16.msra.mxu0 %v8261_v7  ;;  %v8299_v7 = vld [vmem:[%s8685_s26 + $0x9c0] sm:$0xff]  }
 0x11d   : > { %7538 = vmatprep.subr.bf16.mxu0 %v8265_v13  ;;  %v8303_v13 = vld [vmem:[%s8685_s26 + $0x9c8] sm:$0xff]  }
 0x11e   : > { %7531 = vmatpush3.bf16.msra.mxu1 %v8264_v11  ;;  %v8302_v11 = vld [vmem:[%s8685_s26 + $0x908] sm:$0xff]  }
 0x11f   : > { %5666 = vmatmul.mubr.bf16.vlgmr.msra.gmra.mrb[28].mxu0 %v1552_v12  ;;  %7560 = vmatprep.subr.bf16.mxu1 %v8267_v15  ;;  %v1619_v12 = vcombine.high %v1615_v6, %v1615_v6  ;;  %v8305_v15 = vld [vmem:[%s8685_s26 + $0x950] sm:$0xff]  }
 0x120   : > { %7539 = vmatpush3.bf16.msra.mxu0 %v8266_v14  ;;  %5745 = vmatprep.mubr.bf16.mxu0 %v1608_v60  ;;  %v8304_v14 = vld [vmem:[%s8685_s26 + $0x988] sm:$0xff]  }
 0x121   : > { %5706 = vmatmul.mubr.bf16.vlgmr.msra.gmra.mrb[28].mxu1 %v1568_v17  ;;  %7540 = vmatprep.subr.bf16.mxu0 %v8269_v18  ;;  %v8307_v17 = vld [vmem:[%s8685_s26 + $0x9d0] sm:$0xff]   ;;  %v8335_v60 = vld [vmem:[%s8685_s26 + $0xa08] sm:$0xff]  }
 0x122   : > { %7561 = vmatpush3.bf16.msra.mxu1 %v8268_v16  ;;  %5785 = vmatprep.mubr.bf16.mxu1 %v1618_v2  ;;  %v8306_v16 = vld [vmem:[%s8685_s26 + $0x910] sm:$0xff]   ;;  %v8342_v2 = vld [vmem:[%s8685_s26 + $0xa58] sm:$0xff]  }
 0x123   : > { %7562 = vmatprep.subr.bf16.mxu1 %v8271_v20  ;;  %v8308_v18 = vld [vmem:[%s8685_s26 + $0x990] sm:$0xff]   ;;  %v8310_v20 = vld [vmem:[%s8685_s26 + $0x918] sm:$0xff]  }
 0x124   : > { %7541 = vmatpush3.bf16.msra.mxu0 %v8270_v19  ;;  %v8309_v19 = vld [vmem:[%s8685_s26 + $0x958] sm:$0xff]  }
 0x125   : > { %7542 = vmatprep.subr.bf16.mxu0 %v8273_v22  ;;  %v8312_v22 = vld [vmem:[%s8685_s26 + $0x998] sm:$0xff]  }
 0x126   : > { %7563 = vmatpush3.bf16.msra.mxu1 %v8272_v21  ;;  %v8311_v21 = vld [vmem:[%s8685_s26 + $0x9d8] sm:$0xff]  }
 0x127   : > { %7564 = vmatprep.subr.bf16.mxu1 %v8275_v24  ;;  %v8314_v24 = vld [vmem:[%s8685_s26 + $0x920] sm:$0xff]  }
 0x128   : > { %7543 = vmatpush3.bf16.msra.mxu0 %v8274_v23  ;;  %v8313_v23 = vld [vmem:[%s8685_s26 + $0x960] sm:$0xff]  }
 0x129   : > { %7544 = vmatprep.subr.bf16.mxu0 %v8277_v26  ;;  %v8316_v26 = vld [vmem:[%s8685_s26 + $0x9a0] sm:$0xff]  }
 0x12a   : > { %7565 = vmatpush3.bf16.msra.mxu1 %v8276_v25  ;;  %v8315_v25 = vld [vmem:[%s8685_s26 + $0x9e0] sm:$0xff]  }
 0x12b   : > { %7566 = vmatprep.subr.bf16.mxu1 %v8279_v28  ;;  %v8318_v28 = vld [vmem:[%s8685_s26 + $0x928] sm:$0xff]  }
 0x12c   : > { %7545 = vmatpush3.bf16.msra.mxu0 %v8278_v27  ;;  %v8317_v27 = vld [vmem:[%s8685_s26 + $0x968] sm:$0xff]  }
 0x12d   : > { %7546 = vmatprep.subr.bf16.mxu0 %v8281_v30  ;;  %v8320_v30 = vld [vmem:[%s8685_s26 + $0x9a8] sm:$0xff]  }
 0x12e   : > { %7567 = vmatpush3.bf16.msra.mxu1 %v8280_v29  ;;  %v8319_v29 = vld [vmem:[%s8685_s26 + $0x9e8] sm:$0xff]  }
 0x12f   : > { %7568 = vmatprep.subr.bf16.mxu1 %v8283_v32 }
 0x130   : > { %7547 = vmatpush3.bf16.msra.mxu0 %v8282_v31  ;;  %v8321_v31 = vld [vmem:[%s8685_s26 + $0x970] sm:$0xff]  }
 0x131   : > { %7548 = vmatprep.subr.bf16.mxu0 %v8285_v34 }
 0x132   : > { %v7246_v40 = vpop.f32.mrb[4].mxu0  ;;  %7569 = vmatpush3.bf16.msra.mxu1 %v8284_v33  ;;  %v8322_v33 = vld [vmem:[%s8685_s26 + $0x930] sm:$0xff]  }
 0x133   : > { %v7247_v45 = vpop.f32.mrb[5].mxu0  ;;  %7570 = vmatprep.subr.bf16.mxu1 %v8287_v36  ;;  %v7268_v49 = vpop.f32.mrb[4].mxu1 }
 0x134   : > { %v7248_v47 = vadd.f32 %v7247_v45, %v7246_v40  ;;  %v7249_v48 = vpop.f32.mrb[6].mxu0  ;;  %7549 = vmatpush3.bf16.msra.mxu0 %v8286_v35  ;;  %v7269_v53 = vpop.f32.mrb[5].mxu1  ;;  %v8323_v35 = vld [vmem:[%s8685_s26 + $0x9f0] sm:$0xff]   ;;  %v8325_v40 = vld [vmem:[%s8685_s26 + $0x978] sm:$0xff]  }
 0x135   : > { %v7250_v52 = vpop.f32.mrb[7].mxu0  ;;  %7550 = vmatprep.subr.bf16.mxu0 %v8289_v38  ;;  %v7270_v57 = vadd.f32 %v7269_v53, %v7268_v49  ;;  %v7271_v58 = vpop.f32.mrb[6].mxu1  ;;  %v8327_v49 = vld [vmem:[%s8685_s26 + $0x9f8] sm:$0xff]   ;;  %v1601_v53 = vrot.slane %v9026_v51, %v8723_v42  ;;  %v8336_v51 = vld [vmem:[%s8685_s26 + $0xac8] sm:$0xff]  }
 0x136   : > { %v5188_v56 = vadd.f32 %v7248_v47, %v8991_v10  ;;  %7571 = vmatpush3.bf16.msra.mxu1 %v8288_v37  ;;  %v7272_v61 = vpop.f32.mrb[7].mxu1  ;;  %v8301_v10 = vld [vmem:[%s8685_s26 + $0x948] sm:$0xff]   ;;  %v8326_v47 = vld [vmem:[%s8685_s26 + $0x938] sm:$0xff]  }
 0x137   : > { %7572 = vmatprep.subr.bf16.mxu1 %v8291_v46  ;;  %v8329_v52 = vld [vmem:[%s8685_s26 + $0x9b8] sm:$0xff]   ;;  %v1617_v58 = vcombine.high %v1601_v53, %v1601_v53  ;;  %v8337_v61 = vld [vmem:[%s8685_s26 + $0xa88] sm:$0xff]  }
 0x138   : > { %v9036_v0 = vadd.f32 %v7270_v57, %v5188_v56  ;;  %7551 = vmatpush3.bf16.msra.mxu0 %v8290_v41  ;;  %v8332_v56 = vld [vmem:[%s8685_s26 + $0xac0] sm:$0xff]  }
 0x139   : > { %7552 = vmatprep.subr.bf16.mxu0 %v8293_v55  ;;  %v8331_v55 = vld [vmem:[%s8685_s26 + $0xa00] sm:$0xff]  }
 0x13a   : > { %7573 = vmatpush3.bf16.msra.mxu1 %v8292_v54  ;;  %v8330_v54 = vld [vmem:[%s8685_s26 + $0xa40] sm:$0xff]  }
 0x13b   : > { %7574 = vmatprep.subr.bf16.mxu1 %v8295_v62  ;;  %v8333_v57 = vld [vmem:[%s8685_s26 + $0xa80] sm:$0xff]   ;;  %v8338_v62 = vld [vmem:[%s8685_s26 + $0xa50] sm:$0xff]  }
 0x13c   : > { %7553 = vmatpush3.bf16.msra.mxu0 %v8294_v59  ;;  %v8334_v59 = vld [vmem:[%s8685_s26 + $0xa48] sm:$0xff]  }
 0x13d   : > { %7582 = vmatprep.subr.bf16.mxu0 %v8297_v4  ;;  %v8344_v4 = vld [vmem:[%s8685_s26 + $0xad8] sm:$0xff]  }
 0x13e   : > { %7575 = vmatpush3.bf16.msra.mxu1 %v8296_v1  ;;  %v8341_v1 = vld [vmem:[%s8685_s26 + $0xa90] sm:$0xff]  }
 0x13f   : > { %5746 = vmatmul.mubr.bf16.vlgmr.msra.gmra.mrb[32].mxu0 %v1594_v3  ;;  %7604 = vmatprep.subr.bf16.mxu1 %v8299_v7  ;;  %v8343_v3 = vld [vmem:[%s8685_s26 + $0xa18] sm:$0xff]   ;;  %v8347_v7 = vld [vmem:[%s8685_s26 + $0xa20] sm:$0xff]  }
 0x140   : > { %7583 = vmatpush3.bf16.msra.mxu0 %v8298_v5  ;;  %5825 = vmatprep.mubr.bf16.mxu0 %v1615_v6  ;;  %v8345_v5 = vld [vmem:[%s8685_s26 + $0xa98] sm:$0xff]   ;;  %v8346_v6 = vld [vmem:[%s8685_s26 + $0xa60] sm:$0xff]  }
 0x141   : > { %5786 = vmatmul.mubr.bf16.vlgmr.msra.gmra.mrb[32].mxu1 %v1616_v9  ;;  %7584 = vmatprep.subr.bf16.mxu0 %v8301_v10  ;;  %v8349_v9 = vld [vmem:[%s8685_s26 + $0xaa0] sm:$0xff]   ;;  %v8350_v10 = vld [vmem:[%s8685_s26 + $0xa68] sm:$0xff]  }
 0x142   : > { %7605 = vmatpush3.bf16.msra.mxu1 %v8300_v8  ;;  %5865 = vmatprep.mubr.bf16.mxu1 %v1619_v12  ;;  %v8348_v8 = vld [vmem:[%s8685_s26 + $0xae0] sm:$0xff]   ;;  %v8352_v12 = vld [vmem:[%s8685_s26 + $0xae8] sm:$0xff]  }
 0x143   : > { %7606 = vmatprep.subr.bf16.mxu1 %v8303_v13  ;;  %v8353_v13 = vld [vmem:[%s8685_s26 + $0xaa8] sm:$0xff]  }
 0x144   : > { %7585 = vmatpush3.bf16.msra.mxu0 %v8302_v11  ;;  %v8351_v11 = vld [vmem:[%s8685_s26 + $0xa28] sm:$0xff]  }
 0x145   : > { %7586 = vmatprep.subr.bf16.mxu0 %v8305_v15 }
 0x146   : > { %7607 = vmatpush3.bf16.msra.mxu1 %v8304_v14  ;;  %v8354_v14 = vld [vmem:[%s8685_s26 + $0xa70] sm:$0xff]  }
 0x147   : > { %7608 = vmatprep.subr.bf16.mxu1 %v8307_v17  ;;  %v290_v17 = vld [vmem:[%s8664_s27 + $0x28] sm:$0xff] }
 0x148   : > { %7587 = vmatpush3.bf16.msra.mxu0 %v8306_v16  ;;  %v8355_v16 = vld [vmem:[%s8685_s26 + $0xa30] sm:$0xff]  }
 0x149   : > { %7588 = vmatprep.subr.bf16.mxu0 %v8309_v19  ;;  %v8356_v19 = vld [vmem:[%s8685_s26 + $0xaf0] sm:$0xff]  }
 0x14a   : > { %7609 = vmatpush3.bf16.msra.mxu1 %v8308_v18 }
 0x14b   : > { %7610 = vmatprep.subr.bf16.mxu1 %v8311_v21  ;;  %v1620_v21 = vcombine.high %v290_v17, %v290_v17 }
 0x14c   : > { %7589 = vmatpush3.bf16.msra.mxu0 %v8310_v20  ;;  %v1627_v20 = vrot.slane %v290_v17, %v8723_v42 }
 0x14d   : > { %7590 = vmatprep.subr.bf16.mxu0 %v8313_v23 }
 0x14e   : > { %7611 = vmatpush3.bf16.msra.mxu1 %v8312_v22 }
 0x14f   : > { %7612 = vmatprep.subr.bf16.mxu1 %v8315_v25 }
 0x150   : > { %7591 = vmatpush3.bf16.msra.mxu0 %v8314_v24 }
 0x151   : > { %7592 = vmatprep.subr.bf16.mxu0 %v8317_v27  ;;  %v8357_v27 = vld [vmem:[%s8685_s26 + $0xab0] sm:$0xff]  }
 0x152   : > { %v7290_v32 = vpop.f32.mrb[8].mxu0  ;;  %7613 = vmatpush3.bf16.msra.mxu1 %v8316_v26 }
 0x153   : > { %v7291_v34 = vpop.f32.mrb[9].mxu0  ;;  %7614 = vmatprep.subr.bf16.mxu1 %v8319_v29  ;;  %v1635_v29 = vcombine.high %v1627_v20, %v1627_v20 }
 0x154   : > { %v7292_v36 = vadd.f32 %v7291_v34, %v7290_v32  ;;  %v7293_v37 = vpop.f32.mrb[10].mxu0  ;;  %v7312_v38 = vpop.f32.mrb[8].mxu1  ;;  %7593 = vmatpush3.bf16.msra.mxu0 %v8318_v28  ;;  %v8358_v28 = vld [vmem:[%s8685_s26 + $0xa78] sm:$0xff]  }
 0x155   : > { %v7294_v41 = vpop.f32.mrb[11].mxu0  ;;  %v7313_v43 = vpop.f32.mrb[9].mxu1  ;;  %7594 = vmatprep.subr.bf16.mxu0 %v8321_v31  ;;  %v8359_v34 = vld [vmem:[%s8685_s26 + $0xa38] sm:$0xff]   ;;  %v1657_v37 = vrot.slane %v1635_v29, %v8723_v42  ;;  %v8396_v29 = vld [vmem:[%s8685_s26 + $0xc00] sm:$0xff]  }
 0x156   : > { %v5268_v44 = vadd.f32 %v7292_v36, %v9036_v0  ;;  %v7314_v45 = vadd.f32 %v7313_v43, %v7312_v38  ;;  %7615 = vmatpush3.bf16.msra.mxu1 %v8320_v30  ;;  %v7315_v46 = vpop.f32.mrb[10].mxu1  ;;  %v8340_v0 = vld [vmem:[%s8685_s26 + $0xad0] sm:$0xff]   ;;  %v9110_v30 = vrot.slane %v1620_v21, %v8723_v42  ;;  %v8360_v36 = vld [vmem:[%s8685_s26 + $0xaf8] sm:$0xff]   ;;  %v1643_v41 = vrot.slane %v1627_v20, %v8723_v42  ;;  %v8362_v43 = vld [vmem:[%s8685_s26 + $0xb40] sm:$0xff]  }
 0x157   : > { %v7316_v48 = vpop.f32.mrb[11].mxu1  ;;  %7616 = vmatprep.subr.bf16.mxu1 %v8323_v35 }
 0x158   : > { %v9073_v50 = vadd.f32 %v7314_v45, %v5268_v44  ;;  %7595 = vmatpush3.bf16.msra.mxu0 %v8322_v33  ;;  %v1636_v38 = vcombine.high %v9110_v30, %v9110_v30  ;;  %v1667_v44 = vcombine.high %v1657_v37, %v1657_v37  ;;  %v8363_v45 = vld [vmem:[%s8685_s26 + $0xb00] sm:$0xff]  }
 0x159   : > { %7596 = vmatprep.subr.bf16.mxu0 %v8325_v40  ;;  %v8361_v40 = vld [vmem:[%s8685_s26 + $0xab8] sm:$0xff]   ;;  %v8365_v48 = vld [vmem:[%s8685_s26 + $0xb80] sm:$0xff]  }
 0x15a   : > { %7617 = vmatpush3.bf16.msra.mxu1 %v8324_v39  ;;  %v1664_v46 = vrot.slane %v1636_v38, %v8723_v42  ;;  %v8404_v38 = vld [vmem:[%s8685_s26 + $0xc10] sm:$0xff]  }
 0x15b   : > { %7618 = vmatprep.subr.bf16.mxu1 %v8327_v49  ;;  %v1665_v49 = vcombine.high %v1643_v41, %v1643_v41 }
 0x15c   : > { %7597 = vmatpush3.bf16.msra.mxu0 %v8326_v47  ;;  %v8364_v47 = vld [vmem:[%s8685_s26 + $0xbc0] sm:$0xff]  }
 0x15d   : > { %7626 = vmatprep.subr.bf16.mxu0 %v8330_v54  ;;  %v8368_v54 = vld [vmem:[%s8685_s26 + $0xbc8] sm:$0xff]  }
 0x15e   : > { %7619 = vmatpush3.bf16.msra.mxu1 %v8329_v52  ;;  %v8367_v52 = vld [vmem:[%s8685_s26 + $0xb08] sm:$0xff]  }
 0x15f   : > { %5826 = vmatmul.mubr.bf16.vlgmr.msra.gmra.mrb[36].mxu0 %v1601_v53  ;;  %7648 = vmatprep.subr.bf16.mxu1 %v8332_v56  ;;  %v1668_v53 = vcombine.high %v1664_v46, %v1664_v46  ;;  %v8370_v56 = vld [vmem:[%s8685_s26 + $0xb50] sm:$0xff]  }
 0x160   : > { %7627 = vmatpush3.bf16.msra.mxu0 %v8331_v55  ;;  %5905 = vmatprep.mubr.bf16.mxu0 %v1657_v37  ;;  %v8369_v55 = vld [vmem:[%s8685_s26 + $0xb88] sm:$0xff]   ;;  %v8403_v37 = vld [vmem:[%s8685_s26 + $0xc50] sm:$0xff]  }
 0x161   : > { %5866 = vmatmul.mubr.bf16.vlgmr.msra.gmra.mrb[36].mxu1 %v1617_v58  ;;  %7628 = vmatprep.subr.bf16.mxu0 %v8334_v59  ;;  %v8372_v58 = vld [vmem:[%s8685_s26 + $0xbd0] sm:$0xff]  }
 0x162   : > { %7649 = vmatpush3.bf16.msra.mxu1 %v8333_v57  ;;  %5945 = vmatprep.mubr.bf16.mxu1 %v1667_v44  ;;  %v8371_v57 = vld [vmem:[%s8685_s26 + $0xb10] sm:$0xff]   ;;  %v8409_v44 = vld [vmem:[%s8685_s26 + $0xcd8] sm:$0xff]  }
 0x163   : > { %7650 = vmatprep.subr.bf16.mxu1 %v8336_v51  ;;  %v8373_v59 = vld [vmem:[%s8685_s26 + $0xb90] sm:$0xff]   ;;  %v8375_v51 = vld [vmem:[%s8685_s26 + $0xb18] sm:$0xff]  }
 0x164   : > { %7629 = vmatpush3.bf16.msra.mxu0 %v8335_v60  ;;  %v8374_v60 = vld [vmem:[%s8685_s26 + $0xb58] sm:$0xff]  }
 0x165   : > { %7630 = vmatprep.subr.bf16.mxu0 %v8338_v62  ;;  %v8377_v62 = vld [vmem:[%s8685_s26 + $0xb98] sm:$0xff]  }
 0x166   : > { %7651 = vmatpush3.bf16.msra.mxu1 %v8337_v61  ;;  %v8376_v61 = vld [vmem:[%s8685_s26 + $0xbd8] sm:$0xff]  }
 0x167   : > { %7652 = vmatprep.subr.bf16.mxu1 %v8340_v0  ;;  %v8379_v0 = vld [vmem:[%s8685_s26 + $0xb20] sm:$0xff]  }
 0x168   : > { %7631 = vmatpush3.bf16.msra.mxu0 %v8339_v63  ;;  %v8378_v63 = vld [vmem:[%s8685_s26 + $0xb60] sm:$0xff]  }
 0x169   : > { %7632 = vmatprep.subr.bf16.mxu0 %v8342_v2  ;;  %v8381_v2 = vld [vmem:[%s8685_s26 + $0xba0] sm:$0xff]  }
 0x16a   : > { %7653 = vmatpush3.bf16.msra.mxu1 %v8341_v1  ;;  %v8380_v1 = vld [vmem:[%s8685_s26 + $0xbe0] sm:$0xff]  }
 0x16b   : > { %7654 = vmatprep.subr.bf16.mxu1 %v8344_v4  ;;  %v8383_v4 = vld [vmem:[%s8685_s26 + $0xb28] sm:$0xff]  }
 0x16c   : > { %7633 = vmatpush3.bf16.msra.mxu0 %v8343_v3  ;;  %v8382_v3 = vld [vmem:[%s8685_s26 + $0xb68] sm:$0xff]  }
 0x16d   : > { %7634 = vmatprep.subr.bf16.mxu0 %v8346_v6  ;;  %v8385_v6 = vld [vmem:[%s8685_s26 + $0xba8] sm:$0xff]  }
 0x16e   : > { %7655 = vmatpush3.bf16.msra.mxu1 %v8345_v5  ;;  %v8384_v5 = vld [vmem:[%s8685_s26 + $0xbe8] sm:$0xff]  }
 0x16f   : > { %7656 = vmatprep.subr.bf16.mxu1 %v8348_v8 }
 0x170   : > { %7635 = vmatpush3.bf16.msra.mxu0 %v8347_v7  ;;  %v8386_v7 = vld [vmem:[%s8685_s26 + $0xb70] sm:$0xff]  }
 0x171   : > { %7636 = vmatprep.subr.bf16.mxu0 %v8350_v10 }
 0x172   : > { %v7334_v15 = vpop.f32.mrb[12].mxu0  ;;  %7657 = vmatpush3.bf16.msra.mxu1 %v8349_v9  ;;  %v8387_v9 = vld [vmem:[%s8685_s26 + $0xb30] sm:$0xff]  }
 0x173   : > { %v7335_v18 = vpop.f32.mrb[13].mxu0  ;;  %7658 = vmatprep.subr.bf16.mxu1 %v8352_v12 }
 0x174   : > { %v7336_v22 = vadd.f32 %v7335_v18, %v7334_v15  ;;  %v7337_v23 = vpop.f32.mrb[14].mxu0  ;;  %v7356_v24 = vpop.f32.mrb[12].mxu1  ;;  %7637 = vmatpush3.bf16.msra.mxu0 %v8351_v11  ;;  %v8388_v11 = vld [vmem:[%s8685_s26 + $0xbf0] sm:$0xff]  }
 0x175   : > { %v7338_v25 = vpop.f32.mrb[15].mxu0  ;;  %v7357_v26 = vpop.f32.mrb[13].mxu1  ;;  %7638 = vmatprep.subr.bf16.mxu0 %v8354_v14  ;;  %v8389_v15 = vld [vmem:[%s8685_s26 + $0xbb0] sm:$0xff]  }
 0x176   : > { %v5348_v31 = vadd.f32 %v7336_v22, %v9073_v50  ;;  %v7358_v32 = vadd.f32 %v7357_v26, %v7356_v24  ;;  %7659 = vmatpush3.bf16.msra.mxu1 %v8353_v13  ;;  %v7359_v33 = vpop.f32.mrb[14].mxu1  ;;  %v8366_v50 = vld [vmem:[%s8685_s26 + $0xb48] sm:$0xff]   ;;  %v8391_v22 = vld [vmem:[%s8685_s26 + $0xb38] sm:$0xff]  }
 0x177   : > { %v7360_v35 = vpop.f32.mrb[15].mxu1  ;;  %7660 = vmatprep.subr.bf16.mxu1 %v8356_v19  ;;  %v8392_v24 = vld [vmem:[%s8685_s26 + $0xbf8] sm:$0xff]  }
 0x178   : > { %v9118_v39 = vadd.f32 %v7358_v32, %v5348_v31  ;;  %7639 = vmatpush3.bf16.msra.mxu0 %v8355_v16  ;;  %v8390_v16 = vld [vmem:[%s8685_s26 + $0xb78] sm:$0xff]   ;;  %v8397_v31 = vld [vmem:[%s8685_s26 + $0xcc0] sm:$0xff]   ;;  %v8400_v35 = vld [vmem:[%s8685_s26 + $0xc08] sm:$0xff]  }
 0x179   : > { %7640 = vmatprep.subr.bf16.mxu0 %v8358_v28  ;;  %v8394_v26 = vld [vmem:[%s8685_s26 + $0xbb8] sm:$0xff]   ;;  %v8395_v28 = vld [vmem:[%s8685_s26 + $0xc40] sm:$0xff]  }
 0x17a   : > { %7661 = vmatpush3.bf16.msra.mxu1 %v8357_v27  ;;  %v1650_v27 = vrot.slane %v9110_v30, %v8723_v42  ;;  %v8398_v32 = vld [vmem:[%s8685_s26 + $0xc80] sm:$0xff]   ;;  %v8401_v30 = vld [vmem:[%s8685_s26 + $0xcc8] sm:$0xff]  }
 0x17b   : > { %7662 = vmatprep.subr.bf16.mxu1 %v8360_v36  ;;  %v8402_v36 = vld [vmem:[%s8685_s26 + $0xc88] sm:$0xff]  }
 0x17c   : > { %7641 = vmatpush3.bf16.msra.mxu0 %v8359_v34  ;;  %v1666_v33 = vcombine.high %v1650_v27, %v1650_v27  ;;  %v8399_v34 = vld [vmem:[%s8685_s26 + $0xc48] sm:$0xff]  }
 0x17d   : > { %7670 = vmatprep.subr.bf16.mxu0 %v8362_v43  ;;  %v8408_v43 = vld [vmem:[%s8685_s26 + $0xc18] sm:$0xff]  }
 0x17e   : > { %7663 = vmatpush3.bf16.msra.mxu1 %v8361_v40  ;;  %v8406_v40 = vld [vmem:[%s8685_s26 + $0xc90] sm:$0xff]  }
 0x17f   : > { %5906 = vmatmul.mubr.bf16.vlgmr.msra.gmra.mrb[40].mxu0 %v1643_v41  ;;  %7692 = vmatprep.subr.bf16.mxu1 %v8364_v47  ;;  %v8407_v41 = vld [vmem:[%s8685_s26 + $0xc58] sm:$0xff]   ;;  %v8412_v47 = vld [vmem:[%s8685_s26 + $0xc20] sm:$0xff]  }
 0x180   : > { %7671 = vmatpush3.bf16.msra.mxu0 %v8363_v45  ;;  %5985 = vmatprep.mubr.bf16.mxu0 %v1664_v46  ;;  %v8410_v45 = vld [vmem:[%s8685_s26 + $0xc98] sm:$0xff]   ;;  %v8411_v46 = vld [vmem:[%s8685_s26 + $0xc60] sm:$0xff]  }
 0x181   : > { %5946 = vmatmul.mubr.bf16.vlgmr.msra.gmra.mrb[40].mxu1 %v1665_v49  ;;  %7672 = vmatprep.subr.bf16.mxu0 %v8366_v50  ;;  %v8414_v49 = vld [vmem:[%s8685_s26 + $0xca0] sm:$0xff]   ;;  %v8415_v50 = vld [vmem:[%s8685_s26 + $0xc68] sm:$0xff]  }
 0x182   : > { %7693 = vmatpush3.bf16.msra.mxu1 %v8365_v48  ;;  %6025 = vmatprep.mubr.bf16.mxu1 %v1668_v53  ;;  %v8413_v48 = vld [vmem:[%s8685_s26 + $0xce0] sm:$0xff]   ;;  %v8417_v53 = vld [vmem:[%s8685_s26 + $0xce8] sm:$0xff]  }
 0x183   : > { %7694 = vmatprep.subr.bf16.mxu1 %v8368_v54  ;;  %v8418_v54 = vld [vmem:[%s8685_s26 + $0xca8] sm:$0xff]  }
 0x184   : > { %7673 = vmatpush3.bf16.msra.mxu0 %v8367_v52  ;;  %v8416_v52 = vld [vmem:[%s8685_s26 + $0xc28] sm:$0xff]  }
 0x185   : > { %7674 = vmatprep.subr.bf16.mxu0 %v8370_v56 }
 0x186   : > { %7695 = vmatpush3.bf16.msra.mxu1 %v8369_v55  ;;  %v8419_v55 = vld [vmem:[%s8685_s26 + $0xc70] sm:$0xff]  }
 0x187   : > { %7696 = vmatprep.subr.bf16.mxu1 %v8372_v58 }
 0x188   : > { %7675 = vmatpush3.bf16.msra.mxu0 %v8371_v57  ;;  %v8420_v57 = vld [vmem:[%s8685_s26 + $0xc30] sm:$0xff]  }
 0x189   : > { %7676 = vmatprep.subr.bf16.mxu0 %v8374_v60  ;;  %v291_v60 = vld [vmem:[%s8664_s27 + $0x30] sm:$0xff] }
 0x18a   : > { %7697 = vmatpush3.bf16.msra.mxu1 %v8373_v59  ;;  %v8421_v59 = vld [vmem:[%s8685_s26 + $0xcf0] sm:$0xff]  }
 0x18b   : > { %7698 = vmatprep.subr.bf16.mxu1 %v8376_v61 }
 0x18c   : > { %7677 = vmatpush3.bf16.msra.mxu0 %v8375_v51 }
 0x18d   : > { %7678 = vmatprep.subr.bf16.mxu0 %v8378_v63  ;;  %v1676_v63 = vrot.slane %v291_v60, %v8723_v42 }
 0x18e   : > { %7699 = vmatpush3.bf16.msra.mxu1 %v8377_v62 }
 0x18f   : > { %7700 = vmatprep.subr.bf16.mxu1 %v8380_v1 }
 0x190   : > { %7679 = vmatpush3.bf16.msra.mxu0 %v8379_v0  ;;  %v1669_v0 = vcombine.high %v291_v60, %v291_v60 }
 0x191   : > { %7680 = vmatprep.subr.bf16.mxu0 %v8382_v3  ;;  %v8422_v3 = vld [vmem:[%s8685_s26 + $0xcb0] sm:$0xff]  }
 0x192   : > { %v7378_v8 = vpop.f32.mrb[16].mxu0  ;;  %7701 = vmatpush3.bf16.msra.mxu1 %v8381_v2 }
 0x193   : > { %v7379_v10 = vpop.f32.mrb[17].mxu0  ;;  %7702 = vmatprep.subr.bf16.mxu1 %v8384_v5 }
 0x194   : > { %v7380_v12 = vadd.f32 %v7379_v10, %v7378_v8  ;;  %v7381_v13 = vpop.f32.mrb[18].mxu0  ;;  %v7400_v14 = vpop.f32.mrb[16].mxu1  ;;  %7681 = vmatpush3.bf16.msra.mxu0 %v8383_v4  ;;  %v8423_v4 = vld [vmem:[%s8685_s26 + $0xc78] sm:$0xff]  }
 0x195   : > { %v7382_v17 = vpop.f32.mrb[19].mxu0  ;;  %v7401_v18 = vpop.f32.mrb[17].mxu1  ;;  %7682 = vmatprep.subr.bf16.mxu0 %v8386_v7  ;;  %v8424_v8 = vld [vmem:[%s8685_s26 + $0xc38] sm:$0xff]  }
 0x196   : > { %v5428_v19 = vadd.f32 %v7380_v12, %v9118_v39  ;;  %v7402_v20 = vadd.f32 %v7401_v18, %v7400_v14  ;;  %7703 = vmatpush3.bf16.msra.mxu1 %v8385_v6  ;;  %v7403_v21 = vpop.f32.mrb[18].mxu1  ;;  %v8405_v39 = vld [vmem:[%s8685_s26 + $0xcd0] sm:$0xff]   ;;  %v9195_v12 = vrot.slane %v1669_v0, %v8723_v42  ;;  %v8427_v17 = vld [vmem:[%s8685_s26 + $0xd40] sm:$0xff]   ;;  %v8457_v0 = vld [vmem:[%s8685_s26 + $0xdf8] sm:$0xff]  }
 0x197   : > { %v7404_v23 = vpop.f32.mrb[19].mxu1  ;;  %7704 = vmatprep.subr.bf16.mxu1 %v8388_v11  ;;  %v8425_v11 = vld [vmem:[%s8685_s26 + $0xcf8] sm:$0xff]   ;;  %v8429_v21 = vld [vmem:[%s8685_s26 + $0xdc0] sm:$0xff]  }
 0x198   : > { %v9155_v25 = vadd.f32 %v7402_v20, %v5428_v19  ;;  %7683 = vmatpush3.bf16.msra.mxu0 %v8387_v9  ;;  %v1684_v9 = vcombine.high %v1676_v63, %v1676_v63  ;;  %v1685_v18 = vcombine.high %v9195_v12, %v9195_v12  ;;  %v8428_v20 = vld [vmem:[%s8685_s26 + $0xd00] sm:$0xff]  }
 0x199   : > { %7684 = vmatprep.subr.bf16.mxu0 %v8390_v16  ;;  %v1692_v16 = vrot.slane %v1676_v63, %v8723_v42  ;;  %v8430_v23 = vld [vmem:[%s8685_s26 + $0xd80] sm:$0xff]  }
 0x19a   : > { %7705 = vmatpush3.bf16.msra.mxu1 %v8389_v15  ;;  %v1706_v14 = vrot.slane %v1684_v9, %v8723_v42  ;;  %v8426_v15 = vld [vmem:[%s8685_s26 + $0xcb8] sm:$0xff]   ;;  %v8464_v9 = vld [vmem:[%s8685_s26 + $0xe48] sm:$0xff]  }
 0x19b   : > { %7706 = vmatprep.subr.bf16.mxu1 %v8392_v24  ;;  %v1714_v24 = vcombine.high %v1692_v16, %v1692_v16 }
 0x19c   : > { %7685 = vmatpush3.bf16.msra.mxu0 %v8391_v22  ;;  %v1716_v19 = vcombine.high %v1706_v14, %v1706_v14  ;;  %v1713_v22 = vrot.slane %v1685_v18, %v8723_v42  ;;  %v8473_v18 = vld [vmem:[%s8685_s26 + $0xe18] sm:$0xff]  }
 0x19d   : > { %7714 = vmatprep.subr.bf16.mxu0 %v8395_v28  ;;  %v8433_v28 = vld [vmem:[%s8685_s26 + $0xdc8] sm:$0xff]  }
 0x19e   : > { %7707 = vmatpush3.bf16.msra.mxu1 %v8394_v26  ;;  %v8432_v26 = vld [vmem:[%s8685_s26 + $0xd08] sm:$0xff]  }
 0x19f   : > { %5986 = vmatmul.mubr.bf16.vlgmr.msra.gmra.mrb[44].mxu0 %v1650_v27  ;;  %7736 = vmatprep.subr.bf16.mxu1 %v8397_v31  ;;  %v1717_v27 = vcombine.high %v1713_v22, %v1713_v22  ;;  %v8435_v31 = vld [vmem:[%s8685_s26 + $0xd50] sm:$0xff]  }
 0x1a0   : > { %7715 = vmatpush3.bf16.msra.mxu0 %v8396_v29  ;;  %6065 = vmatprep.mubr.bf16.mxu0 %v1706_v14  ;;  %v8434_v29 = vld [vmem:[%s8685_s26 + $0xd88] sm:$0xff]   ;;  %v8469_v14 = vld [vmem:[%s8685_s26 + $0xe10] sm:$0xff]  }
 0x1a1   : > { %6026 = vmatmul.mubr.bf16.vlgmr.msra.gmra.mrb[44].mxu1 %v1666_v33  ;;  %7716 = vmatprep.subr.bf16.mxu0 %v8399_v34  ;;  %v8437_v33 = vld [vmem:[%s8685_s26 + $0xdd0] sm:$0xff]  }
 0x1a2   : > { %7737 = vmatpush3.bf16.msra.mxu1 %v8398_v32  ;;  %6105 = vmatprep.mubr.bf16.mxu1 %v1716_v19  ;;  %v8436_v32 = vld [vmem:[%s8685_s26 + $0xd10] sm:$0xff]   ;;  %v8474_v19 = vld [vmem:[%s8685_s26 + $0xed8] sm:$0xff]  }
 0x1a3   : > { %7738 = vmatprep.subr.bf16.mxu1 %v8401_v30  ;;  %v8438_v34 = vld [vmem:[%s8685_s26 + $0xd90] sm:$0xff]   ;;  %v8440_v30 = vld [vmem:[%s8685_s26 + $0xd18] sm:$0xff]  }
 0x1a4   : > { %7717 = vmatpush3.bf16.msra.mxu0 %v8400_v35  ;;  %v8439_v35 = vld [vmem:[%s8685_s26 + $0xd58] sm:$0xff]  }
 0x1a5   : > { %7718 = vmatprep.subr.bf16.mxu0 %v8403_v37  ;;  %v8442_v37 = vld [vmem:[%s8685_s26 + $0xd98] sm:$0xff]  }
 0x1a6   : > { %7739 = vmatpush3.bf16.msra.mxu1 %v8402_v36  ;;  %v8441_v36 = vld [vmem:[%s8685_s26 + $0xdd8] sm:$0xff]  }
 0x1a7   : > { %7740 = vmatprep.subr.bf16.mxu1 %v8405_v39  ;;  %v8444_v39 = vld [vmem:[%s8685_s26 + $0xd20] sm:$0xff]  }
 0x1a8   : > { %7719 = vmatpush3.bf16.msra.mxu0 %v8404_v38  ;;  %v8443_v38 = vld [vmem:[%s8685_s26 + $0xd60] sm:$0xff]  }
 0x1a9   : > { %7720 = vmatprep.subr.bf16.mxu0 %v8407_v41  ;;  %v8446_v41 = vld [vmem:[%s8685_s26 + $0xda0] sm:$0xff]  }
 0x1aa   : > { %7741 = vmatpush3.bf16.msra.mxu1 %v8406_v40  ;;  %v8445_v40 = vld [vmem:[%s8685_s26 + $0xde0] sm:$0xff]  }
 0x1ab   : > { %7742 = vmatprep.subr.bf16.mxu1 %v8409_v44  ;;  %v8448_v44 = vld [vmem:[%s8685_s26 + $0xd28] sm:$0xff]  }
 0x1ac   : > { %7721 = vmatpush3.bf16.msra.mxu0 %v8408_v43  ;;  %v8447_v43 = vld [vmem:[%s8685_s26 + $0xd68] sm:$0xff]  }
 0x1ad   : > { %7722 = vmatprep.subr.bf16.mxu0 %v8411_v46  ;;  %v8450_v46 = vld [vmem:[%s8685_s26 + $0xda8] sm:$0xff]  }
 0x1ae   : > { %7743 = vmatpush3.bf16.msra.mxu1 %v8410_v45  ;;  %v8449_v45 = vld [vmem:[%s8685_s26 + $0xde8] sm:$0xff]  }
 0x1af   : > { %7744 = vmatprep.subr.bf16.mxu1 %v8413_v48 }
 0x1b0   : > { %7723 = vmatpush3.bf16.msra.mxu0 %v8412_v47  ;;  %v8451_v47 = vld [vmem:[%s8685_s26 + $0xd70] sm:$0xff]  }
 0x1b1   : > { %7724 = vmatprep.subr.bf16.mxu0 %v8415_v50 }
 0x1b2   : > { %v7422_v56 = vpop.f32.mrb[20].mxu0  ;;  %7745 = vmatpush3.bf16.msra.mxu1 %v8414_v49  ;;  %v8452_v49 = vld [vmem:[%s8685_s26 + $0xd30] sm:$0xff]  }
 0x1b3   : > { %v7423_v58 = vpop.f32.mrb[21].mxu0  ;;  %7746 = vmatprep.subr.bf16.mxu1 %v8417_v53 }
 0x1b4   : > { %v7424_v51 = vadd.f32 %v7423_v58, %v7422_v56  ;;  %v7425_v61 = vpop.f32.mrb[22].mxu0  ;;  %v7444_v62 = vpop.f32.mrb[20].mxu1  ;;  %7725 = vmatpush3.bf16.msra.mxu0 %v8416_v52  ;;  %v8453_v52 = vld [vmem:[%s8685_s26 + $0xdf0] sm:$0xff]  }
 0x1b5   : > { %v7426_v1 = vpop.f32.mrb[23].mxu0  ;;  %v7445_v2 = vpop.f32.mrb[21].mxu1  ;;  %7726 = vmatprep.subr.bf16.mxu0 %v8419_v55  ;;  %v8454_v56 = vld [vmem:[%s8685_s26 + $0xdb0] sm:$0xff]  }
 0x1b6   : > { %v5508_v5 = vadd.f32 %v7424_v51, %v9155_v25  ;;  %v7446_v6 = vadd.f32 %v7445_v2, %v7444_v62  ;;  %7747 = vmatpush3.bf16.msra.mxu1 %v8418_v54  ;;  %v7447_v7 = vpop.f32.mrb[22].mxu1  ;;  %v8431_v25 = vld [vmem:[%s8685_s26 + $0xd48] sm:$0xff]   ;;  %v8456_v62 = vld [vmem:[%s8685_s26 + $0xd38] sm:$0xff]  }
 0x1b7   : > { %v7448_v10 = vpop.f32.mrb[23].mxu1  ;;  %7748 = vmatprep.subr.bf16.mxu1 %v8421_v59  ;;  %v8459_v2 = vld [vmem:[%s8685_s26 + $0xdb8] sm:$0xff]   ;;  %v8463_v7 = vld [vmem:[%s8685_s26 + $0xe80] sm:$0xff]  }
 0x1b8   : > { %v9197_v13 = vadd.f32 %v7446_v6, %v5508_v5  ;;  %7727 = vmatpush3.bf16.msra.mxu0 %v8420_v57  ;;  %v8455_v57 = vld [vmem:[%s8685_s26 + $0xd78] sm:$0xff]   ;;  %v8461_v5 = vld [vmem:[%s8685_s26 + $0xe00] sm:$0xff]   ;;  %v8465_v10 = vld [vmem:[%s8685_s26 + $0xe08] sm:$0xff]  }
 0x1b9   : > { %7728 = vmatprep.subr.bf16.mxu0 %v8423_v4  ;;  %v8460_v4 = vld [vmem:[%s8685_s26 + $0xe40] sm:$0xff]  }
 0x1ba   : > { %7749 = vmatpush3.bf16.msra.mxu1 %v8422_v3  ;;  %v1699_v3 = vrot.slane %v9195_v12, %v8723_v42  ;;  %v8462_v6 = vld [vmem:[%s8685_s26 + $0xec0] sm:$0xff]   ;;  %v8467_v12 = vld [vmem:[%s8685_s26 + $0xe88] sm:$0xff]  }
 0x1bb   : > { %7750 = vmatprep.subr.bf16.mxu1 %v8425_v11  ;;  %v8466_v11 = vld [vmem:[%s8685_s26 + $0xec8] sm:$0xff]  }
 0x1bc   : > { %7729 = vmatpush3.bf16.msra.mxu0 %v8424_v8  ;;  %v1715_v8 = vcombine.high %v1699_v3, %v1699_v3 }
 0x1bd   : > { %7758 = vmatprep.subr.bf16.mxu0 %v8427_v17  ;;  %v8472_v17 = vld [vmem:[%s8685_s26 + $0xe58] sm:$0xff]  }
 0x1be   : > { %7751 = vmatpush3.bf16.msra.mxu1 %v8426_v15  ;;  %v8470_v15 = vld [vmem:[%s8685_s26 + $0xed0] sm:$0xff]  }
 0x1bf   : > { %6066 = vmatmul.mubr.bf16.vlgmr.msra.gmra.mrb[48].mxu0 %v1692_v16  ;;  %7780 = vmatprep.subr.bf16.mxu1 %v8429_v21  ;;  %v8471_v16 = vld [vmem:[%s8685_s26 + $0xe90] sm:$0xff]   ;;  %v8476_v21 = vld [vmem:[%s8685_s26 + $0xe60] sm:$0xff]  }
 0x1c0   : > { %7759 = vmatpush3.bf16.msra.mxu0 %v8428_v20  ;;  %6145 = vmatprep.mubr.bf16.mxu0 %v1713_v22  ;;  %v8475_v20 = vld [vmem:[%s8685_s26 + $0xe98] sm:$0xff]   ;;  %v8477_v22 = vld [vmem:[%s8685_s26 + $0xe20] sm:$0xff]  }
 0x1c1   : > { %6106 = vmatmul.mubr.bf16.vlgmr.msra.gmra.mrb[48].mxu1 %v1714_v24  ;;  %7760 = vmatprep.subr.bf16.mxu0 %v8431_v25  ;;  %v8479_v24 = vld [vmem:[%s8685_s26 + $0xea0] sm:$0xff]   ;;  %v8480_v25 = vld [vmem:[%s8685_s26 + $0xe68] sm:$0xff]  }
 0x1c2   : > { %7781 = vmatpush3.bf16.msra.mxu1 %v8430_v23  ;;  %6185 = vmatprep.mubr.bf16.mxu1 %v1717_v27  ;;  %v8478_v23 = vld [vmem:[%s8685_s26 + $0xee0] sm:$0xff]   ;;  %v8482_v27 = vld [vmem:[%s8685_s26 + $0xee8] sm:$0xff]  }
 0x1c3   : > { %7782 = vmatprep.subr.bf16.mxu1 %v8433_v28  ;;  %v8483_v28 = vld [vmem:[%s8685_s26 + $0xea8] sm:$0xff]  }
 0x1c4   : > { %7761 = vmatpush3.bf16.msra.mxu0 %v8432_v26  ;;  %v8481_v26 = vld [vmem:[%s8685_s26 + $0xe28] sm:$0xff]  }
 0x1c5   : > { %7762 = vmatprep.subr.bf16.mxu0 %v8435_v31 }
 0x1c6   : > { %7783 = vmatpush3.bf16.msra.mxu1 %v8434_v29  ;;  %v8484_v29 = vld [vmem:[%s8685_s26 + $0xe70] sm:$0xff]  }
 0x1c7   : > { %7784 = vmatprep.subr.bf16.mxu1 %v8437_v33 }
 0x1c8   : > { %7763 = vmatpush3.bf16.msra.mxu0 %v8436_v32  ;;  %v8485_v32 = vld [vmem:[%s8685_s26 + $0xe30] sm:$0xff]  }
 0x1c9   : > { %7764 = vmatprep.subr.bf16.mxu0 %v8439_v35 }
 0x1ca   : > { %7785 = vmatpush3.bf16.msra.mxu1 %v8438_v34  ;;  %v8486_v34 = vld [vmem:[%s8685_s26 + $0xef0] sm:$0xff]  }
 0x1cb   : > { %7786 = vmatprep.subr.bf16.mxu1 %v8441_v36 }
 0x1cc   : > { %7765 = vmatpush3.bf16.msra.mxu0 %v8440_v30 }
 0x1cd   : > { %7766 = vmatprep.subr.bf16.mxu0 %v8443_v38  ;;  %v292_v38 = vld [vmem:[%s8664_s27 + $0x38] sm:$0xff] }
 0x1ce   : > { %7787 = vmatpush3.bf16.msra.mxu1 %v8442_v37  ;;  %v8488_v37 = vld [vmem:[%s8685_s26 + $0xe78] sm:$0xff]  }
 0x1cf   : > { %7788 = vmatprep.subr.bf16.mxu1 %v8445_v40 }
 0x1d0   : > { %7767 = vmatpush3.bf16.msra.mxu0 %v8444_v39 }
 0x1d1   : > { %7768 = vmatprep.subr.bf16.mxu0 %v8447_v43  ;;  %v1718_v43 = vcombine.high %v292_v38, %v292_v38 }
 0x1d2   : > { %v7466_v48 = vpop.f32.mrb[24].mxu0  ;;  %7789 = vmatpush3.bf16.msra.mxu1 %v8446_v41  ;;  %v1725_v41 = vrot.slane %v292_v38, %v8723_v42  ;;  %v8522_v38 = vld [vmem:[%s8685_s26 + $0xff8] sm:$0xff]  }
 0x1d3   : > { %v7467_v50 = vpop.f32.mrb[25].mxu0  ;;  %7790 = vmatprep.subr.bf16.mxu1 %v8449_v45 }
 0x1d4   : > { %v7468_v53 = vadd.f32 %v7467_v50, %v7466_v48  ;;  %v7469_v54 = vpop.f32.mrb[26].mxu0  ;;  %v7488_v55 = vpop.f32.mrb[24].mxu1  ;;  %7769 = vmatpush3.bf16.msra.mxu0 %v8448_v44  ;;  %v1733_v50 = vcombine.high %v1725_v41, %v1725_v41 }
 0x1d5   : > { %v7470_v58 = vpop.f32.mrb[27].mxu0  ;;  %v7489_v59 = vpop.f32.mrb[25].mxu1  ;;  %7770 = vmatprep.subr.bf16.mxu0 %v8451_v47  ;;  %v8487_v47 = vld [vmem:[%s8685_s26 + $0xeb0] sm:$0xff]   ;;  %v8489_v54 = vld [vmem:[%s8685_s26 + $0xe38] sm:$0xff]  }
 0x1d6   : > { %v5588_v60 = vadd.f32 %v7468_v53, %v9197_v13  ;;  %v7490_v51 = vadd.f32 %v7489_v59, %v7488_v55  ;;  %7791 = vmatpush3.bf16.msra.mxu1 %v8450_v46  ;;  %v7491_v61 = vpop.f32.mrb[26].mxu1  ;;  %v8468_v13 = vld [vmem:[%s8685_s26 + $0xe50] sm:$0xff]   ;;  %v1755_v55 = vrot.slane %v1733_v50, %v8723_v42  ;;  %v8491_v59 = vld [vmem:[%s8685_s26 + $0xeb8] sm:$0xff]   ;;  %v8529_v50 = vld [vmem:[%s8685_s26 + $0x1008] sm:$0xff]  }
 0x1d7   : > { %v7492_v63 = vpop.f32.mrb[27].mxu1  ;;  %7792 = vmatprep.subr.bf16.mxu1 %v8453_v52  ;;  %v9276_v52 = vrot.slane %v1718_v43, %v8723_v42  ;;  %v8525_v43 = vld [vmem:[%s8685_s26 + $0x1040] sm:$0xff]  }
 0x1d8   : > { %v9237_v1 = vadd.f32 %v7490_v51, %v5588_v60  ;;  %7771 = vmatpush3.bf16.msra.mxu0 %v8452_v49  ;;  %v8490_v49 = vld [vmem:[%s8685_s26 + $0xef8] sm:$0xff]   ;;  %v1765_v60 = vcombine.high %v1755_v55, %v1755_v55  ;;  %v8494_v51 = vld [vmem:[%s8685_s26 + $0xfc0] sm:$0xff]  }
 0x1d9   : > { %7772 = vmatprep.subr.bf16.mxu0 %v8455_v57  ;;  %v8492_v57 = vld [vmem:[%s8685_s26 + $0xf40] sm:$0xff]   ;;  %v1734_v58 = vcombine.high %v9276_v52, %v9276_v52 }
 0x1da   : > { %7793 = vmatpush3.bf16.msra.mxu1 %v8454_v56  ;;  %v1741_v56 = vrot.slane %v1725_v41, %v8723_v42  ;;  %v1748_v41 = vrot.slane %v9276_v52, %v8723_v42  ;;  %v8531_v52 = vld [vmem:[%s8685_s26 + $0x1050] sm:$0xff]  }
 0x1db   : > { %7794 = vmatprep.subr.bf16.mxu1 %v8457_v0  ;;  %v1762_v61 = vrot.slane %v1734_v58, %v8723_v42  ;;  %v8496_v0 = vld [vmem:[%s8685_s26 + $0xf48] sm:$0xff]   ;;  %v8537_v58 = vld [vmem:[%s8685_s26 + $0x1060] sm:$0xff]  }
 0x1dc   : > { %7773 = vmatpush3.bf16.msra.mxu0 %v8456_v62  ;;  %v8493_v62 = vld [vmem:[%s8685_s26 + $0xf00] sm:$0xff]   ;;  %v1763_v63 = vcombine.high %v1741_v56, %v1741_v56 }
 0x1dd   : > { %7802 = vmatprep.subr.bf16.mxu0 %v8460_v4  ;;  %v8497_v4 = vld [vmem:[%s8685_s26 + $0xf08] sm:$0xff]  }
 0x1de   : > { %7795 = vmatpush3.bf16.msra.mxu1 %v8459_v2  ;;  %v1766_v2 = vcombine.high %v1762_v61, %v1762_v61 }
 0x1df   : > { %6146 = vmatmul.mubr.bf16.vlgmr.msra.gmra.mrb[52].mxu0 %v1699_v3  ;;  %7824 = vmatprep.subr.bf16.mxu1 %v8462_v6  ;;  %v8498_v3 = vld [vmem:[%s8685_s26 + $0xfc8] sm:$0xff]  }
 0x1e0   : > { %7803 = vmatpush3.bf16.msra.mxu0 %v8461_v5  ;;  %6225 = vmatprep.mubr.bf16.mxu0 %v1755_v55  ;;  %v8500_v5 = vld [vmem:[%s8685_s26 + $0xf50] sm:$0xff]   ;;  %v8499_v6 = vld [vmem:[%s8685_s26 + $0xf88] sm:$0xff]   ;;  %v8534_v55 = vld [vmem:[%s8685_s26 + $0x1058] sm:$0xff]  }
 0x1e1   : > { %6186 = vmatmul.mubr.bf16.vlgmr.msra.gmra.mrb[52].mxu1 %v1715_v8  ;;  %7804 = vmatprep.subr.bf16.mxu0 %v8464_v9  ;;  %v8501_v8 = vld [vmem:[%s8685_s26 + $0xf10] sm:$0xff]   ;;  %v8504_v9 = vld [vmem:[%s8685_s26 + $0xf58] sm:$0xff]  }
 0x1e2   : > { %7825 = vmatpush3.bf16.msra.mxu1 %v8463_v7  ;;  %6265 = vmatprep.mubr.bf16.mxu1 %v1765_v60  ;;  %v8502_v7 = vld [vmem:[%s8685_s26 + $0xfd0] sm:$0xff]   ;;  %v8538_v60 = vld [vmem:[%s8685_s26 + $0x1020] sm:$0xff]  }
 0x1e3   : > { %7826 = vmatprep.subr.bf16.mxu1 %v8466_v11  ;;  %v8506_v11 = vld [vmem:[%s8685_s26 + $0xfd8] sm:$0xff]  }
 0x1e4   : > { %7805 = vmatpush3.bf16.msra.mxu0 %v8465_v10  ;;  %v8503_v10 = vld [vmem:[%s8685_s26 + $0xf90] sm:$0xff]  }
 0x1e5   : > { %7806 = vmatprep.subr.bf16.mxu0 %v8468_v13  ;;  %v8508_v13 = vld [vmem:[%s8685_s26 + $0xf60] sm:$0xff]  }
 0x1e6   : > { %7827 = vmatpush3.bf16.msra.mxu1 %v8467_v12  ;;  %v8505_v12 = vld [vmem:[%s8685_s26 + $0xf18] sm:$0xff]  }
 0x1e7   : > { %7828 = vmatprep.subr.bf16.mxu1 %v8470_v15  ;;  %v8510_v15 = vld [vmem:[%s8685_s26 + $0xfe0] sm:$0xff]  }
 0x1e8   : > { %7807 = vmatpush3.bf16.msra.mxu0 %v8469_v14  ;;  %v8507_v14 = vld [vmem:[%s8685_s26 + $0xf98] sm:$0xff]  }
 0x1e9   : > { %7808 = vmatprep.subr.bf16.mxu0 %v8472_v17  ;;  %v8512_v17 = vld [vmem:[%s8685_s26 + $0xf68] sm:$0xff]  }
 0x1ea   : > { %7829 = vmatpush3.bf16.msra.mxu1 %v8471_v16  ;;  %v8509_v16 = vld [vmem:[%s8685_s26 + $0xf20] sm:$0xff]  }
 0x1eb   : > { %7830 = vmatprep.subr.bf16.mxu1 %v8474_v19  ;;  %v8514_v19 = vld [vmem:[%s8685_s26 + $0xfe8] sm:$0xff]  }
 0x1ec   : > { %7809 = vmatpush3.bf16.msra.mxu0 %v8473_v18  ;;  %v8511_v18 = vld [vmem:[%s8685_s26 + $0xfa0] sm:$0xff]  }
 0x1ed   : > { %7810 = vmatprep.subr.bf16.mxu0 %v8476_v21  ;;  %v8516_v21 = vld [vmem:[%s8685_s26 + $0xf70] sm:$0xff]  }
 0x1ee   : > { %7831 = vmatpush3.bf16.msra.mxu1 %v8475_v20  ;;  %v8513_v20 = vld [vmem:[%s8685_s26 + $0xf28] sm:$0xff]  }
 0x1ef   : > { %7832 = vmatprep.subr.bf16.mxu1 %v8478_v23  ;;  %v8515_v23 = vld [vmem:[%s8685_s26 + $0xfa8] sm:$0xff]  }
 0x1f0   : > { %7811 = vmatpush3.bf16.msra.mxu0 %v8477_v22 }
 0x1f1   : > { %7812 = vmatprep.subr.bf16.mxu0 %v8480_v25  ;;  %v8518_v25 = vld [vmem:[%s8685_s26 + $0xff0] sm:$0xff]  }
 0x1f2   : > { %v7510_v31 = vpop.f32.mrb[28].mxu0  ;;  %7833 = vmatpush3.bf16.msra.mxu1 %v8479_v24 }
 0x1f3   : > { %v7511_v33 = vpop.f32.mrb[29].mxu0  ;;  %7834 = vmatprep.subr.bf16.mxu1 %v8482_v27 }
 0x1f4   : > { %v7512_v35 = vadd.f32 %v7511_v33, %v7510_v31  ;;  %v7513_v30 = vpop.f32.mrb[30].mxu0  ;;  %v7532_v36 = vpop.f32.mrb[28].mxu1  ;;  %7813 = vmatpush3.bf16.msra.mxu0 %v8481_v26  ;;  %v8520_v31 = vld [vmem:[%s8685_s26 + $0xf78] sm:$0xff]  }
 0x1f5   : > { %v7514_v39 = vpop.f32.mrb[31].mxu0  ;;  %v7533_v40 = vpop.f32.mrb[29].mxu1  ;;  %7814 = vmatprep.subr.bf16.mxu0 %v8484_v29  ;;  %v8517_v29 = vld [vmem:[%s8685_s26 + $0xf30] sm:$0xff]  }
 0x1f6   : > { %v5668_v44 = vadd.f32 %v7512_v35, %v9237_v1  ;;  %v7534_v45 = vadd.f32 %v7533_v40, %v7532_v36  ;;  %7835 = vmatpush3.bf16.msra.mxu1 %v8483_v28  ;;  %v7535_v46 = vpop.f32.mrb[30].mxu1  ;;  %v8495_v1 = vld [vmem:[%s8685_s26 + $0xf80] sm:$0xff]   ;;  %v8519_v36 = vld [vmem:[%s8685_s26 + $0xfb0] sm:$0xff]   ;;  %v8521_v40 = vld [vmem:[%s8685_s26 + $0xf38] sm:$0xff]  }
 0x1f7   : > { %v7536_v48 = vpop.f32.mrb[31].mxu1  ;;  %7836 = vmatprep.subr.bf16.mxu1 %v8486_v34  ;;  %v1764_v46 = vcombine.high %v1748_v41, %v1748_v41 }
 0x1f8   : > { %v9278_v53 = vadd.f32 %v7534_v45, %v5668_v44  ;;  %7815 = vmatpush3.bf16.msra.mxu0 %v8485_v32  ;;  %v8524_v44 = vld [vmem:[%s8685_s26 + $0xfb8] sm:$0xff]   ;;  %v8526_v45 = vld [vmem:[%s8685_s26 + $0x1000] sm:$0xff]  }
 0x1f9   : > { %7816 = vmatprep.subr.bf16.mxu0 %v8488_v37  ;;  %v8527_v48 = vld [vmem:[%s8685_s26 + $0x1080] sm:$0xff]  }
 0x1fa   : > { %7837 = vmatpush3.bf16.msra.mxu1 %v8487_v47  ;;  %v8528_v47 = vld [vmem:[%s8685_s26 + $0x1048] sm:$0xff]  }
 0x1fb   : > { %7838 = vmatprep.subr.bf16.mxu1 %v8490_v49  ;;  %v8595_v49 = vmov 0.0  }
 0x1fc   : > { %7817 = vmatpush3.bf16.msra.mxu0 %v8489_v54  ;;  %v8532_v54 = vld [vmem:[%s8685_s26 + $0x1010] sm:$0xff]  }
 0x1fd   : > { %7846 = vmatprep.subr.bf16.mxu0 %v8492_v57  ;;  %v8535_v57 = vld [vmem:[%s8685_s26 + $0x1018] sm:$0xff]  }
 0x1fe   : > { %7839 = vmatpush3.bf16.msra.mxu1 %v8491_v59  ;;  %v8536_v59 = vld [vmem:[%s8685_s26 + $0x1098] sm:$0xff]  }
 0x1ff   : > { %6226 = vmatmul.mubr.bf16.vlgmr.msra.gmra.mrb[56].mxu0 %v1741_v56  ;;  %7868 = vmatprep.subr.bf16.mxu1 %v8494_v51  ;;  %v8533_v56 = vld [vmem:[%s8685_s26 + $0x1090] sm:$0xff]   ;;  %v8539_v51 = vld [vmem:[%s8685_s26 + $0x10a0] sm:$0xff]  }
 0x200   : > { %7847 = vmatpush3.bf16.msra.mxu0 %v8493_v62  ;;  %6305 = vmatprep.mubr.bf16.mxu0 %v1762_v61  ;;  %v8540_v61 = vld [vmem:[%s8685_s26 + $0x1068] sm:$0xff]   ;;  %v6639_v62 = vld.sshfl [vmem:[%s8664_s27 + $0x40] sm:$0x13 pattern:$0x75316420] }
 0x201   : > { %6266 = vmatmul.mubr.bf16.vlgmr.msra.gmra.mrb[56].mxu1 %v1763_v63  ;;  %7848 = vmatprep.subr.bf16.mxu0 %v8496_v0  ;;  %v1774_v63 = vcombine.high %v6639_v62, %v6639_v62  ;;  %v8541_v0 = vld [vmem:[%s8685_s26 + $0x1028] sm:$0xff]  }
 0x202   : > { %7869 = vmatpush3.bf16.msra.mxu1 %v8495_v1  ;;  %6345 = vmatprep.mubr.bf16.mxu1 %v1766_v2  ;;  %v8543_v1 = vld [vmem:[%s8685_s26 + $0x1070] sm:$0xff]  }
 0x203   : > { %7870 = vmatprep.subr.bf16.mxu1 %v8498_v3  ;;  %v1788_v2 = vrot.slane %v1774_v63, %v8723_v42 }
 0x204   : > { %7849 = vmatpush3.bf16.msra.mxu0 %v8497_v4  ;;  %v8542_v4 = vld [vmem:[%s8685_s26 + $0x10a8] sm:$0xff]  }
 0x205   : > { %7850 = vmatprep.subr.bf16.mxu0 %v8500_v5 }
 0x206   : > { %7871 = vmatpush3.bf16.msra.mxu1 %v8499_v6 }
 0x207   : > { %7872 = vmatprep.subr.bf16.mxu1 %v8502_v7 }
 0x208   : > { %7851 = vmatpush3.bf16.msra.mxu0 %v8501_v8 }
 0x209   : > { %7852 = vmatprep.subr.bf16.mxu0 %v8504_v9  ;;  %v8544_v9 = vld [vmem:[%s8685_s26 + $0x1030] sm:$0xff]  }
 0x20a   : > { %7873 = vmatpush3.bf16.msra.mxu1 %v8503_v10 }
 0x20b   : > { %7874 = vmatprep.subr.bf16.mxu1 %v8506_v11 }
 0x20c   : > { %7853 = vmatpush3.bf16.msra.mxu0 %v8505_v12  ;;  %v8546_v12 = vld [vmem:[%s8685_s26 + $0x1078] sm:$0xff]  }
 0x20d   : > { %7854 = vmatprep.subr.bf16.mxu0 %v8508_v13 }
 0x20e   : > { %7875 = vmatpush3.bf16.msra.mxu1 %v8507_v14 }
 0x20f   : > { %7876 = vmatprep.subr.bf16.mxu1 %v8510_v15 }
 0x210   : > { %7855 = vmatpush3.bf16.msra.mxu0 %v8509_v16  ;;  %v8545_v16 = vld [vmem:[%s8685_s26 + $0x10b0] sm:$0xff]  }
 0x211   : > { %7856 = vmatprep.subr.bf16.mxu0 %v8512_v17 }
 0x212   : > { %v7554_v22 = vpop.f32.mrb[32].mxu0  ;;  %7877 = vmatpush3.bf16.msra.mxu1 %v8511_v18 }
 0x213   : > { %v7555_v24 = vpop.f32.mrb[33].mxu0  ;;  %7878 = vmatprep.subr.bf16.mxu1 %v8514_v19  ;;  %v8547_v19 = vld [vmem:[%s8685_s26 + $0x1038] sm:$0xff]  }
 0x214   : > { %v7556_v26 = vadd.f32 %v7555_v24, %v7554_v22  ;;  %v7557_v27 = vpop.f32.mrb[34].mxu0  ;;  %v7576_v28 = vpop.f32.mrb[32].mxu1  ;;  %7857 = vmatpush3.bf16.msra.mxu0 %v8513_v20  ;;  %v1781_v20 = vrot.slane %v6639_v62, %v8723_v42 }
 0x215   : > { %v7558_v32 = vpop.f32.mrb[35].mxu0  ;;  %v7577_v33 = vpop.f32.mrb[33].mxu1  ;;  %7858 = vmatprep.subr.bf16.mxu0 %v8516_v21  ;;  %v8548_v21 = vld [vmem:[%s8685_s26 + $0x10b8] sm:$0xff]  }
 0x216   : > { %v5748_v34 = vadd.f32 %v7556_v26, %v9278_v53  ;;  %v7578_v35 = vadd.f32 %v7577_v33, %v7576_v28  ;;  %7879 = vmatpush3.bf16.msra.mxu1 %v8515_v23  ;;  %v7579_v30 = vpop.f32.mrb[34].mxu1  ;;  %v8530_v53 = vld [vmem:[%s8685_s26 + $0x1088] sm:$0xff]   ;;  %v1789_v22 = vcombine.high %v1781_v20, %v1781_v20 }
 0x217   : > { %v7580_v37 = vpop.f32.mrb[35].mxu1  ;;  %7880 = vmatprep.subr.bf16.mxu1 %v8518_v25 }
 0x218   : > { %v9318_v39 = vadd.f32 %v7578_v35, %v5748_v34  ;;  %7859 = vmatpush3.bf16.msra.mxu0 %v8517_v29 }
 0x219   : > { %7860 = vmatprep.subr.bf16.mxu0 %v8520_v31 }
 0x21a   : > { %7881 = vmatpush3.bf16.msra.mxu1 %v8519_v36 }
 0x21b   : > { %7882 = vmatprep.subr.bf16.mxu1 %v8522_v38 }
 0x21c   : > { %7861 = vmatpush3.bf16.msra.mxu0 %v8521_v40 }
 0x21d   : > { %7890 = vmatprep.subr.bf16.mxu0 %v8525_v43 }
 0x21e   : > { %7883 = vmatpush3.bf16.msra.mxu1 %v8524_v44 }
 0x21f   : > { %6306 = vmatmul.mubr.bf16.vlgmr.msra.gmra.mrb[60].mxu0 %v1748_v41  ;;  %7926 = vmatprep.subr.bf16.mxu1 %v8595_v49 }
 0x220   : > { %7891 = vmatpush3.bf16.msra.mxu0 %v8526_v45  ;;  %6385 = vmatprep.mubr.bf16.mxu0 %v1788_v2 }
 0x221   : > { %6346 = vmatmul.mubr.bf16.vlgmr.msra.gmra.mrb[60].mxu1 %v1764_v46  ;;  %7892 = vmatprep.subr.bf16.mxu0 %v8528_v47 }
 0x222   : > { %7927 = vmatpush3.bf16.msra.mxu1 %v8527_v48  ;;  %7942 = vmatprep.mubr.msk.bf16.mxu1 %vm8596_vm1, %v8595_v49 }
 0x223   : > { %7928 = vmatprep.subr.bf16.mxu1 %v8595_v49 }
 0x224   : > { %7893 = vmatpush3.bf16.msra.mxu0 %v8529_v50 }
 0x225   : > { %7894 = vmatprep.subr.bf16.mxu0 %v8531_v52 }
 0x226   : > { %7929 = vmatpush3.bf16.msra.mxu1 %v8530_v53 }
 0x227   : > { %7930 = vmatprep.subr.bf16.mxu1 %v8595_v49 }
 0x228   : > { %7895 = vmatpush3.bf16.msra.mxu0 %v8532_v54 }
 0x229   : > { %7896 = vmatprep.subr.bf16.mxu0 %v8534_v55 }
 0x22a   : > { %7931 = vmatpush3.bf16.msra.mxu1 %v8533_v56 }
 0x22b   : > { %7932 = vmatprep.subr.bf16.mxu1 %v8595_v49 }
 0x22c   : > { %7897 = vmatpush3.bf16.msra.mxu0 %v8535_v57 }
 0x22d   : > { %7898 = vmatprep.subr.bf16.mxu0 %v8537_v58 }
 0x22e   : > { %7933 = vmatpush3.bf16.msra.mxu1 %v8536_v59 }
 0x22f   : > { %7934 = vmatprep.subr.bf16.mxu1 %v8595_v49 }
 0x230   : > { %7899 = vmatpush3.bf16.msra.mxu0 %v8538_v60 }
 0x231   : > { %7900 = vmatprep.subr.bf16.mxu0 %v8540_v61 }
 0x232   : > { %v7598_v3 = vpop.f32.mrb[36].mxu0  ;;  %7935 = vmatpush3.bf16.msra.mxu1 %v8539_v51 }
 0x233   : > { %v7599_v5 = vpop.f32.mrb[37].mxu0  ;;  %7936 = vmatprep.subr.bf16.mxu1 %v8595_v49 }
 0x234   : > { %v7600_v6 = vadd.f32 %v7599_v5, %v7598_v3  ;;  %v7601_v7 = vpop.f32.mrb[38].mxu0  ;;  %v7620_v8 = vpop.f32.mrb[36].mxu1  ;;  %7901 = vmatpush3.bf16.msra.mxu0 %v8541_v0 }
 0x235   : > { %v7602_v10 = vpop.f32.mrb[39].mxu0  ;;  %v7621_v11 = vpop.f32.mrb[37].mxu1  ;;  %7902 = vmatprep.subr.bf16.mxu0 %v8543_v1 }
 0x236   : > { %v5828_v13 = vadd.f32 %v7600_v6, %v9318_v39  ;;  %v7622_v14 = vadd.f32 %v7621_v11, %v7620_v8  ;;  %7937 = vmatpush3.bf16.msra.mxu1 %v8542_v4  ;;  %v7623_v15 = vpop.f32.mrb[38].mxu1 }
 0x237   : > { %v7624_v17 = vpop.f32.mrb[39].mxu1  ;;  %7938 = vmatprep.subr.bf16.mxu1 %v8595_v49 }
 0x238   : > { %v5868_v18 = vadd.f32 %v7622_v14, %v5828_v13  ;;  %7903 = vmatpush3.bf16.msra.mxu0 %v8544_v9 }
 0x239   : > { %7904 = vmatprep.subr.bf16.mxu0 %v8546_v12 }
 0x23a   : > { %7939 = vmatpush3.bf16.msra.mxu1 %v8545_v16 }
 0x23b   : > { %7940 = vmatprep.subr.bf16.mxu1 %v8595_v49 }
 0x23c   : > { %7905 = vmatpush3.bf16.msra.mxu0 %v8547_v19 }
 0x23e   : > { %7941 = vmatpush3.bf16.msra.mxu1 %v8548_v21 }
 0x23f   : > { %6386 = vmatmul.mubr.bf16.vlgmr.msra.gmra.mrb[64].mxu0 %v1781_v20 }
 0x241   : > { %7943 = vmatmul.mubr.bf16.vlgmr.msra.gmra.mrb[64].mxu1 %v1789_v22 }
 0x252   : > { %v7642_v23 = vpop.f32.mrb[40].mxu0 }
 0x253   : > { %v7643_v24 = vpop.f32.mrb[41].mxu0 }
 0x254   : > { %v7644_v25 = vadd.f32 %v7643_v24, %v7642_v23  ;;  %v7645_v26 = vpop.f32.mrb[42].mxu0  ;;  %v7664_v27 = vpop.f32.mrb[40].mxu1 }
 0x255   : > { %v7646_v28 = vpop.f32.mrb[43].mxu0  ;;  %v7665_v29 = vpop.f32.mrb[41].mxu1 }
 0x256   : > { %v5908_v31 = vadd.f32 %v7644_v25, %v5868_v18  ;;  %v7666_v32 = vadd.f32 %v7665_v29, %v7664_v27  ;;  %v7667_v33 = vpop.f32.mrb[42].mxu1 }
 0x257   : > { %v7668_v42 = vpop.f32.mrb[43].mxu1 }
 0x258   : > { %v5948_v34 = vadd.f32 %v7666_v32, %v5908_v31 }
 0x272   : > { %v7686_v35 = vpop.f32.mrb[44].mxu0 }
 0x273   : > { %v7687_v30 = vpop.f32.mrb[45].mxu0 }
 0x274   : > { %v7688_v36 = vadd.f32 %v7687_v30, %v7686_v35  ;;  %v7689_v37 = vpop.f32.mrb[46].mxu0  ;;  %v7708_v38 = vpop.f32.mrb[44].mxu1 }
 0x275   : > { %v7690_v39 = vpop.f32.mrb[47].mxu0  ;;  %v7709_v40 = vpop.f32.mrb[45].mxu1 }
 0x276   : > { %v5988_v41 = vadd.f32 %v7688_v36, %v5948_v34  ;;  %v7710_v43 = vadd.f32 %v7709_v40, %v7708_v38  ;;  %v7711_v44 = vpop.f32.mrb[46].mxu1  ;;  %v284_v39 = vld [vmem:[#allocation2] sm:$0x3] }
 0x277   : > { %v7712_v45 = vpop.f32.mrb[47].mxu1  ;;  %v8549_v44 = vld [vmem:[%s8675_s10] sm:$0xff] (!%p7176_p9)  }
 0x278   : > { %v6028_v46 = vadd.f32 %v7710_v43, %v5988_v41  ;;  %v8597_v45 = vmov (!%p7176_p9), 0.0  }
 0x279   : > { %7946 = vmatprep.subr.bf16.mxu0 (!%p7176_p9), %v8597_v45  ;;  %7954 = vmatprep.mubr.msk.bf16.mxu0 (!%p7176_p9), %vm8598_vm3, %v8597_v45 }
 0x27a   : > { %7947 = vmatpush3.bf16.msra.mxu0 (!%p7176_p9), %v8549_v44 }
 0x27b   : > { %7948 = vmatprep.subr.bf16.mxu0 (!%p7176_p9), %v8597_v45 }
 0x292   : > { %v7730_v47 = vpop.f32.mrb[48].mxu0 }
 0x293   : > { %v7731_v48 = vpop.f32.mrb[49].mxu0 }
 0x294   : > { %v7732_v49 = vadd.f32 %v7731_v48, %v7730_v47  ;;  %v7733_v50 = vpop.f32.mrb[50].mxu0  ;;  %v7752_v52 = vpop.f32.mrb[48].mxu1  ;;  %v7177_v48 = vld [vmem:[%s267_s30] ss:$0 sm:$0xff] (!%p7176_p9) }
 0x295   : > { %v7734_v53 = vpop.f32.mrb[51].mxu0  ;;  %v7753_v54 = vpop.f32.mrb[49].mxu1  ;;  %v8551_v50 = vld [vmem:[%s8675_s10 + $0x10] sm:$0xff] (!%p7176_p9)  }
 0x296   : > { %v6068_v55 = vadd.f32 %v7732_v49, %v6028_v46  ;;  %v7754_v56 = vadd.f32 %v7753_v54, %v7752_v52  ;;  %v7755_v57 = vpop.f32.mrb[50].mxu1  ;;  %v8550_v46 = vld [vmem:[%s8675_s10 + $0x8] sm:$0xff] (!%p7176_p9)   ;;  %v8552_v53 = vld [vmem:[%s8675_s10 + $0x18] sm:$0xff] (!%p7176_p9)  }
 0x297   : > { %v7756_v58 = vpop.f32.mrb[51].mxu1  ;;  %7949 = vmatpush3.bf16.msra.mxu0 (!%p7176_p9), %v8550_v46 }
 0x298   : > { %v6108_v59 = vadd.f32 %v7754_v56, %v6068_v55  ;;  %7950 = vmatprep.subr.bf16.mxu0 (!%p7176_p9), %v8597_v45 }
 0x29b   : > { %7951 = vmatpush3.bf16.msra.mxu0 (!%p7176_p9), %v8551_v50 }
 0x29c   : > { %7952 = vmatprep.subr.bf16.mxu0 (!%p7176_p9), %v8597_v45 }
 0x29f   : > { %7953 = vmatpush3.bf16.msra.mxu0 (!%p7176_p9), %v8552_v53 }
 0x2b2   : > { %v7774_v60 = vpop.f32.mrb[52].mxu0 }
 0x2b3   : > { %v7775_v51 = vpop.f32.mrb[53].mxu0 }
 0x2b4   : > { %v7776_v61 = vadd.f32 %v7775_v51, %v7774_v60  ;;  %v7777_v62 = vpop.f32.mrb[54].mxu0  ;;  %v7796_v63 = vpop.f32.mrb[52].mxu1 }
 0x2b5   : > { %v7778_v0 = vpop.f32.mrb[55].mxu0  ;;  %v7797_v1 = vpop.f32.mrb[53].mxu1 }
 0x2b6   : > { %v6148_v2 = vadd.f32 %v7776_v61, %v6108_v59  ;;  %v7798_v3 = vadd.f32 %v7797_v1, %v7796_v63  ;;  %v7799_v4 = vpop.f32.mrb[54].mxu1 }
 0x2b7   : > { %v7800_v5 = vpop.f32.mrb[55].mxu1 }
 0x2b8   : > { %v6188_v6 = vadd.f32 %v7798_v3, %v6148_v2 }
 0x2d2   : > { %v7818_v7 = vpop.f32.mrb[56].mxu0 }
 0x2d3   : > { %v7819_v8 = vpop.f32.mrb[57].mxu0 }
 0x2d4   : > { %v7820_v9 = vadd.f32 %v7819_v8, %v7818_v7  ;;  %v7821_v10 = vpop.f32.mrb[58].mxu0  ;;  %v7840_v11 = vpop.f32.mrb[56].mxu1 }
 0x2d5   : > { %v7822_v12 = vpop.f32.mrb[59].mxu0  ;;  %v7841_v13 = vpop.f32.mrb[57].mxu1 }
 0x2d6   : > { %v6228_v14 = vadd.f32 %v7820_v9, %v6188_v6  ;;  %v7842_v15 = vadd.f32 %v7841_v13, %v7840_v11  ;;  %v7843_v16 = vpop.f32.mrb[58].mxu1 }
 0x2d7   : > { %v7844_v17 = vpop.f32.mrb[59].mxu1 }
 0x2d8   : > { %v6268_v18 = vadd.f32 %v7842_v15, %v6228_v14 }
 0x2f2   : > { %v7862_v19 = vpop.f32.mrb[60].mxu0 }
 0x2f3   : > { %v7863_v20 = vpop.f32.mrb[61].mxu0 }
 0x2f4   : > { %v7864_v21 = vadd.f32 %v7863_v20, %v7862_v19  ;;  %v7865_v22 = vpop.f32.mrb[62].mxu0  ;;  %v7884_v23 = vpop.f32.mrb[60].mxu1 }
 0x2f5   : > { %v7866_v24 = vpop.f32.mrb[63].mxu0  ;;  %v7885_v25 = vpop.f32.mrb[61].mxu1 }
 0x2f6   : > { %v6308_v26 = vadd.f32 %v7864_v21, %v6268_v18  ;;  %v7886_v27 = vadd.f32 %v7885_v25, %v7884_v23  ;;  %v7887_v28 = vpop.f32.mrb[62].mxu1 }
 0x2f7   : > { %v7888_v29 = vpop.f32.mrb[63].mxu1 }
 0x2f8   : > { %v6348_v31 = vadd.f32 %v7886_v27, %v6308_v26 }
 0x312   : > { %v7906_v32 = vpop.f32.mrb[64].mxu0 }
 0x313   : > { %v7907_v33 = vpop.f32.mrb[65].mxu0 }
 0x314   : > { %v7908_v42 = vadd.f32 %v7907_v33, %v7906_v32  ;;  %v7909_v34 = vpop.f32.mrb[66].mxu0  ;;  %v6427_v35 = vpop.f32.mrb[64].mxu1 }
 0x315   : > { %v7910_v30 = vpop.f32.mrb[67].mxu0  ;;  %v7944_v36 = vpop.f32.mrb[65].mxu1 }
 0x316   : > { %v6388_v37 = vadd.f32 %v7908_v42, %v6348_v31  ;;  %v6430_v38 = vpop.f32.mrb[66].mxu1  ;;  %6439 = sbr.rel (%p7176_p9) target bundleno = 1025 (0x401), region = 44 }
 0x317   : > { %v7945_v40 = vpop.f32.mrb[67].mxu1 }
 0x318   : > { %v6428_v41 = vadd.f32 %v6427_v35, %v6388_v37 }
 0x31a   : > { %v6433_v43 = vadd.f32 %v6428_v41, %v284_v39 }
 0x31c   : > { %6435 = vst.msk [vmem:[#allocation2] sm:$0x3] %vm6434_vm2, %v6433_v43 }
 0x323   : > { %v6440_v47 = vld [vmem:[#allocation2] sm:$0x3] }
 0x324   : > { %v6448_v49 = vadd.f32 %v7177_v48, %v6440_v47 }
 0x326   : > { %v6449_v52 = vmax.f32 %v6448_v49, 0.0 }
 0x328   : > { %v6450_v54 = vpack.c.bf16 %v6449_v52, %v6449_v52 }
 0x32a   : > { %7955 = vmatmul.mubr.msk.bf16.vlgmr.msra.gmra.mrb[0].mxu0 %vm6483_vm4, %v6450_v54 }
 0x3fd   : > { %v6521_v55 = vpop.f32.mrb[0].mxu0 }
 0x3fe   : > { %6528 = vst.msk [vmem:[%s8680_s14] sm:$0x3] %vm6527_vm5, %v6521_v55  ;;  %v7956_v56 = vpop.f32.mrb[1].mxu0 }
 0x3ff   : > { %v6524_v57 = vpop.f32.mrb[2].mxu0 }
 0x400   : > { %v7957_v58 = vpop.f32.mrb[3].mxu0 }
 0x401 PF: > { %s14_s19 = sadd.s32 1, %s8591_s19   ;;  %s9392_s15 = smov %s8583_s17 }
 0x402   : > { %p11_p10 = scmp.ge.s32.totalorder %s14_s19, 6   ;;  %s9393_s16 = smov %s8587_s18 }
 0x403   : > { %s9394_s17 = smov %s9397_s20  ;;  %s9395_s18 = smov %s9401_s21 }
 0x404   :  { %13 = sbr.rel (!%p11_p10) target bundleno = 3 (0x3), region = 83 }

</bundles_post_ra>
